<compile_context>
chip_gen: v7x
topology: tpu7x:2x2x1
jax: 0.10.0
libtpu: 0.0.40
codegen_flags: <defaults>
</compile_context>

<pallas_src>
import functools
import math

import jax
import jax.numpy as jnp
from jax import lax
from jax.experimental import pallas as pl
from jax.experimental.pallas import tpu as pltpu

LATERAL_COEFF = 0.2
VERTICAL_COEFF = 0.1
BN_EPS = 1e-5


# --------------------------------------------------------------------------- #
# Kernel
# --------------------------------------------------------------------------- #
def glom_kernel(iters, n_levels, seq_len,
                x_ref, h0_ref, w_in_ref, b_in_ref, w_ud_ref, b_ud_ref,
                out_ref):
    L, T = n_levels, seq_len
    N, H = h0_ref.shape            # N = L*T (level-major, time flattened)
    NU = N - T                     # rows through the fused up/down net: (L-1)*T
    W = 2 * H                      # fused [up | down] feature width
    lat = 0.5 * LATERAL_COEFF
    rem = 1.0 - LATERAL_COEFF - VERTICAL_COEFF
    inv_nu = 1.0 / NU

    # ---- loop-invariant values (small: biases, masks, in_net output) --------
    b_in = b_in_ref[...]           # (3, Kp) f32
    b_ud = b_ud_ref[...]           # (5, W)  f32: [b1 | b2 | b3 | vert*gamma | vert*beta]
    row = lax.broadcasted_iota(jnp.int32, (N, 1), 0)
    not_last_t = (row % T) != (T - 1)          # kills t = T-1 wrap-around slots

    # in_net(x) does not depend on hidden -> compute once (bf16 MXU, f32 acc).
    # Last layer + bias are pre-scaled by 0.5*VERTICAL_COEFF host-side.
    h = jnp.maximum(jnp.dot(x_ref[...], w_in_ref[0],
                            preferred_element_type=jnp.float32) + b_in[0:1], 0.0)
    h = jnp.maximum(jnp.dot(h.astype(jnp.bfloat16), w_in_ref[1],
                            preferred_element_type=jnp.float32) + b_in[1:2], 0.0)
    in_x = (jnp.dot(h.astype(jnp.bfloat16), w_in_ref[2],
                    preferred_element_type=jnp.float32) + b_in[2:3])[:, :H]   # (T, H)

    # Recurrent state lives in the output ref (no final copy, no concats).
    out_ref[...] = h0_ref[...]

    def step(_, carry):
        hidden = out_ref[...]                                   # (N, H) f32

        # ---- vertical: up_net(hidden[:-1]) & down_net(hidden[1:]) fused into
        #      ONE block-diagonal MLP; layer-1 weights stacked host-side so the
        #      lane-concat operand needs a single MXU push (3 pushes total).
        hb = hidden.astype(jnp.bfloat16)
        ud_in = jnp.concatenate([hb[:NU], hb[T:]], axis=1)      # (NU, 2H) bf16
        h1 = jnp.maximum(jnp.dot(ud_in, w_ud_ref[0],
                                 preferred_element_type=jnp.float32) + b_ud[0:1], 0.0)
        h2 = jnp.maximum(jnp.dot(h1.astype(jnp.bfloat16), w_ud_ref[1],
                                 preferred_element_type=jnp.float32) + b_ud[1:2], 0.0)
        y = jnp.dot(h2.astype(jnp.bfloat16), w_ud_ref[2],
                    preferred_element_type=jnp.float32) + b_ud[2:3]   # (NU, W) f32

        # ---- fused BatchNorm (training mode, biased var), one-pass stats -----
        mean = jnp.sum(y, axis=0, keepdims=True) * inv_nu
        ex2 = jnp.sum(y * y, axis=0, keepdims=True) * inv_nu
        var = jnp.maximum(ex2 - mean * mean, 0.0)
        scale = b_ud[3:4] * lax.rsqrt(var + BN_EPS)             # gamma pre-scaled by vert
        yv = y * scale + (b_ud[4:5] - mean * scale)             # = vert*[up_out | dn_out]
        up_v = yv[:, :H]                                        # vert * up_net(hidden[:-1])
        dn_v = yv[:, H:]                                        # vert * down_net(hidden[1:])

        # ---- lateral: hierarchical attention --------------------------------
        hid_next = pltpu.roll(hidden, N - 1, axis=0)            # row r -> hidden[r+1] (XLU)
        attn = jnp.maximum(jnp.sum(hidden * hid_next, axis=1, keepdims=True), 0.0)
        attn = jnp.where(not_last_t, attn, 0.0)                 # only t in [0, T-2]
        rev = attn
        for k in range(1, L):        # reverse cumsum over levels: masked VPU adds;
            rev = rev + jnp.where(   # shifts are multiples of T=8 -> tile-aligned.
                row < (L - k) * T, jnp.roll(attn, -k * T, axis=0), 0.0)
        hrcl = lat - lat * jnp.exp(-rev)                        # lat*(1-exp(-rev)); 0 @ t=T-1
        h_lat = hrcl * hid_next + pltpu.roll(hrcl * hidden, 1, axis=0)
        base = rem * hidden + h_lat

        # ---- combine into three 8-aligned row blocks (no axis-0 concats) -----
        out_ref[pl.ds(0, T), :] = base[:T] + in_x + dn_v[:T]
        if NU > T:
            out_ref[pl.ds(T, NU - T), :] = base[T:NU] + up_v[:NU - T] + dn_v[T:]
        out_ref[pl.ds(NU, T), :] = base[NU:] + up_v[NU - T:]    # top level: no down input
        return carry

    # Fully unrolled recurrence (iters is static) for LLO scheduler visibility.
    lax.fori_loop(0, iters, step, 0, unroll=True)


# --------------------------------------------------------------------------- #
# Host-side parameter packing (26 tensors -> 4 buffers, constants folded in)
# --------------------------------------------------------------------------- #
def pack_glom_params(d_in, h_dim, in_p, up_p, dn_p):
    H = h_dim
    vert = 0.5 * VERTICAL_COEFF
    iw1, ib1, iw2, ib2, iw3, ib3 = in_p
    uw1, ub1, uw2, ub2, uw3, ub3, ug, ubt = up_p
    dw1, db1, dw2, db2, dw3, db3, dg, dbt = dn_p

    n1, n2 = uw1.shape[1], uw2.shape[1]          # 24, 16
    assert n1 <= H and n2 <= H, "fusion assumes hidden MLP widths <= h_dim"
    Kp = max(d_in, H, iw1.shape[1], iw2.shape[1])

    def square(wm, scale=1.0):                    # zero-pad a weight into (Kp, Kp)
        return jnp.zeros((Kp, Kp), jnp.float32).at[:wm.shape[0], :wm.shape[1]].set(scale * wm)

    def rowpad(b, width, scale=1.0):
        return jnp.zeros((1, width), jnp.float32).at[:, :b.shape[1]].set(scale * b)

    # in_net: last layer pre-scaled by vert (feedback #6); weights stored bf16.
    w_in = jnp.stack([square(iw1), square(iw2), square(iw3, vert)]).astype(jnp.bfloat16)
    b_in = jnp.concatenate([rowpad(ib1, Kp), rowpad(ib2, Kp), rowpad(ib3, Kp, vert)], 0)

    W = 2 * H
    # Layer-1 up/down weights stacked vertically -> ONE matmul on [up_in | dn_in].
    w1 = (jnp.zeros((W, W), jnp.float32)
          .at[:H, :n1].set(uw1).at[H:, n1:2 * n1].set(dw1))
    w2 = (jnp.zeros((W, W), jnp.float32)
          .at[:n1, :n2].set(uw2).at[n1:2 * n1, n2:2 * n2].set(dw2))
    w3 = (jnp.zeros((W, W), jnp.float32)
          .at[:n2, :H].set(uw3).at[n2:2 * n2, H:].set(dw3))
    w_ud = jnp.stack([w1, w2, w3]).astype(jnp.bfloat16)                           # (3, W, W)

    def cat2(a, b, scale=1.0):                    # [a | b] padded to width W
        r = jnp.zeros((1, W), jnp.float32)
        r = r.at[:, :a.shape[1]].set(scale * a)
        return r.at[:, a.shape[1]:a.shape[1] + b.shape[1]].set(scale * b)

    # gamma/beta rows pre-scaled by vert (feedback #6); biases stay f32.
    b_ud = jnp.concatenate([cat2(ub1, db1), cat2(ub2, db2), cat2(ub3, db3),
                            cat2(ug, dg, vert), cat2(ubt, dbt, vert)], axis=0)    # (5, W)
    return w_in, b_in, w_ud, b_ud


# --------------------------------------------------------------------------- #
# Wrapper
# --------------------------------------------------------------------------- #
def trajectory_glom(x, hidden0, in_params, up_params, down_params, iters=10):
    L, T, H = hidden0.shape
    d_in = x.shape[-1]
    w_in, b_in, w_ud, b_ud = pack_glom_params(d_in, H, in_params, up_params, down_params)
    Kp = w_in.shape[-1]
    x_pad = jnp.zeros((T, Kp), jnp.bfloat16).at[:, :d_in].set(x.astype(jnp.bfloat16))
    h0_flat = hidden0.reshape(L * T, H).astype(jnp.float32)

    inputs = [x_pad, h0_flat, w_in, b_in, w_ud, b_ud]
    vmem = pl.BlockSpec(memory_space=pltpu.MemorySpace.VMEM)
    out_flat = pl.pallas_call(
        functools.partial(glom_kernel, iters, L, T),
        out_shape=jax.ShapeDtypeStruct((L * T, H), jnp.float32),
        in_specs=[vmem] * len(inputs),
        out_specs=vmem,
    )(*inputs)
    return out_flat.reshape(L, T, H)


# --------------------------------------------------------------------------- #
# Parameter init (deterministic, PyTorch-Linear-style)
# --------------------------------------------------------------------------- #
def feedforward_params(key, d_in, d_out, h_dims, final_batchnorm):
    """Weights stored (in, out); biases / BN params (1, out)."""
    dims = [d_in] + list(h_dims) + [d_out]
    params = []
    for i in range(len(dims) - 1):
        key, kw, kb = jax.random.split(key, 3)
        bound = 1.0 / math.sqrt(dims[i])
        w = jax.random.uniform(kw, (dims[i], dims[i + 1]), jnp.float32, -bound, bound)
        b = jax.random.uniform(kb, (1, dims[i + 1]), jnp.float32, -bound, bound)
        params += [w, b]
    if final_batchnorm:
        params += [jnp.ones((1, d_out), jnp.float32),    # gamma
                   jnp.zeros((1, d_out), jnp.float32)]   # beta
    return params


if __name__ == "__main__":
    d_in, h_dim, n_levels, T, iters = 12, 32, 5, 8, 10

    key = jax.random.PRNGKey(0)
    kx, kh, k_in, k_up, k_dn = jax.random.split(key, 5)

    x = jax.random.normal(kx, (T, d_in), jnp.float32)
    # torch.randn(n_levels, T, h_dim) * 0.01 equivalent (deterministic here).
    hidden0 = jax.random.normal(kh, (n_levels, T, h_dim), jnp.float32) * 0.01

    in_p = feedforward_params(k_in, d_in, h_dim, [24, 16], final_batchnorm=False)
    up_p = feedforward_params(k_up, h_dim, h_dim, [24, 16], final_batchnorm=True)
    dn_p = feedforward_params(k_dn, h_dim, h_dim, [24, 16], final_batchnorm=True)

    out = trajectory_glom(x, hidden0, in_p, up_p, dn_p, iters=iters)
    jax.block_until_ready(out)
    assert out.shape == (n_levels, T, h_dim) and out.dtype == jnp.float32
    assert bool(jnp.all(jnp.isfinite(out)))
    print("KERNEL_OK")
</pallas_src>

<mosaic_0001>
module attributes {stable_mosaic.version = 11 : i64} {
  func.func @glom_kernel(%arg0: memref<8x32xbf16, #tpu.memory_space<vmem>>, %arg1: memref<40x32xf32, #tpu.memory_space<vmem>>, %arg2: memref<3x32x32xbf16, #tpu.memory_space<vmem>>, %arg3: memref<3x32xf32, #tpu.memory_space<vmem>>, %arg4: memref<3x64x64xbf16, #tpu.memory_space<vmem>>, %arg5: memref<5x64xf32, #tpu.memory_space<vmem>>, %arg6: memref<40x32xf32, #tpu.memory_space<vmem>>) attributes {dimension_semantics = [], scalar_prefetch = 0 : i64, scratch_operands = 0 : i64, tpu.core_type = #tpu.core_type<tc>} {
    %c0 = arith.constant 0 : index
    %c0_0 = arith.constant 0 : index
    %0 = vector.load %arg3[%c0, %c0_0] : memref<3x32xf32, #tpu.memory_space<vmem>>, vector<3x32xf32>
    %c0_1 = arith.constant 0 : index
    %c0_2 = arith.constant 0 : index
    %1 = vector.load %arg5[%c0_1, %c0_2] : memref<5x64xf32, #tpu.memory_space<vmem>>, vector<5x64xf32>
    %2 = tpu.iota {dimensions = array<i32: 0>} : vector<40x1xi32>
    %c8_i32 = arith.constant 8 : i32
    %c0_i32 = arith.constant 0 : i32
    %3 = arith.cmpi eq, %c8_i32, %c0_i32 : i32
    %c1_i32 = arith.constant 1 : i32
    %4 = arith.select %3, %c1_i32, %c8_i32 : i32
    %5 = vector.broadcast %4 : i32 to vector<40x1xi32>
    %6 = arith.remsi %2, %5 : vector<40x1xi32>
    %c0_i32_3 = arith.constant 0 : i32
    %7 = vector.broadcast %c0_i32_3 : i32 to vector<40x1xi32>
    %8 = arith.cmpi ne, %6, %7 : vector<40x1xi32>
    %c0_i32_4 = arith.constant 0 : i32
    %9 = vector.broadcast %c0_i32_4 : i32 to vector<40x1xi32>
    %10 = arith.cmpi slt, %6, %9 : vector<40x1xi32>
    %c0_i32_5 = arith.constant 0 : i32
    %11 = arith.cmpi slt, %4, %c0_i32_5 : i32
    %12 = vector.broadcast %11 : i1 to vector<40x1xi1>
    %13 = vector.broadcast %12 : vector<40x1xi1> to vector<40x1xi1>
    %14 = arith.xori %10, %13 : vector<40x1xi1>
    %15 = arith.andi %14, %8 : vector<40x1xi1>
    %16 = vector.broadcast %4 : i32 to vector<40x1xi32>
    %17 = arith.addi %6, %16 : vector<40x1xi32>
    %18 = arith.select %15, %17, %6 : vector<40x1xi1>, vector<40x1xi32>
    %c7_i32 = arith.constant 7 : i32
    %19 = vector.broadcast %c7_i32 : i32 to vector<40x1xi32>
    %20 = arith.cmpi ne, %18, %19 : vector<40x1xi32>
    %c0_6 = arith.constant 0 : index
    %c0_7 = arith.constant 0 : index
    %21 = vector.load %arg0[%c0_6, %c0_7] : memref<8x32xbf16, #tpu.memory_space<vmem>>, vector<8x32xbf16>
    %c0_8 = arith.constant 0 : index
    %c0_9 = arith.constant 0 : index
    %c0_10 = arith.constant 0 : index
    %22 = vector.load %arg2[%c0_8, %c0_9, %c0_10] : memref<3x32x32xbf16, #tpu.memory_space<vmem>>, vector<1x32x32xbf16>
    %23 = vector.shape_cast %22 : vector<1x32x32xbf16> to vector<32x32xbf16>
    %cst = arith.constant dense<0.000000e+00> : vector<8x32xf32>
    %24 = tpu.matmul %21, %23, %cst {dimension_numbers = #tpu.dot_dimension_numbers<[1], [0], [0], [1], [0, 0, 1, 1], [], []>} : vector<8x32xbf16>, vector<32x32xbf16>, vector<8x32xf32> -> vector<8x32xf32>
    %25 = vector.extract_strided_slice %0 {offsets = [0, 0], sizes = [1, 32], strides = [1, 1]} : vector<3x32xf32> to vector<1x32xf32>
    %26 = vector.broadcast %25 : vector<1x32xf32> to vector<8x32xf32>
    %27 = arith.addf %24, %26 : vector<8x32xf32>
    %cst_11 = arith.constant 0.000000e+00 : f32
    %28 = vector.broadcast %cst_11 : f32 to vector<8x32xf32>
    %29 = arith.maximumf %27, %28 : vector<8x32xf32>
    %30 = arith.truncf %29 : vector<8x32xf32> to vector<8x32xbf16>
    %c1 = arith.constant 1 : index
    %c0_12 = arith.constant 0 : index
    %c0_13 = arith.constant 0 : index
    %31 = vector.load %arg2[%c1, %c0_12, %c0_13] : memref<3x32x32xbf16, #tpu.memory_space<vmem>>, vector<1x32x32xbf16>
    %32 = vector.shape_cast %31 : vector<1x32x32xbf16> to vector<32x32xbf16>
    %cst_14 = arith.constant dense<0.000000e+00> : vector<8x32xf32>
    %33 = tpu.matmul %30, %32, %cst_14 {dimension_numbers = #tpu.dot_dimension_numbers<[1], [0], [0], [1], [0, 0, 1, 1], [], []>} : vector<8x32xbf16>, vector<32x32xbf16>, vector<8x32xf32> -> vector<8x32xf32>
    %34 = vector.extract_strided_slice %0 {offsets = [1, 0], sizes = [1, 32], strides = [1, 1]} : vector<3x32xf32> to vector<1x32xf32>
    %35 = vector.broadcast %34 : vector<1x32xf32> to vector<8x32xf32>
    %36 = arith.addf %33, %35 : vector<8x32xf32>
    %cst_15 = arith.constant 0.000000e+00 : f32
    %37 = vector.broadcast %cst_15 : f32 to vector<8x32xf32>
    %38 = arith.maximumf %36, %37 : vector<8x32xf32>
    %39 = arith.truncf %38 : vector<8x32xf32> to vector<8x32xbf16>
    %c2 = arith.constant 2 : index
    %c0_16 = arith.constant 0 : index
    %c0_17 = arith.constant 0 : index
    %40 = vector.load %arg2[%c2, %c0_16, %c0_17] : memref<3x32x32xbf16, #tpu.memory_space<vmem>>, vector<1x32x32xbf16>
    %41 = vector.shape_cast %40 : vector<1x32x32xbf16> to vector<32x32xbf16>
    %cst_18 = arith.constant dense<0.000000e+00> : vector<8x32xf32>
    %42 = tpu.matmul %39, %41, %cst_18 {dimension_numbers = #tpu.dot_dimension_numbers<[1], [0], [0], [1], [0, 0, 1, 1], [], []>} : vector<8x32xbf16>, vector<32x32xbf16>, vector<8x32xf32> -> vector<8x32xf32>
    %43 = vector.extract_strided_slice %0 {offsets = [2, 0], sizes = [1, 32], strides = [1, 1]} : vector<3x32xf32> to vector<1x32xf32>
    %44 = vector.broadcast %43 : vector<1x32xf32> to vector<8x32xf32>
    %45 = arith.addf %42, %44 : vector<8x32xf32>
    %c0_19 = arith.constant 0 : index
    %c0_20 = arith.constant 0 : index
    %46 = vector.load %arg1[%c0_19, %c0_20] : memref<40x32xf32, #tpu.memory_space<vmem>>, vector<40x32xf32>
    %c0_21 = arith.constant 0 : index
    %c0_22 = arith.constant 0 : index
    %47 = vector.load %arg6[%c0_21, %c0_22] : memref<40x32xf32, #tpu.memory_space<vmem>>, vector<40x32xf32>
    tpu.vector_store %arg6[%c0_21, %c0_22], %46 {strides = array<i32>} : memref<40x32xf32, #tpu.memory_space<vmem>>, vector<40x32xf32>,
    %c0_i32_23 = arith.constant 0 : i32
    %c0_24 = arith.constant 0 : index
    %c0_25 = arith.constant 0 : index
    %48 = vector.load %arg6[%c0_24, %c0_25] : memref<40x32xf32, #tpu.memory_space<vmem>>, vector<40x32xf32>
    %49 = arith.truncf %48 : vector<40x32xf32> to vector<40x32xbf16>
    %50 = vector.extract_strided_slice %49 {offsets = [0, 0], sizes = [32, 32], strides = [1, 1]} : vector<40x32xbf16> to vector<32x32xbf16>
    %51 = vector.extract_strided_slice %49 {offsets = [8, 0], sizes = [32, 32], strides = [1, 1]} : vector<40x32xbf16> to vector<32x32xbf16>
    %52 = tpu.concatenate %50, %51 in 1 : vector<32x32xbf16>, vector<32x32xbf16> -> vector<32x64xbf16>
    %c0_26 = arith.constant 0 : index
    %c0_27 = arith.constant 0 : index
    %c0_28 = arith.constant 0 : index
    %53 = vector.load %arg4[%c0_26, %c0_27, %c0_28] : memref<3x64x64xbf16, #tpu.memory_space<vmem>>, vector<1x64x64xbf16>
    %54 = vector.shape_cast %53 : vector<1x64x64xbf16> to vector<64x64xbf16>
    %cst_29 = arith.constant dense<0.000000e+00> : vector<32x64xf32>
    %55 = tpu.matmul %52, %54, %cst_29 {dimension_numbers = #tpu.dot_dimension_numbers<[1], [0], [0], [1], [0, 0, 1, 1], [], []>} : vector<32x64xbf16>, vector<64x64xbf16>, vector<32x64xf32> -> vector<32x64xf32>
    %56 = vector.extract_strided_slice %1 {offsets = [0, 0], sizes = [1, 64], strides = [1, 1]} : vector<5x64xf32> to vector<1x64xf32>
    %57 = vector.broadcast %56 : vector<1x64xf32> to vector<32x64xf32>
    %58 = arith.addf %55, %57 : vector<32x64xf32>
    %cst_30 = arith.constant 0.000000e+00 : f32
    %59 = vector.broadcast %cst_30 : f32 to vector<32x64xf32>
    %60 = arith.maximumf %58, %59 : vector<32x64xf32>
    %61 = arith.truncf %60 : vector<32x64xf32> to vector<32x64xbf16>
    %c1_31 = arith.constant 1 : index
    %c0_32 = arith.constant 0 : index
    %c0_33 = arith.constant 0 : index
    %62 = vector.load %arg4[%c1_31, %c0_32, %c0_33] : memref<3x64x64xbf16, #tpu.memory_space<vmem>>, vector<1x64x64xbf16>
    %63 = vector.shape_cast %62 : vector<1x64x64xbf16> to vector<64x64xbf16>
    %cst_34 = arith.constant dense<0.000000e+00> : vector<32x64xf32>
    %64 = tpu.matmul %61, %63, %cst_34 {dimension_numbers = #tpu.dot_dimension_numbers<[1], [0], [0], [1], [0, 0, 1, 1], [], []>} : vector<32x64xbf16>, vector<64x64xbf16>, vector<32x64xf32> -> vector<32x64xf32>
    %65 = vector.extract_strided_slice %1 {offsets = [1, 0], sizes = [1, 64], strides = [1, 1]} : vector<5x64xf32> to vector<1x64xf32>
    %66 = vector.broadcast %65 : vector<1x64xf32> to vector<32x64xf32>
    %67 = arith.addf %64, %66 : vector<32x64xf32>
    %cst_35 = arith.constant 0.000000e+00 : f32
    %68 = vector.broadcast %cst_35 : f32 to vector<32x64xf32>
    %69 = arith.maximumf %67, %68 : vector<32x64xf32>
    %70 = arith.truncf %69 : vector<32x64xf32> to vector<32x64xbf16>
    %c2_36 = arith.constant 2 : index
    %c0_37 = arith.constant 0 : index
    %c0_38 = arith.constant 0 : index
    %71 = vector.load %arg4[%c2_36, %c0_37, %c0_38] : memref<3x64x64xbf16, #tpu.memory_space<vmem>>, vector<1x64x64xbf16>
    %72 = vector.shape_cast %71 : vector<1x64x64xbf16> to vector<64x64xbf16>
    %cst_39 = arith.constant dense<0.000000e+00> : vector<32x64xf32>
    %73 = tpu.matmul %70, %72, %cst_39 {dimension_numbers = #tpu.dot_dimension_numbers<[1], [0], [0], [1], [0, 0, 1, 1], [], []>} : vector<32x64xbf16>, vector<64x64xbf16>, vector<32x64xf32> -> vector<32x64xf32>
    %74 = vector.extract_strided_slice %1 {offsets = [2, 0], sizes = [1, 64], strides = [1, 1]} : vector<5x64xf32> to vector<1x64xf32>
    %75 = vector.broadcast %74 : vector<1x64xf32> to vector<32x64xf32>
    %76 = arith.addf %73, %75 : vector<32x64xf32>
    %cst_40 = arith.constant dense<0.000000e+00> : vector<64xf32>
    %77 = vector.multi_reduction <add>, %76, %cst_40 [0] : vector<32x64xf32> to vector<64xf32>
    %78 = vector.shape_cast %77 : vector<64xf32> to vector<1x64xf32>
    %cst_41 = arith.constant 3.125000e-02 : f32
    %79 = vector.broadcast %cst_41 : f32 to vector<1x64xf32>
    %80 = arith.mulf %78, %79 : vector<1x64xf32>
    %81 = arith.mulf %76, %76 : vector<32x64xf32>
    %cst_42 = arith.constant dense<0.000000e+00> : vector<64xf32>
    %82 = vector.multi_reduction <add>, %81, %cst_42 [0] : vector<32x64xf32> to vector<64xf32>
    %83 = vector.shape_cast %82 : vector<64xf32> to vector<1x64xf32>
    %cst_43 = arith.constant 3.125000e-02 : f32
    %84 = vector.broadcast %cst_43 : f32 to vector<1x64xf32>
    %85 = arith.mulf %83, %84 : vector<1x64xf32>
    %86 = arith.mulf %80, %80 : vector<1x64xf32>
    %87 = arith.subf %85, %86 : vector<1x64xf32>
    %cst_44 = arith.constant 0.000000e+00 : f32
    %88 = vector.broadcast %cst_44 : f32 to vector<1x64xf32>
    %89 = arith.maximumf %87, %88 : vector<1x64xf32>
    %90 = vector.extract_strided_slice %1 {offsets = [3, 0], sizes = [1, 64], strides = [1, 1]} : vector<5x64xf32> to vector<1x64xf32>
    %cst_45 = arith.constant 9.99999974E-6 : f32
    %91 = vector.broadcast %cst_45 : f32 to vector<1x64xf32>
    %92 = arith.addf %89, %91 : vector<1x64xf32>
    %93 = math.rsqrt %92 : vector<1x64xf32>
    %94 = arith.mulf %90, %93 : vector<1x64xf32>
    %95 = vector.broadcast %94 : vector<1x64xf32> to vector<32x64xf32>
    %96 = arith.mulf %76, %95 : vector<32x64xf32>
    %97 = vector.extract_strided_slice %1 {offsets = [4, 0], sizes = [1, 64], strides = [1, 1]} : vector<5x64xf32> to vector<1x64xf32>
    %98 = arith.mulf %80, %94 : vector<1x64xf32>
    %99 = arith.subf %97, %98 : vector<1x64xf32>
    %100 = vector.broadcast %99 : vector<1x64xf32> to vector<32x64xf32>
    %101 = arith.addf %96, %100 : vector<32x64xf32>
    %102 = vector.extract_strided_slice %101 {offsets = [0, 0], sizes = [32, 32], strides = [1, 1]} : vector<32x64xf32> to vector<32x32xf32>
    %103 = vector.extract_strided_slice %101 {offsets = [0, 32], sizes = [32, 32], strides = [1, 1]} : vector<32x64xf32> to vector<32x32xf32>
    %c39_i32 = arith.constant 39 : i32
    %104 = tpu.dynamic_rotate %48 by %c39_i32 dim 0 : vector<40x32xf32>, i32 -> vector<40x32xf32>
    %105 = arith.mulf %48, %104 : vector<40x32xf32>
    %cst_46 = arith.constant dense<0.000000e+00> : vector<40xf32>
    %106 = vector.multi_reduction <add>, %105, %cst_46 [1] : vector<40x32xf32> to vector<40xf32>
    %107 = vector.shape_cast %106 : vector<40xf32> to vector<40x1xf32>
    %cst_47 = arith.constant 0.000000e+00 : f32
    %108 = vector.broadcast %cst_47 : f32 to vector<40x1xf32>
    %109 = arith.maximumf %107, %108 : vector<40x1xf32>
    %cst_48 = arith.constant 0.000000e+00 : f32
    %110 = vector.broadcast %cst_48 : f32 to vector<40x1xf32>
    %111 = arith.select %20, %109, %110 : vector<40x1xi1>, vector<40x1xf32>
    %c32_i32 = arith.constant 32 : i32
    %112 = vector.broadcast %c32_i32 : i32 to vector<40x1xi32>
    %113 = arith.cmpi slt, %2, %112 : vector<40x1xi32>
    %114 = vector.extract_strided_slice %111 {offsets = [8, 0], sizes = [32, 1], strides = [1, 1]} : vector<40x1xf32> to vector<32x1xf32>
    %115 = vector.extract_strided_slice %111 {offsets = [0, 0], sizes = [8, 1], strides = [1, 1]} : vector<40x1xf32> to vector<8x1xf32>
    %116 = tpu.concatenate %114, %115 in 0 : vector<32x1xf32>, vector<8x1xf32> -> vector<40x1xf32>
    %cst_49 = arith.constant 0.000000e+00 : f32
    %117 = vector.broadcast %cst_49 : f32 to vector<40x1xf32>
    %118 = arith.select %113, %116, %117 : vector<40x1xi1>, vector<40x1xf32>
    %119 = arith.addf %111, %118 : vector<40x1xf32>
    %c24_i32 = arith.constant 24 : i32
    %120 = vector.broadcast %c24_i32 : i32 to vector<40x1xi32>
    %121 = arith.cmpi slt, %2, %120 : vector<40x1xi32>
    %122 = vector.extract_strided_slice %111 {offsets = [16, 0], sizes = [24, 1], strides = [1, 1]} : vector<40x1xf32> to vector<24x1xf32>
    %123 = vector.extract_strided_slice %111 {offsets = [0, 0], sizes = [16, 1], strides = [1, 1]} : vector<40x1xf32> to vector<16x1xf32>
    %124 = tpu.concatenate %122, %123 in 0 : vector<24x1xf32>, vector<16x1xf32> -> vector<40x1xf32>
    %cst_50 = arith.constant 0.000000e+00 : f32
    %125 = vector.broadcast %cst_50 : f32 to vector<40x1xf32>
    %126 = arith.select %121, %124, %125 : vector<40x1xi1>, vector<40x1xf32>
    %127 = arith.addf %119, %126 : vector<40x1xf32>
    %c16_i32 = arith.constant 16 : i32
    %128 = vector.broadcast %c16_i32 : i32 to vector<40x1xi32>
    %129 = arith.cmpi slt, %2, %128 : vector<40x1xi32>
    %130 = vector.extract_strided_slice %111 {offsets = [24, 0], sizes = [16, 1], strides = [1, 1]} : vector<40x1xf32> to vector<16x1xf32>
    %131 = vector.extract_strided_slice %111 {offsets = [0, 0], sizes = [24, 1], strides = [1, 1]} : vector<40x1xf32> to vector<24x1xf32>
    %132 = tpu.concatenate %130, %131 in 0 : vector<16x1xf32>, vector<24x1xf32> -> vector<40x1xf32>
    %cst_51 = arith.constant 0.000000e+00 : f32
    %133 = vector.broadcast %cst_51 : f32 to vector<40x1xf32>
    %134 = arith.select %129, %132, %133 : vector<40x1xi1>, vector<40x1xf32>
    %135 = arith.addf %127, %134 : vector<40x1xf32>
    %c8_i32_52 = arith.constant 8 : i32
    %136 = vector.broadcast %c8_i32_52 : i32 to vector<40x1xi32>
    %137 = arith.cmpi slt, %2, %136 : vector<40x1xi32>
    %138 = vector.extract_strided_slice %111 {offsets = [32, 0], sizes = [8, 1], strides = [1, 1]} : vector<40x1xf32> to vector<8x1xf32>
    %139 = vector.extract_strided_slice %111 {offsets = [0, 0], sizes = [32, 1], strides = [1, 1]} : vector<40x1xf32> to vector<32x1xf32>
    %140 = tpu.concatenate %138, %139 in 0 : vector<8x1xf32>, vector<32x1xf32> -> vector<40x1xf32>
    %cst_53 = arith.constant 0.000000e+00 : f32
    %141 = vector.broadcast %cst_53 : f32 to vector<40x1xf32>
    %142 = arith.select %137, %140, %141 : vector<40x1xi1>, vector<40x1xf32>
    %143 = arith.addf %135, %142 : vector<40x1xf32>
    %cst_54 = arith.constant 0.000000e+00 : f32
    %144 = vector.broadcast %cst_54 : f32 to vector<40x1xf32>
    %145 = arith.subf %144, %143 : vector<40x1xf32>
    %146 = math.exp %145 : vector<40x1xf32>
    %cst_55 = arith.constant 1.000000e-01 : f32
    %147 = vector.broadcast %cst_55 : f32 to vector<40x1xf32>
    %148 = arith.mulf %147, %146 : vector<40x1xf32>
    %cst_56 = arith.constant 1.000000e-01 : f32
    %149 = vector.broadcast %cst_56 : f32 to vector<40x1xf32>
    %150 = arith.subf %149, %148 : vector<40x1xf32>
    %151 = vector.broadcast %150 : vector<40x1xf32> to vector<40x32xf32>
    %152 = arith.mulf %151, %104 : vector<40x32xf32>
    %153 = vector.broadcast %150 : vector<40x1xf32> to vector<40x32xf32>
    %154 = arith.mulf %153, %48 : vector<40x32xf32>
    %c1_i32_57 = arith.constant 1 : i32
    %155 = tpu.dynamic_rotate %154 by %c1_i32_57 dim 0 : vector<40x32xf32>, i32 -> vector<40x32xf32>
    %156 = arith.addf %152, %155 : vector<40x32xf32>
    %cst_58 = arith.constant 0.699999988 : f32
    %157 = vector.broadcast %cst_58 : f32 to vector<40x32xf32>
    %158 = arith.mulf %157, %48 : vector<40x32xf32>
    %159 = arith.addf %158, %156 : vector<40x32xf32>
    %160 = vector.extract_strided_slice %159 {offsets = [0, 0], sizes = [8, 32], strides = [1, 1]} : vector<40x32xf32> to vector<8x32xf32>
    %161 = arith.addf %160, %45 : vector<8x32xf32>
    %162 = vector.extract_strided_slice %103 {offsets = [0, 0], sizes = [8, 32], strides = [1, 1]} : vector<32x32xf32> to vector<8x32xf32>
    %163 = arith.addf %161, %162 : vector<8x32xf32>
    %c0_59 = arith.constant 0 : index
    %c0_60 = arith.constant 0 : index
    %164 = vector.load %arg6[%c0_59, %c0_60] : memref<40x32xf32, #tpu.memory_space<vmem>>, vector<8x32xf32>
    tpu.vector_store %arg6[%c0_59, %c0_60], %163 {strides = array<i32>} : memref<40x32xf32, #tpu.memory_space<vmem>>, vector<8x32xf32>,
    %165 = vector.extract_strided_slice %159 {offsets = [8, 0], sizes = [24, 32], strides = [1, 1]} : vector<40x32xf32> to vector<24x32xf32>
    %166 = vector.extract_strided_slice %102 {offsets = [0, 0], sizes = [24, 32], strides = [1, 1]} : vector<32x32xf32> to vector<24x32xf32>
    %167 = arith.addf %165, %166 : vector<24x32xf32>
    %168 = vector.extract_strided_slice %103 {offsets = [8, 0], sizes = [24, 32], strides = [1, 1]} : vector<32x32xf32> to vector<24x32xf32>
    %169 = arith.addf %167, %168 : vector<24x32xf32>
    %c8 = arith.constant 8 : index
    %c0_61 = arith.constant 0 : index
    %170 = vector.load %arg6[%c8, %c0_61] : memref<40x32xf32, #tpu.memory_space<vmem>>, vector<24x32xf32>
    tpu.vector_store %arg6[%c8, %c0_61], %169 {strides = array<i32>} : memref<40x32xf32, #tpu.memory_space<vmem>>, vector<24x32xf32>,
    %171 = vector.extract_strided_slice %159 {offsets = [32, 0], sizes = [8, 32], strides = [1, 1]} : vector<40x32xf32> to vector<8x32xf32>
    %172 = vector.extract_strided_slice %102 {offsets = [24, 0], sizes = [8, 32], strides = [1, 1]} : vector<32x32xf32> to vector<8x32xf32>
    %173 = arith.addf %171, %172 : vector<8x32xf32>
    %c32 = arith.constant 32 : index
    %c0_62 = arith.constant 0 : index
    %174 = vector.load %arg6[%c32, %c0_62] : memref<40x32xf32, #tpu.memory_space<vmem>>, vector<8x32xf32>
    tpu.vector_store %arg6[%c32, %c0_62], %173 {strides = array<i32>} : memref<40x32xf32, #tpu.memory_space<vmem>>, vector<8x32xf32>,
    %c1_i32_63 = arith.constant 1 : i32
    %c0_64 = arith.constant 0 : index
    %c0_65 = arith.constant 0 : index
    %175 = vector.load %arg6[%c0_64, %c0_65] : memref<40x32xf32, #tpu.memory_space<vmem>>, vector<40x32xf32>
    %176 = arith.truncf %175 : vector<40x32xf32> to vector<40x32xbf16>
    %177 = vector.extract_strided_slice %176 {offsets = [0, 0], sizes = [32, 32], strides = [1, 1]} : vector<40x32xbf16> to vector<32x32xbf16>
    %178 = vector.extract_strided_slice %176 {offsets = [8, 0], sizes = [32, 32], strides = [1, 1]} : vector<40x32xbf16> to vector<32x32xbf16>
    %179 = tpu.concatenate %177, %178 in 1 : vector<32x32xbf16>, vector<32x32xbf16> -> vector<32x64xbf16>
    %c0_66 = arith.constant 0 : index
    %c0_67 = arith.constant 0 : index
    %c0_68 = arith.constant 0 : index
    %180 = vector.load %arg4[%c0_66, %c0_67, %c0_68] : memref<3x64x64xbf16, #tpu.memory_space<vmem>>, vector<1x64x64xbf16>
    %181 = vector.shape_cast %180 : vector<1x64x64xbf16> to vector<64x64xbf16>
    %cst_69 = arith.constant dense<0.000000e+00> : vector<32x64xf32>
    %182 = tpu.matmul %179, %181, %cst_69 {dimension_numbers = #tpu.dot_dimension_numbers<[1], [0], [0], [1], [0, 0, 1, 1], [], []>} : vector<32x64xbf16>, vector<64x64xbf16>, vector<32x64xf32> -> vector<32x64xf32>
    %183 = vector.extract_strided_slice %1 {offsets = [0, 0], sizes = [1, 64], strides = [1, 1]} : vector<5x64xf32> to vector<1x64xf32>
    %184 = vector.broadcast %183 : vector<1x64xf32> to vector<32x64xf32>
    %185 = arith.addf %182, %184 : vector<32x64xf32>
    %cst_70 = arith.constant 0.000000e+00 : f32
    %186 = vector.broadcast %cst_70 : f32 to vector<32x64xf32>
    %187 = arith.maximumf %185, %186 : vector<32x64xf32>
    %188 = arith.truncf %187 : vector<32x64xf32> to vector<32x64xbf16>
    %c1_71 = arith.constant 1 : index
    %c0_72 = arith.constant 0 : index
    %c0_73 = arith.constant 0 : index
    %189 = vector.load %arg4[%c1_71, %c0_72, %c0_73] : memref<3x64x64xbf16, #tpu.memory_space<vmem>>, vector<1x64x64xbf16>
    %190 = vector.shape_cast %189 : vector<1x64x64xbf16> to vector<64x64xbf16>
    %cst_74 = arith.constant dense<0.000000e+00> : vector<32x64xf32>
    %191 = tpu.matmul %188, %190, %cst_74 {dimension_numbers = #tpu.dot_dimension_numbers<[1], [0], [0], [1], [0, 0, 1, 1], [], []>} : vector<32x64xbf16>, vector<64x64xbf16>, vector<32x64xf32> -> vector<32x64xf32>
    %192 = vector.extract_strided_slice %1 {offsets = [1, 0], sizes = [1, 64], strides = [1, 1]} : vector<5x64xf32> to vector<1x64xf32>
    %193 = vector.broadcast %192 : vector<1x64xf32> to vector<32x64xf32>
    %194 = arith.addf %191, %193 : vector<32x64xf32>
    %cst_75 = arith.constant 0.000000e+00 : f32
    %195 = vector.broadcast %cst_75 : f32 to vector<32x64xf32>
    %196 = arith.maximumf %194, %195 : vector<32x64xf32>
    %197 = arith.truncf %196 : vector<32x64xf32> to vector<32x64xbf16>
    %c2_76 = arith.constant 2 : index
    %c0_77 = arith.constant 0 : index
    %c0_78 = arith.constant 0 : index
    %198 = vector.load %arg4[%c2_76, %c0_77, %c0_78] : memref<3x64x64xbf16, #tpu.memory_space<vmem>>, vector<1x64x64xbf16>
    %199 = vector.shape_cast %198 : vector<1x64x64xbf16> to vector<64x64xbf16>
    %cst_79 = arith.constant dense<0.000000e+00> : vector<32x64xf32>
    %200 = tpu.matmul %197, %199, %cst_79 {dimension_numbers = #tpu.dot_dimension_numbers<[1], [0], [0], [1], [0, 0, 1, 1], [], []>} : vector<32x64xbf16>, vector<64x64xbf16>, vector<32x64xf32> -> vector<32x64xf32>
    %201 = vector.extract_strided_slice %1 {offsets = [2, 0], sizes = [1, 64], strides = [1, 1]} : vector<5x64xf32> to vector<1x64xf32>
    %202 = vector.broadcast %201 : vector<1x64xf32> to vector<32x64xf32>
    %203 = arith.addf %200, %202 : vector<32x64xf32>
    %cst_80 = arith.constant dense<0.000000e+00> : vector<64xf32>
    %204 = vector.multi_reduction <add>, %203, %cst_80 [0] : vector<32x64xf32> to vector<64xf32>
    %205 = vector.shape_cast %204 : vector<64xf32> to vector<1x64xf32>
    %cst_81 = arith.constant 3.125000e-02 : f32
    %206 = vector.broadcast %cst_81 : f32 to vector<1x64xf32>
    %207 = arith.mulf %205, %206 : vector<1x64xf32>
    %208 = arith.mulf %203, %203 : vector<32x64xf32>
    %cst_82 = arith.constant dense<0.000000e+00> : vector<64xf32>
    %209 = vector.multi_reduction <add>, %208, %cst_82 [0] : vector<32x64xf32> to vector<64xf32>
    %210 = vector.shape_cast %209 : vector<64xf32> to vector<1x64xf32>
    %cst_83 = arith.constant 3.125000e-02 : f32
    %211 = vector.broadcast %cst_83 : f32 to vector<1x64xf32>
    %212 = arith.mulf %210, %211 : vector<1x64xf32>
    %213 = arith.mulf %207, %207 : vector<1x64xf32>
    %214 = arith.subf %212, %213 : vector<1x64xf32>
    %cst_84 = arith.constant 0.000000e+00 : f32
    %215 = vector.broadcast %cst_84 : f32 to vector<1x64xf32>
    %216 = arith.maximumf %214, %215 : vector<1x64xf32>
    %217 = vector.extract_strided_slice %1 {offsets = [3, 0], sizes = [1, 64], strides = [1, 1]} : vector<5x64xf32> to vector<1x64xf32>
    %cst_85 = arith.constant 9.99999974E-6 : f32
    %218 = vector.broadcast %cst_85 : f32 to vector<1x64xf32>
    %219 = arith.addf %216, %218 : vector<1x64xf32>
    %220 = math.rsqrt %219 : vector<1x64xf32>
    %221 = arith.mulf %217, %220 : vector<1x64xf32>
    %222 = vector.broadcast %221 : vector<1x64xf32> to vector<32x64xf32>
    %223 = arith.mulf %203, %222 : vector<32x64xf32>
    %224 = vector.extract_strided_slice %1 {offsets = [4, 0], sizes = [1, 64], strides = [1, 1]} : vector<5x64xf32> to vector<1x64xf32>
    %225 = arith.mulf %207, %221 : vector<1x64xf32>
    %226 = arith.subf %224, %225 : vector<1x64xf32>
    %227 = vector.broadcast %226 : vector<1x64xf32> to vector<32x64xf32>
    %228 = arith.addf %223, %227 : vector<32x64xf32>
    %229 = vector.extract_strided_slice %228 {offsets = [0, 0], sizes = [32, 32], strides = [1, 1]} : vector<32x64xf32> to vector<32x32xf32>
    %230 = vector.extract_strided_slice %228 {offsets = [0, 32], sizes = [32, 32], strides = [1, 1]} : vector<32x64xf32> to vector<32x32xf32>
    %c39_i32_86 = arith.constant 39 : i32
    %231 = tpu.dynamic_rotate %175 by %c39_i32_86 dim 0 : vector<40x32xf32>, i32 -> vector<40x32xf32>
    %232 = arith.mulf %175, %231 : vector<40x32xf32>
    %cst_87 = arith.constant dense<0.000000e+00> : vector<40xf32>
    %233 = vector.multi_reduction <add>, %232, %cst_87 [1] : vector<40x32xf32> to vector<40xf32>
    %234 = vector.shape_cast %233 : vector<40xf32> to vector<40x1xf32>
    %cst_88 = arith.constant 0.000000e+00 : f32
    %235 = vector.broadcast %cst_88 : f32 to vector<40x1xf32>
    %236 = arith.maximumf %234, %235 : vector<40x1xf32>
    %cst_89 = arith.constant 0.000000e+00 : f32
    %237 = vector.broadcast %cst_89 : f32 to vector<40x1xf32>
    %238 = arith.select %20, %236, %237 : vector<40x1xi1>, vector<40x1xf32>
    %c32_i32_90 = arith.constant 32 : i32
    %239 = vector.broadcast %c32_i32_90 : i32 to vector<40x1xi32>
    %240 = arith.cmpi slt, %2, %239 : vector<40x1xi32>
    %241 = vector.extract_strided_slice %238 {offsets = [8, 0], sizes = [32, 1], strides = [1, 1]} : vector<40x1xf32> to vector<32x1xf32>
    %242 = vector.extract_strided_slice %238 {offsets = [0, 0], sizes = [8, 1], strides = [1, 1]} : vector<40x1xf32> to vector<8x1xf32>
    %243 = tpu.concatenate %241, %242 in 0 : vector<32x1xf32>, vector<8x1xf32> -> vector<40x1xf32>
    %cst_91 = arith.constant 0.000000e+00 : f32
    %244 = vector.broadcast %cst_91 : f32 to vector<40x1xf32>
    %245 = arith.select %240, %243, %244 : vector<40x1xi1>, vector<40x1xf32>
    %246 = arith.addf %238, %245 : vector<40x1xf32>
    %c24_i32_92 = arith.constant 24 : i32
    %247 = vector.broadcast %c24_i32_92 : i32 to vector<40x1xi32>
    %248 = arith.cmpi slt, %2, %247 : vector<40x1xi32>
    %249 = vector.extract_strided_slice %238 {offsets = [16, 0], sizes = [24, 1], strides = [1, 1]} : vector<40x1xf32> to vector<24x1xf32>
    %250 = vector.extract_strided_slice %238 {offsets = [0, 0], sizes = [16, 1], strides = [1, 1]} : vector<40x1xf32> to vector<16x1xf32>
    %251 = tpu.concatenate %249, %250 in 0 : vector<24x1xf32>, vector<16x1xf32> -> vector<40x1xf32>
    %cst_93 = arith.constant 0.000000e+00 : f32
    %252 = vector.broadcast %cst_93 : f32 to vector<40x1xf32>
    %253 = arith.select %248, %251, %252 : vector<40x1xi1>, vector<40x1xf32>
    %254 = arith.addf %246, %253 : vector<40x1xf32>
    %c16_i32_94 = arith.constant 16 : i32
    %255 = vector.broadcast %c16_i32_94 : i32 to vector<40x1xi32>
    %256 = arith.cmpi slt, %2, %255 : vector<40x1xi32>
    %257 = vector.extract_strided_slice %238 {offsets = [24, 0], sizes = [16, 1], strides = [1, 1]} : vector<40x1xf32> to vector<16x1xf32>
    %258 = vector.extract_strided_slice %238 {offsets = [0, 0], sizes = [24, 1], strides = [1, 1]} : vector<40x1xf32> to vector<24x1xf32>
    %259 = tpu.concatenate %257, %258 in 0 : vector<16x1xf32>, vector<24x1xf32> -> vector<40x1xf32>
    %cst_95 = arith.constant 0.000000e+00 : f32
    %260 = vector.broadcast %cst_95 : f32 to vector<40x1xf32>
    %261 = arith.select %256, %259, %260 : vector<40x1xi1>, vector<40x1xf32>
    %262 = arith.addf %254, %261 : vector<40x1xf32>
    %c8_i32_96 = arith.constant 8 : i32
    %263 = vector.broadcast %c8_i32_96 : i32 to vector<40x1xi32>
    %264 = arith.cmpi slt, %2, %263 : vector<40x1xi32>
    %265 = vector.extract_strided_slice %238 {offsets = [32, 0], sizes = [8, 1], strides = [1, 1]} : vector<40x1xf32> to vector<8x1xf32>
    %266 = vector.extract_strided_slice %238 {offsets = [0, 0], sizes = [32, 1], strides = [1, 1]} : vector<40x1xf32> to vector<32x1xf32>
    %267 = tpu.concatenate %265, %266 in 0 : vector<8x1xf32>, vector<32x1xf32> -> vector<40x1xf32>
    %cst_97 = arith.constant 0.000000e+00 : f32
    %268 = vector.broadcast %cst_97 : f32 to vector<40x1xf32>
    %269 = arith.select %264, %267, %268 : vector<40x1xi1>, vector<40x1xf32>
    %270 = arith.addf %262, %269 : vector<40x1xf32>
    %cst_98 = arith.constant 0.000000e+00 : f32
    %271 = vector.broadcast %cst_98 : f32 to vector<40x1xf32>
    %272 = arith.subf %271, %270 : vector<40x1xf32>
    %273 = math.exp %272 : vector<40x1xf32>
    %cst_99 = arith.constant 1.000000e-01 : f32
    %274 = vector.broadcast %cst_99 : f32 to vector<40x1xf32>
    %275 = arith.mulf %274, %273 : vector<40x1xf32>
    %cst_100 = arith.constant 1.000000e-01 : f32
    %276 = vector.broadcast %cst_100 : f32 to vector<40x1xf32>
    %277 = arith.subf %276, %275 : vector<40x1xf32>
    %278 = vector.broadcast %277 : vector<40x1xf32> to vector<40x32xf32>
    %279 = arith.mulf %278, %231 : vector<40x32xf32>
    %280 = vector.broadcast %277 : vector<40x1xf32> to vector<40x32xf32>
    %281 = arith.mulf %280, %175 : vector<40x32xf32>
    %c1_i32_101 = arith.constant 1 : i32
    %282 = tpu.dynamic_rotate %281 by %c1_i32_101 dim 0 : vector<40x32xf32>, i32 -> vector<40x32xf32>
    %283 = arith.addf %279, %282 : vector<40x32xf32>
    %cst_102 = arith.constant 0.699999988 : f32
    %284 = vector.broadcast %cst_102 : f32 to vector<40x32xf32>
    %285 = arith.mulf %284, %175 : vector<40x32xf32>
    %286 = arith.addf %285, %283 : vector<40x32xf32>
    %287 = vector.extract_strided_slice %286 {offsets = [0, 0], sizes = [8, 32], strides = [1, 1]} : vector<40x32xf32> to vector<8x32xf32>
    %288 = arith.addf %287, %45 : vector<8x32xf32>
    %289 = vector.extract_strided_slice %230 {offsets = [0, 0], sizes = [8, 32], strides = [1, 1]} : vector<32x32xf32> to vector<8x32xf32>
    %290 = arith.addf %288, %289 : vector<8x32xf32>
    %c0_103 = arith.constant 0 : index
    %c0_104 = arith.constant 0 : index
    %291 = vector.load %arg6[%c0_103, %c0_104] : memref<40x32xf32, #tpu.memory_space<vmem>>, vector<8x32xf32>
    tpu.vector_store %arg6[%c0_103, %c0_104], %290 {strides = array<i32>} : memref<40x32xf32, #tpu.memory_space<vmem>>, vector<8x32xf32>,
    %292 = vector.extract_strided_slice %286 {offsets = [8, 0], sizes = [24, 32], strides = [1, 1]} : vector<40x32xf32> to vector<24x32xf32>
    %293 = vector.extract_strided_slice %229 {offsets = [0, 0], sizes = [24, 32], strides = [1, 1]} : vector<32x32xf32> to vector<24x32xf32>
    %294 = arith.addf %292, %293 : vector<24x32xf32>
    %295 = vector.extract_strided_slice %230 {offsets = [8, 0], sizes = [24, 32], strides = [1, 1]} : vector<32x32xf32> to vector<24x32xf32>
    %296 = arith.addf %294, %295 : vector<24x32xf32>
    %c8_105 = arith.constant 8 : index
    %c0_106 = arith.constant 0 : index
    %297 = vector.load %arg6[%c8_105, %c0_106] : memref<40x32xf32, #tpu.memory_space<vmem>>, vector<24x32xf32>
    tpu.vector_store %arg6[%c8_105, %c0_106], %296 {strides = array<i32>} : memref<40x32xf32, #tpu.memory_space<vmem>>, vector<24x32xf32>,
    %298 = vector.extract_strided_slice %286 {offsets = [32, 0], sizes = [8, 32], strides = [1, 1]} : vector<40x32xf32> to vector<8x32xf32>
    %299 = vector.extract_strided_slice %229 {offsets = [24, 0], sizes = [8, 32], strides = [1, 1]} : vector<32x32xf32> to vector<8x32xf32>
    %300 = arith.addf %298, %299 : vector<8x32xf32>
    %c32_107 = arith.constant 32 : index
    %c0_108 = arith.constant 0 : index
    %301 = vector.load %arg6[%c32_107, %c0_108] : memref<40x32xf32, #tpu.memory_space<vmem>>, vector<8x32xf32>
    tpu.vector_store %arg6[%c32_107, %c0_108], %300 {strides = array<i32>} : memref<40x32xf32, #tpu.memory_space<vmem>>, vector<8x32xf32>,
    %c2_i32 = arith.constant 2 : i32
    %c0_109 = arith.constant 0 : index
    %c0_110 = arith.constant 0 : index
    %302 = vector.load %arg6[%c0_109, %c0_110] : memref<40x32xf32, #tpu.memory_space<vmem>>, vector<40x32xf32>
    %303 = arith.truncf %302 : vector<40x32xf32> to vector<40x32xbf16>
    %304 = vector.extract_strided_slice %303 {offsets = [0, 0], sizes = [32, 32], strides = [1, 1]} : vector<40x32xbf16> to vector<32x32xbf16>
    %305 = vector.extract_strided_slice %303 {offsets = [8, 0], sizes = [32, 32], strides = [1, 1]} : vector<40x32xbf16> to vector<32x32xbf16>
    %306 = tpu.concatenate %304, %305 in 1 : vector<32x32xbf16>, vector<32x32xbf16> -> vector<32x64xbf16>
    %c0_111 = arith.constant 0 : index
    %c0_112 = arith.constant 0 : index
    %c0_113 = arith.constant 0 : index
    %307 = vector.load %arg4[%c0_111, %c0_112, %c0_113] : memref<3x64x64xbf16, #tpu.memory_space<vmem>>, vector<1x64x64xbf16>
    %308 = vector.shape_cast %307 : vector<1x64x64xbf16> to vector<64x64xbf16>
    %cst_114 = arith.constant dense<0.000000e+00> : vector<32x64xf32>
    %309 = tpu.matmul %306, %308, %cst_114 {dimension_numbers = #tpu.dot_dimension_numbers<[1], [0], [0], [1], [0, 0, 1, 1], [], []>} : vector<32x64xbf16>, vector<64x64xbf16>, vector<32x64xf32> -> vector<32x64xf32>
    %310 = vector.extract_strided_slice %1 {offsets = [0, 0], sizes = [1, 64], strides = [1, 1]} : vector<5x64xf32> to vector<1x64xf32>
    %311 = vector.broadcast %310 : vector<1x64xf32> to vector<32x64xf32>
    %312 = arith.addf %309, %311 : vector<32x64xf32>
    %cst_115 = arith.constant 0.000000e+00 : f32
    %313 = vector.broadcast %cst_115 : f32 to vector<32x64xf32>
    %314 = arith.maximumf %312, %313 : vector<32x64xf32>
    %315 = arith.truncf %314 : vector<32x64xf32> to vector<32x64xbf16>
    %c1_116 = arith.constant 1 : index
    %c0_117 = arith.constant 0 : index
    %c0_118 = arith.constant 0 : index
    %316 = vector.load %arg4[%c1_116, %c0_117, %c0_118] : memref<3x64x64xbf16, #tpu.memory_space<vmem>>, vector<1x64x64xbf16>
    %317 = vector.shape_cast %316 : vector<1x64x64xbf16> to vector<64x64xbf16>
    %cst_119 = arith.constant dense<0.000000e+00> : vector<32x64xf32>
    %318 = tpu.matmul %315, %317, %cst_119 {dimension_numbers = #tpu.dot_dimension_numbers<[1], [0], [0], [1], [0, 0, 1, 1], [], []>} : vector<32x64xbf16>, vector<64x64xbf16>, vector<32x64xf32> -> vector<32x64xf32>
    %319 = vector.extract_strided_slice %1 {offsets = [1, 0], sizes = [1, 64], strides = [1, 1]} : vector<5x64xf32> to vector<1x64xf32>
    %320 = vector.broadcast %319 : vector<1x64xf32> to vector<32x64xf32>
    %321 = arith.addf %318, %320 : vector<32x64xf32>
    %cst_120 = arith.constant 0.000000e+00 : f32
    %322 = vector.broadcast %cst_120 : f32 to vector<32x64xf32>
    %323 = arith.maximumf %321, %322 : vector<32x64xf32>
    %324 = arith.truncf %323 : vector<32x64xf32> to vector<32x64xbf16>
    %c2_121 = arith.constant 2 : index
    %c0_122 = arith.constant 0 : index
    %c0_123 = arith.constant 0 : index
    %325 = vector.load %arg4[%c2_121, %c0_122, %c0_123] : memref<3x64x64xbf16, #tpu.memory_space<vmem>>, vector<1x64x64xbf16>
    %326 = vector.shape_cast %325 : vector<1x64x64xbf16> to vector<64x64xbf16>
    %cst_124 = arith.constant dense<0.000000e+00> : vector<32x64xf32>
    %327 = tpu.matmul %324, %326, %cst_124 {dimension_numbers = #tpu.dot_dimension_numbers<[1], [0], [0], [1], [0, 0, 1, 1], [], []>} : vector<32x64xbf16>, vector<64x64xbf16>, vector<32x64xf32> -> vector<32x64xf32>
    %328 = vector.extract_strided_slice %1 {offsets = [2, 0], sizes = [1, 64], strides = [1, 1]} : vector<5x64xf32> to vector<1x64xf32>
    %329 = vector.broadcast %328 : vector<1x64xf32> to vector<32x64xf32>
    %330 = arith.addf %327, %329 : vector<32x64xf32>
    %cst_125 = arith.constant dense<0.000000e+00> : vector<64xf32>
    %331 = vector.multi_reduction <add>, %330, %cst_125 [0] : vector<32x64xf32> to vector<64xf32>
    %332 = vector.shape_cast %331 : vector<64xf32> to vector<1x64xf32>
    %cst_126 = arith.constant 3.125000e-02 : f32
    %333 = vector.broadcast %cst_126 : f32 to vector<1x64xf32>
    %334 = arith.mulf %332, %333 : vector<1x64xf32>
    %335 = arith.mulf %330, %330 : vector<32x64xf32>
    %cst_127 = arith.constant dense<0.000000e+00> : vector<64xf32>
    %336 = vector.multi_reduction <add>, %335, %cst_127 [0] : vector<32x64xf32> to vector<64xf32>
    %337 = vector.shape_cast %336 : vector<64xf32> to vector<1x64xf32>
    %cst_128 = arith.constant 3.125000e-02 : f32
    %338 = vector.broadcast %cst_128 : f32 to vector<1x64xf32>
    %339 = arith.mulf %337, %338 : vector<1x64xf32>
    %340 = arith.mulf %334, %334 : vector<1x64xf32>
    %341 = arith.subf %339, %340 : vector<1x64xf32>
    %cst_129 = arith.constant 0.000000e+00 : f32
    %342 = vector.broadcast %cst_129 : f32 to vector<1x64xf32>
    %343 = arith.maximumf %341, %342 : vector<1x64xf32>
    %344 = vector.extract_strided_slice %1 {offsets = [3, 0], sizes = [1, 64], strides = [1, 1]} : vector<5x64xf32> to vector<1x64xf32>
    %cst_130 = arith.constant 9.99999974E-6 : f32
    %345 = vector.broadcast %cst_130 : f32 to vector<1x64xf32>
    %346 = arith.addf %343, %345 : vector<1x64xf32>
    %347 = math.rsqrt %346 : vector<1x64xf32>
    %348 = arith.mulf %344, %347 : vector<1x64xf32>
    %349 = vector.broadcast %348 : vector<1x64xf32> to vector<32x64xf32>
    %350 = arith.mulf %330, %349 : vector<32x64xf32>
    %351 = vector.extract_strided_slice %1 {offsets = [4, 0], sizes = [1, 64], strides = [1, 1]} : vector<5x64xf32> to vector<1x64xf32>
    %352 = arith.mulf %334, %348 : vector<1x64xf32>
    %353 = arith.subf %351, %352 : vector<1x64xf32>
    %354 = vector.broadcast %353 : vector<1x64xf32> to vector<32x64xf32>
    %355 = arith.addf %350, %354 : vector<32x64xf32>
    %356 = vector.extract_strided_slice %355 {offsets = [0, 0], sizes = [32, 32], strides = [1, 1]} : vector<32x64xf32> to vector<32x32xf32>
    %357 = vector.extract_strided_slice %355 {offsets = [0, 32], sizes = [32, 32], strides = [1, 1]} : vector<32x64xf32> to vector<32x32xf32>
    %c39_i32_131 = arith.constant 39 : i32
    %358 = tpu.dynamic_rotate %302 by %c39_i32_131 dim 0 : vector<40x32xf32>, i32 -> vector<40x32xf32>
    %359 = arith.mulf %302, %358 : vector<40x32xf32>
    %cst_132 = arith.constant dense<0.000000e+00> : vector<40xf32>
    %360 = vector.multi_reduction <add>, %359, %cst_132 [1] : vector<40x32xf32> to vector<40xf32>
    %361 = vector.shape_cast %360 : vector<40xf32> to vector<40x1xf32>
    %cst_133 = arith.constant 0.000000e+00 : f32
    %362 = vector.broadcast %cst_133 : f32 to vector<40x1xf32>
    %363 = arith.maximumf %361, %362 : vector<40x1xf32>
    %cst_134 = arith.constant 0.000000e+00 : f32
    %364 = vector.broadcast %cst_134 : f32 to vector<40x1xf32>
    %365 = arith.select %20, %363, %364 : vector<40x1xi1>, vector<40x1xf32>
    %c32_i32_135 = arith.constant 32 : i32
    %366 = vector.broadcast %c32_i32_135 : i32 to vector<40x1xi32>
    %367 = arith.cmpi slt, %2, %366 : vector<40x1xi32>
    %368 = vector.extract_strided_slice %365 {offsets = [8, 0], sizes = [32, 1], strides = [1, 1]} : vector<40x1xf32> to vector<32x1xf32>
    %369 = vector.extract_strided_slice %365 {offsets = [0, 0], sizes = [8, 1], strides = [1, 1]} : vector<40x1xf32> to vector<8x1xf32>
    %370 = tpu.concatenate %368, %369 in 0 : vector<32x1xf32>, vector<8x1xf32> -> vector<40x1xf32>
    %cst_136 = arith.constant 0.000000e+00 : f32
    %371 = vector.broadcast %cst_136 : f32 to vector<40x1xf32>
    %372 = arith.select %367, %370, %371 : vector<40x1xi1>, vector<40x1xf32>
    %373 = arith.addf %365, %372 : vector<40x1xf32>
    %c24_i32_137 = arith.constant 24 : i32
    %374 = vector.broadcast %c24_i32_137 : i32 to vector<40x1xi32>
    %375 = arith.cmpi slt, %2, %374 : vector<40x1xi32>
    %376 = vector.extract_strided_slice %365 {offsets = [16, 0], sizes = [24, 1], strides = [1, 1]} : vector<40x1xf32> to vector<24x1xf32>
    %377 = vector.extract_strided_slice %365 {offsets = [0, 0], sizes = [16, 1], strides = [1, 1]} : vector<40x1xf32> to vector<16x1xf32>
    %378 = tpu.concatenate %376, %377 in 0 : vector<24x1xf32>, vector<16x1xf32> -> vector<40x1xf32>
    %cst_138 = arith.constant 0.000000e+00 : f32
    %379 = vector.broadcast %cst_138 : f32 to vector<40x1xf32>
    %380 = arith.select %375, %378, %379 : vector<40x1xi1>, vector<40x1xf32>
    %381 = arith.addf %373, %380 : vector<40x1xf32>
    %c16_i32_139 = arith.constant 16 : i32
    %382 = vector.broadcast %c16_i32_139 : i32 to vector<40x1xi32>
    %383 = arith.cmpi slt, %2, %382 : vector<40x1xi32>
    %384 = vector.extract_strided_slice %365 {offsets = [24, 0], sizes = [16, 1], strides = [1, 1]} : vector<40x1xf32> to vector<16x1xf32>
    %385 = vector.extract_strided_slice %365 {offsets = [0, 0], sizes = [24, 1], strides = [1, 1]} : vector<40x1xf32> to vector<24x1xf32>
    %386 = tpu.concatenate %384, %385 in 0 : vector<16x1xf32>, vector<24x1xf32> -> vector<40x1xf32>
    %cst_140 = arith.constant 0.000000e+00 : f32
    %387 = vector.broadcast %cst_140 : f32 to vector<40x1xf32>
    %388 = arith.select %383, %386, %387 : vector<40x1xi1>, vector<40x1xf32>
    %389 = arith.addf %381, %388 : vector<40x1xf32>
    %c8_i32_141 = arith.constant 8 : i32
    %390 = vector.broadcast %c8_i32_141 : i32 to vector<40x1xi32>
    %391 = arith.cmpi slt, %2, %390 : vector<40x1xi32>
    %392 = vector.extract_strided_slice %365 {offsets = [32, 0], sizes = [8, 1], strides = [1, 1]} : vector<40x1xf32> to vector<8x1xf32>
    %393 = vector.extract_strided_slice %365 {offsets = [0, 0], sizes = [32, 1], strides = [1, 1]} : vector<40x1xf32> to vector<32x1xf32>
    %394 = tpu.concatenate %392, %393 in 0 : vector<8x1xf32>, vector<32x1xf32> -> vector<40x1xf32>
    %cst_142 = arith.constant 0.000000e+00 : f32
    %395 = vector.broadcast %cst_142 : f32 to vector<40x1xf32>
    %396 = arith.select %391, %394, %395 : vector<40x1xi1>, vector<40x1xf32>
    %397 = arith.addf %389, %396 : vector<40x1xf32>
    %cst_143 = arith.constant 0.000000e+00 : f32
    %398 = vector.broadcast %cst_143 : f32 to vector<40x1xf32>
    %399 = arith.subf %398, %397 : vector<40x1xf32>
    %400 = math.exp %399 : vector<40x1xf32>
    %cst_144 = arith.constant 1.000000e-01 : f32
    %401 = vector.broadcast %cst_144 : f32 to vector<40x1xf32>
    %402 = arith.mulf %401, %400 : vector<40x1xf32>
    %cst_145 = arith.constant 1.000000e-01 : f32
    %403 = vector.broadcast %cst_145 : f32 to vector<40x1xf32>
    %404 = arith.subf %403, %402 : vector<40x1xf32>
    %405 = vector.broadcast %404 : vector<40x1xf32> to vector<40x32xf32>
    %406 = arith.mulf %405, %358 : vector<40x32xf32>
    %407 = vector.broadcast %404 : vector<40x1xf32> to vector<40x32xf32>
    %408 = arith.mulf %407, %302 : vector<40x32xf32>
    %c1_i32_146 = arith.constant 1 : i32
    %409 = tpu.dynamic_rotate %408 by %c1_i32_146 dim 0 : vector<40x32xf32>, i32 -> vector<40x32xf32>
    %410 = arith.addf %406, %409 : vector<40x32xf32>
    %cst_147 = arith.constant 0.699999988 : f32
    %411 = vector.broadcast %cst_147 : f32 to vector<40x32xf32>
    %412 = arith.mulf %411, %302 : vector<40x32xf32>
    %413 = arith.addf %412, %410 : vector<40x32xf32>
    %414 = vector.extract_strided_slice %413 {offsets = [0, 0], sizes = [8, 32], strides = [1, 1]} : vector<40x32xf32> to vector<8x32xf32>
    %415 = arith.addf %414, %45 : vector<8x32xf32>
    %416 = vector.extract_strided_slice %357 {offsets = [0, 0], sizes = [8, 32], strides = [1, 1]} : vector<32x32xf32> to vector<8x32xf32>
    %417 = arith.addf %415, %416 : vector<8x32xf32>
    %c0_148 = arith.constant 0 : index
    %c0_149 = arith.constant 0 : index
    %418 = vector.load %arg6[%c0_148, %c0_149] : memref<40x32xf32, #tpu.memory_space<vmem>>, vector<8x32xf32>
    tpu.vector_store %arg6[%c0_148, %c0_149], %417 {strides = array<i32>} : memref<40x32xf32, #tpu.memory_space<vmem>>, vector<8x32xf32>,
    %419 = vector.extract_strided_slice %413 {offsets = [8, 0], sizes = [24, 32], strides = [1, 1]} : vector<40x32xf32> to vector<24x32xf32>
    %420 = vector.extract_strided_slice %356 {offsets = [0, 0], sizes = [24, 32], strides = [1, 1]} : vector<32x32xf32> to vector<24x32xf32>
    %421 = arith.addf %419, %420 : vector<24x32xf32>
    %422 = vector.extract_strided_slice %357 {offsets = [8, 0], sizes = [24, 32], strides = [1, 1]} : vector<32x32xf32> to vector<24x32xf32>
    %423 = arith.addf %421, %422 : vector<24x32xf32>
    %c8_150 = arith.constant 8 : index
    %c0_151 = arith.constant 0 : index
    %424 = vector.load %arg6[%c8_150, %c0_151] : memref<40x32xf32, #tpu.memory_space<vmem>>, vector<24x32xf32>
    tpu.vector_store %arg6[%c8_150, %c0_151], %423 {strides = array<i32>} : memref<40x32xf32, #tpu.memory_space<vmem>>, vector<24x32xf32>,
    %425 = vector.extract_strided_slice %413 {offsets = [32, 0], sizes = [8, 32], strides = [1, 1]} : vector<40x32xf32> to vector<8x32xf32>
    %426 = vector.extract_strided_slice %356 {offsets = [24, 0], sizes = [8, 32], strides = [1, 1]} : vector<32x32xf32> to vector<8x32xf32>
    %427 = arith.addf %425, %426 : vector<8x32xf32>
    %c32_152 = arith.constant 32 : index
    %c0_153 = arith.constant 0 : index
    %428 = vector.load %arg6[%c32_152, %c0_153] : memref<40x32xf32, #tpu.memory_space<vmem>>, vector<8x32xf32>
    tpu.vector_store %arg6[%c32_152, %c0_153], %427 {strides = array<i32>} : memref<40x32xf32, #tpu.memory_space<vmem>>, vector<8x32xf32>,
    %c3_i32 = arith.constant 3 : i32
    %c0_154 = arith.constant 0 : index
    %c0_155 = arith.constant 0 : index
    %429 = vector.load %arg6[%c0_154, %c0_155] : memref<40x32xf32, #tpu.memory_space<vmem>>, vector<40x32xf32>
    %430 = arith.truncf %429 : vector<40x32xf32> to vector<40x32xbf16>
    %431 = vector.extract_strided_slice %430 {offsets = [0, 0], sizes = [32, 32], strides = [1, 1]} : vector<40x32xbf16> to vector<32x32xbf16>
    %432 = vector.extract_strided_slice %430 {offsets = [8, 0], sizes = [32, 32], strides = [1, 1]} : vector<40x32xbf16> to vector<32x32xbf16>
    %433 = tpu.concatenate %431, %432 in 1 : vector<32x32xbf16>, vector<32x32xbf16> -> vector<32x64xbf16>
    %c0_156 = arith.constant 0 : index
    %c0_157 = arith.constant 0 : index
    %c0_158 = arith.constant 0 : index
    %434 = vector.load %arg4[%c0_156, %c0_157, %c0_158] : memref<3x64x64xbf16, #tpu.memory_space<vmem>>, vector<1x64x64xbf16>
    %435 = vector.shape_cast %434 : vector<1x64x64xbf16> to vector<64x64xbf16>
    %cst_159 = arith.constant dense<0.000000e+00> : vector<32x64xf32>
    %436 = tpu.matmul %433, %435, %cst_159 {dimension_numbers = #tpu.dot_dimension_numbers<[1], [0], [0], [1], [0, 0, 1, 1], [], []>} : vector<32x64xbf16>, vector<64x64xbf16>, vector<32x64xf32> -> vector<32x64xf32>
    %437 = vector.extract_strided_slice %1 {offsets = [0, 0], sizes = [1, 64], strides = [1, 1]} : vector<5x64xf32> to vector<1x64xf32>
    %438 = vector.broadcast %437 : vector<1x64xf32> to vector<32x64xf32>
    %439 = arith.addf %436, %438 : vector<32x64xf32>
    %cst_160 = arith.constant 0.000000e+00 : f32
    %440 = vector.broadcast %cst_160 : f32 to vector<32x64xf32>
    %441 = arith.maximumf %439, %440 : vector<32x64xf32>
    %442 = arith.truncf %441 : vector<32x64xf32> to vector<32x64xbf16>
    %c1_161 = arith.constant 1 : index
    %c0_162 = arith.constant 0 : index
    %c0_163 = arith.constant 0 : index
    %443 = vector.load %arg4[%c1_161, %c0_162, %c0_163] : memref<3x64x64xbf16, #tpu.memory_space<vmem>>, vector<1x64x64xbf16>
    %444 = vector.shape_cast %443 : vector<1x64x64xbf16> to vector<64x64xbf16>
    %cst_164 = arith.constant dense<0.000000e+00> : vector<32x64xf32>
    %445 = tpu.matmul %442, %444, %cst_164 {dimension_numbers = #tpu.dot_dimension_numbers<[1], [0], [0], [1], [0, 0, 1, 1], [], []>} : vector<32x64xbf16>, vector<64x64xbf16>, vector<32x64xf32> -> vector<32x64xf32>
    %446 = vector.extract_strided_slice %1 {offsets = [1, 0], sizes = [1, 64], strides = [1, 1]} : vector<5x64xf32> to vector<1x64xf32>
    %447 = vector.broadcast %446 : vector<1x64xf32> to vector<32x64xf32>
    %448 = arith.addf %445, %447 : vector<32x64xf32>
    %cst_165 = arith.constant 0.000000e+00 : f32
    %449 = vector.broadcast %cst_165 : f32 to vector<32x64xf32>
    %450 = arith.maximumf %448, %449 : vector<32x64xf32>
    %451 = arith.truncf %450 : vector<32x64xf32> to vector<32x64xbf16>
    %c2_166 = arith.constant 2 : index
    %c0_167 = arith.constant 0 : index
    %c0_168 = arith.constant 0 : index
    %452 = vector.load %arg4[%c2_166, %c0_167, %c0_168] : memref<3x64x64xbf16, #tpu.memory_space<vmem>>, vector<1x64x64xbf16>
    %453 = vector.shape_cast %452 : vector<1x64x64xbf16> to vector<64x64xbf16>
    %cst_169 = arith.constant dense<0.000000e+00> : vector<32x64xf32>
    %454 = tpu.matmul %451, %453, %cst_169 {dimension_numbers = #tpu.dot_dimension_numbers<[1], [0], [0], [1], [0, 0, 1, 1], [], []>} : vector<32x64xbf16>, vector<64x64xbf16>, vector<32x64xf32> -> vector<32x64xf32>
    %455 = vector.extract_strided_slice %1 {offsets = [2, 0], sizes = [1, 64], strides = [1, 1]} : vector<5x64xf32> to vector<1x64xf32>
    %456 = vector.broadcast %455 : vector<1x64xf32> to vector<32x64xf32>
    %457 = arith.addf %454, %456 : vector<32x64xf32>
    %cst_170 = arith.constant dense<0.000000e+00> : vector<64xf32>
    %458 = vector.multi_reduction <add>, %457, %cst_170 [0] : vector<32x64xf32> to vector<64xf32>
    %459 = vector.shape_cast %458 : vector<64xf32> to vector<1x64xf32>
    %cst_171 = arith.constant 3.125000e-02 : f32
    %460 = vector.broadcast %cst_171 : f32 to vector<1x64xf32>
    %461 = arith.mulf %459, %460 : vector<1x64xf32>
    %462 = arith.mulf %457, %457 : vector<32x64xf32>
    %cst_172 = arith.constant dense<0.000000e+00> : vector<64xf32>
    %463 = vector.multi_reduction <add>, %462, %cst_172 [0] : vector<32x64xf32> to vector<64xf32>
    %464 = vector.shape_cast %463 : vector<64xf32> to vector<1x64xf32>
    %cst_173 = arith.constant 3.125000e-02 : f32
    %465 = vector.broadcast %cst_173 : f32 to vector<1x64xf32>
    %466 = arith.mulf %464, %465 : vector<1x64xf32>
    %467 = arith.mulf %461, %461 : vector<1x64xf32>
    %468 = arith.subf %466, %467 : vector<1x64xf32>
    %cst_174 = arith.constant 0.000000e+00 : f32
    %469 = vector.broadcast %cst_174 : f32 to vector<1x64xf32>
    %470 = arith.maximumf %468, %469 : vector<1x64xf32>
    %471 = vector.extract_strided_slice %1 {offsets = [3, 0], sizes = [1, 64], strides = [1, 1]} : vector<5x64xf32> to vector<1x64xf32>
    %cst_175 = arith.constant 9.99999974E-6 : f32
    %472 = vector.broadcast %cst_175 : f32 to vector<1x64xf32>
    %473 = arith.addf %470, %472 : vector<1x64xf32>
    %474 = math.rsqrt %473 : vector<1x64xf32>
    %475 = arith.mulf %471, %474 : vector<1x64xf32>
    %476 = vector.broadcast %475 : vector<1x64xf32> to vector<32x64xf32>
    %477 = arith.mulf %457, %476 : vector<32x64xf32>
    %478 = vector.extract_strided_slice %1 {offsets = [4, 0], sizes = [1, 64], strides = [1, 1]} : vector<5x64xf32> to vector<1x64xf32>
    %479 = arith.mulf %461, %475 : vector<1x64xf32>
    %480 = arith.subf %478, %479 : vector<1x64xf32>
    %481 = vector.broadcast %480 : vector<1x64xf32> to vector<32x64xf32>
    %482 = arith.addf %477, %481 : vector<32x64xf32>
    %483 = vector.extract_strided_slice %482 {offsets = [0, 0], sizes = [32, 32], strides = [1, 1]} : vector<32x64xf32> to vector<32x32xf32>
    %484 = vector.extract_strided_slice %482 {offsets = [0, 32], sizes = [32, 32], strides = [1, 1]} : vector<32x64xf32> to vector<32x32xf32>
    %c39_i32_176 = arith.constant 39 : i32
    %485 = tpu.dynamic_rotate %429 by %c39_i32_176 dim 0 : vector<40x32xf32>, i32 -> vector<40x32xf32>
    %486 = arith.mulf %429, %485 : vector<40x32xf32>
    %cst_177 = arith.constant dense<0.000000e+00> : vector<40xf32>
    %487 = vector.multi_reduction <add>, %486, %cst_177 [1] : vector<40x32xf32> to vector<40xf32>
    %488 = vector.shape_cast %487 : vector<40xf32> to vector<40x1xf32>
    %cst_178 = arith.constant 0.000000e+00 : f32
    %489 = vector.broadcast %cst_178 : f32 to vector<40x1xf32>
    %490 = arith.maximumf %488, %489 : vector<40x1xf32>
    %cst_179 = arith.constant 0.000000e+00 : f32
    %491 = vector.broadcast %cst_179 : f32 to vector<40x1xf32>
    %492 = arith.select %20, %490, %491 : vector<40x1xi1>, vector<40x1xf32>
    %c32_i32_180 = arith.constant 32 : i32
    %493 = vector.broadcast %c32_i32_180 : i32 to vector<40x1xi32>
    %494 = arith.cmpi slt, %2, %493 : vector<40x1xi32>
    %495 = vector.extract_strided_slice %492 {offsets = [8, 0], sizes = [32, 1], strides = [1, 1]} : vector<40x1xf32> to vector<32x1xf32>
    %496 = vector.extract_strided_slice %492 {offsets = [0, 0], sizes = [8, 1], strides = [1, 1]} : vector<40x1xf32> to vector<8x1xf32>
    %497 = tpu.concatenate %495, %496 in 0 : vector<32x1xf32>, vector<8x1xf32> -> vector<40x1xf32>
    %cst_181 = arith.constant 0.000000e+00 : f32
    %498 = vector.broadcast %cst_181 : f32 to vector<40x1xf32>
    %499 = arith.select %494, %497, %498 : vector<40x1xi1>, vector<40x1xf32>
    %500 = arith.addf %492, %499 : vector<40x1xf32>
    %c24_i32_182 = arith.constant 24 : i32
    %501 = vector.broadcast %c24_i32_182 : i32 to vector<40x1xi32>
    %502 = arith.cmpi slt, %2, %501 : vector<40x1xi32>
    %503 = vector.extract_strided_slice %492 {offsets = [16, 0], sizes = [24, 1], strides = [1, 1]} : vector<40x1xf32> to vector<24x1xf32>
    %504 = vector.extract_strided_slice %492 {offsets = [0, 0], sizes = [16, 1], strides = [1, 1]} : vector<40x1xf32> to vector<16x1xf32>
    %505 = tpu.concatenate %503, %504 in 0 : vector<24x1xf32>, vector<16x1xf32> -> vector<40x1xf32>
    %cst_183 = arith.constant 0.000000e+00 : f32
    %506 = vector.broadcast %cst_183 : f32 to vector<40x1xf32>
    %507 = arith.select %502, %505, %506 : vector<40x1xi1>, vector<40x1xf32>
    %508 = arith.addf %500, %507 : vector<40x1xf32>
    %c16_i32_184 = arith.constant 16 : i32
    %509 = vector.broadcast %c16_i32_184 : i32 to vector<40x1xi32>
    %510 = arith.cmpi slt, %2, %509 : vector<40x1xi32>
    %511 = vector.extract_strided_slice %492 {offsets = [24, 0], sizes = [16, 1], strides = [1, 1]} : vector<40x1xf32> to vector<16x1xf32>
    %512 = vector.extract_strided_slice %492 {offsets = [0, 0], sizes = [24, 1], strides = [1, 1]} : vector<40x1xf32> to vector<24x1xf32>
    %513 = tpu.concatenate %511, %512 in 0 : vector<16x1xf32>, vector<24x1xf32> -> vector<40x1xf32>
    %cst_185 = arith.constant 0.000000e+00 : f32
    %514 = vector.broadcast %cst_185 : f32 to vector<40x1xf32>
    %515 = arith.select %510, %513, %514 : vector<40x1xi1>, vector<40x1xf32>
    %516 = arith.addf %508, %515 : vector<40x1xf32>
    %c8_i32_186 = arith.constant 8 : i32
    %517 = vector.broadcast %c8_i32_186 : i32 to vector<40x1xi32>
    %518 = arith.cmpi slt, %2, %517 : vector<40x1xi32>
    %519 = vector.extract_strided_slice %492 {offsets = [32, 0], sizes = [8, 1], strides = [1, 1]} : vector<40x1xf32> to vector<8x1xf32>
    %520 = vector.extract_strided_slice %492 {offsets = [0, 0], sizes = [32, 1], strides = [1, 1]} : vector<40x1xf32> to vector<32x1xf32>
    %521 = tpu.concatenate %519, %520 in 0 : vector<8x1xf32>, vector<32x1xf32> -> vector<40x1xf32>
    %cst_187 = arith.constant 0.000000e+00 : f32
    %522 = vector.broadcast %cst_187 : f32 to vector<40x1xf32>
    %523 = arith.select %518, %521, %522 : vector<40x1xi1>, vector<40x1xf32>
    %524 = arith.addf %516, %523 : vector<40x1xf32>
    %cst_188 = arith.constant 0.000000e+00 : f32
    %525 = vector.broadcast %cst_188 : f32 to vector<40x1xf32>
    %526 = arith.subf %525, %524 : vector<40x1xf32>
    %527 = math.exp %526 : vector<40x1xf32>
    %cst_189 = arith.constant 1.000000e-01 : f32
    %528 = vector.broadcast %cst_189 : f32 to vector<40x1xf32>
    %529 = arith.mulf %528, %527 : vector<40x1xf32>
    %cst_190 = arith.constant 1.000000e-01 : f32
    %530 = vector.broadcast %cst_190 : f32 to vector<40x1xf32>
    %531 = arith.subf %530, %529 : vector<40x1xf32>
    %532 = vector.broadcast %531 : vector<40x1xf32> to vector<40x32xf32>
    %533 = arith.mulf %532, %485 : vector<40x32xf32>
    %534 = vector.broadcast %531 : vector<40x1xf32> to vector<40x32xf32>
    %535 = arith.mulf %534, %429 : vector<40x32xf32>
    %c1_i32_191 = arith.constant 1 : i32
    %536 = tpu.dynamic_rotate %535 by %c1_i32_191 dim 0 : vector<40x32xf32>, i32 -> vector<40x32xf32>
    %537 = arith.addf %533, %536 : vector<40x32xf32>
    %cst_192 = arith.constant 0.699999988 : f32
    %538 = vector.broadcast %cst_192 : f32 to vector<40x32xf32>
    %539 = arith.mulf %538, %429 : vector<40x32xf32>
    %540 = arith.addf %539, %537 : vector<40x32xf32>
    %541 = vector.extract_strided_slice %540 {offsets = [0, 0], sizes = [8, 32], strides = [1, 1]} : vector<40x32xf32> to vector<8x32xf32>
    %542 = arith.addf %541, %45 : vector<8x32xf32>
    %543 = vector.extract_strided_slice %484 {offsets = [0, 0], sizes = [8, 32], strides = [1, 1]} : vector<32x32xf32> to vector<8x32xf32>
    %544 = arith.addf %542, %543 : vector<8x32xf32>
    %c0_193 = arith.constant 0 : index
    %c0_194 = arith.constant 0 : index
    %545 = vector.load %arg6[%c0_193, %c0_194] : memref<40x32xf32, #tpu.memory_space<vmem>>, vector<8x32xf32>
    tpu.vector_store %arg6[%c0_193, %c0_194], %544 {strides = array<i32>} : memref<40x32xf32, #tpu.memory_space<vmem>>, vector<8x32xf32>,
    %546 = vector.extract_strided_slice %540 {offsets = [8, 0], sizes = [24, 32], strides = [1, 1]} : vector<40x32xf32> to vector<24x32xf32>
    %547 = vector.extract_strided_slice %483 {offsets = [0, 0], sizes = [24, 32], strides = [1, 1]} : vector<32x32xf32> to vector<24x32xf32>
    %548 = arith.addf %546, %547 : vector<24x32xf32>
    %549 = vector.extract_strided_slice %484 {offsets = [8, 0], sizes = [24, 32], strides = [1, 1]} : vector<32x32xf32> to vector<24x32xf32>
    %550 = arith.addf %548, %549 : vector<24x32xf32>
    %c8_195 = arith.constant 8 : index
    %c0_196 = arith.constant 0 : index
    %551 = vector.load %arg6[%c8_195, %c0_196] : memref<40x32xf32, #tpu.memory_space<vmem>>, vector<24x32xf32>
    tpu.vector_store %arg6[%c8_195, %c0_196], %550 {strides = array<i32>} : memref<40x32xf32, #tpu.memory_space<vmem>>, vector<24x32xf32>,
    %552 = vector.extract_strided_slice %540 {offsets = [32, 0], sizes = [8, 32], strides = [1, 1]} : vector<40x32xf32> to vector<8x32xf32>
    %553 = vector.extract_strided_slice %483 {offsets = [24, 0], sizes = [8, 32], strides = [1, 1]} : vector<32x32xf32> to vector<8x32xf32>
    %554 = arith.addf %552, %553 : vector<8x32xf32>
    %c32_197 = arith.constant 32 : index
    %c0_198 = arith.constant 0 : index
    %555 = vector.load %arg6[%c32_197, %c0_198] : memref<40x32xf32, #tpu.memory_space<vmem>>, vector<8x32xf32>
    tpu.vector_store %arg6[%c32_197, %c0_198], %554 {strides = array<i32>} : memref<40x32xf32, #tpu.memory_space<vmem>>, vector<8x32xf32>,
    %c4_i32 = arith.constant 4 : i32
    %c0_199 = arith.constant 0 : index
    %c0_200 = arith.constant 0 : index
    %556 = vector.load %arg6[%c0_199, %c0_200] : memref<40x32xf32, #tpu.memory_space<vmem>>, vector<40x32xf32>
    %557 = arith.truncf %556 : vector<40x32xf32> to vector<40x32xbf16>
    %558 = vector.extract_strided_slice %557 {offsets = [0, 0], sizes = [32, 32], strides = [1, 1]} : vector<40x32xbf16> to vector<32x32xbf16>
    %559 = vector.extract_strided_slice %557 {offsets = [8, 0], sizes = [32, 32], strides = [1, 1]} : vector<40x32xbf16> to vector<32x32xbf16>
    %560 = tpu.concatenate %558, %559 in 1 : vector<32x32xbf16>, vector<32x32xbf16> -> vector<32x64xbf16>
    %c0_201 = arith.constant 0 : index
    %c0_202 = arith.constant 0 : index
    %c0_203 = arith.constant 0 : index
    %561 = vector.load %arg4[%c0_201, %c0_202, %c0_203] : memref<3x64x64xbf16, #tpu.memory_space<vmem>>, vector<1x64x64xbf16>
    %562 = vector.shape_cast %561 : vector<1x64x64xbf16> to vector<64x64xbf16>
    %cst_204 = arith.constant dense<0.000000e+00> : vector<32x64xf32>
    %563 = tpu.matmul %560, %562, %cst_204 {dimension_numbers = #tpu.dot_dimension_numbers<[1], [0], [0], [1], [0, 0, 1, 1], [], []>} : vector<32x64xbf16>, vector<64x64xbf16>, vector<32x64xf32> -> vector<32x64xf32>
    %564 = vector.extract_strided_slice %1 {offsets = [0, 0], sizes = [1, 64], strides = [1, 1]} : vector<5x64xf32> to vector<1x64xf32>
    %565 = vector.broadcast %564 : vector<1x64xf32> to vector<32x64xf32>
    %566 = arith.addf %563, %565 : vector<32x64xf32>
    %cst_205 = arith.constant 0.000000e+00 : f32
    %567 = vector.broadcast %cst_205 : f32 to vector<32x64xf32>
    %568 = arith.maximumf %566, %567 : vector<32x64xf32>
    %569 = arith.truncf %568 : vector<32x64xf32> to vector<32x64xbf16>
    %c1_206 = arith.constant 1 : index
    %c0_207 = arith.constant 0 : index
    %c0_208 = arith.constant 0 : index
    %570 = vector.load %arg4[%c1_206, %c0_207, %c0_208] : memref<3x64x64xbf16, #tpu.memory_space<vmem>>, vector<1x64x64xbf16>
    %571 = vector.shape_cast %570 : vector<1x64x64xbf16> to vector<64x64xbf16>
    %cst_209 = arith.constant dense<0.000000e+00> : vector<32x64xf32>
    %572 = tpu.matmul %569, %571, %cst_209 {dimension_numbers = #tpu.dot_dimension_numbers<[1], [0], [0], [1], [0, 0, 1, 1], [], []>} : vector<32x64xbf16>, vector<64x64xbf16>, vector<32x64xf32> -> vector<32x64xf32>
    %573 = vector.extract_strided_slice %1 {offsets = [1, 0], sizes = [1, 64], strides = [1, 1]} : vector<5x64xf32> to vector<1x64xf32>
    %574 = vector.broadcast %573 : vector<1x64xf32> to vector<32x64xf32>
    %575 = arith.addf %572, %574 : vector<32x64xf32>
    %cst_210 = arith.constant 0.000000e+00 : f32
    %576 = vector.broadcast %cst_210 : f32 to vector<32x64xf32>
    %577 = arith.maximumf %575, %576 : vector<32x64xf32>
    %578 = arith.truncf %577 : vector<32x64xf32> to vector<32x64xbf16>
    %c2_211 = arith.constant 2 : index
    %c0_212 = arith.constant 0 : index
    %c0_213 = arith.constant 0 : index
    %579 = vector.load %arg4[%c2_211, %c0_212, %c0_213] : memref<3x64x64xbf16, #tpu.memory_space<vmem>>, vector<1x64x64xbf16>
    %580 = vector.shape_cast %579 : vector<1x64x64xbf16> to vector<64x64xbf16>
    %cst_214 = arith.constant dense<0.000000e+00> : vector<32x64xf32>
    %581 = tpu.matmul %578, %580, %cst_214 {dimension_numbers = #tpu.dot_dimension_numbers<[1], [0], [0], [1], [0, 0, 1, 1], [], []>} : vector<32x64xbf16>, vector<64x64xbf16>, vector<32x64xf32> -> vector<32x64xf32>
    %582 = vector.extract_strided_slice %1 {offsets = [2, 0], sizes = [1, 64], strides = [1, 1]} : vector<5x64xf32> to vector<1x64xf32>
    %583 = vector.broadcast %582 : vector<1x64xf32> to vector<32x64xf32>
    %584 = arith.addf %581, %583 : vector<32x64xf32>
    %cst_215 = arith.constant dense<0.000000e+00> : vector<64xf32>
    %585 = vector.multi_reduction <add>, %584, %cst_215 [0] : vector<32x64xf32> to vector<64xf32>
    %586 = vector.shape_cast %585 : vector<64xf32> to vector<1x64xf32>
    %cst_216 = arith.constant 3.125000e-02 : f32
    %587 = vector.broadcast %cst_216 : f32 to vector<1x64xf32>
    %588 = arith.mulf %586, %587 : vector<1x64xf32>
    %589 = arith.mulf %584, %584 : vector<32x64xf32>
    %cst_217 = arith.constant dense<0.000000e+00> : vector<64xf32>
    %590 = vector.multi_reduction <add>, %589, %cst_217 [0] : vector<32x64xf32> to vector<64xf32>
    %591 = vector.shape_cast %590 : vector<64xf32> to vector<1x64xf32>
    %cst_218 = arith.constant 3.125000e-02 : f32
    %592 = vector.broadcast %cst_218 : f32 to vector<1x64xf32>
    %593 = arith.mulf %591, %592 : vector<1x64xf32>
    %594 = arith.mulf %588, %588 : vector<1x64xf32>
    %595 = arith.subf %593, %594 : vector<1x64xf32>
    %cst_219 = arith.constant 0.000000e+00 : f32
    %596 = vector.broadcast %cst_219 : f32 to vector<1x64xf32>
    %597 = arith.maximumf %595, %596 : vector<1x64xf32>
    %598 = vector.extract_strided_slice %1 {offsets = [3, 0], sizes = [1, 64], strides = [1, 1]} : vector<5x64xf32> to vector<1x64xf32>
    %cst_220 = arith.constant 9.99999974E-6 : f32
    %599 = vector.broadcast %cst_220 : f32 to vector<1x64xf32>
    %600 = arith.addf %597, %599 : vector<1x64xf32>
    %601 = math.rsqrt %600 : vector<1x64xf32>
    %602 = arith.mulf %598, %601 : vector<1x64xf32>
    %603 = vector.broadcast %602 : vector<1x64xf32> to vector<32x64xf32>
    %604 = arith.mulf %584, %603 : vector<32x64xf32>
    %605 = vector.extract_strided_slice %1 {offsets = [4, 0], sizes = [1, 64], strides = [1, 1]} : vector<5x64xf32> to vector<1x64xf32>
    %606 = arith.mulf %588, %602 : vector<1x64xf32>
    %607 = arith.subf %605, %606 : vector<1x64xf32>
    %608 = vector.broadcast %607 : vector<1x64xf32> to vector<32x64xf32>
    %609 = arith.addf %604, %608 : vector<32x64xf32>
    %610 = vector.extract_strided_slice %609 {offsets = [0, 0], sizes = [32, 32], strides = [1, 1]} : vector<32x64xf32> to vector<32x32xf32>
    %611 = vector.extract_strided_slice %609 {offsets = [0, 32], sizes = [32, 32], strides = [1, 1]} : vector<32x64xf32> to vector<32x32xf32>
    %c39_i32_221 = arith.constant 39 : i32
    %612 = tpu.dynamic_rotate %556 by %c39_i32_221 dim 0 : vector<40x32xf32>, i32 -> vector<40x32xf32>
    %613 = arith.mulf %556, %612 : vector<40x32xf32>
    %cst_222 = arith.constant dense<0.000000e+00> : vector<40xf32>
    %614 = vector.multi_reduction <add>, %613, %cst_222 [1] : vector<40x32xf32> to vector<40xf32>
    %615 = vector.shape_cast %614 : vector<40xf32> to vector<40x1xf32>
    %cst_223 = arith.constant 0.000000e+00 : f32
    %616 = vector.broadcast %cst_223 : f32 to vector<40x1xf32>
    %617 = arith.maximumf %615, %616 : vector<40x1xf32>
    %cst_224 = arith.constant 0.000000e+00 : f32
    %618 = vector.broadcast %cst_224 : f32 to vector<40x1xf32>
    %619 = arith.select %20, %617, %618 : vector<40x1xi1>, vector<40x1xf32>
    %c32_i32_225 = arith.constant 32 : i32
    %620 = vector.broadcast %c32_i32_225 : i32 to vector<40x1xi32>
    %621 = arith.cmpi slt, %2, %620 : vector<40x1xi32>
    %622 = vector.extract_strided_slice %619 {offsets = [8, 0], sizes = [32, 1], strides = [1, 1]} : vector<40x1xf32> to vector<32x1xf32>
    %623 = vector.extract_strided_slice %619 {offsets = [0, 0], sizes = [8, 1], strides = [1, 1]} : vector<40x1xf32> to vector<8x1xf32>
    %624 = tpu.concatenate %622, %623 in 0 : vector<32x1xf32>, vector<8x1xf32> -> vector<40x1xf32>
    %cst_226 = arith.constant 0.000000e+00 : f32
    %625 = vector.broadcast %cst_226 : f32 to vector<40x1xf32>
    %626 = arith.select %621, %624, %625 : vector<40x1xi1>, vector<40x1xf32>
    %627 = arith.addf %619, %626 : vector<40x1xf32>
    %c24_i32_227 = arith.constant 24 : i32
    %628 = vector.broadcast %c24_i32_227 : i32 to vector<40x1xi32>
    %629 = arith.cmpi slt, %2, %628 : vector<40x1xi32>
    %630 = vector.extract_strided_slice %619 {offsets = [16, 0], sizes = [24, 1], strides = [1, 1]} : vector<40x1xf32> to vector<24x1xf32>
    %631 = vector.extract_strided_slice %619 {offsets = [0, 0], sizes = [16, 1], strides = [1, 1]} : vector<40x1xf32> to vector<16x1xf32>
    %632 = tpu.concatenate %630, %631 in 0 : vector<24x1xf32>, vector<16x1xf32> -> vector<40x1xf32>
    %cst_228 = arith.constant 0.000000e+00 : f32
    %633 = vector.broadcast %cst_228 : f32 to vector<40x1xf32>
    %634 = arith.select %629, %632, %633 : vector<40x1xi1>, vector<40x1xf32>
    %635 = arith.addf %627, %634 : vector<40x1xf32>
    %c16_i32_229 = arith.constant 16 : i32
    %636 = vector.broadcast %c16_i32_229 : i32 to vector<40x1xi32>
    %637 = arith.cmpi slt, %2, %636 : vector<40x1xi32>
    %638 = vector.extract_strided_slice %619 {offsets = [24, 0], sizes = [16, 1], strides = [1, 1]} : vector<40x1xf32> to vector<16x1xf32>
    %639 = vector.extract_strided_slice %619 {offsets = [0, 0], sizes = [24, 1], strides = [1, 1]} : vector<40x1xf32> to vector<24x1xf32>
    %640 = tpu.concatenate %638, %639 in 0 : vector<16x1xf32>, vector<24x1xf32> -> vector<40x1xf32>
    %cst_230 = arith.constant 0.000000e+00 : f32
    %641 = vector.broadcast %cst_230 : f32 to vector<40x1xf32>
    %642 = arith.select %637, %640, %641 : vector<40x1xi1>, vector<40x1xf32>
    %643 = arith.addf %635, %642 : vector<40x1xf32>
    %c8_i32_231 = arith.constant 8 : i32
    %644 = vector.broadcast %c8_i32_231 : i32 to vector<40x1xi32>
    %645 = arith.cmpi slt, %2, %644 : vector<40x1xi32>
    %646 = vector.extract_strided_slice %619 {offsets = [32, 0], sizes = [8, 1], strides = [1, 1]} : vector<40x1xf32> to vector<8x1xf32>
    %647 = vector.extract_strided_slice %619 {offsets = [0, 0], sizes = [32, 1], strides = [1, 1]} : vector<40x1xf32> to vector<32x1xf32>
    %648 = tpu.concatenate %646, %647 in 0 : vector<8x1xf32>, vector<32x1xf32> -> vector<40x1xf32>
    %cst_232 = arith.constant 0.000000e+00 : f32
    %649 = vector.broadcast %cst_232 : f32 to vector<40x1xf32>
    %650 = arith.select %645, %648, %649 : vector<40x1xi1>, vector<40x1xf32>
    %651 = arith.addf %643, %650 : vector<40x1xf32>
    %cst_233 = arith.constant 0.000000e+00 : f32
    %652 = vector.broadcast %cst_233 : f32 to vector<40x1xf32>
    %653 = arith.subf %652, %651 : vector<40x1xf32>
    %654 = math.exp %653 : vector<40x1xf32>
    %cst_234 = arith.constant 1.000000e-01 : f32
    %655 = vector.broadcast %cst_234 : f32 to vector<40x1xf32>
    %656 = arith.mulf %655, %654 : vector<40x1xf32>
    %cst_235 = arith.constant 1.000000e-01 : f32
    %657 = vector.broadcast %cst_235 : f32 to vector<40x1xf32>
    %658 = arith.subf %657, %656 : vector<40x1xf32>
    %659 = vector.broadcast %658 : vector<40x1xf32> to vector<40x32xf32>
    %660 = arith.mulf %659, %612 : vector<40x32xf32>
    %661 = vector.broadcast %658 : vector<40x1xf32> to vector<40x32xf32>
    %662 = arith.mulf %661, %556 : vector<40x32xf32>
    %c1_i32_236 = arith.constant 1 : i32
    %663 = tpu.dynamic_rotate %662 by %c1_i32_236 dim 0 : vector<40x32xf32>, i32 -> vector<40x32xf32>
    %664 = arith.addf %660, %663 : vector<40x32xf32>
    %cst_237 = arith.constant 0.699999988 : f32
    %665 = vector.broadcast %cst_237 : f32 to vector<40x32xf32>
    %666 = arith.mulf %665, %556 : vector<40x32xf32>
    %667 = arith.addf %666, %664 : vector<40x32xf32>
    %668 = vector.extract_strided_slice %667 {offsets = [0, 0], sizes = [8, 32], strides = [1, 1]} : vector<40x32xf32> to vector<8x32xf32>
    %669 = arith.addf %668, %45 : vector<8x32xf32>
    %670 = vector.extract_strided_slice %611 {offsets = [0, 0], sizes = [8, 32], strides = [1, 1]} : vector<32x32xf32> to vector<8x32xf32>
    %671 = arith.addf %669, %670 : vector<8x32xf32>
    %c0_238 = arith.constant 0 : index
    %c0_239 = arith.constant 0 : index
    %672 = vector.load %arg6[%c0_238, %c0_239] : memref<40x32xf32, #tpu.memory_space<vmem>>, vector<8x32xf32>
    tpu.vector_store %arg6[%c0_238, %c0_239], %671 {strides = array<i32>} : memref<40x32xf32, #tpu.memory_space<vmem>>, vector<8x32xf32>,
    %673 = vector.extract_strided_slice %667 {offsets = [8, 0], sizes = [24, 32], strides = [1, 1]} : vector<40x32xf32> to vector<24x32xf32>
    %674 = vector.extract_strided_slice %610 {offsets = [0, 0], sizes = [24, 32], strides = [1, 1]} : vector<32x32xf32> to vector<24x32xf32>
    %675 = arith.addf %673, %674 : vector<24x32xf32>
    %676 = vector.extract_strided_slice %611 {offsets = [8, 0], sizes = [24, 32], strides = [1, 1]} : vector<32x32xf32> to vector<24x32xf32>
    %677 = arith.addf %675, %676 : vector<24x32xf32>
    %c8_240 = arith.constant 8 : index
    %c0_241 = arith.constant 0 : index
    %678 = vector.load %arg6[%c8_240, %c0_241] : memref<40x32xf32, #tpu.memory_space<vmem>>, vector<24x32xf32>
    tpu.vector_store %arg6[%c8_240, %c0_241], %677 {strides = array<i32>} : memref<40x32xf32, #tpu.memory_space<vmem>>, vector<24x32xf32>,
    %679 = vector.extract_strided_slice %667 {offsets = [32, 0], sizes = [8, 32], strides = [1, 1]} : vector<40x32xf32> to vector<8x32xf32>
    %680 = vector.extract_strided_slice %610 {offsets = [24, 0], sizes = [8, 32], strides = [1, 1]} : vector<32x32xf32> to vector<8x32xf32>
    %681 = arith.addf %679, %680 : vector<8x32xf32>
    %c32_242 = arith.constant 32 : index
    %c0_243 = arith.constant 0 : index
    %682 = vector.load %arg6[%c32_242, %c0_243] : memref<40x32xf32, #tpu.memory_space<vmem>>, vector<8x32xf32>
    tpu.vector_store %arg6[%c32_242, %c0_243], %681 {strides = array<i32>} : memref<40x32xf32, #tpu.memory_space<vmem>>, vector<8x32xf32>,
    %c5_i32 = arith.constant 5 : i32
    %c0_244 = arith.constant 0 : index
    %c0_245 = arith.constant 0 : index
    %683 = vector.load %arg6[%c0_244, %c0_245] : memref<40x32xf32, #tpu.memory_space<vmem>>, vector<40x32xf32>
    %684 = arith.truncf %683 : vector<40x32xf32> to vector<40x32xbf16>
    %685 = vector.extract_strided_slice %684 {offsets = [0, 0], sizes = [32, 32], strides = [1, 1]} : vector<40x32xbf16> to vector<32x32xbf16>
    %686 = vector.extract_strided_slice %684 {offsets = [8, 0], sizes = [32, 32], strides = [1, 1]} : vector<40x32xbf16> to vector<32x32xbf16>
    %687 = tpu.concatenate %685, %686 in 1 : vector<32x32xbf16>, vector<32x32xbf16> -> vector<32x64xbf16>
    %c0_246 = arith.constant 0 : index
    %c0_247 = arith.constant 0 : index
    %c0_248 = arith.constant 0 : index
    %688 = vector.load %arg4[%c0_246, %c0_247, %c0_248] : memref<3x64x64xbf16, #tpu.memory_space<vmem>>, vector<1x64x64xbf16>
    %689 = vector.shape_cast %688 : vector<1x64x64xbf16> to vector<64x64xbf16>
    %cst_249 = arith.constant dense<0.000000e+00> : vector<32x64xf32>
    %690 = tpu.matmul %687, %689, %cst_249 {dimension_numbers = #tpu.dot_dimension_numbers<[1], [0], [0], [1], [0, 0, 1, 1], [], []>} : vector<32x64xbf16>, vector<64x64xbf16>, vector<32x64xf32> -> vector<32x64xf32>
    %691 = vector.extract_strided_slice %1 {offsets = [0, 0], sizes = [1, 64], strides = [1, 1]} : vector<5x64xf32> to vector<1x64xf32>
    %692 = vector.broadcast %691 : vector<1x64xf32> to vector<32x64xf32>
    %693 = arith.addf %690, %692 : vector<32x64xf32>
    %cst_250 = arith.constant 0.000000e+00 : f32
    %694 = vector.broadcast %cst_250 : f32 to vector<32x64xf32>
    %695 = arith.maximumf %693, %694 : vector<32x64xf32>
    %696 = arith.truncf %695 : vector<32x64xf32> to vector<32x64xbf16>
    %c1_251 = arith.constant 1 : index
    %c0_252 = arith.constant 0 : index
    %c0_253 = arith.constant 0 : index
    %697 = vector.load %arg4[%c1_251, %c0_252, %c0_253] : memref<3x64x64xbf16, #tpu.memory_space<vmem>>, vector<1x64x64xbf16>
    %698 = vector.shape_cast %697 : vector<1x64x64xbf16> to vector<64x64xbf16>
    %cst_254 = arith.constant dense<0.000000e+00> : vector<32x64xf32>
    %699 = tpu.matmul %696, %698, %cst_254 {dimension_numbers = #tpu.dot_dimension_numbers<[1], [0], [0], [1], [0, 0, 1, 1], [], []>} : vector<32x64xbf16>, vector<64x64xbf16>, vector<32x64xf32> -> vector<32x64xf32>
    %700 = vector.extract_strided_slice %1 {offsets = [1, 0], sizes = [1, 64], strides = [1, 1]} : vector<5x64xf32> to vector<1x64xf32>
    %701 = vector.broadcast %700 : vector<1x64xf32> to vector<32x64xf32>
    %702 = arith.addf %699, %701 : vector<32x64xf32>
    %cst_255 = arith.constant 0.000000e+00 : f32
    %703 = vector.broadcast %cst_255 : f32 to vector<32x64xf32>
    %704 = arith.maximumf %702, %703 : vector<32x64xf32>
    %705 = arith.truncf %704 : vector<32x64xf32> to vector<32x64xbf16>
    %c2_256 = arith.constant 2 : index
    %c0_257 = arith.constant 0 : index
    %c0_258 = arith.constant 0 : index
    %706 = vector.load %arg4[%c2_256, %c0_257, %c0_258] : memref<3x64x64xbf16, #tpu.memory_space<vmem>>, vector<1x64x64xbf16>
    %707 = vector.shape_cast %706 : vector<1x64x64xbf16> to vector<64x64xbf16>
    %cst_259 = arith.constant dense<0.000000e+00> : vector<32x64xf32>
    %708 = tpu.matmul %705, %707, %cst_259 {dimension_numbers = #tpu.dot_dimension_numbers<[1], [0], [0], [1], [0, 0, 1, 1], [], []>} : vector<32x64xbf16>, vector<64x64xbf16>, vector<32x64xf32> -> vector<32x64xf32>
    %709 = vector.extract_strided_slice %1 {offsets = [2, 0], sizes = [1, 64], strides = [1, 1]} : vector<5x64xf32> to vector<1x64xf32>
    %710 = vector.broadcast %709 : vector<1x64xf32> to vector<32x64xf32>
    %711 = arith.addf %708, %710 : vector<32x64xf32>
    %cst_260 = arith.constant dense<0.000000e+00> : vector<64xf32>
    %712 = vector.multi_reduction <add>, %711, %cst_260 [0] : vector<32x64xf32> to vector<64xf32>
    %713 = vector.shape_cast %712 : vector<64xf32> to vector<1x64xf32>
    %cst_261 = arith.constant 3.125000e-02 : f32
    %714 = vector.broadcast %cst_261 : f32 to vector<1x64xf32>
    %715 = arith.mulf %713, %714 : vector<1x64xf32>
    %716 = arith.mulf %711, %711 : vector<32x64xf32>
    %cst_262 = arith.constant dense<0.000000e+00> : vector<64xf32>
    %717 = vector.multi_reduction <add>, %716, %cst_262 [0] : vector<32x64xf32> to vector<64xf32>
    %718 = vector.shape_cast %717 : vector<64xf32> to vector<1x64xf32>
    %cst_263 = arith.constant 3.125000e-02 : f32
    %719 = vector.broadcast %cst_263 : f32 to vector<1x64xf32>
    %720 = arith.mulf %718, %719 : vector<1x64xf32>
    %721 = arith.mulf %715, %715 : vector<1x64xf32>
    %722 = arith.subf %720, %721 : vector<1x64xf32>
    %cst_264 = arith.constant 0.000000e+00 : f32
    %723 = vector.broadcast %cst_264 : f32 to vector<1x64xf32>
    %724 = arith.maximumf %722, %723 : vector<1x64xf32>
    %725 = vector.extract_strided_slice %1 {offsets = [3, 0], sizes = [1, 64], strides = [1, 1]} : vector<5x64xf32> to vector<1x64xf32>
    %cst_265 = arith.constant 9.99999974E-6 : f32
    %726 = vector.broadcast %cst_265 : f32 to vector<1x64xf32>
    %727 = arith.addf %724, %726 : vector<1x64xf32>
    %728 = math.rsqrt %727 : vector<1x64xf32>
    %729 = arith.mulf %725, %728 : vector<1x64xf32>
    %730 = vector.broadcast %729 : vector<1x64xf32> to vector<32x64xf32>
    %731 = arith.mulf %711, %730 : vector<32x64xf32>
    %732 = vector.extract_strided_slice %1 {offsets = [4, 0], sizes = [1, 64], strides = [1, 1]} : vector<5x64xf32> to vector<1x64xf32>
    %733 = arith.mulf %715, %729 : vector<1x64xf32>
    %734 = arith.subf %732, %733 : vector<1x64xf32>
    %735 = vector.broadcast %734 : vector<1x64xf32> to vector<32x64xf32>
    %736 = arith.addf %731, %735 : vector<32x64xf32>
    %737 = vector.extract_strided_slice %736 {offsets = [0, 0], sizes = [32, 32], strides = [1, 1]} : vector<32x64xf32> to vector<32x32xf32>
    %738 = vector.extract_strided_slice %736 {offsets = [0, 32], sizes = [32, 32], strides = [1, 1]} : vector<32x64xf32> to vector<32x32xf32>
    %c39_i32_266 = arith.constant 39 : i32
    %739 = tpu.dynamic_rotate %683 by %c39_i32_266 dim 0 : vector<40x32xf32>, i32 -> vector<40x32xf32>
    %740 = arith.mulf %683, %739 : vector<40x32xf32>
    %cst_267 = arith.constant dense<0.000000e+00> : vector<40xf32>
    %741 = vector.multi_reduction <add>, %740, %cst_267 [1] : vector<40x32xf32> to vector<40xf32>
    %742 = vector.shape_cast %741 : vector<40xf32> to vector<40x1xf32>
    %cst_268 = arith.constant 0.000000e+00 : f32
    %743 = vector.broadcast %cst_268 : f32 to vector<40x1xf32>
    %744 = arith.maximumf %742, %743 : vector<40x1xf32>
    %cst_269 = arith.constant 0.000000e+00 : f32
    %745 = vector.broadcast %cst_269 : f32 to vector<40x1xf32>
    %746 = arith.select %20, %744, %745 : vector<40x1xi1>, vector<40x1xf32>
    %c32_i32_270 = arith.constant 32 : i32
    %747 = vector.broadcast %c32_i32_270 : i32 to vector<40x1xi32>
    %748 = arith.cmpi slt, %2, %747 : vector<40x1xi32>
    %749 = vector.extract_strided_slice %746 {offsets = [8, 0], sizes = [32, 1], strides = [1, 1]} : vector<40x1xf32> to vector<32x1xf32>
    %750 = vector.extract_strided_slice %746 {offsets = [0, 0], sizes = [8, 1], strides = [1, 1]} : vector<40x1xf32> to vector<8x1xf32>
    %751 = tpu.concatenate %749, %750 in 0 : vector<32x1xf32>, vector<8x1xf32> -> vector<40x1xf32>
    %cst_271 = arith.constant 0.000000e+00 : f32
    %752 = vector.broadcast %cst_271 : f32 to vector<40x1xf32>
    %753 = arith.select %748, %751, %752 : vector<40x1xi1>, vector<40x1xf32>
    %754 = arith.addf %746, %753 : vector<40x1xf32>
    %c24_i32_272 = arith.constant 24 : i32
    %755 = vector.broadcast %c24_i32_272 : i32 to vector<40x1xi32>
    %756 = arith.cmpi slt, %2, %755 : vector<40x1xi32>
    %757 = vector.extract_strided_slice %746 {offsets = [16, 0], sizes = [24, 1], strides = [1, 1]} : vector<40x1xf32> to vector<24x1xf32>
    %758 = vector.extract_strided_slice %746 {offsets = [0, 0], sizes = [16, 1], strides = [1, 1]} : vector<40x1xf32> to vector<16x1xf32>
    %759 = tpu.concatenate %757, %758 in 0 : vector<24x1xf32>, vector<16x1xf32> -> vector<40x1xf32>
    %cst_273 = arith.constant 0.000000e+00 : f32
    %760 = vector.broadcast %cst_273 : f32 to vector<40x1xf32>
    %761 = arith.select %756, %759, %760 : vector<40x1xi1>, vector<40x1xf32>
    %762 = arith.addf %754, %761 : vector<40x1xf32>
    %c16_i32_274 = arith.constant 16 : i32
    %763 = vector.broadcast %c16_i32_274 : i32 to vector<40x1xi32>
    %764 = arith.cmpi slt, %2, %763 : vector<40x1xi32>
    %765 = vector.extract_strided_slice %746 {offsets = [24, 0], sizes = [16, 1], strides = [1, 1]} : vector<40x1xf32> to vector<16x1xf32>
    %766 = vector.extract_strided_slice %746 {offsets = [0, 0], sizes = [24, 1], strides = [1, 1]} : vector<40x1xf32> to vector<24x1xf32>
    %767 = tpu.concatenate %765, %766 in 0 : vector<16x1xf32>, vector<24x1xf32> -> vector<40x1xf32>
    %cst_275 = arith.constant 0.000000e+00 : f32
    %768 = vector.broadcast %cst_275 : f32 to vector<40x1xf32>
    %769 = arith.select %764, %767, %768 : vector<40x1xi1>, vector<40x1xf32>
    %770 = arith.addf %762, %769 : vector<40x1xf32>
    %c8_i32_276 = arith.constant 8 : i32
    %771 = vector.broadcast %c8_i32_276 : i32 to vector<40x1xi32>
    %772 = arith.cmpi slt, %2, %771 : vector<40x1xi32>
    %773 = vector.extract_strided_slice %746 {offsets = [32, 0], sizes = [8, 1], strides = [1, 1]} : vector<40x1xf32> to vector<8x1xf32>
    %774 = vector.extract_strided_slice %746 {offsets = [0, 0], sizes = [32, 1], strides = [1, 1]} : vector<40x1xf32> to vector<32x1xf32>
    %775 = tpu.concatenate %773, %774 in 0 : vector<8x1xf32>, vector<32x1xf32> -> vector<40x1xf32>
    %cst_277 = arith.constant 0.000000e+00 : f32
    %776 = vector.broadcast %cst_277 : f32 to vector<40x1xf32>
    %777 = arith.select %772, %775, %776 : vector<40x1xi1>, vector<40x1xf32>
    %778 = arith.addf %770, %777 : vector<40x1xf32>
    %cst_278 = arith.constant 0.000000e+00 : f32
    %779 = vector.broadcast %cst_278 : f32 to vector<40x1xf32>
    %780 = arith.subf %779, %778 : vector<40x1xf32>
    %781 = math.exp %780 : vector<40x1xf32>
    %cst_279 = arith.constant 1.000000e-01 : f32
    %782 = vector.broadcast %cst_279 : f32 to vector<40x1xf32>
    %783 = arith.mulf %782, %781 : vector<40x1xf32>
    %cst_280 = arith.constant 1.000000e-01 : f32
    %784 = vector.broadcast %cst_280 : f32 to vector<40x1xf32>
    %785 = arith.subf %784, %783 : vector<40x1xf32>
    %786 = vector.broadcast %785 : vector<40x1xf32> to vector<40x32xf32>
    %787 = arith.mulf %786, %739 : vector<40x32xf32>
    %788 = vector.broadcast %785 : vector<40x1xf32> to vector<40x32xf32>
    %789 = arith.mulf %788, %683 : vector<40x32xf32>
    %c1_i32_281 = arith.constant 1 : i32
    %790 = tpu.dynamic_rotate %789 by %c1_i32_281 dim 0 : vector<40x32xf32>, i32 -> vector<40x32xf32>
    %791 = arith.addf %787, %790 : vector<40x32xf32>
    %cst_282 = arith.constant 0.699999988 : f32
    %792 = vector.broadcast %cst_282 : f32 to vector<40x32xf32>
    %793 = arith.mulf %792, %683 : vector<40x32xf32>
    %794 = arith.addf %793, %791 : vector<40x32xf32>
    %795 = vector.extract_strided_slice %794 {offsets = [0, 0], sizes = [8, 32], strides = [1, 1]} : vector<40x32xf32> to vector<8x32xf32>
    %796 = arith.addf %795, %45 : vector<8x32xf32>
    %797 = vector.extract_strided_slice %738 {offsets = [0, 0], sizes = [8, 32], strides = [1, 1]} : vector<32x32xf32> to vector<8x32xf32>
    %798 = arith.addf %796, %797 : vector<8x32xf32>
    %c0_283 = arith.constant 0 : index
    %c0_284 = arith.constant 0 : index
    %799 = vector.load %arg6[%c0_283, %c0_284] : memref<40x32xf32, #tpu.memory_space<vmem>>, vector<8x32xf32>
    tpu.vector_store %arg6[%c0_283, %c0_284], %798 {strides = array<i32>} : memref<40x32xf32, #tpu.memory_space<vmem>>, vector<8x32xf32>,
    %800 = vector.extract_strided_slice %794 {offsets = [8, 0], sizes = [24, 32], strides = [1, 1]} : vector<40x32xf32> to vector<24x32xf32>
    %801 = vector.extract_strided_slice %737 {offsets = [0, 0], sizes = [24, 32], strides = [1, 1]} : vector<32x32xf32> to vector<24x32xf32>
    %802 = arith.addf %800, %801 : vector<24x32xf32>
    %803 = vector.extract_strided_slice %738 {offsets = [8, 0], sizes = [24, 32], strides = [1, 1]} : vector<32x32xf32> to vector<24x32xf32>
    %804 = arith.addf %802, %803 : vector<24x32xf32>
    %c8_285 = arith.constant 8 : index
    %c0_286 = arith.constant 0 : index
    %805 = vector.load %arg6[%c8_285, %c0_286] : memref<40x32xf32, #tpu.memory_space<vmem>>, vector<24x32xf32>
    tpu.vector_store %arg6[%c8_285, %c0_286], %804 {strides = array<i32>} : memref<40x32xf32, #tpu.memory_space<vmem>>, vector<24x32xf32>,
    %806 = vector.extract_strided_slice %794 {offsets = [32, 0], sizes = [8, 32], strides = [1, 1]} : vector<40x32xf32> to vector<8x32xf32>
    %807 = vector.extract_strided_slice %737 {offsets = [24, 0], sizes = [8, 32], strides = [1, 1]} : vector<32x32xf32> to vector<8x32xf32>
    %808 = arith.addf %806, %807 : vector<8x32xf32>
    %c32_287 = arith.constant 32 : index
    %c0_288 = arith.constant 0 : index
    %809 = vector.load %arg6[%c32_287, %c0_288] : memref<40x32xf32, #tpu.memory_space<vmem>>, vector<8x32xf32>
    tpu.vector_store %arg6[%c32_287, %c0_288], %808 {strides = array<i32>} : memref<40x32xf32, #tpu.memory_space<vmem>>, vector<8x32xf32>,
    %c6_i32 = arith.constant 6 : i32
    %c0_289 = arith.constant 0 : index
    %c0_290 = arith.constant 0 : index
    %810 = vector.load %arg6[%c0_289, %c0_290] : memref<40x32xf32, #tpu.memory_space<vmem>>, vector<40x32xf32>
    %811 = arith.truncf %810 : vector<40x32xf32> to vector<40x32xbf16>
    %812 = vector.extract_strided_slice %811 {offsets = [0, 0], sizes = [32, 32], strides = [1, 1]} : vector<40x32xbf16> to vector<32x32xbf16>
    %813 = vector.extract_strided_slice %811 {offsets = [8, 0], sizes = [32, 32], strides = [1, 1]} : vector<40x32xbf16> to vector<32x32xbf16>
    %814 = tpu.concatenate %812, %813 in 1 : vector<32x32xbf16>, vector<32x32xbf16> -> vector<32x64xbf16>
    %c0_291 = arith.constant 0 : index
    %c0_292 = arith.constant 0 : index
    %c0_293 = arith.constant 0 : index
    %815 = vector.load %arg4[%c0_291, %c0_292, %c0_293] : memref<3x64x64xbf16, #tpu.memory_space<vmem>>, vector<1x64x64xbf16>
    %816 = vector.shape_cast %815 : vector<1x64x64xbf16> to vector<64x64xbf16>
    %cst_294 = arith.constant dense<0.000000e+00> : vector<32x64xf32>
    %817 = tpu.matmul %814, %816, %cst_294 {dimension_numbers = #tpu.dot_dimension_numbers<[1], [0], [0], [1], [0, 0, 1, 1], [], []>} : vector<32x64xbf16>, vector<64x64xbf16>, vector<32x64xf32> -> vector<32x64xf32>
    %818 = vector.extract_strided_slice %1 {offsets = [0, 0], sizes = [1, 64], strides = [1, 1]} : vector<5x64xf32> to vector<1x64xf32>
    %819 = vector.broadcast %818 : vector<1x64xf32> to vector<32x64xf32>
    %820 = arith.addf %817, %819 : vector<32x64xf32>
    %cst_295 = arith.constant 0.000000e+00 : f32
    %821 = vector.broadcast %cst_295 : f32 to vector<32x64xf32>
    %822 = arith.maximumf %820, %821 : vector<32x64xf32>
    %823 = arith.truncf %822 : vector<32x64xf32> to vector<32x64xbf16>
    %c1_296 = arith.constant 1 : index
    %c0_297 = arith.constant 0 : index
    %c0_298 = arith.constant 0 : index
    %824 = vector.load %arg4[%c1_296, %c0_297, %c0_298] : memref<3x64x64xbf16, #tpu.memory_space<vmem>>, vector<1x64x64xbf16>
    %825 = vector.shape_cast %824 : vector<1x64x64xbf16> to vector<64x64xbf16>
    %cst_299 = arith.constant dense<0.000000e+00> : vector<32x64xf32>
    %826 = tpu.matmul %823, %825, %cst_299 {dimension_numbers = #tpu.dot_dimension_numbers<[1], [0], [0], [1], [0, 0, 1, 1], [], []>} : vector<32x64xbf16>, vector<64x64xbf16>, vector<32x64xf32> -> vector<32x64xf32>
    %827 = vector.extract_strided_slice %1 {offsets = [1, 0], sizes = [1, 64], strides = [1, 1]} : vector<5x64xf32> to vector<1x64xf32>
    %828 = vector.broadcast %827 : vector<1x64xf32> to vector<32x64xf32>
    %829 = arith.addf %826, %828 : vector<32x64xf32>
    %cst_300 = arith.constant 0.000000e+00 : f32
    %830 = vector.broadcast %cst_300 : f32 to vector<32x64xf32>
    %831 = arith.maximumf %829, %830 : vector<32x64xf32>
    %832 = arith.truncf %831 : vector<32x64xf32> to vector<32x64xbf16>
    %c2_301 = arith.constant 2 : index
    %c0_302 = arith.constant 0 : index
    %c0_303 = arith.constant 0 : index
    %833 = vector.load %arg4[%c2_301, %c0_302, %c0_303] : memref<3x64x64xbf16, #tpu.memory_space<vmem>>, vector<1x64x64xbf16>
    %834 = vector.shape_cast %833 : vector<1x64x64xbf16> to vector<64x64xbf16>
    %cst_304 = arith.constant dense<0.000000e+00> : vector<32x64xf32>
    %835 = tpu.matmul %832, %834, %cst_304 {dimension_numbers = #tpu.dot_dimension_numbers<[1], [0], [0], [1], [0, 0, 1, 1], [], []>} : vector<32x64xbf16>, vector<64x64xbf16>, vector<32x64xf32> -> vector<32x64xf32>
    %836 = vector.extract_strided_slice %1 {offsets = [2, 0], sizes = [1, 64], strides = [1, 1]} : vector<5x64xf32> to vector<1x64xf32>
    %837 = vector.broadcast %836 : vector<1x64xf32> to vector<32x64xf32>
    %838 = arith.addf %835, %837 : vector<32x64xf32>
    %cst_305 = arith.constant dense<0.000000e+00> : vector<64xf32>
    %839 = vector.multi_reduction <add>, %838, %cst_305 [0] : vector<32x64xf32> to vector<64xf32>
    %840 = vector.shape_cast %839 : vector<64xf32> to vector<1x64xf32>
    %cst_306 = arith.constant 3.125000e-02 : f32
    %841 = vector.broadcast %cst_306 : f32 to vector<1x64xf32>
    %842 = arith.mulf %840, %841 : vector<1x64xf32>
    %843 = arith.mulf %838, %838 : vector<32x64xf32>
    %cst_307 = arith.constant dense<0.000000e+00> : vector<64xf32>
    %844 = vector.multi_reduction <add>, %843, %cst_307 [0] : vector<32x64xf32> to vector<64xf32>
    %845 = vector.shape_cast %844 : vector<64xf32> to vector<1x64xf32>
    %cst_308 = arith.constant 3.125000e-02 : f32
    %846 = vector.broadcast %cst_308 : f32 to vector<1x64xf32>
    %847 = arith.mulf %845, %846 : vector<1x64xf32>
    %848 = arith.mulf %842, %842 : vector<1x64xf32>
    %849 = arith.subf %847, %848 : vector<1x64xf32>
    %cst_309 = arith.constant 0.000000e+00 : f32
    %850 = vector.broadcast %cst_309 : f32 to vector<1x64xf32>
    %851 = arith.maximumf %849, %850 : vector<1x64xf32>
    %852 = vector.extract_strided_slice %1 {offsets = [3, 0], sizes = [1, 64], strides = [1, 1]} : vector<5x64xf32> to vector<1x64xf32>
    %cst_310 = arith.constant 9.99999974E-6 : f32
    %853 = vector.broadcast %cst_310 : f32 to vector<1x64xf32>
    %854 = arith.addf %851, %853 : vector<1x64xf32>
    %855 = math.rsqrt %854 : vector<1x64xf32>
    %856 = arith.mulf %852, %855 : vector<1x64xf32>
    %857 = vector.broadcast %856 : vector<1x64xf32> to vector<32x64xf32>
    %858 = arith.mulf %838, %857 : vector<32x64xf32>
    %859 = vector.extract_strided_slice %1 {offsets = [4, 0], sizes = [1, 64], strides = [1, 1]} : vector<5x64xf32> to vector<1x64xf32>
    %860 = arith.mulf %842, %856 : vector<1x64xf32>
    %861 = arith.subf %859, %860 : vector<1x64xf32>
    %862 = vector.broadcast %861 : vector<1x64xf32> to vector<32x64xf32>
    %863 = arith.addf %858, %862 : vector<32x64xf32>
    %864 = vector.extract_strided_slice %863 {offsets = [0, 0], sizes = [32, 32], strides = [1, 1]} : vector<32x64xf32> to vector<32x32xf32>
    %865 = vector.extract_strided_slice %863 {offsets = [0, 32], sizes = [32, 32], strides = [1, 1]} : vector<32x64xf32> to vector<32x32xf32>
    %c39_i32_311 = arith.constant 39 : i32
    %866 = tpu.dynamic_rotate %810 by %c39_i32_311 dim 0 : vector<40x32xf32>, i32 -> vector<40x32xf32>
    %867 = arith.mulf %810, %866 : vector<40x32xf32>
    %cst_312 = arith.constant dense<0.000000e+00> : vector<40xf32>
    %868 = vector.multi_reduction <add>, %867, %cst_312 [1] : vector<40x32xf32> to vector<40xf32>
    %869 = vector.shape_cast %868 : vector<40xf32> to vector<40x1xf32>
    %cst_313 = arith.constant 0.000000e+00 : f32
    %870 = vector.broadcast %cst_313 : f32 to vector<40x1xf32>
    %871 = arith.maximumf %869, %870 : vector<40x1xf32>
    %cst_314 = arith.constant 0.000000e+00 : f32
    %872 = vector.broadcast %cst_314 : f32 to vector<40x1xf32>
    %873 = arith.select %20, %871, %872 : vector<40x1xi1>, vector<40x1xf32>
    %c32_i32_315 = arith.constant 32 : i32
    %874 = vector.broadcast %c32_i32_315 : i32 to vector<40x1xi32>
    %875 = arith.cmpi slt, %2, %874 : vector<40x1xi32>
    %876 = vector.extract_strided_slice %873 {offsets = [8, 0], sizes = [32, 1], strides = [1, 1]} : vector<40x1xf32> to vector<32x1xf32>
    %877 = vector.extract_strided_slice %873 {offsets = [0, 0], sizes = [8, 1], strides = [1, 1]} : vector<40x1xf32> to vector<8x1xf32>
    %878 = tpu.concatenate %876, %877 in 0 : vector<32x1xf32>, vector<8x1xf32> -> vector<40x1xf32>
    %cst_316 = arith.constant 0.000000e+00 : f32
    %879 = vector.broadcast %cst_316 : f32 to vector<40x1xf32>
    %880 = arith.select %875, %878, %879 : vector<40x1xi1>, vector<40x1xf32>
    %881 = arith.addf %873, %880 : vector<40x1xf32>
    %c24_i32_317 = arith.constant 24 : i32
    %882 = vector.broadcast %c24_i32_317 : i32 to vector<40x1xi32>
    %883 = arith.cmpi slt, %2, %882 : vector<40x1xi32>
    %884 = vector.extract_strided_slice %873 {offsets = [16, 0], sizes = [24, 1], strides = [1, 1]} : vector<40x1xf32> to vector<24x1xf32>
    %885 = vector.extract_strided_slice %873 {offsets = [0, 0], sizes = [16, 1], strides = [1, 1]} : vector<40x1xf32> to vector<16x1xf32>
    %886 = tpu.concatenate %884, %885 in 0 : vector<24x1xf32>, vector<16x1xf32> -> vector<40x1xf32>
    %cst_318 = arith.constant 0.000000e+00 : f32
    %887 = vector.broadcast %cst_318 : f32 to vector<40x1xf32>
    %888 = arith.select %883, %886, %887 : vector<40x1xi1>, vector<40x1xf32>
    %889 = arith.addf %881, %888 : vector<40x1xf32>
    %c16_i32_319 = arith.constant 16 : i32
    %890 = vector.broadcast %c16_i32_319 : i32 to vector<40x1xi32>
    %891 = arith.cmpi slt, %2, %890 : vector<40x1xi32>
    %892 = vector.extract_strided_slice %873 {offsets = [24, 0], sizes = [16, 1], strides = [1, 1]} : vector<40x1xf32> to vector<16x1xf32>
    %893 = vector.extract_strided_slice %873 {offsets = [0, 0], sizes = [24, 1], strides = [1, 1]} : vector<40x1xf32> to vector<24x1xf32>
    %894 = tpu.concatenate %892, %893 in 0 : vector<16x1xf32>, vector<24x1xf32> -> vector<40x1xf32>
    %cst_320 = arith.constant 0.000000e+00 : f32
    %895 = vector.broadcast %cst_320 : f32 to vector<40x1xf32>
    %896 = arith.select %891, %894, %895 : vector<40x1xi1>, vector<40x1xf32>
    %897 = arith.addf %889, %896 : vector<40x1xf32>
    %c8_i32_321 = arith.constant 8 : i32
    %898 = vector.broadcast %c8_i32_321 : i32 to vector<40x1xi32>
    %899 = arith.cmpi slt, %2, %898 : vector<40x1xi32>
    %900 = vector.extract_strided_slice %873 {offsets = [32, 0], sizes = [8, 1], strides = [1, 1]} : vector<40x1xf32> to vector<8x1xf32>
    %901 = vector.extract_strided_slice %873 {offsets = [0, 0], sizes = [32, 1], strides = [1, 1]} : vector<40x1xf32> to vector<32x1xf32>
    %902 = tpu.concatenate %900, %901 in 0 : vector<8x1xf32>, vector<32x1xf32> -> vector<40x1xf32>
    %cst_322 = arith.constant 0.000000e+00 : f32
    %903 = vector.broadcast %cst_322 : f32 to vector<40x1xf32>
    %904 = arith.select %899, %902, %903 : vector<40x1xi1>, vector<40x1xf32>
    %905 = arith.addf %897, %904 : vector<40x1xf32>
    %cst_323 = arith.constant 0.000000e+00 : f32
    %906 = vector.broadcast %cst_323 : f32 to vector<40x1xf32>
    %907 = arith.subf %906, %905 : vector<40x1xf32>
    %908 = math.exp %907 : vector<40x1xf32>
    %cst_324 = arith.constant 1.000000e-01 : f32
    %909 = vector.broadcast %cst_324 : f32 to vector<40x1xf32>
    %910 = arith.mulf %909, %908 : vector<40x1xf32>
    %cst_325 = arith.constant 1.000000e-01 : f32
    %911 = vector.broadcast %cst_325 : f32 to vector<40x1xf32>
    %912 = arith.subf %911, %910 : vector<40x1xf32>
    %913 = vector.broadcast %912 : vector<40x1xf32> to vector<40x32xf32>
    %914 = arith.mulf %913, %866 : vector<40x32xf32>
    %915 = vector.broadcast %912 : vector<40x1xf32> to vector<40x32xf32>
    %916 = arith.mulf %915, %810 : vector<40x32xf32>
    %c1_i32_326 = arith.constant 1 : i32
    %917 = tpu.dynamic_rotate %916 by %c1_i32_326 dim 0 : vector<40x32xf32>, i32 -> vector<40x32xf32>
    %918 = arith.addf %914, %917 : vector<40x32xf32>
    %cst_327 = arith.constant 0.699999988 : f32
    %919 = vector.broadcast %cst_327 : f32 to vector<40x32xf32>
    %920 = arith.mulf %919, %810 : vector<40x32xf32>
    %921 = arith.addf %920, %918 : vector<40x32xf32>
    %922 = vector.extract_strided_slice %921 {offsets = [0, 0], sizes = [8, 32], strides = [1, 1]} : vector<40x32xf32> to vector<8x32xf32>
    %923 = arith.addf %922, %45 : vector<8x32xf32>
    %924 = vector.extract_strided_slice %865 {offsets = [0, 0], sizes = [8, 32], strides = [1, 1]} : vector<32x32xf32> to vector<8x32xf32>
    %925 = arith.addf %923, %924 : vector<8x32xf32>
    %c0_328 = arith.constant 0 : index
    %c0_329 = arith.constant 0 : index
    %926 = vector.load %arg6[%c0_328, %c0_329] : memref<40x32xf32, #tpu.memory_space<vmem>>, vector<8x32xf32>
    tpu.vector_store %arg6[%c0_328, %c0_329], %925 {strides = array<i32>} : memref<40x32xf32, #tpu.memory_space<vmem>>, vector<8x32xf32>,
    %927 = vector.extract_strided_slice %921 {offsets = [8, 0], sizes = [24, 32], strides = [1, 1]} : vector<40x32xf32> to vector<24x32xf32>
    %928 = vector.extract_strided_slice %864 {offsets = [0, 0], sizes = [24, 32], strides = [1, 1]} : vector<32x32xf32> to vector<24x32xf32>
    %929 = arith.addf %927, %928 : vector<24x32xf32>
    %930 = vector.extract_strided_slice %865 {offsets = [8, 0], sizes = [24, 32], strides = [1, 1]} : vector<32x32xf32> to vector<24x32xf32>
    %931 = arith.addf %929, %930 : vector<24x32xf32>
    %c8_330 = arith.constant 8 : index
    %c0_331 = arith.constant 0 : index
    %932 = vector.load %arg6[%c8_330, %c0_331] : memref<40x32xf32, #tpu.memory_space<vmem>>, vector<24x32xf32>
    tpu.vector_store %arg6[%c8_330, %c0_331], %931 {strides = array<i32>} : memref<40x32xf32, #tpu.memory_space<vmem>>, vector<24x32xf32>,
    %933 = vector.extract_strided_slice %921 {offsets = [32, 0], sizes = [8, 32], strides = [1, 1]} : vector<40x32xf32> to vector<8x32xf32>
    %934 = vector.extract_strided_slice %864 {offsets = [24, 0], sizes = [8, 32], strides = [1, 1]} : vector<32x32xf32> to vector<8x32xf32>
    %935 = arith.addf %933, %934 : vector<8x32xf32>
    %c32_332 = arith.constant 32 : index
    %c0_333 = arith.constant 0 : index
    %936 = vector.load %arg6[%c32_332, %c0_333] : memref<40x32xf32, #tpu.memory_space<vmem>>, vector<8x32xf32>
    tpu.vector_store %arg6[%c32_332, %c0_333], %935 {strides = array<i32>} : memref<40x32xf32, #tpu.memory_space<vmem>>, vector<8x32xf32>,
    %c7_i32_334 = arith.constant 7 : i32
    %c0_335 = arith.constant 0 : index
    %c0_336 = arith.constant 0 : index
    %937 = vector.load %arg6[%c0_335, %c0_336] : memref<40x32xf32, #tpu.memory_space<vmem>>, vector<40x32xf32>
    %938 = arith.truncf %937 : vector<40x32xf32> to vector<40x32xbf16>
    %939 = vector.extract_strided_slice %938 {offsets = [0, 0], sizes = [32, 32], strides = [1, 1]} : vector<40x32xbf16> to vector<32x32xbf16>
    %940 = vector.extract_strided_slice %938 {offsets = [8, 0], sizes = [32, 32], strides = [1, 1]} : vector<40x32xbf16> to vector<32x32xbf16>
    %941 = tpu.concatenate %939, %940 in 1 : vector<32x32xbf16>, vector<32x32xbf16> -> vector<32x64xbf16>
    %c0_337 = arith.constant 0 : index
    %c0_338 = arith.constant 0 : index
    %c0_339 = arith.constant 0 : index
    %942 = vector.load %arg4[%c0_337, %c0_338, %c0_339] : memref<3x64x64xbf16, #tpu.memory_space<vmem>>, vector<1x64x64xbf16>
    %943 = vector.shape_cast %942 : vector<1x64x64xbf16> to vector<64x64xbf16>
    %cst_340 = arith.constant dense<0.000000e+00> : vector<32x64xf32>
    %944 = tpu.matmul %941, %943, %cst_340 {dimension_numbers = #tpu.dot_dimension_numbers<[1], [0], [0], [1], [0, 0, 1, 1], [], []>} : vector<32x64xbf16>, vector<64x64xbf16>, vector<32x64xf32> -> vector<32x64xf32>
    %945 = vector.extract_strided_slice %1 {offsets = [0, 0], sizes = [1, 64], strides = [1, 1]} : vector<5x64xf32> to vector<1x64xf32>
    %946 = vector.broadcast %945 : vector<1x64xf32> to vector<32x64xf32>
    %947 = arith.addf %944, %946 : vector<32x64xf32>
    %cst_341 = arith.constant 0.000000e+00 : f32
    %948 = vector.broadcast %cst_341 : f32 to vector<32x64xf32>
    %949 = arith.maximumf %947, %948 : vector<32x64xf32>
    %950 = arith.truncf %949 : vector<32x64xf32> to vector<32x64xbf16>
    %c1_342 = arith.constant 1 : index
    %c0_343 = arith.constant 0 : index
    %c0_344 = arith.constant 0 : index
    %951 = vector.load %arg4[%c1_342, %c0_343, %c0_344] : memref<3x64x64xbf16, #tpu.memory_space<vmem>>, vector<1x64x64xbf16>
    %952 = vector.shape_cast %951 : vector<1x64x64xbf16> to vector<64x64xbf16>
    %cst_345 = arith.constant dense<0.000000e+00> : vector<32x64xf32>
    %953 = tpu.matmul %950, %952, %cst_345 {dimension_numbers = #tpu.dot_dimension_numbers<[1], [0], [0], [1], [0, 0, 1, 1], [], []>} : vector<32x64xbf16>, vector<64x64xbf16>, vector<32x64xf32> -> vector<32x64xf32>
    %954 = vector.extract_strided_slice %1 {offsets = [1, 0], sizes = [1, 64], strides = [1, 1]} : vector<5x64xf32> to vector<1x64xf32>
    %955 = vector.broadcast %954 : vector<1x64xf32> to vector<32x64xf32>
    %956 = arith.addf %953, %955 : vector<32x64xf32>
    %cst_346 = arith.constant 0.000000e+00 : f32
    %957 = vector.broadcast %cst_346 : f32 to vector<32x64xf32>
    %958 = arith.maximumf %956, %957 : vector<32x64xf32>
    %959 = arith.truncf %958 : vector<32x64xf32> to vector<32x64xbf16>
    %c2_347 = arith.constant 2 : index
    %c0_348 = arith.constant 0 : index
    %c0_349 = arith.constant 0 : index
    %960 = vector.load %arg4[%c2_347, %c0_348, %c0_349] : memref<3x64x64xbf16, #tpu.memory_space<vmem>>, vector<1x64x64xbf16>
    %961 = vector.shape_cast %960 : vector<1x64x64xbf16> to vector<64x64xbf16>
    %cst_350 = arith.constant dense<0.000000e+00> : vector<32x64xf32>
    %962 = tpu.matmul %959, %961, %cst_350 {dimension_numbers = #tpu.dot_dimension_numbers<[1], [0], [0], [1], [0, 0, 1, 1], [], []>} : vector<32x64xbf16>, vector<64x64xbf16>, vector<32x64xf32> -> vector<32x64xf32>
    %963 = vector.extract_strided_slice %1 {offsets = [2, 0], sizes = [1, 64], strides = [1, 1]} : vector<5x64xf32> to vector<1x64xf32>
    %964 = vector.broadcast %963 : vector<1x64xf32> to vector<32x64xf32>
    %965 = arith.addf %962, %964 : vector<32x64xf32>
    %cst_351 = arith.constant dense<0.000000e+00> : vector<64xf32>
    %966 = vector.multi_reduction <add>, %965, %cst_351 [0] : vector<32x64xf32> to vector<64xf32>
    %967 = vector.shape_cast %966 : vector<64xf32> to vector<1x64xf32>
    %cst_352 = arith.constant 3.125000e-02 : f32
    %968 = vector.broadcast %cst_352 : f32 to vector<1x64xf32>
    %969 = arith.mulf %967, %968 : vector<1x64xf32>
    %970 = arith.mulf %965, %965 : vector<32x64xf32>
    %cst_353 = arith.constant dense<0.000000e+00> : vector<64xf32>
    %971 = vector.multi_reduction <add>, %970, %cst_353 [0] : vector<32x64xf32> to vector<64xf32>
    %972 = vector.shape_cast %971 : vector<64xf32> to vector<1x64xf32>
    %cst_354 = arith.constant 3.125000e-02 : f32
    %973 = vector.broadcast %cst_354 : f32 to vector<1x64xf32>
    %974 = arith.mulf %972, %973 : vector<1x64xf32>
    %975 = arith.mulf %969, %969 : vector<1x64xf32>
    %976 = arith.subf %974, %975 : vector<1x64xf32>
    %cst_355 = arith.constant 0.000000e+00 : f32
    %977 = vector.broadcast %cst_355 : f32 to vector<1x64xf32>
    %978 = arith.maximumf %976, %977 : vector<1x64xf32>
    %979 = vector.extract_strided_slice %1 {offsets = [3, 0], sizes = [1, 64], strides = [1, 1]} : vector<5x64xf32> to vector<1x64xf32>
    %cst_356 = arith.constant 9.99999974E-6 : f32
    %980 = vector.broadcast %cst_356 : f32 to vector<1x64xf32>
    %981 = arith.addf %978, %980 : vector<1x64xf32>
    %982 = math.rsqrt %981 : vector<1x64xf32>
    %983 = arith.mulf %979, %982 : vector<1x64xf32>
    %984 = vector.broadcast %983 : vector<1x64xf32> to vector<32x64xf32>
    %985 = arith.mulf %965, %984 : vector<32x64xf32>
    %986 = vector.extract_strided_slice %1 {offsets = [4, 0], sizes = [1, 64], strides = [1, 1]} : vector<5x64xf32> to vector<1x64xf32>
    %987 = arith.mulf %969, %983 : vector<1x64xf32>
    %988 = arith.subf %986, %987 : vector<1x64xf32>
    %989 = vector.broadcast %988 : vector<1x64xf32> to vector<32x64xf32>
    %990 = arith.addf %985, %989 : vector<32x64xf32>
    %991 = vector.extract_strided_slice %990 {offsets = [0, 0], sizes = [32, 32], strides = [1, 1]} : vector<32x64xf32> to vector<32x32xf32>
    %992 = vector.extract_strided_slice %990 {offsets = [0, 32], sizes = [32, 32], strides = [1, 1]} : vector<32x64xf32> to vector<32x32xf32>
    %c39_i32_357 = arith.constant 39 : i32
    %993 = tpu.dynamic_rotate %937 by %c39_i32_357 dim 0 : vector<40x32xf32>, i32 -> vector<40x32xf32>
    %994 = arith.mulf %937, %993 : vector<40x32xf32>
    %cst_358 = arith.constant dense<0.000000e+00> : vector<40xf32>
    %995 = vector.multi_reduction <add>, %994, %cst_358 [1] : vector<40x32xf32> to vector<40xf32>
    %996 = vector.shape_cast %995 : vector<40xf32> to vector<40x1xf32>
    %cst_359 = arith.constant 0.000000e+00 : f32
    %997 = vector.broadcast %cst_359 : f32 to vector<40x1xf32>
    %998 = arith.maximumf %996, %997 : vector<40x1xf32>
    %cst_360 = arith.constant 0.000000e+00 : f32
    %999 = vector.broadcast %cst_360 : f32 to vector<40x1xf32>
    %1000 = arith.select %20, %998, %999 : vector<40x1xi1>, vector<40x1xf32>
    %c32_i32_361 = arith.constant 32 : i32
    %1001 = vector.broadcast %c32_i32_361 : i32 to vector<40x1xi32>
    %1002 = arith.cmpi slt, %2, %1001 : vector<40x1xi32>
    %1003 = vector.extract_strided_slice %1000 {offsets = [8, 0], sizes = [32, 1], strides = [1, 1]} : vector<40x1xf32> to vector<32x1xf32>
    %1004 = vector.extract_strided_slice %1000 {offsets = [0, 0], sizes = [8, 1], strides = [1, 1]} : vector<40x1xf32> to vector<8x1xf32>
    %1005 = tpu.concatenate %1003, %1004 in 0 : vector<32x1xf32>, vector<8x1xf32> -> vector<40x1xf32>
    %cst_362 = arith.constant 0.000000e+00 : f32
    %1006 = vector.broadcast %cst_362 : f32 to vector<40x1xf32>
    %1007 = arith.select %1002, %1005, %1006 : vector<40x1xi1>, vector<40x1xf32>
    %1008 = arith.addf %1000, %1007 : vector<40x1xf32>
    %c24_i32_363 = arith.constant 24 : i32
    %1009 = vector.broadcast %c24_i32_363 : i32 to vector<40x1xi32>
    %1010 = arith.cmpi slt, %2, %1009 : vector<40x1xi32>
    %1011 = vector.extract_strided_slice %1000 {offsets = [16, 0], sizes = [24, 1], strides = [1, 1]} : vector<40x1xf32> to vector<24x1xf32>
    %1012 = vector.extract_strided_slice %1000 {offsets = [0, 0], sizes = [16, 1], strides = [1, 1]} : vector<40x1xf32> to vector<16x1xf32>
    %1013 = tpu.concatenate %1011, %1012 in 0 : vector<24x1xf32>, vector<16x1xf32> -> vector<40x1xf32>
    %cst_364 = arith.constant 0.000000e+00 : f32
    %1014 = vector.broadcast %cst_364 : f32 to vector<40x1xf32>
    %1015 = arith.select %1010, %1013, %1014 : vector<40x1xi1>, vector<40x1xf32>
    %1016 = arith.addf %1008, %1015 : vector<40x1xf32>
    %c16_i32_365 = arith.constant 16 : i32
    %1017 = vector.broadcast %c16_i32_365 : i32 to vector<40x1xi32>
    %1018 = arith.cmpi slt, %2, %1017 : vector<40x1xi32>
    %1019 = vector.extract_strided_slice %1000 {offsets = [24, 0], sizes = [16, 1], strides = [1, 1]} : vector<40x1xf32> to vector<16x1xf32>
    %1020 = vector.extract_strided_slice %1000 {offsets = [0, 0], sizes = [24, 1], strides = [1, 1]} : vector<40x1xf32> to vector<24x1xf32>
    %1021 = tpu.concatenate %1019, %1020 in 0 : vector<16x1xf32>, vector<24x1xf32> -> vector<40x1xf32>
    %cst_366 = arith.constant 0.000000e+00 : f32
    %1022 = vector.broadcast %cst_366 : f32 to vector<40x1xf32>
    %1023 = arith.select %1018, %1021, %1022 : vector<40x1xi1>, vector<40x1xf32>
    %1024 = arith.addf %1016, %1023 : vector<40x1xf32>
    %c8_i32_367 = arith.constant 8 : i32
    %1025 = vector.broadcast %c8_i32_367 : i32 to vector<40x1xi32>
    %1026 = arith.cmpi slt, %2, %1025 : vector<40x1xi32>
    %1027 = vector.extract_strided_slice %1000 {offsets = [32, 0], sizes = [8, 1], strides = [1, 1]} : vector<40x1xf32> to vector<8x1xf32>
    %1028 = vector.extract_strided_slice %1000 {offsets = [0, 0], sizes = [32, 1], strides = [1, 1]} : vector<40x1xf32> to vector<32x1xf32>
    %1029 = tpu.concatenate %1027, %1028 in 0 : vector<8x1xf32>, vector<32x1xf32> -> vector<40x1xf32>
    %cst_368 = arith.constant 0.000000e+00 : f32
    %1030 = vector.broadcast %cst_368 : f32 to vector<40x1xf32>
    %1031 = arith.select %1026, %1029, %1030 : vector<40x1xi1>, vector<40x1xf32>
    %1032 = arith.addf %1024, %1031 : vector<40x1xf32>
    %cst_369 = arith.constant 0.000000e+00 : f32
    %1033 = vector.broadcast %cst_369 : f32 to vector<40x1xf32>
    %1034 = arith.subf %1033, %1032 : vector<40x1xf32>
    %1035 = math.exp %1034 : vector<40x1xf32>
    %cst_370 = arith.constant 1.000000e-01 : f32
    %1036 = vector.broadcast %cst_370 : f32 to vector<40x1xf32>
    %1037 = arith.mulf %1036, %1035 : vector<40x1xf32>
    %cst_371 = arith.constant 1.000000e-01 : f32
    %1038 = vector.broadcast %cst_371 : f32 to vector<40x1xf32>
    %1039 = arith.subf %1038, %1037 : vector<40x1xf32>
    %1040 = vector.broadcast %1039 : vector<40x1xf32> to vector<40x32xf32>
    %1041 = arith.mulf %1040, %993 : vector<40x32xf32>
    %1042 = vector.broadcast %1039 : vector<40x1xf32> to vector<40x32xf32>
    %1043 = arith.mulf %1042, %937 : vector<40x32xf32>
    %c1_i32_372 = arith.constant 1 : i32
    %1044 = tpu.dynamic_rotate %1043 by %c1_i32_372 dim 0 : vector<40x32xf32>, i32 -> vector<40x32xf32>
    %1045 = arith.addf %1041, %1044 : vector<40x32xf32>
    %cst_373 = arith.constant 0.699999988 : f32
    %1046 = vector.broadcast %cst_373 : f32 to vector<40x32xf32>
    %1047 = arith.mulf %1046, %937 : vector<40x32xf32>
    %1048 = arith.addf %1047, %1045 : vector<40x32xf32>
    %1049 = vector.extract_strided_slice %1048 {offsets = [0, 0], sizes = [8, 32], strides = [1, 1]} : vector<40x32xf32> to vector<8x32xf32>
    %1050 = arith.addf %1049, %45 : vector<8x32xf32>
    %1051 = vector.extract_strided_slice %992 {offsets = [0, 0], sizes = [8, 32], strides = [1, 1]} : vector<32x32xf32> to vector<8x32xf32>
    %1052 = arith.addf %1050, %1051 : vector<8x32xf32>
    %c0_374 = arith.constant 0 : index
    %c0_375 = arith.constant 0 : index
    %1053 = vector.load %arg6[%c0_374, %c0_375] : memref<40x32xf32, #tpu.memory_space<vmem>>, vector<8x32xf32>
    tpu.vector_store %arg6[%c0_374, %c0_375], %1052 {strides = array<i32>} : memref<40x32xf32, #tpu.memory_space<vmem>>, vector<8x32xf32>,
    %1054 = vector.extract_strided_slice %1048 {offsets = [8, 0], sizes = [24, 32], strides = [1, 1]} : vector<40x32xf32> to vector<24x32xf32>
    %1055 = vector.extract_strided_slice %991 {offsets = [0, 0], sizes = [24, 32], strides = [1, 1]} : vector<32x32xf32> to vector<24x32xf32>
    %1056 = arith.addf %1054, %1055 : vector<24x32xf32>
    %1057 = vector.extract_strided_slice %992 {offsets = [8, 0], sizes = [24, 32], strides = [1, 1]} : vector<32x32xf32> to vector<24x32xf32>
    %1058 = arith.addf %1056, %1057 : vector<24x32xf32>
    %c8_376 = arith.constant 8 : index
    %c0_377 = arith.constant 0 : index
    %1059 = vector.load %arg6[%c8_376, %c0_377] : memref<40x32xf32, #tpu.memory_space<vmem>>, vector<24x32xf32>
    tpu.vector_store %arg6[%c8_376, %c0_377], %1058 {strides = array<i32>} : memref<40x32xf32, #tpu.memory_space<vmem>>, vector<24x32xf32>,
    %1060 = vector.extract_strided_slice %1048 {offsets = [32, 0], sizes = [8, 32], strides = [1, 1]} : vector<40x32xf32> to vector<8x32xf32>
    %1061 = vector.extract_strided_slice %991 {offsets = [24, 0], sizes = [8, 32], strides = [1, 1]} : vector<32x32xf32> to vector<8x32xf32>
    %1062 = arith.addf %1060, %1061 : vector<8x32xf32>
    %c32_378 = arith.constant 32 : index
    %c0_379 = arith.constant 0 : index
    %1063 = vector.load %arg6[%c32_378, %c0_379] : memref<40x32xf32, #tpu.memory_space<vmem>>, vector<8x32xf32>
    tpu.vector_store %arg6[%c32_378, %c0_379], %1062 {strides = array<i32>} : memref<40x32xf32, #tpu.memory_space<vmem>>, vector<8x32xf32>,
    %c8_i32_380 = arith.constant 8 : i32
    %c0_381 = arith.constant 0 : index
    %c0_382 = arith.constant 0 : index
    %1064 = vector.load %arg6[%c0_381, %c0_382] : memref<40x32xf32, #tpu.memory_space<vmem>>, vector<40x32xf32>
    %1065 = arith.truncf %1064 : vector<40x32xf32> to vector<40x32xbf16>
    %1066 = vector.extract_strided_slice %1065 {offsets = [0, 0], sizes = [32, 32], strides = [1, 1]} : vector<40x32xbf16> to vector<32x32xbf16>
    %1067 = vector.extract_strided_slice %1065 {offsets = [8, 0], sizes = [32, 32], strides = [1, 1]} : vector<40x32xbf16> to vector<32x32xbf16>
    %1068 = tpu.concatenate %1066, %1067 in 1 : vector<32x32xbf16>, vector<32x32xbf16> -> vector<32x64xbf16>
    %c0_383 = arith.constant 0 : index
    %c0_384 = arith.constant 0 : index
    %c0_385 = arith.constant 0 : index
    %1069 = vector.load %arg4[%c0_383, %c0_384, %c0_385] : memref<3x64x64xbf16, #tpu.memory_space<vmem>>, vector<1x64x64xbf16>
    %1070 = vector.shape_cast %1069 : vector<1x64x64xbf16> to vector<64x64xbf16>
    %cst_386 = arith.constant dense<0.000000e+00> : vector<32x64xf32>
    %1071 = tpu.matmul %1068, %1070, %cst_386 {dimension_numbers = #tpu.dot_dimension_numbers<[1], [0], [0], [1], [0, 0, 1, 1], [], []>} : vector<32x64xbf16>, vector<64x64xbf16>, vector<32x64xf32> -> vector<32x64xf32>
    %1072 = vector.extract_strided_slice %1 {offsets = [0, 0], sizes = [1, 64], strides = [1, 1]} : vector<5x64xf32> to vector<1x64xf32>
    %1073 = vector.broadcast %1072 : vector<1x64xf32> to vector<32x64xf32>
    %1074 = arith.addf %1071, %1073 : vector<32x64xf32>
    %cst_387 = arith.constant 0.000000e+00 : f32
    %1075 = vector.broadcast %cst_387 : f32 to vector<32x64xf32>
    %1076 = arith.maximumf %1074, %1075 : vector<32x64xf32>
    %1077 = arith.truncf %1076 : vector<32x64xf32> to vector<32x64xbf16>
    %c1_388 = arith.constant 1 : index
    %c0_389 = arith.constant 0 : index
    %c0_390 = arith.constant 0 : index
    %1078 = vector.load %arg4[%c1_388, %c0_389, %c0_390] : memref<3x64x64xbf16, #tpu.memory_space<vmem>>, vector<1x64x64xbf16>
    %1079 = vector.shape_cast %1078 : vector<1x64x64xbf16> to vector<64x64xbf16>
    %cst_391 = arith.constant dense<0.000000e+00> : vector<32x64xf32>
    %1080 = tpu.matmul %1077, %1079, %cst_391 {dimension_numbers = #tpu.dot_dimension_numbers<[1], [0], [0], [1], [0, 0, 1, 1], [], []>} : vector<32x64xbf16>, vector<64x64xbf16>, vector<32x64xf32> -> vector<32x64xf32>
    %1081 = vector.extract_strided_slice %1 {offsets = [1, 0], sizes = [1, 64], strides = [1, 1]} : vector<5x64xf32> to vector<1x64xf32>
    %1082 = vector.broadcast %1081 : vector<1x64xf32> to vector<32x64xf32>
    %1083 = arith.addf %1080, %1082 : vector<32x64xf32>
    %cst_392 = arith.constant 0.000000e+00 : f32
    %1084 = vector.broadcast %cst_392 : f32 to vector<32x64xf32>
    %1085 = arith.maximumf %1083, %1084 : vector<32x64xf32>
    %1086 = arith.truncf %1085 : vector<32x64xf32> to vector<32x64xbf16>
    %c2_393 = arith.constant 2 : index
    %c0_394 = arith.constant 0 : index
    %c0_395 = arith.constant 0 : index
    %1087 = vector.load %arg4[%c2_393, %c0_394, %c0_395] : memref<3x64x64xbf16, #tpu.memory_space<vmem>>, vector<1x64x64xbf16>
    %1088 = vector.shape_cast %1087 : vector<1x64x64xbf16> to vector<64x64xbf16>
    %cst_396 = arith.constant dense<0.000000e+00> : vector<32x64xf32>
    %1089 = tpu.matmul %1086, %1088, %cst_396 {dimension_numbers = #tpu.dot_dimension_numbers<[1], [0], [0], [1], [0, 0, 1, 1], [], []>} : vector<32x64xbf16>, vector<64x64xbf16>, vector<32x64xf32> -> vector<32x64xf32>
    %1090 = vector.extract_strided_slice %1 {offsets = [2, 0], sizes = [1, 64], strides = [1, 1]} : vector<5x64xf32> to vector<1x64xf32>
    %1091 = vector.broadcast %1090 : vector<1x64xf32> to vector<32x64xf32>
    %1092 = arith.addf %1089, %1091 : vector<32x64xf32>
    %cst_397 = arith.constant dense<0.000000e+00> : vector<64xf32>
    %1093 = vector.multi_reduction <add>, %1092, %cst_397 [0] : vector<32x64xf32> to vector<64xf32>
    %1094 = vector.shape_cast %1093 : vector<64xf32> to vector<1x64xf32>
    %cst_398 = arith.constant 3.125000e-02 : f32
    %1095 = vector.broadcast %cst_398 : f32 to vector<1x64xf32>
    %1096 = arith.mulf %1094, %1095 : vector<1x64xf32>
    %1097 = arith.mulf %1092, %1092 : vector<32x64xf32>
    %cst_399 = arith.constant dense<0.000000e+00> : vector<64xf32>
    %1098 = vector.multi_reduction <add>, %1097, %cst_399 [0] : vector<32x64xf32> to vector<64xf32>
    %1099 = vector.shape_cast %1098 : vector<64xf32> to vector<1x64xf32>
    %cst_400 = arith.constant 3.125000e-02 : f32
    %1100 = vector.broadcast %cst_400 : f32 to vector<1x64xf32>
    %1101 = arith.mulf %1099, %1100 : vector<1x64xf32>
    %1102 = arith.mulf %1096, %1096 : vector<1x64xf32>
    %1103 = arith.subf %1101, %1102 : vector<1x64xf32>
    %cst_401 = arith.constant 0.000000e+00 : f32
    %1104 = vector.broadcast %cst_401 : f32 to vector<1x64xf32>
    %1105 = arith.maximumf %1103, %1104 : vector<1x64xf32>
    %1106 = vector.extract_strided_slice %1 {offsets = [3, 0], sizes = [1, 64], strides = [1, 1]} : vector<5x64xf32> to vector<1x64xf32>
    %cst_402 = arith.constant 9.99999974E-6 : f32
    %1107 = vector.broadcast %cst_402 : f32 to vector<1x64xf32>
    %1108 = arith.addf %1105, %1107 : vector<1x64xf32>
    %1109 = math.rsqrt %1108 : vector<1x64xf32>
    %1110 = arith.mulf %1106, %1109 : vector<1x64xf32>
    %1111 = vector.broadcast %1110 : vector<1x64xf32> to vector<32x64xf32>
    %1112 = arith.mulf %1092, %1111 : vector<32x64xf32>
    %1113 = vector.extract_strided_slice %1 {offsets = [4, 0], sizes = [1, 64], strides = [1, 1]} : vector<5x64xf32> to vector<1x64xf32>
    %1114 = arith.mulf %1096, %1110 : vector<1x64xf32>
    %1115 = arith.subf %1113, %1114 : vector<1x64xf32>
    %1116 = vector.broadcast %1115 : vector<1x64xf32> to vector<32x64xf32>
    %1117 = arith.addf %1112, %1116 : vector<32x64xf32>
    %1118 = vector.extract_strided_slice %1117 {offsets = [0, 0], sizes = [32, 32], strides = [1, 1]} : vector<32x64xf32> to vector<32x32xf32>
    %1119 = vector.extract_strided_slice %1117 {offsets = [0, 32], sizes = [32, 32], strides = [1, 1]} : vector<32x64xf32> to vector<32x32xf32>
    %c39_i32_403 = arith.constant 39 : i32
    %1120 = tpu.dynamic_rotate %1064 by %c39_i32_403 dim 0 : vector<40x32xf32>, i32 -> vector<40x32xf32>
    %1121 = arith.mulf %1064, %1120 : vector<40x32xf32>
    %cst_404 = arith.constant dense<0.000000e+00> : vector<40xf32>
    %1122 = vector.multi_reduction <add>, %1121, %cst_404 [1] : vector<40x32xf32> to vector<40xf32>
    %1123 = vector.shape_cast %1122 : vector<40xf32> to vector<40x1xf32>
    %cst_405 = arith.constant 0.000000e+00 : f32
    %1124 = vector.broadcast %cst_405 : f32 to vector<40x1xf32>
    %1125 = arith.maximumf %1123, %1124 : vector<40x1xf32>
    %cst_406 = arith.constant 0.000000e+00 : f32
    %1126 = vector.broadcast %cst_406 : f32 to vector<40x1xf32>
    %1127 = arith.select %20, %1125, %1126 : vector<40x1xi1>, vector<40x1xf32>
    %c32_i32_407 = arith.constant 32 : i32
    %1128 = vector.broadcast %c32_i32_407 : i32 to vector<40x1xi32>
    %1129 = arith.cmpi slt, %2, %1128 : vector<40x1xi32>
    %1130 = vector.extract_strided_slice %1127 {offsets = [8, 0], sizes = [32, 1], strides = [1, 1]} : vector<40x1xf32> to vector<32x1xf32>
    %1131 = vector.extract_strided_slice %1127 {offsets = [0, 0], sizes = [8, 1], strides = [1, 1]} : vector<40x1xf32> to vector<8x1xf32>
    %1132 = tpu.concatenate %1130, %1131 in 0 : vector<32x1xf32>, vector<8x1xf32> -> vector<40x1xf32>
    %cst_408 = arith.constant 0.000000e+00 : f32
    %1133 = vector.broadcast %cst_408 : f32 to vector<40x1xf32>
    %1134 = arith.select %1129, %1132, %1133 : vector<40x1xi1>, vector<40x1xf32>
    %1135 = arith.addf %1127, %1134 : vector<40x1xf32>
    %c24_i32_409 = arith.constant 24 : i32
    %1136 = vector.broadcast %c24_i32_409 : i32 to vector<40x1xi32>
    %1137 = arith.cmpi slt, %2, %1136 : vector<40x1xi32>
    %1138 = vector.extract_strided_slice %1127 {offsets = [16, 0], sizes = [24, 1], strides = [1, 1]} : vector<40x1xf32> to vector<24x1xf32>
    %1139 = vector.extract_strided_slice %1127 {offsets = [0, 0], sizes = [16, 1], strides = [1, 1]} : vector<40x1xf32> to vector<16x1xf32>
    %1140 = tpu.concatenate %1138, %1139 in 0 : vector<24x1xf32>, vector<16x1xf32> -> vector<40x1xf32>
    %cst_410 = arith.constant 0.000000e+00 : f32
    %1141 = vector.broadcast %cst_410 : f32 to vector<40x1xf32>
    %1142 = arith.select %1137, %1140, %1141 : vector<40x1xi1>, vector<40x1xf32>
    %1143 = arith.addf %1135, %1142 : vector<40x1xf32>
    %c16_i32_411 = arith.constant 16 : i32
    %1144 = vector.broadcast %c16_i32_411 : i32 to vector<40x1xi32>
    %1145 = arith.cmpi slt, %2, %1144 : vector<40x1xi32>
    %1146 = vector.extract_strided_slice %1127 {offsets = [24, 0], sizes = [16, 1], strides = [1, 1]} : vector<40x1xf32> to vector<16x1xf32>
    %1147 = vector.extract_strided_slice %1127 {offsets = [0, 0], sizes = [24, 1], strides = [1, 1]} : vector<40x1xf32> to vector<24x1xf32>
    %1148 = tpu.concatenate %1146, %1147 in 0 : vector<16x1xf32>, vector<24x1xf32> -> vector<40x1xf32>
    %cst_412 = arith.constant 0.000000e+00 : f32
    %1149 = vector.broadcast %cst_412 : f32 to vector<40x1xf32>
    %1150 = arith.select %1145, %1148, %1149 : vector<40x1xi1>, vector<40x1xf32>
    %1151 = arith.addf %1143, %1150 : vector<40x1xf32>
    %c8_i32_413 = arith.constant 8 : i32
    %1152 = vector.broadcast %c8_i32_413 : i32 to vector<40x1xi32>
    %1153 = arith.cmpi slt, %2, %1152 : vector<40x1xi32>
    %1154 = vector.extract_strided_slice %1127 {offsets = [32, 0], sizes = [8, 1], strides = [1, 1]} : vector<40x1xf32> to vector<8x1xf32>
    %1155 = vector.extract_strided_slice %1127 {offsets = [0, 0], sizes = [32, 1], strides = [1, 1]} : vector<40x1xf32> to vector<32x1xf32>
    %1156 = tpu.concatenate %1154, %1155 in 0 : vector<8x1xf32>, vector<32x1xf32> -> vector<40x1xf32>
    %cst_414 = arith.constant 0.000000e+00 : f32
    %1157 = vector.broadcast %cst_414 : f32 to vector<40x1xf32>
    %1158 = arith.select %1153, %1156, %1157 : vector<40x1xi1>, vector<40x1xf32>
    %1159 = arith.addf %1151, %1158 : vector<40x1xf32>
    %cst_415 = arith.constant 0.000000e+00 : f32
    %1160 = vector.broadcast %cst_415 : f32 to vector<40x1xf32>
    %1161 = arith.subf %1160, %1159 : vector<40x1xf32>
    %1162 = math.exp %1161 : vector<40x1xf32>
    %cst_416 = arith.constant 1.000000e-01 : f32
    %1163 = vector.broadcast %cst_416 : f32 to vector<40x1xf32>
    %1164 = arith.mulf %1163, %1162 : vector<40x1xf32>
    %cst_417 = arith.constant 1.000000e-01 : f32
    %1165 = vector.broadcast %cst_417 : f32 to vector<40x1xf32>
    %1166 = arith.subf %1165, %1164 : vector<40x1xf32>
    %1167 = vector.broadcast %1166 : vector<40x1xf32> to vector<40x32xf32>
    %1168 = arith.mulf %1167, %1120 : vector<40x32xf32>
    %1169 = vector.broadcast %1166 : vector<40x1xf32> to vector<40x32xf32>
    %1170 = arith.mulf %1169, %1064 : vector<40x32xf32>
    %c1_i32_418 = arith.constant 1 : i32
    %1171 = tpu.dynamic_rotate %1170 by %c1_i32_418 dim 0 : vector<40x32xf32>, i32 -> vector<40x32xf32>
    %1172 = arith.addf %1168, %1171 : vector<40x32xf32>
    %cst_419 = arith.constant 0.699999988 : f32
    %1173 = vector.broadcast %cst_419 : f32 to vector<40x32xf32>
    %1174 = arith.mulf %1173, %1064 : vector<40x32xf32>
    %1175 = arith.addf %1174, %1172 : vector<40x32xf32>
    %1176 = vector.extract_strided_slice %1175 {offsets = [0, 0], sizes = [8, 32], strides = [1, 1]} : vector<40x32xf32> to vector<8x32xf32>
    %1177 = arith.addf %1176, %45 : vector<8x32xf32>
    %1178 = vector.extract_strided_slice %1119 {offsets = [0, 0], sizes = [8, 32], strides = [1, 1]} : vector<32x32xf32> to vector<8x32xf32>
    %1179 = arith.addf %1177, %1178 : vector<8x32xf32>
    %c0_420 = arith.constant 0 : index
    %c0_421 = arith.constant 0 : index
    %1180 = vector.load %arg6[%c0_420, %c0_421] : memref<40x32xf32, #tpu.memory_space<vmem>>, vector<8x32xf32>
    tpu.vector_store %arg6[%c0_420, %c0_421], %1179 {strides = array<i32>} : memref<40x32xf32, #tpu.memory_space<vmem>>, vector<8x32xf32>,
    %1181 = vector.extract_strided_slice %1175 {offsets = [8, 0], sizes = [24, 32], strides = [1, 1]} : vector<40x32xf32> to vector<24x32xf32>
    %1182 = vector.extract_strided_slice %1118 {offsets = [0, 0], sizes = [24, 32], strides = [1, 1]} : vector<32x32xf32> to vector<24x32xf32>
    %1183 = arith.addf %1181, %1182 : vector<24x32xf32>
    %1184 = vector.extract_strided_slice %1119 {offsets = [8, 0], sizes = [24, 32], strides = [1, 1]} : vector<32x32xf32> to vector<24x32xf32>
    %1185 = arith.addf %1183, %1184 : vector<24x32xf32>
    %c8_422 = arith.constant 8 : index
    %c0_423 = arith.constant 0 : index
    %1186 = vector.load %arg6[%c8_422, %c0_423] : memref<40x32xf32, #tpu.memory_space<vmem>>, vector<24x32xf32>
    tpu.vector_store %arg6[%c8_422, %c0_423], %1185 {strides = array<i32>} : memref<40x32xf32, #tpu.memory_space<vmem>>, vector<24x32xf32>,
    %1187 = vector.extract_strided_slice %1175 {offsets = [32, 0], sizes = [8, 32], strides = [1, 1]} : vector<40x32xf32> to vector<8x32xf32>
    %1188 = vector.extract_strided_slice %1118 {offsets = [24, 0], sizes = [8, 32], strides = [1, 1]} : vector<32x32xf32> to vector<8x32xf32>
    %1189 = arith.addf %1187, %1188 : vector<8x32xf32>
    %c32_424 = arith.constant 32 : index
    %c0_425 = arith.constant 0 : index
    %1190 = vector.load %arg6[%c32_424, %c0_425] : memref<40x32xf32, #tpu.memory_space<vmem>>, vector<8x32xf32>
    tpu.vector_store %arg6[%c32_424, %c0_425], %1189 {strides = array<i32>} : memref<40x32xf32, #tpu.memory_space<vmem>>, vector<8x32xf32>,
    %c9_i32 = arith.constant 9 : i32
    %c0_426 = arith.constant 0 : index
    %c0_427 = arith.constant 0 : index
    %1191 = vector.load %arg6[%c0_426, %c0_427] : memref<40x32xf32, #tpu.memory_space<vmem>>, vector<40x32xf32>
    %1192 = arith.truncf %1191 : vector<40x32xf32> to vector<40x32xbf16>
    %1193 = vector.extract_strided_slice %1192 {offsets = [0, 0], sizes = [32, 32], strides = [1, 1]} : vector<40x32xbf16> to vector<32x32xbf16>
    %1194 = vector.extract_strided_slice %1192 {offsets = [8, 0], sizes = [32, 32], strides = [1, 1]} : vector<40x32xbf16> to vector<32x32xbf16>
    %1195 = tpu.concatenate %1193, %1194 in 1 : vector<32x32xbf16>, vector<32x32xbf16> -> vector<32x64xbf16>
    %c0_428 = arith.constant 0 : index
    %c0_429 = arith.constant 0 : index
    %c0_430 = arith.constant 0 : index
    %1196 = vector.load %arg4[%c0_428, %c0_429, %c0_430] : memref<3x64x64xbf16, #tpu.memory_space<vmem>>, vector<1x64x64xbf16>
    %1197 = vector.shape_cast %1196 : vector<1x64x64xbf16> to vector<64x64xbf16>
    %cst_431 = arith.constant dense<0.000000e+00> : vector<32x64xf32>
    %1198 = tpu.matmul %1195, %1197, %cst_431 {dimension_numbers = #tpu.dot_dimension_numbers<[1], [0], [0], [1], [0, 0, 1, 1], [], []>} : vector<32x64xbf16>, vector<64x64xbf16>, vector<32x64xf32> -> vector<32x64xf32>
    %1199 = vector.extract_strided_slice %1 {offsets = [0, 0], sizes = [1, 64], strides = [1, 1]} : vector<5x64xf32> to vector<1x64xf32>
    %1200 = vector.broadcast %1199 : vector<1x64xf32> to vector<32x64xf32>
    %1201 = arith.addf %1198, %1200 : vector<32x64xf32>
    %cst_432 = arith.constant 0.000000e+00 : f32
    %1202 = vector.broadcast %cst_432 : f32 to vector<32x64xf32>
    %1203 = arith.maximumf %1201, %1202 : vector<32x64xf32>
    %1204 = arith.truncf %1203 : vector<32x64xf32> to vector<32x64xbf16>
    %c1_433 = arith.constant 1 : index
    %c0_434 = arith.constant 0 : index
    %c0_435 = arith.constant 0 : index
    %1205 = vector.load %arg4[%c1_433, %c0_434, %c0_435] : memref<3x64x64xbf16, #tpu.memory_space<vmem>>, vector<1x64x64xbf16>
    %1206 = vector.shape_cast %1205 : vector<1x64x64xbf16> to vector<64x64xbf16>
    %cst_436 = arith.constant dense<0.000000e+00> : vector<32x64xf32>
    %1207 = tpu.matmul %1204, %1206, %cst_436 {dimension_numbers = #tpu.dot_dimension_numbers<[1], [0], [0], [1], [0, 0, 1, 1], [], []>} : vector<32x64xbf16>, vector<64x64xbf16>, vector<32x64xf32> -> vector<32x64xf32>
    %1208 = vector.extract_strided_slice %1 {offsets = [1, 0], sizes = [1, 64], strides = [1, 1]} : vector<5x64xf32> to vector<1x64xf32>
    %1209 = vector.broadcast %1208 : vector<1x64xf32> to vector<32x64xf32>
    %1210 = arith.addf %1207, %1209 : vector<32x64xf32>
    %cst_437 = arith.constant 0.000000e+00 : f32
    %1211 = vector.broadcast %cst_437 : f32 to vector<32x64xf32>
    %1212 = arith.maximumf %1210, %1211 : vector<32x64xf32>
    %1213 = arith.truncf %1212 : vector<32x64xf32> to vector<32x64xbf16>
    %c2_438 = arith.constant 2 : index
    %c0_439 = arith.constant 0 : index
    %c0_440 = arith.constant 0 : index
    %1214 = vector.load %arg4[%c2_438, %c0_439, %c0_440] : memref<3x64x64xbf16, #tpu.memory_space<vmem>>, vector<1x64x64xbf16>
    %1215 = vector.shape_cast %1214 : vector<1x64x64xbf16> to vector<64x64xbf16>
    %cst_441 = arith.constant dense<0.000000e+00> : vector<32x64xf32>
    %1216 = tpu.matmul %1213, %1215, %cst_441 {dimension_numbers = #tpu.dot_dimension_numbers<[1], [0], [0], [1], [0, 0, 1, 1], [], []>} : vector<32x64xbf16>, vector<64x64xbf16>, vector<32x64xf32> -> vector<32x64xf32>
    %1217 = vector.extract_strided_slice %1 {offsets = [2, 0], sizes = [1, 64], strides = [1, 1]} : vector<5x64xf32> to vector<1x64xf32>
    %1218 = vector.broadcast %1217 : vector<1x64xf32> to vector<32x64xf32>
    %1219 = arith.addf %1216, %1218 : vector<32x64xf32>
    %cst_442 = arith.constant dense<0.000000e+00> : vector<64xf32>
    %1220 = vector.multi_reduction <add>, %1219, %cst_442 [0] : vector<32x64xf32> to vector<64xf32>
    %1221 = vector.shape_cast %1220 : vector<64xf32> to vector<1x64xf32>
    %cst_443 = arith.constant 3.125000e-02 : f32
    %1222 = vector.broadcast %cst_443 : f32 to vector<1x64xf32>
    %1223 = arith.mulf %1221, %1222 : vector<1x64xf32>
    %1224 = arith.mulf %1219, %1219 : vector<32x64xf32>
    %cst_444 = arith.constant dense<0.000000e+00> : vector<64xf32>
    %1225 = vector.multi_reduction <add>, %1224, %cst_444 [0] : vector<32x64xf32> to vector<64xf32>
    %1226 = vector.shape_cast %1225 : vector<64xf32> to vector<1x64xf32>
    %cst_445 = arith.constant 3.125000e-02 : f32
    %1227 = vector.broadcast %cst_445 : f32 to vector<1x64xf32>
    %1228 = arith.mulf %1226, %1227 : vector<1x64xf32>
    %1229 = arith.mulf %1223, %1223 : vector<1x64xf32>
    %1230 = arith.subf %1228, %1229 : vector<1x64xf32>
    %cst_446 = arith.constant 0.000000e+00 : f32
    %1231 = vector.broadcast %cst_446 : f32 to vector<1x64xf32>
    %1232 = arith.maximumf %1230, %1231 : vector<1x64xf32>
    %1233 = vector.extract_strided_slice %1 {offsets = [3, 0], sizes = [1, 64], strides = [1, 1]} : vector<5x64xf32> to vector<1x64xf32>
    %cst_447 = arith.constant 9.99999974E-6 : f32
    %1234 = vector.broadcast %cst_447 : f32 to vector<1x64xf32>
    %1235 = arith.addf %1232, %1234 : vector<1x64xf32>
    %1236 = math.rsqrt %1235 : vector<1x64xf32>
    %1237 = arith.mulf %1233, %1236 : vector<1x64xf32>
    %1238 = vector.broadcast %1237 : vector<1x64xf32> to vector<32x64xf32>
    %1239 = arith.mulf %1219, %1238 : vector<32x64xf32>
    %1240 = vector.extract_strided_slice %1 {offsets = [4, 0], sizes = [1, 64], strides = [1, 1]} : vector<5x64xf32> to vector<1x64xf32>
    %1241 = arith.mulf %1223, %1237 : vector<1x64xf32>
    %1242 = arith.subf %1240, %1241 : vector<1x64xf32>
    %1243 = vector.broadcast %1242 : vector<1x64xf32> to vector<32x64xf32>
    %1244 = arith.addf %1239, %1243 : vector<32x64xf32>
    %1245 = vector.extract_strided_slice %1244 {offsets = [0, 0], sizes = [32, 32], strides = [1, 1]} : vector<32x64xf32> to vector<32x32xf32>
    %1246 = vector.extract_strided_slice %1244 {offsets = [0, 32], sizes = [32, 32], strides = [1, 1]} : vector<32x64xf32> to vector<32x32xf32>
    %c39_i32_448 = arith.constant 39 : i32
    %1247 = tpu.dynamic_rotate %1191 by %c39_i32_448 dim 0 : vector<40x32xf32>, i32 -> vector<40x32xf32>
    %1248 = arith.mulf %1191, %1247 : vector<40x32xf32>
    %cst_449 = arith.constant dense<0.000000e+00> : vector<40xf32>
    %1249 = vector.multi_reduction <add>, %1248, %cst_449 [1] : vector<40x32xf32> to vector<40xf32>
    %1250 = vector.shape_cast %1249 : vector<40xf32> to vector<40x1xf32>
    %cst_450 = arith.constant 0.000000e+00 : f32
    %1251 = vector.broadcast %cst_450 : f32 to vector<40x1xf32>
    %1252 = arith.maximumf %1250, %1251 : vector<40x1xf32>
    %cst_451 = arith.constant 0.000000e+00 : f32
    %1253 = vector.broadcast %cst_451 : f32 to vector<40x1xf32>
    %1254 = arith.select %20, %1252, %1253 : vector<40x1xi1>, vector<40x1xf32>
    %c32_i32_452 = arith.constant 32 : i32
    %1255 = vector.broadcast %c32_i32_452 : i32 to vector<40x1xi32>
    %1256 = arith.cmpi slt, %2, %1255 : vector<40x1xi32>
    %1257 = vector.extract_strided_slice %1254 {offsets = [8, 0], sizes = [32, 1], strides = [1, 1]} : vector<40x1xf32> to vector<32x1xf32>
    %1258 = vector.extract_strided_slice %1254 {offsets = [0, 0], sizes = [8, 1], strides = [1, 1]} : vector<40x1xf32> to vector<8x1xf32>
    %1259 = tpu.concatenate %1257, %1258 in 0 : vector<32x1xf32>, vector<8x1xf32> -> vector<40x1xf32>
    %cst_453 = arith.constant 0.000000e+00 : f32
    %1260 = vector.broadcast %cst_453 : f32 to vector<40x1xf32>
    %1261 = arith.select %1256, %1259, %1260 : vector<40x1xi1>, vector<40x1xf32>
    %1262 = arith.addf %1254, %1261 : vector<40x1xf32>
    %c24_i32_454 = arith.constant 24 : i32
    %1263 = vector.broadcast %c24_i32_454 : i32 to vector<40x1xi32>
    %1264 = arith.cmpi slt, %2, %1263 : vector<40x1xi32>
    %1265 = vector.extract_strided_slice %1254 {offsets = [16, 0], sizes = [24, 1], strides = [1, 1]} : vector<40x1xf32> to vector<24x1xf32>
    %1266 = vector.extract_strided_slice %1254 {offsets = [0, 0], sizes = [16, 1], strides = [1, 1]} : vector<40x1xf32> to vector<16x1xf32>
    %1267 = tpu.concatenate %1265, %1266 in 0 : vector<24x1xf32>, vector<16x1xf32> -> vector<40x1xf32>
    %cst_455 = arith.constant 0.000000e+00 : f32
    %1268 = vector.broadcast %cst_455 : f32 to vector<40x1xf32>
    %1269 = arith.select %1264, %1267, %1268 : vector<40x1xi1>, vector<40x1xf32>
    %1270 = arith.addf %1262, %1269 : vector<40x1xf32>
    %c16_i32_456 = arith.constant 16 : i32
    %1271 = vector.broadcast %c16_i32_456 : i32 to vector<40x1xi32>
    %1272 = arith.cmpi slt, %2, %1271 : vector<40x1xi32>
    %1273 = vector.extract_strided_slice %1254 {offsets = [24, 0], sizes = [16, 1], strides = [1, 1]} : vector<40x1xf32> to vector<16x1xf32>
    %1274 = vector.extract_strided_slice %1254 {offsets = [0, 0], sizes = [24, 1], strides = [1, 1]} : vector<40x1xf32> to vector<24x1xf32>
    %1275 = tpu.concatenate %1273, %1274 in 0 : vector<16x1xf32>, vector<24x1xf32> -> vector<40x1xf32>
    %cst_457 = arith.constant 0.000000e+00 : f32
    %1276 = vector.broadcast %cst_457 : f32 to vector<40x1xf32>
    %1277 = arith.select %1272, %1275, %1276 : vector<40x1xi1>, vector<40x1xf32>
    %1278 = arith.addf %1270, %1277 : vector<40x1xf32>
    %c8_i32_458 = arith.constant 8 : i32
    %1279 = vector.broadcast %c8_i32_458 : i32 to vector<40x1xi32>
    %1280 = arith.cmpi slt, %2, %1279 : vector<40x1xi32>
    %1281 = vector.extract_strided_slice %1254 {offsets = [32, 0], sizes = [8, 1], strides = [1, 1]} : vector<40x1xf32> to vector<8x1xf32>
    %1282 = vector.extract_strided_slice %1254 {offsets = [0, 0], sizes = [32, 1], strides = [1, 1]} : vector<40x1xf32> to vector<32x1xf32>
    %1283 = tpu.concatenate %1281, %1282 in 0 : vector<8x1xf32>, vector<32x1xf32> -> vector<40x1xf32>
    %cst_459 = arith.constant 0.000000e+00 : f32
    %1284 = vector.broadcast %cst_459 : f32 to vector<40x1xf32>
    %1285 = arith.select %1280, %1283, %1284 : vector<40x1xi1>, vector<40x1xf32>
    %1286 = arith.addf %1278, %1285 : vector<40x1xf32>
    %cst_460 = arith.constant 0.000000e+00 : f32
    %1287 = vector.broadcast %cst_460 : f32 to vector<40x1xf32>
    %1288 = arith.subf %1287, %1286 : vector<40x1xf32>
    %1289 = math.exp %1288 : vector<40x1xf32>
    %cst_461 = arith.constant 1.000000e-01 : f32
    %1290 = vector.broadcast %cst_461 : f32 to vector<40x1xf32>
    %1291 = arith.mulf %1290, %1289 : vector<40x1xf32>
    %cst_462 = arith.constant 1.000000e-01 : f32
    %1292 = vector.broadcast %cst_462 : f32 to vector<40x1xf32>
    %1293 = arith.subf %1292, %1291 : vector<40x1xf32>
    %1294 = vector.broadcast %1293 : vector<40x1xf32> to vector<40x32xf32>
    %1295 = arith.mulf %1294, %1247 : vector<40x32xf32>
    %1296 = vector.broadcast %1293 : vector<40x1xf32> to vector<40x32xf32>
    %1297 = arith.mulf %1296, %1191 : vector<40x32xf32>
    %c1_i32_463 = arith.constant 1 : i32
    %1298 = tpu.dynamic_rotate %1297 by %c1_i32_463 dim 0 : vector<40x32xf32>, i32 -> vector<40x32xf32>
    %1299 = arith.addf %1295, %1298 : vector<40x32xf32>
    %cst_464 = arith.constant 0.699999988 : f32
    %1300 = vector.broadcast %cst_464 : f32 to vector<40x32xf32>
    %1301 = arith.mulf %1300, %1191 : vector<40x32xf32>
    %1302 = arith.addf %1301, %1299 : vector<40x32xf32>
    %1303 = vector.extract_strided_slice %1302 {offsets = [0, 0], sizes = [8, 32], strides = [1, 1]} : vector<40x32xf32> to vector<8x32xf32>
    %1304 = arith.addf %1303, %45 : vector<8x32xf32>
    %1305 = vector.extract_strided_slice %1246 {offsets = [0, 0], sizes = [8, 32], strides = [1, 1]} : vector<32x32xf32> to vector<8x32xf32>
    %1306 = arith.addf %1304, %1305 : vector<8x32xf32>
    %c0_465 = arith.constant 0 : index
    %c0_466 = arith.constant 0 : index
    %1307 = vector.load %arg6[%c0_465, %c0_466] : memref<40x32xf32, #tpu.memory_space<vmem>>, vector<8x32xf32>
    tpu.vector_store %arg6[%c0_465, %c0_466], %1306 {strides = array<i32>} : memref<40x32xf32, #tpu.memory_space<vmem>>, vector<8x32xf32>,
    %1308 = vector.extract_strided_slice %1302 {offsets = [8, 0], sizes = [24, 32], strides = [1, 1]} : vector<40x32xf32> to vector<24x32xf32>
    %1309 = vector.extract_strided_slice %1245 {offsets = [0, 0], sizes = [24, 32], strides = [1, 1]} : vector<32x32xf32> to vector<24x32xf32>
    %1310 = arith.addf %1308, %1309 : vector<24x32xf32>
    %1311 = vector.extract_strided_slice %1246 {offsets = [8, 0], sizes = [24, 32], strides = [1, 1]} : vector<32x32xf32> to vector<24x32xf32>
    %1312 = arith.addf %1310, %1311 : vector<24x32xf32>
    %c8_467 = arith.constant 8 : index
    %c0_468 = arith.constant 0 : index
    %1313 = vector.load %arg6[%c8_467, %c0_468] : memref<40x32xf32, #tpu.memory_space<vmem>>, vector<24x32xf32>
    tpu.vector_store %arg6[%c8_467, %c0_468], %1312 {strides = array<i32>} : memref<40x32xf32, #tpu.memory_space<vmem>>, vector<24x32xf32>,
    %1314 = vector.extract_strided_slice %1302 {offsets = [32, 0], sizes = [8, 32], strides = [1, 1]} : vector<40x32xf32> to vector<8x32xf32>
    %1315 = vector.extract_strided_slice %1245 {offsets = [24, 0], sizes = [8, 32], strides = [1, 1]} : vector<32x32xf32> to vector<8x32xf32>
    %1316 = arith.addf %1314, %1315 : vector<8x32xf32>
    %c32_469 = arith.constant 32 : index
    %c0_470 = arith.constant 0 : index
    %1317 = vector.load %arg6[%c32_469, %c0_470] : memref<40x32xf32, #tpu.memory_space<vmem>>, vector<8x32xf32>
    tpu.vector_store %arg6[%c32_469, %c0_470], %1316 {strides = array<i32>} : memref<40x32xf32, #tpu.memory_space<vmem>>, vector<8x32xf32>,
    return
  }
}

</mosaic_0001>

<bundles_post_ra>
// kernel: tpu_custom_call.1
= control target key start
LH: loop header
LB: loop body
LE: loop exit
PB: predicated region body
PF: predicated region fallthrough
CT: control target
= control target key end

     0   :  { %11 = vsyncpa [#allocation3], 0  ;;  %s6930_s21 = smov [#allocation2]   ;;  %s9128_s0 = inlined_call_operand.vmem [shape: bf16[8,32], index: 0, kind: input, shape index: {}]   ;;  %s9129_s1 = inlined_call_operand.vmem [shape: f32[40,32], index: 1, kind: input, shape index: {}]   ;;  %s9130_s2 = inlined_call_operand.vmem [shape: bf16[3,32,32], index: 2, kind: input, shape index: {}]   ;;  %s9131_s3 = inlined_call_operand.vmem [shape: f32[3,32], index: 3, kind: input, shape index: {}]   ;;  %s9132_s4 = inlined_call_operand.hbm [shape: bf16[3,64,64], index: 4, kind: input, shape index: {}]   ;;  %s9133_s5 = inlined_call_operand.vmem [shape: f32[5,64], index: 5, kind: input, shape index: {}]   ;;  %s9134_s6 = inlined_call_operand.vmem [shape: f32[40,32], index: 6, kind: output, shape index: {}]  }
   0x1   :  { %s25_s22 = sshll.u32 %s6930_s21, 4  ;;  %s6906_s25 = scalar_lea.hbm %s9132_s4, 1536  ;;  %s26_s22 = int_to_ptr.vmem [resolvable:$true] %s25_s22 }
   0x2   :  { %p6907_p0 = scmp.ne.s32.totalorder %s9132_s4, %s6906_s25  ;;  %p6910_p1 = scmp.lt.u32.totalorder %s6906_s25, %s9132_s4 }
   0x4   :  { %p6912_p2 = pnand %p6910_p1, %p6907_p0 }
   0x6   :  { %6915 = shalt.err (!%p6912_p2)
}
   0x7   :  { %s6916_s30 = scalar_lea.vmem %s26_s22, 1536  ;;  %p6921_p4 = scmp.lt.s32.totalorder %s26_s22, %s26_s22 }
   0x8   :  { %p6917_p3 = scmp.ne.s32.totalorder %s26_s22, %s6916_s30  ;;  %p6922_p5 = scmp.lt.s32.totalorder %s6916_s30, %s6916_s30 }
   0xa   :  { %p6923_p6 = por %p6922_p5, %p6921_p4 }
   0xc   :  { %p6924_p7 = pnand %p6923_p6, %p6917_p3 }
   0xe   :  { %6927 = shalt.err (!%p6924_p7)
}
   0xf   :  { %s6931_s7 = smov 64   ;;  %s6932_s8 = smov 4  }
  0x10   :  { %31 = dma.hbm_to_vmem [thread:$0]  %s9132_s4, 1536, %s26_s22, [#allocation3], %s6931_s7, %s6931_s7, %s6932_s8  }
  0x11   :  { %6928 = dma.done.wait [#allocation3], 1536  }
  0x12   :  { %6929 = vsyncadd [#allocation3], 4294965760  ;;  %v6933_v0 = vmov 0.0   ;;  %vm6934_vm0 = vmmov 0   ;;  %v6651_v1 = vld [vmem:[%s9130_s2] sm:$0xff]   ;;  %v6652_v2 = vld [vmem:[%s9130_s2 + $0x8] sm:$0xff]   ;;  %v40_v25 = vlaneseq }
  0x13   :  { %6257 = vmatprep.subr.bf16.mxu0 %v6933_v0  ;;  %6261 = vmatprep.mubr.msk.bf16.mxu0 %vm6934_vm0, %v6933_v0  ;;  %vm132_vm1 = vcmask 261120   ;;  %v308_v3 = vld [vmem:[%s9129_s1] sm:$0xff]  ;;  %v309_v4 = vld [vmem:[%s9129_s1 + $0x8] sm:$0xff]  ;;  %v310_v5 = vld [vmem:[%s9129_s1 + $0x10] sm:$0xff]  ;;  %vm329_vm2 = vcmask 1043456   ;;  %s6935_s21 = smov 32  }
  0x14   :  { %6265 = vmatprep.subr.bf16.mxu1 %v6933_v0  ;;  %6269 = vmatprep.mubr.msk.bf16.mxu1 %vm6934_vm0, %v6933_v0  ;;  %v311_v6 = vld [vmem:[%s9129_s1 + $0x18] sm:$0xff]  ;;  %313 = vst.msk [vmem:[%s9134_s6] sm:$0xff] %vm132_vm1, %v308_v3  ;;  %314 = vst.msk [vmem:[%s9134_s6 + $0x8] sm:$0xff] %vm132_vm1, %v309_v4  ;;  %v312_v7 = vld [vmem:[%s9129_s1 + $0x20] sm:$0xff]  ;;  %v7069_v26 = vshrl.u32 %v40_v25, 7  ;;  %vm381_vm4 = vcmask 523264  }
  0x15   :  { %6258 = vmatpush3.bf16.msra.mxu0 %v6651_v1  ;;  %315 = vst.msk [vmem:[%s9134_s6 + $0x10] sm:$0xff] %vm132_vm1, %v310_v5  ;;  %316 = vst.msk [vmem:[%s9134_s6 + $0x18] sm:$0xff] %vm132_vm1, %v311_v6  ;;  %v6653_v8 = vld [vmem:[%s9130_s2 + $0x10] sm:$0xff]   ;;  %v111_v9 = vld [vmem:[%s9128_s0] sm:$0xf]  ;;  %s6937_s1 = smov 96  }
  0x16   :  { %6259 = vmatprep.subr.bf16.mxu0 %v6933_v0  ;;  %317 = vst.msk [vmem:[%s9134_s6 + $0x20] sm:$0xff] %vm132_vm1, %v312_v7  ;;  %6266 = vmatpush3.bf16.msra.mxu1 %v6653_v8  ;;  %v6654_v23 = vld [vmem:[%s9130_s2 + $0x18] sm:$0xff]   ;;  %v6655_v24 = vld [vmem:[#allocation2] sm:$0xff]   ;;  %vm695_vm3 = vcmp.lt.s32.totalorder %v7069_v26, 7  ;;  %v118_v47 = vsub.s32 0, %v7069_v26  ;;  %v6656_v58 = vld [vmem:[#allocation2 + $0x8] sm:$0xff]  }
  0x17   :  { %6267 = vmatprep.subr.bf16.mxu1 %v6933_v0  ;;  %v7106_v48 = vld [vmem:[%s9131_s3] sm:$0x7]  ;;  %v6657_v60 = vld [vmem:[#allocation2 + $0x10] sm:$0xff]   ;;  %v6658_v61 = vld [vmem:[#allocation2 + $0x18] sm:$0xff]   ;;  %v50_v4 = vand.u32 7, %v7069_v26  ;;  %v42_v6 = vadd.s32 8, %v7069_v26 }
  0x18   :  { %v119_v49 = vrot.slane %v7106_v48, %v118_v47  ;;  %v6659_v1 = vld [vmem:[%s9130_s2 + $0x20] sm:$0xff]   ;;  %v44_v7 = vadd.s32 24, %v7069_v26  ;;  %v43_v8 = vadd.s32 16, %v7069_v26  ;;  %vm856_vm10 = vcmp.lt.s32.totalorder %v7069_v26, 1 }
  0x19   :  { %6260 = vmatpush3.bf16.msra.mxu0 %v6652_v2  ;;  %v6660_v2 = vld [vmem:[%s9130_s2 + $0x28] sm:$0xff]   ;;  %v7124_v3 = vld [vmem:[#allocation2 + $0x20] sm:$0xff]   ;;  %vm7131_vm5 = vcmp.ne.s32.totalorder %v50_v4, 7 }
  0x1a   :  { %6273 = vmatprep.subr.bf16.mxu0 %v6933_v0  ;;  %6268 = vmatpush3.bf16.msra.mxu1 %v6654_v23 }
  0x1b   :  { %v318_v10 = vld [vmem:[%s9134_s6] sm:$0xff]  ;;  %v319_v11 = vld [vmem:[%s9134_s6 + $0x8] sm:$0xff]  ;;  %6281 = vmatprep.subr.bf16.mxu1 %v6655_v24 }
  0x1c   :  { %6262 = vmatmul.mubr.msk.bf16.vlgmr.msra.gmra.mrb[0].mxu0 %vm132_vm1, %v111_v9  ;;  %v320_v12 = vld [vmem:[%s9134_s6 + $0x10] sm:$0xff]  ;;  %v321_v13 = vld [vmem:[%s9134_s6 + $0x18] sm:$0xff]  ;;  %v323_v14 = vpack.c.bf16 %v319_v11, %v318_v10  ;;  %v690_v27 = vrot.slane %v318_v10, 1  ;;  %v691_v28 = vrot.slane %v319_v11, 1 }
  0x1d   :  { %6277 = vmatprep.mubr.msk.bf16.mxu0 %vm6934_vm0, %v6933_v0  ;;  %v322_v15 = vld [vmem:[%s9134_s6 + $0x20] sm:$0xff]  ;;  %v7059_v16 = vpack.c.bf16 %v321_v13, %v320_v12  ;;  %v692_v29 = vrot.slane %v320_v12, 1  ;;  %v693_v30 = vrot.slane %v321_v13, 1  ;;  %6274 = vmatpush3.bf16.msra.mxu0 %v6659_v1 }
  0x1e   :  { %v325_v17 = vpack.c.bf16 %v322_v15, %v322_v15  ;;  %v330_v18 = vrot.slane %v323_v14, 4  ;;  %v694_v31 = vrot.slane %v322_v15, 1  ;;  %v7074_v32 = vsel %vm695_vm3, %v690_v27, %v691_v28  ;;  %6275 = vmatprep.subr.bf16.mxu0 %v6933_v0 }
  0x1f   :  { %v331_v19 = vrot.slane %v7059_v16, 4  ;;  %v7078_v33 = vsel %vm695_vm3, %v691_v28, %v692_v29  ;;  %v7082_v34 = vsel %vm695_vm3, %v692_v29, %v693_v30  ;;  %v701_v35 = vmul.f32 %v7074_v32, %v318_v10 }
  0x20   :  { %v333_v20 = vrot.slane %v325_v17, 4  ;;  %v702_v36 = vmul.f32 %v7078_v33, %v319_v11  ;;  %v703_v37 = vmul.f32 %v7082_v34, %v320_v12  ;;  %v7089_v38 = vsel %vm695_vm3, %v693_v30, %v694_v31 }
  0x21   :  { %v332_v21 = vsel %vm329_vm2, %v330_v18, %v331_v19  ;;  %v706_v39 = vsel %vm132_vm1, %v701_v35, 0.0  ;;  %v704_v42 = vmul.f32 %v7089_v38, %v321_v13  ;;  %v7097_v43 = vsel %vm695_vm3, %v694_v31, %v690_v27  ;;  %6276 = vmatpush3.bf16.msra.mxu0 %v6660_v2 }
  0x22   :  { %335 = vrot.lane.b32.xlu0 %v332_v21, %s6935_s21  ;;  %v334_v22 = vsel %vm329_vm2, %v331_v19, %v333_v20  ;;  %v712_v40 = vsel %vm132_vm1, %v703_v37, 0.0  ;;  %707 = vadd.xlane.f32.xlu1 %v706_v39  ;;  %v709_v41 = vsel %vm132_vm1, %v702_v36, 0.0  ;;  %v705_v45 = vmul.f32 %v7097_v43, %v322_v15 }
  0x23   :  { %v715_v44 = vsel %vm132_vm1, %v704_v42, 0.0  ;;  %6293 = vmatprep.subr.bf16.mxu0 %v7124_v3  ;;  %v57_v11 = vand.u32 7, %v42_v6  ;;  %v64_v12 = vand.u32 7, %v43_v8  ;;  %v6936_v13 = vmov 0  }
  0x24   :  { %v718_v46 = vsel %vm132_vm1, %v705_v45, 0.0  ;;  %6650 = vset.pattern.permute.xlu1 %v6936_v13  ;;  %6649 = vset.pattern.permute.xlu0 %v6936_v13  ;;  %v71_v17 = vand.u32 7, %v44_v7  ;;  %v45_v19 = vadd.s32 32, %v7069_v26  ;;  %v185_v8 = vsub.s32 1, %v7069_v26 }
  0x25   :  { %vm7135_vm6 = vcmp.ne.s32.totalorder %v57_v11, 7  ;;  %vm7139_vm7 = vcmp.ne.s32.totalorder %v64_v12, 7 }
  0x26   :  { %337 = vrot.lane.b32.xlu0 %v334_v22, %s6935_s21  ;;  %710 = vadd.xlane.f32.xlu1 %v709_v41  ;;  %vm7150_vm8 = vcmp.ne.s32.totalorder %v71_v17, 7  ;;  %v78_v29 = vand.u32 7, %v45_v19  ;;  %v6662_v19 = vld [vmem:[#allocation2 + $0x28] sm:$0xff]  }
  0x28   :  { %vm7161_vm9 = vcmp.ne.s32.totalorder %v78_v29, 7 }
  0x2a   :  { %716 = vadd.xlane.f32.xlu1 %v715_v44 }
  0x2e   :  { %719 = vadd.xlane.f32.xlu1 %v718_v46 }
  0x45   :  { %713 = vadd.xlane.f32.xlu0 %v712_v40 }
  0x94   :  { %v336_v54 = vpop.permute.xlu0 %335 }
  0x95   :  { %v341_v59 = vsel %vm132_vm1, %v323_v14, %v336_v54 }
  0x98   :  { %v338_v62 = vpop.permute.xlu0 %337 }
  0x99   :  { %v344_v63 = vsel %vm132_vm1, %v7059_v16, %v338_v62 }
  0xaf   :  { %v708_v5 = vpop.xlane.xlu1 %707 }
  0xb0   :  { %v721_v0 = vmax.f32 %v708_v5, 0.0 }
  0xb2   :  { %v726_v20 = vsel %vm7131_vm5, %v721_v0, 0.0 }
  0xb3   :  { %v711_v16 = vpop.xlane.xlu1 %710 }
  0xb4   :  { %v722_v21 = vmax.f32 %v711_v16, 0.0 }
  0xb6   :  { %v727_v22 = vsel %vm7135_vm6, %v722_v21, 0.0  ;;  %v7180_v21 = vld [vmem:[%s9133_s5] sm:$0x1f] }
  0xb7   :  { %v717_v27 = vpop.xlane.xlu1 %716 }
  0xb8   :  { %v724_v30 = vmax.f32 %v717_v27, 0.0 }
  0xba   :  { %v7156_v35 = vsel %vm7150_vm8, %v724_v30, 0.0 }
  0xbb   :  { %v720_v41 = vpop.xlane.xlu1 %719 }
  0xbc   :  { %v725_v42 = vmax.f32 %v720_v41, 0.0 }
  0xbe   :  { %v7167_v44 = vsel %vm7161_vm9, %v725_v42, 0.0 }
  0xd2   :  { %v714_v9 = vpop.xlane.xlu0 %713 }
  0xd3   :  { %v723_v14 = vmax.f32 %v714_v9, 0.0  ;;  %v186_v9 = vrot.slane %v7106_v48, %v185_v8 }
  0xd5   :  { %v728_v23 = vsel %vm7139_vm7, %v723_v14, 0.0 }
  0xd6   :  { %v742_v28 = vadd.f32 %v728_v23, %v727_v22  ;;  %v743_v36 = vadd.f32 %v7156_v35, %v728_v23 }
  0xd8   :  { %v757_v37 = vadd.f32 %v742_v28, %v7156_v35  ;;  %v758_v45 = vadd.f32 %v743_v36, %v7167_v44 }
  0xda   :  { %v772_v46 = vadd.f32 %v757_v37, %v7167_v44 }
  0xef   :  { %v170_v50 = vpop.f32.mrb[0].mxu0 }
  0xf0   :  { %v171_v51 = vadd.f32 %v170_v50, %v119_v49  ;;  %v6263_v52 = vpop.f32.mrb[1].mxu0  ;;  %v793_v50 = vsub.f32 0.0, %v758_v45 }
  0xf1   :  { %v173_v53 = vpop.f32.mrb[2].mxu0 }
  0xf2   :  { %v176_v55 = vmax.f32 %v171_v51, 0.0  ;;  %v6264_v56 = vpop.f32.mrb[3].mxu0  ;;  %v792_v51 = vsub.f32 0.0, %v772_v46  ;;  %v795_v53 = vsub.f32 0.0, %v7167_v44  ;;  %v800_v54 = vmul.f32 1.442695, %v793_v50 }
  0xf3   :  { %v6665_v46 = vld [vmem:[#allocation2 + $0x40] sm:$0xff]   ;;  %v6667_v50 = vld [vmem:[#allocation2 + $0x50] sm:$0xff]  }
  0xf4   :  { %v177_v57 = vpack.c.bf16 %v176_v55, %v176_v55  ;;  %v798_v55 = vmul.f32 1.442695, %v792_v51  ;;  %6777 = vpow2.f32 %v800_v54  ;;  %v6668_v51 = vld [vmem:[#allocation2 + $0x58] sm:$0xff]  }
  0xf6   :  { %6270 = vmatmul.mubr.msk.bf16.vlgmr.msra.gmra.mrb[0].mxu1 %vm132_vm1, %v177_v57  ;;  %6779 = vpow2.f32 %v798_v55  ;;  %v804_v57 = vmul.f32 1.442695, %v795_v53 }
  0xf7   :  { %6282 = vmatpush3.bf16.msra.mxu1 %v6655_v24  ;;  %6289 = vmatprep.mubr.msk.bf16.mxu1 %vm381_vm4, %v341_v59  ;;  %v741_v24 = vadd.f32 %v727_v22, %v726_v20  ;;  %v6663_v20 = vld [vmem:[#allocation2 + $0x30] sm:$0xff]   ;;  %v7185_v22 = vrot.slane %v7180_v21, %v118_v47 }
  0xf8   :  { %6283 = vmatprep.subr.bf16.mxu1 %v6656_v58 }
  0xf9   :  { %v756_v31 = vadd.f32 %v741_v24, %v728_v23  ;;  %v6664_v23 = vld [vmem:[#allocation2 + $0x38] sm:$0xff]  }
  0xfb   :  { %6284 = vmatpush3.bf16.msra.mxu1 %v6656_v58  ;;  %v771_v39 = vadd.f32 %v756_v31, %v7156_v35 }
  0xfc   :  { %6285 = vmatprep.subr.bf16.mxu1 %v6657_v60 }
  0xfd   :  { %v786_v49 = vadd.f32 %v771_v39, %v7167_v44 }
  0xfe   :  { %v6778_v58 = vpop.eup %6777 }
  0xff   :  { %6286 = vmatpush3.bf16.msra.mxu1 %v6657_v60  ;;  %v791_v52 = vsub.f32 0.0, %v786_v49  ;;  %v808_v60 = vmul.f32 0.1, %v6778_v58  ;;  %v6666_v49 = vld [vmem:[#allocation2 + $0x48] sm:$0xff]  }
 0x100   :  { %6287 = vmatprep.subr.bf16.mxu1 %v6658_v61  ;;  %v6780_v59 = vpop.eup %6779 }
 0x101   :  { %v796_v56 = vmul.f32 1.442695, %v791_v52  ;;  %v807_v62 = vmul.f32 0.1, %v6780_v59  ;;  %v744_v52 = vadd.f32 %v7167_v44, %v7156_v35 }
 0x103   :  { %6288 = vmatpush3.bf16.msra.mxu1 %v6658_v61  ;;  %6781 = vpow2.f32 %v796_v56  ;;  %v812_v1 = vsub.f32 0.1, %v807_v62  ;;  %v794_v53 = vsub.f32 0.0, %v744_v52  ;;  %v7198_v62 = vrot.slane %v7180_v21, %v185_v8 }
 0x104   :  { %6783 = vpow2.f32 %v804_v57  ;;  %6305 = vmatprep.subr.bf16.mxu1 %v6665_v46  ;;  %v251_v8 = vsub.s32 2, %v7069_v26 }
 0x105   :  { %v802_v54 = vmul.f32 1.442695, %v794_v53 }
 0x106   :  { %6290 = vmatmul.mubr.msk.bf16.vlgmr.msra.gmra.mrb[4].mxu1 %vm381_vm4, %v344_v63  ;;  %v813_v63 = vsub.f32 0.1, %v808_v60 }
 0x107   :  { %6306 = vmatpush3.bf16.msra.mxu1 %v6665_v46  ;;  %6785 = vpow2.f32 %v802_v54 }
 0x108   :  { %828 = vperm.xlu1 %6650, %v813_v63   ;;  %6307 = vmatprep.subr.bf16.mxu1 %v6666_v49 }
 0x10b   :  { %6308 = vmatpush3.bf16.msra.mxu1 %v6666_v49 }
 0x10c   :  { %823 = vperm.xlu1 %6650, %v812_v1   ;;  %6309 = vmatprep.subr.bf16.mxu1 %v6667_v50 }
 0x10d   :  { %v6782_v61 = vpop.eup %6781 }
 0x10e   :  { %v806_v2 = vmul.f32 0.1, %v6782_v61  ;;  %v6784_v4 = vpop.eup %6783 }
 0x10f   :  { %v810_v6 = vmul.f32 0.1, %v6784_v4  ;;  %6310 = vmatpush3.bf16.msra.mxu1 %v6667_v50 }
 0x110   :  { %v811_v5 = vsub.f32 0.1, %v806_v2  ;;  %6311 = vmatprep.subr.bf16.mxu1 %v6668_v51 }
 0x111   :  { %v815_v7 = vsub.f32 0.1, %v810_v6  ;;  %v6786_v55 = vpop.eup %6785 }
 0x112   :  { %818 = vperm.xlu1 %6650, %v811_v5   ;;  %v809_v56 = vmul.f32 0.1, %v6786_v55 }
 0x113   :  { %6312 = vmatpush3.bf16.msra.mxu1 %v6668_v51 }
 0x114   :  { %v814_v57 = vsub.f32 0.1, %v809_v56 }
 0x116   :  { %838 = vperm.xlu1 %6650, %v815_v7   ;;  %833 = vperm.xlu0 %6649, %v814_v57  }
 0x1c9   :  { %v236_v0 = vpop.f32.mrb[0].mxu1 }
 0x1ca   :  { %v237_v11 = vadd.f32 %v236_v0, %v186_v9  ;;  %v6271_v12 = vpop.f32.mrb[1].mxu1 }
 0x1cb   :  { %v239_v13 = vpop.f32.mrb[2].mxu1 }
 0x1cc   :  { %v242_v14 = vmax.f32 %v237_v11, 0.0  ;;  %v6272_v16 = vpop.f32.mrb[3].mxu1 }
 0x1ce   :  { %v243_v17 = vpack.c.bf16 %v242_v14, %v242_v14  ;;  %v7210_v14 = vrot.slane %v7180_v21, %v251_v8 }
 0x1d0   :  { %6278 = vmatmul.mubr.msk.bf16.vlgmr.msra.gmra.mrb[4].mxu0 %vm132_vm1, %v243_v17 }
 0x1d1   :  { %6294 = vmatpush3.bf16.msra.mxu0 %v7124_v3 }
 0x1d2   :  { %6295 = vmatprep.subr.bf16.mxu0 %v6662_v19 }
 0x1d5   :  { %6296 = vmatpush3.bf16.msra.mxu0 %v6662_v19 }
 0x1d6   :  { %6297 = vmatprep.subr.bf16.mxu0 %v6663_v20 }
 0x1d9   :  { %v6291_v24 = vpop.f32.mrb[4].mxu1  ;;  %6298 = vmatpush3.bf16.msra.mxu0 %v6663_v20 }
 0x1da   :  { %v429_v27 = vadd.f32 %v6291_v24, %v7185_v22  ;;  %v420_v3 = vpop.f32.mrb[5].mxu1  ;;  %6299 = vmatprep.subr.bf16.mxu0 %v6664_v23 }
 0x1db   :  { %v421_v28 = vadd.f32 %v420_v3, %v7185_v22  ;;  %v6292_v29 = vpop.f32.mrb[6].mxu1 }
 0x1dc   :  { %v432_v30 = vadd.f32 %v6292_v29, %v7185_v22  ;;  %v423_v31 = vpop.f32.mrb[7].mxu1  ;;  %v437_v37 = vmax.f32 %v429_v27, 0.0 }
 0x1dd   :  { %v424_v36 = vadd.f32 %v423_v31, %v7185_v22  ;;  %6300 = vmatpush3.bf16.msra.mxu0 %v6664_v23  ;;  %v435_v39 = vmax.f32 %v421_v28, 0.0 }
 0x1de   :  { %v438_v47 = vmax.f32 %v432_v30, 0.0 }
 0x1df   :  { %v436_v41 = vmax.f32 %v424_v36, 0.0 }
 0x1e0   :  { %v440_v42 = vpack.c.bf16 %v438_v47, %v437_v37 }
 0x1e1   :  { %v439_v45 = vpack.c.bf16 %v436_v41, %v435_v39 }
 0x1e3   :  { %6301 = vmatprep.mubr.msk.bf16.mxu0 %vm381_vm4, %v439_v45 }
 0x1e4   :  { %6302 = vmatmul.mubr.msk.bf16.vlgmr.msra.gmra.mrb[8].mxu0 %vm381_vm4, %v440_v42 }
 0x2a3   :  { %v7195_v58 = vpop.f32.mrb[4].mxu0 }
 0x2a4   :  { %v6279_v59 = vpop.f32.mrb[5].mxu0 }
 0x2a5   :  { %v305_v60 = vpop.f32.mrb[6].mxu0 }
 0x2a6   :  { %v6280_v61 = vpop.f32.mrb[7].mxu0 }
 0x2a7   :  { %v7244_v61 = vpop.permute.xlu1 %828 }
 0x2b7   :  { %v6303_v63 = vpop.f32.mrb[8].mxu0 }
 0x2b8   :  { %v527_v1 = vadd.f32 %v6303_v63, %v7198_v62  ;;  %v518_v2 = vpop.f32.mrb[9].mxu0 }
 0x2b9   :  { %v519_v35 = vadd.f32 %v518_v2, %v7198_v62  ;;  %v6304_v44 = vpop.f32.mrb[10].mxu0 }
 0x2ba   :  { %v530_v4 = vadd.f32 %v6304_v44, %v7198_v62  ;;  %v521_v5 = vpop.f32.mrb[11].mxu0  ;;  %v535_v7 = vmax.f32 %v527_v1, 0.0 }
 0x2bb   :  { %v522_v6 = vadd.f32 %v521_v5, %v7198_v62  ;;  %v533_v0 = vmax.f32 %v519_v35, 0.0  ;;  %v7246_v5 = vpop.permute.xlu1 %823 }
 0x2bc   :  { %v536_v9 = vmax.f32 %v530_v4, 0.0 }
 0x2bd   :  { %v534_v11 = vmax.f32 %v522_v6, 0.0 }
 0x2be   :  { %v538_v12 = vpack.c.bf16 %v536_v9, %v535_v7 }
 0x2bf   :  { %v537_v13 = vpack.c.bf16 %v534_v11, %v533_v0 }
 0x2c1   :  { %6313 = vmatprep.mubr.msk.bf16.mxu1 %vm381_vm4, %v537_v13 }
 0x2c2   :  { %6314 = vmatmul.mubr.msk.bf16.vlgmr.msra.gmra.mrb[8].mxu1 %vm381_vm4, %v538_v12  ;;  %v7248_v12 = vpop.permute.xlu1 %818 }
 0x395   :  { %v6315_v16 = vpop.f32.mrb[8].mxu1 }
 0x396   :  { %v616_v17 = vpop.f32.mrb[9].mxu1  ;;  %v7213_v19 = vadd.f32 %v6315_v16, %v7210_v14 }
 0x397   :  { %v7216_v20 = vadd.f32 %v616_v17, %v7210_v14  ;;  %v6316_v23 = vpop.f32.mrb[10].mxu1  ;;  %v834_v17 = vpop.permute.xlu0 %833 }
 0x398   :  { %v619_v24 = vpop.f32.mrb[11].mxu1  ;;  %v7221_v3 = vadd.f32 %v6316_v23, %v7210_v14  ;;  %v647_v29 = vmul.f32 %v7213_v19, %v7213_v19  ;;  %v634_v47 = vsel %vm381_vm4, %v7213_v19, 0.0  ;;  %v839_v23 = vpop.permute.xlu1 %838 }
 0x399   :  { %v645_v27 = vmul.f32 %v7216_v20, %v7216_v20  ;;  %v7224_v28 = vadd.f32 %v619_v24, %v7210_v14  ;;  %v631_v30 = vsel %vm381_vm4, %v7216_v20, 0.0  ;;  %v7253_v24 = vld [vmem:[%s9134_s6 + $0x10] sm:$0xff] }
 0x39a   :  { %v648_v41 = vmul.f32 %v7221_v3, %v7221_v3  ;;  %v652_v49 = vsel %vm381_vm4, %v647_v29, 0.0  ;;  %v636_v50 = vsel %vm381_vm4, %v7221_v3, 0.0  ;;  %v6898_v29 = vld [vmem:[%s9134_s6 + $0x18] sm:$0xff] }
 0x39b   :  { %v632_v31 = vsel %vm381_vm4, %v7224_v28, 0.0  ;;  %v646_v36 = vmul.f32 %v7224_v28, %v7224_v28  ;;  %v649_v39 = vsel %vm381_vm4, %v645_v27, 0.0  ;;  %v7257_v27 = vmul.f32 %v7253_v24, %v7244_v61 }
 0x39c   :  { %v633_v37 = vadd.f32 %v632_v31, %v631_v30  ;;  %v654_v53 = vsel %vm381_vm4, %v648_v41, 0.0  ;;  %v849_v30 = vmul.f32 %v6898_v29, %v834_v17  ;;  %v6899_v31 = vld [vmem:[%s9134_s6 + $0x20] sm:$0xff]  ;;  %v7267_v41 = vsub.s32 3, %v7069_v26 }
 0x39d   :  { %v650_v42 = vsel %vm381_vm4, %v646_v36, 0.0  ;;  %v850_v36 = vmul.f32 %v6899_v31, %v839_v23 }
 0x39e   :  { %v635_v45 = vadd.f32 %v634_v47, %v633_v37  ;;  %v651_v46 = vadd.f32 %v650_v42, %v649_v39  ;;  %v853_v37 = vrot.slane %v7257_v27, 7  ;;  %v854_v47 = vrot.slane %v849_v30, 7 }
 0x39f   :  { %v855_v39 = vrot.slane %v850_v36, 7  ;;  %v841_v30 = vmul.f32 %v7248_v12, %v7074_v32 }
 0x3a0   :  { %v637_v51 = vadd.f32 %v636_v50, %v635_v45  ;;  %v653_v52 = vadd.f32 %v652_v49, %v651_v46  ;;  %v845_v45 = vmul.f32 %v839_v23, %v7097_v43  ;;  %v844_v46 = vmul.f32 %v834_v17, %v7089_v38  ;;  %v6901_v17 = vld [vmem:[%s9134_s6 + $0x8] sm:$0xff] }
 0x3a1   :  { %v857_v50 = vsel %vm856_vm10, %v854_v47, %v855_v39  ;;  %v870_v38 = vmul.f32 0.7, %v6898_v29  ;;  %v847_v23 = vmul.f32 %v6901_v17, %v7246_v5 }
 0x3a2   :  { %v638_v54 = vrot.slane %v637_v51, 4  ;;  %v655_v55 = vadd.f32 %v654_v53, %v653_v52  ;;  %v866_v43 = vadd.f32 %v857_v50, %v845_v45  ;;  %v843_v50 = vmul.f32 %v7244_v61, %v7082_v34 }
 0x3a4   :  { %v639_v56 = vadd.f32 %v638_v54, %v637_v51  ;;  %v656_v57 = vrot.slane %v655_v55, 4  ;;  %v858_v51 = vsel %vm856_vm10, %v853_v37, %v854_v47  ;;  %v7281_v54 = vsub.s32 4, %v7069_v26 }
 0x3a5   :  { %v842_v47 = vmul.f32 %v7246_v5, %v7078_v33 }
 0x3a6   :  { %v640_v59 = vrot.slane %v639_v56, 2  ;;  %v657_v60 = vadd.f32 %v656_v57, %v655_v55  ;;  %v865_v55 = vadd.f32 %v858_v51, %v844_v46  ;;  %v868_v51 = vmul.f32 0.7, %v6901_v17 }
 0x3a8   :  { %v641_v63 = vadd.f32 %v640_v59, %v639_v56  ;;  %v658_v1 = vrot.slane %v657_v60, 2  ;;  %v871_v56 = vmul.f32 0.7, %v6899_v31  ;;  %v852_v31 = vrot.slane %v847_v23, 7 }
 0x3aa   :  { %v642_v2 = vrot.slane %v641_v63, 1  ;;  %v659_v35 = vadd.f32 %v658_v1, %v657_v60  ;;  %v859_v33 = vsel %vm856_vm10, %v852_v31, %v853_v37 }
 0x3ab   :  { %v864_v5 = vadd.f32 %v859_v33, %v843_v50  ;;  %v6674_v33 = vld [vmem:[#allocation2 + $0x28] sm:$0xff]  }
 0x3ac   :  { %v643_v44 = vadd.f32 %v642_v2, %v641_v63  ;;  %v660_v4 = vrot.slane %v659_v35, 1 }
 0x3ae   :  { %v644_v6 = vmul.f32 0.03125, %v643_v44  ;;  %v661_v7 = vadd.f32 %v660_v4, %v659_v35  ;;  %v876_v44 = vadd.f32 %v871_v56, %v866_v43  ;;  %v875_v4 = vadd.f32 %v870_v38, %v865_v55 }
 0x3b0   :  { %v662_v9 = vmul.f32 0.03125, %v661_v7  ;;  %v663_v0 = vmul.f32 %v644_v6, %v644_v6 }
 0x3b2   :  { %v664_v11 = vsub.f32 %v662_v9, %v663_v0 }
 0x3b4   :  { %v665_v13 = vmax.f32 %v664_v11, 0.0  ;;  %v6671_v11 = vld [vmem:[#allocation2 + $0x10] sm:$0xff]  }
 0x3b6   :  { %v666_v16 = vadd.f32 1e-05, %v665_v13  ;;  %v6900_v13 = vld [vmem:[%s9134_s6] sm:$0xff] }
 0x3b7   :  { %v867_v46 = vmul.f32 0.7, %v6900_v13 }
 0x3b8   :  { %6787 = vrsqrt.f32 %v666_v16  ;;  %v846_v16 = vmul.f32 %v6900_v13, %v7248_v12 }
 0x3ba   :  { %v851_v29 = vrot.slane %v846_v16, 7 }
 0x3bc   :  { %v861_v36 = vsel %vm856_vm10, %v855_v39, %v851_v29 }
 0x3bd   :  { %v862_v45 = vadd.f32 %v861_v36, %v841_v30 }
 0x3bf   :  { %v872_v12 = vadd.f32 %v867_v46, %v862_v45 }
 0x3c2   :  { %v6788_v42 = vpop.eup %6787 }
 0x3c3   :  { %v668_v49 = vmul.f32 %v6788_v42, %v7180_v21  ;;  %v252_v42 = vrot.slane %v7106_v48, %v251_v8 }
 0x3c5   :  { %v672_v52 = vrot.slane %v668_v49, %v7267_v41  ;;  %v677_v53 = vmul.f32 %v668_v49, %v644_v6  ;;  %v860_v49 = vsel %vm856_vm10, %v851_v29, %v852_v31  ;;  %v7319_v32 = vadd.f32 %v7195_v58, %v252_v42 }
 0x3c6   :  { %v863_v39 = vadd.f32 %v860_v49, %v842_v47 }
 0x3c7   :  { %v674_v57 = vmul.f32 %v672_v52, %v7224_v28  ;;  %v673_v59 = vmul.f32 %v672_v52, %v7216_v20  ;;  %v679_v60 = vrot.slane %v677_v53, 7  ;;  %v675_v63 = vmul.f32 %v672_v52, %v7213_v19  ;;  %v6669_v19 = vld [vmem:[#allocation2] sm:$0xff]  }
 0x3c8   :  { %v676_v1 = vmul.f32 %v672_v52, %v7221_v3  ;;  %v6670_v3 = vld [vmem:[#allocation2 + $0x8] sm:$0xff]   ;;  %6317 = vmatprep.subr.bf16.mxu0 %v6669_v19  ;;  %v877_v48 = vadd.f32 %v872_v12, %v7319_v32  ;;  %v873_v8 = vadd.f32 %v868_v51, %v863_v39  ;;  %v869_v52 = vmul.f32 0.7, %v7253_v24  ;;  %v6673_v51 = vld [vmem:[#allocation2 + $0x20] sm:$0xff]  }
 0x3c9   :  { %v681_v2 = vsub.f32 %v7180_v21, %v679_v60  ;;  %6318 = vmatpush3.bf16.msra.mxu0 %v6669_v19  ;;  %6329 = vmatprep.subr.bf16.mxu1 %v6673_v51 }
 0x3ca   :  { %6319 = vmatprep.subr.bf16.mxu0 %v6670_v3  ;;  %v874_v58 = vadd.f32 %v869_v52, %v864_v5  ;;  %6330 = vmatpush3.bf16.msra.mxu1 %v6673_v51  ;;  %v6675_v51 = vld [vmem:[#allocation2 + $0x30] sm:$0xff]  }
 0x3cb   :  { %v685_v35 = vrot.slane %v681_v2, %v7281_v54  ;;  %6331 = vmatprep.subr.bf16.mxu1 %v6674_v33 }
 0x3cd   :  { %v686_v6 = vadd.f32 %v685_v35, %v673_v59  ;;  %v687_v7 = vadd.f32 %v685_v35, %v674_v57  ;;  %v688_v9 = vadd.f32 %v685_v35, %v675_v63  ;;  %v689_v0 = vadd.f32 %v685_v35, %v676_v1  ;;  %6320 = vmatpush3.bf16.msra.mxu0 %v6670_v3  ;;  %v6672_v57 = vld [vmem:[#allocation2 + $0x18] sm:$0xff]  }
 0x3ce   :  { %6321 = vmatprep.subr.bf16.mxu0 %v6671_v11  ;;  %6332 = vmatpush3.bf16.msra.mxu1 %v6674_v33  ;;  %v6676_v33 = vld [vmem:[#allocation2 + $0x38] sm:$0xff]  }
 0x3cf   :  { %879 = vrot.lane.b32.xlu1 %v686_v6, %s6937_s1  ;;  %v905_v28 = vadd.f32 %v876_v44, %v689_v0  ;;  %v886_v20 = vadd.f32 %v875_v4, %v688_v9  ;;  %v884_v34 = vadd.f32 %v873_v8, %v686_v6  ;;  %v885_v37 = vadd.f32 %v874_v58, %v687_v7 }
 0x3d0   :  { %6333 = vmatprep.subr.bf16.mxu1 %v6675_v51 }
 0x3d1   :  { %906 = vst.msk [vmem:[%s9134_s6 + $0x20] sm:$0xff] %vm132_vm1, %v905_v28  ;;  %6322 = vmatpush3.bf16.msra.mxu0 %v6671_v11 }
 0x3d2   :  { %6323 = vmatprep.subr.bf16.mxu0 %v6672_v57  ;;  %6334 = vmatpush3.bf16.msra.mxu1 %v6675_v51 }
 0x3d3   :  { %890 = vrot.lane.b32.xlu1 %v687_v7, %s6937_s1  ;;  %6335 = vmatprep.subr.bf16.mxu1 %v6676_v33 }
 0x3d5   :  { %6324 = vmatpush3.bf16.msra.mxu0 %v6672_v57 }
 0x3d6   :  { %6336 = vmatpush3.bf16.msra.mxu1 %v6676_v33 }
 0x3d7   :  { %892 = vrot.lane.b32.xlu1 %v688_v9, %s6937_s1 }
 0x3d8   :  { %v7376_v7 = vld [vmem:[%s9134_s6 + $0x20] sm:$0xff] }
 0x3d9   :  { %v914_v19 = vpack.c.bf16 %v7376_v7, %v7376_v7  ;;  %v1267_v31 = vrot.slane %v7376_v7, 1 }
 0x3db   :  { %894 = vrot.lane.b32.xlu1 %v689_v0, %s6937_s1  ;;  %v921_v11 = vrot.slane %v914_v19, 4 }
 0x441   :  { %v880_v53 = vpop.permute.xlu1 %879 }
 0x442   :  { %v882_v55 = vadd.f32 %v880_v53, %v877_v48 }
 0x444   :  { %883 = vst.msk [vmem:[%s9134_s6] sm:$0xff] %vm132_vm1, %v882_v55 }
 0x445   :  { %v891_v61 = vpop.permute.xlu1 %890 }
 0x446   :  { %v899_v27 = vadd.f32 %v891_v61, %v884_v34 }
 0x448   :  { %902 = vst.msk [vmem:[%s9134_s6 + $0x8] sm:$0xff] %vm132_vm1, %v899_v27 }
 0x449   :  { %v893_v43 = vpop.permute.xlu1 %892 }
 0x44a   :  { %v900_v56 = vadd.f32 %v893_v43, %v885_v37 }
 0x44b   :  { %v7358_v2 = vld [vmem:[%s9134_s6] sm:$0xff] }
 0x44c   :  { %903 = vst.msk [vmem:[%s9134_s6 + $0x10] sm:$0xff] %vm132_vm1, %v900_v56  ;;  %v1263_v16 = vrot.slane %v7358_v2, 1 }
 0x44d   :  { %v895_v24 = vpop.permute.xlu1 %894 }
 0x44e   :  { %v901_v38 = vadd.f32 %v895_v24, %v886_v20  ;;  %v7412_v49 = vsel %vm695_vm3, %v1267_v31, %v1263_v16 }
 0x44f   :  { %v7346_v59 = vld [vmem:[%s9134_s6 + $0x8] sm:$0xff]  ;;  %v1277_v12 = vmul.f32 %v7412_v49, %v7376_v7 }
 0x450   :  { %904 = vst.msk [vmem:[%s9134_s6 + $0x18] sm:$0xff] %vm132_vm1, %v901_v38  ;;  %v1264_v63 = vrot.slane %v7346_v59, 1  ;;  %v912_v44 = vpack.c.bf16 %v7346_v59, %v7358_v2 }
 0x451   :  { %v1290_v39 = vsel %vm132_vm1, %v1277_v12, 0.0 }
 0x452   :  { %v918_v28 = vrot.slane %v912_v44, 4  ;;  %v7390_v17 = vsel %vm695_vm3, %v1263_v16, %v1264_v63 }
 0x453   :  { %v7351_v60 = vld [vmem:[%s9134_s6 + $0x10] sm:$0xff]  ;;  %v1273_v29 = vmul.f32 %v7390_v17, %v7358_v2 }
 0x454   :  { %v1265_v1 = vrot.slane %v7351_v60, 1 }
 0x455   :  { %v1278_v36 = vsel %vm132_vm1, %v1273_v29, 0.0 }
 0x456   :  { %v7362_v35 = vsel %vm695_vm3, %v1264_v63, %v1265_v1 }
 0x457   :  { %v1274_v4 = vmul.f32 %v7362_v35, %v7346_v59  ;;  %v7371_v6 = vld [vmem:[%s9134_s6 + $0x18] sm:$0xff] }
 0x458   :  { %v913_v9 = vpack.c.bf16 %v7371_v6, %v7351_v60  ;;  %v1266_v23 = vrot.slane %v7371_v6, 1 }
 0x459   :  { %v1281_v0 = vsel %vm132_vm1, %v1274_v4, 0.0 }
 0x45a   :  { %1282 = vadd.xlane.f32.xlu0 %v1281_v0  ;;  %v919_v20 = vrot.slane %v913_v9, 4  ;;  %v7397_v30 = vsel %vm695_vm3, %v1265_v1, %v1266_v23  ;;  %v7405_v42 = vsel %vm695_vm3, %v1266_v23, %v1267_v31 }
 0x45b   :  { %v1275_v47 = vmul.f32 %v7397_v30, %v7351_v60  ;;  %v1276_v46 = vmul.f32 %v7405_v42, %v7371_v6 }
 0x45c   :  { %v920_v3 = vsel %vm329_vm2, %v918_v28, %v919_v20  ;;  %v922_v13 = vsel %vm329_vm2, %v919_v20, %v921_v11 }
 0x45d   :  { %923 = vrot.lane.b32.xlu1 %v920_v3, %s6935_s21  ;;  %v1284_v45 = vsel %vm132_vm1, %v1275_v47, 0.0  ;;  %v1287_v50 = vsel %vm132_vm1, %v1276_v46, 0.0 }
 0x461   :  { %925 = vrot.lane.b32.xlu1 %v922_v13, %s6935_s21 }
 0x485   :  { %1279 = vadd.xlane.f32.xlu1 %v1278_v36 }
 0x489   :  { %1285 = vadd.xlane.f32.xlu1 %v1284_v45 }
 0x48d   :  { %1288 = vadd.xlane.f32.xlu1 %v1287_v50 }
 0x491   :  { %1291 = vadd.xlane.f32.xlu1 %v1290_v39 }
 0x4cf   :  { %v924_v48 = vpop.permute.xlu1 %923 }
 0x4d0   :  { %v929_v8 = vsel %vm132_vm1, %v912_v44, %v924_v48 }
 0x4d1   :  { %6325 = vmatprep.mubr.msk.bf16.mxu0 %vm381_vm4, %v929_v8 }
 0x4d3   :  { %v926_v5 = vpop.permute.xlu1 %925 }
 0x4d4   :  { %v932_v52 = vsel %vm132_vm1, %v913_v9, %v926_v5 }
 0x4d5   :  { %6326 = vmatmul.mubr.msk.bf16.vlgmr.msra.gmra.mrb[12].mxu0 %vm381_vm4, %v932_v52 }
 0x4e7   :  { %v1283_v55 = vpop.xlane.xlu0 %1282 }
 0x4e8   :  { %v1294_v61 = vmax.f32 %v1283_v55, 0.0 }
 0x4ea   :  { %v1299_v56 = vsel %vm7135_vm6, %v1294_v61, 0.0 }
 0x512   :  { %v1280_v53 = vpop.xlane.xlu1 %1279 }
 0x513   :  { %v1293_v34 = vmax.f32 %v1280_v53, 0.0 }
 0x515   :  { %v1298_v37 = vsel %vm7131_vm5, %v1293_v34, 0.0 }
 0x516   :  { %v1286_v58 = vpop.xlane.xlu1 %1285  ;;  %v1308_v57 = vadd.f32 %v1299_v56, %v1298_v37 }
 0x517   :  { %v1295_v27 = vmax.f32 %v1286_v58, 0.0 }
 0x519   :  { %v1300_v24 = vsel %vm7139_vm7, %v1295_v27, 0.0 }
 0x51a   :  { %v1289_v43 = vpop.xlane.xlu1 %1288  ;;  %v1309_v1 = vadd.f32 %v1300_v24, %v1299_v56  ;;  %v1318_v44 = vadd.f32 %v1308_v57, %v1300_v24  ;;  %v6677_v57 = vld [vmem:[#allocation2 + $0x40] sm:$0xff]  }
 0x51b   :  { %v1296_v38 = vmax.f32 %v1289_v43, 0.0  ;;  %6341 = vmatprep.subr.bf16.mxu0 %v6677_v57 }
 0x51c   :  { %6342 = vmatpush3.bf16.msra.mxu0 %v6677_v57 }
 0x51d   :  { %v1301_v63 = vsel %vm7150_vm8, %v1296_v38, 0.0 }
 0x51e   :  { %v1292_v4 = vpop.xlane.xlu1 %1291  ;;  %v1310_v0 = vadd.f32 %v1301_v63, %v1300_v24  ;;  %v1319_v28 = vadd.f32 %v1309_v1, %v1301_v63  ;;  %v1328_v20 = vadd.f32 %v1318_v44, %v1301_v63 }
 0x51f   :  { %v1297_v9 = vmax.f32 %v1292_v4, 0.0 }
 0x521   :  { %v1302_v19 = vsel %vm7161_vm9, %v1297_v9, 0.0 }
 0x522   :  { %v1338_v3 = vadd.f32 %v1328_v20, %v1302_v19  ;;  %v1320_v11 = vadd.f32 %v1310_v0, %v1302_v19  ;;  %v1329_v13 = vadd.f32 %v1319_v28, %v1302_v19  ;;  %v1311_v16 = vadd.f32 %v1302_v19, %v1301_v63  ;;  %v6678_v63 = vld [vmem:[#allocation2 + $0x48] sm:$0xff]  }
 0x523   :  { %v1347_v47 = vsub.f32 0.0, %v1302_v19  ;;  %6343 = vmatprep.subr.bf16.mxu0 %v6678_v63 }
 0x524   :  { %v1343_v23 = vsub.f32 0.0, %v1338_v3  ;;  %v1345_v29 = vsub.f32 0.0, %v1320_v11  ;;  %v1344_v31 = vsub.f32 0.0, %v1329_v13  ;;  %v1346_v36 = vsub.f32 0.0, %v1311_v16  ;;  %6344 = vmatpush3.bf16.msra.mxu0 %v6678_v63 }
 0x525   :  { %v1356_v39 = vmul.f32 1.442695, %v1347_v47 }
 0x526   :  { %v1348_v45 = vmul.f32 1.442695, %v1343_v23  ;;  %v1352_v46 = vmul.f32 1.442695, %v1345_v29  ;;  %v1350_v50 = vmul.f32 1.442695, %v1344_v31 }
 0x527   :  { %v1354_v12 = vmul.f32 1.442695, %v1346_v36  ;;  %v6679_v31 = vld [vmem:[#allocation2 + $0x50] sm:$0xff]   ;;  %v6680_v36 = vld [vmem:[#allocation2 + $0x58] sm:$0xff]  }
 0x528   :  { %6789 = vpow2.f32 %v1348_v45  ;;  %6345 = vmatprep.subr.bf16.mxu0 %v6679_v31 }
 0x529   :  { %6791 = vpow2.f32 %v1352_v46  ;;  %6346 = vmatpush3.bf16.msra.mxu0 %v6679_v31 }
 0x52a   :  { %6793 = vpow2.f32 %v1350_v50  ;;  %6347 = vmatprep.subr.bf16.mxu0 %v6680_v36 }
 0x52b   :  { %6795 = vpow2.f32 %v1354_v12 }
 0x52c   :  { %6797 = vpow2.f32 %v1356_v39 }
 0x52d   :  { %6348 = vmatpush3.bf16.msra.mxu0 %v6680_v36 }
 0x532   :  { %v6790_v48 = vpop.eup %6789 }
 0x533   :  { %v6792_v8 = vpop.eup %6791  ;;  %v1358_v5 = vmul.f32 0.1, %v6790_v48 }
 0x534   :  { %v6794_v52 = vpop.eup %6793  ;;  %v1360_v53 = vmul.f32 0.1, %v6792_v8 }
 0x535   :  { %v6796_v55 = vpop.eup %6795  ;;  %v1363_v34 = vsub.f32 0.1, %v1358_v5  ;;  %v1359_v61 = vmul.f32 0.1, %v6794_v52 }
 0x536   :  { %v1365_v58 = vsub.f32 0.1, %v1360_v53  ;;  %v1361_v27 = vmul.f32 0.1, %v6796_v55  ;;  %v6798_v37 = vpop.eup %6797 }
 0x537   :  { %1370 = vperm.xlu0 %6649, %v1363_v34   ;;  %v1364_v56 = vsub.f32 0.1, %v1359_v61  ;;  %v1362_v24 = vmul.f32 0.1, %v6798_v37 }
 0x538   :  { %1380 = vperm.xlu1 %6650, %v1365_v58   ;;  %v1366_v43 = vsub.f32 0.1, %v1361_v27 }
 0x539   :  { %v1367_v38 = vsub.f32 0.1, %v1362_v24 }
 0x53b   :  { %1385 = vperm.xlu0 %6649, %v1366_v43  }
 0x53c   :  { %1375 = vperm.xlu1 %6650, %v1364_v56  }
 0x540   :  { %1390 = vperm.xlu1 %6650, %v1367_v38  }
 0x5a8   :  { %v6327_v1 = vpop.f32.mrb[12].mxu0 }
 0x5a9   :  { %v1012_v44 = vadd.f32 %v6327_v1, %v7185_v22  ;;  %v1003_v4 = vpop.f32.mrb[13].mxu0 }
 0x5aa   :  { %v1004_v9 = vadd.f32 %v1003_v4, %v7185_v22  ;;  %v6328_v0 = vpop.f32.mrb[14].mxu0 }
 0x5ab   :  { %v1015_v28 = vadd.f32 %v6328_v0, %v7185_v22  ;;  %v1006_v20 = vpop.f32.mrb[15].mxu0  ;;  %v1020_v3 = vmax.f32 %v1012_v44, 0.0 }
 0x5ac   :  { %v1007_v19 = vadd.f32 %v1006_v20, %v7185_v22  ;;  %v1018_v13 = vmax.f32 %v1004_v9, 0.0 }
 0x5ad   :  { %v1021_v11 = vmax.f32 %v1015_v28, 0.0 }
 0x5ae   :  { %v1019_v16 = vmax.f32 %v1007_v19, 0.0 }
 0x5af   :  { %v1023_v23 = vpack.c.bf16 %v1021_v11, %v1020_v3 }
 0x5b0   :  { %v1022_v29 = vpack.c.bf16 %v1019_v16, %v1018_v13 }
 0x5b2   :  { %6337 = vmatprep.mubr.msk.bf16.mxu1 %vm381_vm4, %v1022_v29 }
 0x5b3   :  { %6338 = vmatmul.mubr.msk.bf16.vlgmr.msra.gmra.mrb[12].mxu1 %vm381_vm4, %v1023_v23 }
 0x686   :  { %v6339_v47 = vpop.f32.mrb[12].mxu1 }
 0x687   :  { %v1105_v45 = vadd.f32 %v6339_v47, %v7198_v62  ;;  %v1096_v46 = vpop.f32.mrb[13].mxu1 }
 0x688   :  { %v1097_v50 = vadd.f32 %v1096_v46, %v7198_v62  ;;  %v6340_v12 = vpop.f32.mrb[14].mxu1 }
 0x689   :  { %v1108_v39 = vadd.f32 %v6340_v12, %v7198_v62  ;;  %v1099_v51 = vpop.f32.mrb[15].mxu1  ;;  %v1113_v48 = vmax.f32 %v1105_v45, 0.0 }
 0x68a   :  { %v1100_v33 = vadd.f32 %v1099_v51, %v7198_v62  ;;  %v1111_v5 = vmax.f32 %v1097_v50, 0.0 }
 0x68b   :  { %v1114_v8 = vmax.f32 %v1108_v39, 0.0 }
 0x68c   :  { %v1112_v52 = vmax.f32 %v1100_v33, 0.0 }
 0x68d   :  { %v1116_v53 = vpack.c.bf16 %v1114_v8, %v1113_v48 }
 0x68e   :  { %v1115_v55 = vpack.c.bf16 %v1112_v52, %v1111_v5  ;;  %v7466_v5 = vpop.permute.xlu1 %1380 }
 0x690   :  { %6349 = vmatprep.mubr.msk.bf16.mxu0 %vm381_vm4, %v1115_v55 }
 0x691   :  { %6350 = vmatmul.mubr.msk.bf16.vlgmr.msra.gmra.mrb[16].mxu0 %vm381_vm4, %v1116_v53 }
 0x764   :  { %v6351_v34 = vpop.f32.mrb[16].mxu0 }
 0x765   :  { %v1189_v58 = vpop.f32.mrb[17].mxu0  ;;  %v7445_v61 = vadd.f32 %v6351_v34, %v7210_v14 }
 0x766   :  { %v7448_v27 = vadd.f32 %v1189_v58, %v7210_v14  ;;  %v6352_v37 = vpop.f32.mrb[18].mxu0 }
 0x767   :  { %v1192_v43 = vpop.f32.mrb[19].mxu0  ;;  %v1201_v24 = vadd.f32 %v6352_v37, %v7210_v14  ;;  %v1220_v57 = vmul.f32 %v7445_v61, %v7445_v61  ;;  %v1207_v9 = vsel %vm381_vm4, %v7445_v61, 0.0  ;;  %v7468_v37 = vpop.permute.xlu0 %1370 }
 0x768   :  { %v1218_v56 = vmul.f32 %v7448_v27, %v7448_v27  ;;  %v1193_v38 = vadd.f32 %v1192_v43, %v7210_v14  ;;  %v1204_v63 = vsel %vm381_vm4, %v7448_v27, 0.0  ;;  %v7470_v43 = vpop.permute.xlu1 %1375 }
 0x769   :  { %v1221_v28 = vmul.f32 %v1201_v24, %v1201_v24  ;;  %v1225_v11 = vsel %vm381_vm4, %v1220_v57, 0.0  ;;  %v1209_v13 = vsel %vm381_vm4, %v1201_v24, 0.0 }
 0x76a   :  { %v1205_v1 = vsel %vm381_vm4, %v1193_v38, 0.0  ;;  %v1219_v44 = vmul.f32 %v1193_v38, %v1193_v38  ;;  %v1222_v0 = vsel %vm381_vm4, %v1218_v56, 0.0 }
 0x76b   :  { %v1206_v4 = vadd.f32 %v1205_v1, %v1204_v63  ;;  %v1227_v29 = vsel %vm381_vm4, %v1221_v28, 0.0  ;;  %v1386_v63 = vpop.permute.xlu0 %1385 }
 0x76c   :  { %v1223_v20 = vsel %vm381_vm4, %v1219_v44, 0.0  ;;  %v1391_v1 = vpop.permute.xlu1 %1390  ;;  %v1401_v44 = vmul.f32 %v1386_v63, %v7371_v6 }
 0x76d   :  { %v1208_v19 = vadd.f32 %v1207_v9, %v1206_v4  ;;  %v1224_v3 = vadd.f32 %v1223_v20, %v1222_v0  ;;  %v1402_v4 = vmul.f32 %v1391_v1, %v7376_v7  ;;  %v1400_v9 = vmul.f32 %v7466_v5, %v7351_v60 }
 0x76e   :  { %v1406_v0 = vrot.slane %v1401_v44, 7 }
 0x76f   :  { %v1210_v16 = vadd.f32 %v1209_v13, %v1208_v19  ;;  %v1226_v23 = vadd.f32 %v1225_v11, %v1224_v3  ;;  %v1407_v28 = vrot.slane %v1402_v4, 7  ;;  %v1405_v19 = vrot.slane %v1400_v9, 7 }
 0x770   :  { %v1394_v4 = vmul.f32 %v7470_v43, %v7362_v35  ;;  %v1420_v35 = vmul.f32 0.7, %v7351_v60 }
 0x771   :  { %v1211_v31 = vrot.slane %v1210_v16, 4  ;;  %v1228_v36 = vadd.f32 %v1227_v29, %v1226_v23  ;;  %v1409_v11 = vsel %vm856_vm10, %v1405_v19, %v1406_v0  ;;  %v1408_v13 = vsel %vm856_vm10, %v1406_v0, %v1407_v28 }
 0x772   :  { %v1396_v29 = vmul.f32 %v1386_v63, %v7405_v42 }
 0x773   :  { %v1212_v47 = vadd.f32 %v1211_v31, %v1210_v16  ;;  %v1229_v45 = vrot.slane %v1228_v36, 4  ;;  %v1397_v31 = vmul.f32 %v1391_v1, %v7412_v49  ;;  %v1393_v1 = vmul.f32 %v7468_v37, %v7390_v17 }
 0x775   :  { %v1213_v46 = vrot.slane %v1212_v47, 2  ;;  %v1230_v50 = vadd.f32 %v1229_v45, %v1228_v36 }
 0x777   :  { %v1214_v12 = vadd.f32 %v1213_v46, %v1212_v47  ;;  %v1231_v39 = vrot.slane %v1230_v50, 2 }
 0x779   :  { %v1215_v51 = vrot.slane %v1214_v12, 1  ;;  %v1232_v33 = vadd.f32 %v1231_v39, %v1230_v50  ;;  %v1416_v50 = vadd.f32 %v1409_v11, %v1396_v29  ;;  %v1395_v11 = vmul.f32 %v7466_v5, %v7397_v30 }
 0x77b   :  { %v1216_v48 = vadd.f32 %v1215_v51, %v1214_v12  ;;  %v1233_v8 = vrot.slane %v1232_v33, 1  ;;  %v1417_v12 = vadd.f32 %v1408_v13, %v1397_v31 }
 0x77d   :  { %v1217_v52 = vmul.f32 0.03125, %v1216_v48  ;;  %v1234_v53 = vadd.f32 %v1233_v8, %v1232_v33  ;;  %v1422_v33 = vmul.f32 0.7, %v7376_v7  ;;  %v1421_v48 = vmul.f32 0.7, %v7371_v6  ;;  %v6682_v6 = vld [vmem:[#allocation2 + $0x8] sm:$0xff]  }
 0x77e   :  { %v6683_v7 = vld [vmem:[#allocation2 + $0x10] sm:$0xff]  }
 0x77f   :  { %v1235_v55 = vmul.f32 0.03125, %v1234_v53  ;;  %v1236_v34 = vmul.f32 %v1217_v52, %v1217_v52  ;;  %v1427_v42 = vadd.f32 %v1422_v33, %v1417_v12 }
 0x781   :  { %v1237_v58 = vsub.f32 %v1235_v55, %v1236_v34  ;;  %v1398_v34 = vmul.f32 %v7468_v37, %v7358_v2 }
 0x783   :  { %v1238_v56 = vmax.f32 %v1237_v58, 0.0  ;;  %v1399_v58 = vmul.f32 %v7470_v43, %v7346_v59 }
 0x785   :  { %v1239_v57 = vadd.f32 1e-05, %v1238_v56  ;;  %v1403_v56 = vrot.slane %v1398_v34, 7 }
 0x787   :  { %6799 = vrsqrt.f32 %v1239_v57  ;;  %v1404_v57 = vrot.slane %v1399_v58, 7  ;;  %v1412_v63 = vsel %vm856_vm10, %v1407_v28, %v1403_v56  ;;  %v1419_v28 = vmul.f32 0.7, %v7346_v59 }
 0x788   :  { %v1413_v9 = vadd.f32 %v1412_v63, %v1393_v1 }
 0x789   :  { %v1411_v44 = vsel %vm856_vm10, %v1403_v56, %v1404_v57 }
 0x78a   :  { %v1414_v0 = vadd.f32 %v1411_v44, %v1394_v4 }
 0x78c   :  { %v1424_v17 = vadd.f32 %v1419_v28, %v1414_v0 }
 0x791   :  { %v6800_v20 = vpop.eup %6799 }
 0x792   :  { %v1241_v3 = vmul.f32 %v6800_v20, %v7180_v21  ;;  %v1418_v20 = vmul.f32 0.7, %v7358_v2 }
 0x794   :  { %v1245_v16 = vrot.slane %v1241_v3, %v7267_v41  ;;  %v1250_v23 = vmul.f32 %v1241_v3, %v1217_v52  ;;  %v1426_v52 = vadd.f32 %v1421_v48, %v1416_v50  ;;  %v1410_v3 = vsel %vm856_vm10, %v1404_v57, %v1405_v19 }
 0x795   :  { %v1423_v13 = vadd.f32 %v1418_v20, %v1413_v9  ;;  %v1415_v37 = vadd.f32 %v1410_v3, %v1395_v11  ;;  %v6685_v3 = vld [vmem:[#allocation2 + $0x20] sm:$0xff]   ;;  %v6686_v11 = vld [vmem:[#allocation2 + $0x28] sm:$0xff]  }
 0x796   :  { %v1247_v36 = vmul.f32 %v1245_v16, %v1193_v38  ;;  %v1252_v47 = vrot.slane %v1250_v23, 7  ;;  %v1246_v45 = vmul.f32 %v1245_v16, %v7448_v27  ;;  %v1249_v46 = vmul.f32 %v1245_v16, %v1201_v24  ;;  %v6684_v24 = vld [vmem:[#allocation2 + $0x18] sm:$0xff]   ;;  %6365 = vmatprep.subr.bf16.mxu0 %v6685_v3 }
 0x797   :  { %v1248_v39 = vmul.f32 %v1245_v16, %v7445_v61  ;;  %v1428_v23 = vadd.f32 %v1423_v13, %v7319_v32  ;;  %6366 = vmatpush3.bf16.msra.mxu0 %v6685_v3 }
 0x798   :  { %v1254_v51 = vsub.f32 %v7180_v21, %v1252_v47  ;;  %v6681_v21 = vld [vmem:[#allocation2] sm:$0xff]   ;;  %6367 = vmatprep.subr.bf16.mxu0 %v6686_v11 }
 0x799   :  { %6353 = vmatprep.subr.bf16.mxu1 %v6681_v21 }
 0x79a   :  { %v1258_v8 = vrot.slane %v1254_v51, %v7281_v54  ;;  %6354 = vmatpush3.bf16.msra.mxu1 %v6681_v21 }
 0x79b   :  { %6355 = vmatprep.subr.bf16.mxu1 %v6682_v6  ;;  %6368 = vmatpush3.bf16.msra.mxu0 %v6686_v11 }
 0x79c   :  { %v1260_v49 = vadd.f32 %v1258_v8, %v1247_v36  ;;  %v1259_v38 = vadd.f32 %v1258_v8, %v1246_v45  ;;  %v1262_v53 = vadd.f32 %v1258_v8, %v1249_v46  ;;  %v1261_v55 = vadd.f32 %v1258_v8, %v1248_v39 }
 0x79d   :  { %v1425_v36 = vadd.f32 %v1420_v35, %v1415_v37 }
 0x79e   :  { %1441 = vrot.lane.b32.xlu1 %v1260_v49, %s6937_s1  ;;  %1430 = vrot.lane.b32.xlu0 %v1259_v38, %s6937_s1  ;;  %v1456_v27 = vadd.f32 %v1427_v42, %v1262_v53  ;;  %v1437_v61 = vadd.f32 %v1426_v52, %v1261_v55  ;;  %v1435_v16 = vadd.f32 %v1424_v17, %v1259_v38 }
 0x79f   :  { %6356 = vmatpush3.bf16.msra.mxu1 %v6682_v6  ;;  %v1436_v59 = vadd.f32 %v1425_v36, %v1260_v49 }
 0x7a0   :  { %1457 = vst.msk [vmem:[%s9134_s6 + $0x20] sm:$0xff] %vm132_vm1, %v1456_v27  ;;  %6357 = vmatprep.subr.bf16.mxu1 %v6683_v7 }
 0x7a2   :  { %1445 = vrot.lane.b32.xlu1 %v1262_v53, %s6937_s1  ;;  %1443 = vrot.lane.b32.xlu0 %v1261_v55, %s6937_s1 }
 0x7a3   :  { %6358 = vmatpush3.bf16.msra.mxu1 %v6683_v7 }
 0x7a4   :  { %6359 = vmatprep.subr.bf16.mxu1 %v6684_v24 }
 0x7a7   :  { %6360 = vmatpush3.bf16.msra.mxu1 %v6684_v24  ;;  %v7537_v47 = vld [vmem:[%s9134_s6 + $0x20] sm:$0xff] }
 0x7a8   :  { %v1465_v50 = vpack.c.bf16 %v7537_v47, %v7537_v47  ;;  %v1818_v24 = vrot.slane %v7537_v47, 1 }
 0x7aa   :  { %v1472_v8 = vrot.slane %v1465_v50, 4 }
 0x810   :  { %v1442_v43 = vpop.permute.xlu1 %1441  ;;  %v1431_v29 = vpop.permute.xlu0 %1430 }
 0x811   :  { %v1450_v31 = vadd.f32 %v1442_v43, %v1435_v16  ;;  %v1433_v2 = vadd.f32 %v1431_v29, %v1428_v23 }
 0x813   :  { %1453 = vst.msk [vmem:[%s9134_s6 + $0x8] sm:$0xff] %vm132_vm1, %v1450_v31  ;;  %1434 = vst.msk [vmem:[%s9134_s6] sm:$0xff] %vm132_vm1, %v1433_v2 }
 0x814   :  { %v1446_v30 = vpop.permute.xlu1 %1445  ;;  %v1444_v5 = vpop.permute.xlu0 %1443 }
 0x815   :  { %v1452_v19 = vadd.f32 %v1446_v30, %v1437_v61  ;;  %v1451_v60 = vadd.f32 %v1444_v5, %v1436_v59 }
 0x817   :  { %1455 = vst.msk [vmem:[%s9134_s6 + $0x18] sm:$0xff] %vm132_vm1, %v1452_v19  ;;  %1454 = vst.msk [vmem:[%s9134_s6 + $0x10] sm:$0xff] %vm132_vm1, %v1451_v60 }
 0x81a   :  { %v7542_v45 = vld [vmem:[%s9134_s6] sm:$0xff]  ;;  %v7547_v46 = vld [vmem:[%s9134_s6 + $0x8] sm:$0xff] }
 0x81b   :  { %v1463_v12 = vpack.c.bf16 %v7547_v46, %v7542_v45  ;;  %v1814_v38 = vrot.slane %v7542_v45, 1  ;;  %v1815_v53 = vrot.slane %v7547_v46, 1 }
 0x81d   :  { %v1469_v42 = vrot.slane %v1463_v12, 4  ;;  %v7573_v55 = vsel %vm695_vm3, %v1814_v38, %v1815_v53  ;;  %v7599_v63 = vsel %vm695_vm3, %v1818_v24, %v1814_v38 }
 0x81e   :  { %v7556_v39 = vld [vmem:[%s9134_s6 + $0x10] sm:$0xff]  ;;  %v7561_v51 = vld [vmem:[%s9134_s6 + $0x18] sm:$0xff]  ;;  %v1824_v21 = vmul.f32 %v7573_v55, %v7542_v45  ;;  %v1828_v9 = vmul.f32 %v7599_v63, %v7537_v47 }
 0x81f   :  { %v1464_v33 = vpack.c.bf16 %v7561_v51, %v7556_v39  ;;  %v1816_v27 = vrot.slane %v7556_v39, 1  ;;  %v1817_v61 = vrot.slane %v7561_v51, 1 }
 0x820   :  { %v1829_v34 = vsel %vm132_vm1, %v1824_v21, 0.0  ;;  %v1841_v20 = vsel %vm132_vm1, %v1828_v9, 0.0 }
 0x821   :  { %v1470_v48 = vrot.slane %v1464_v33, 4  ;;  %v7581_v6 = vsel %vm695_vm3, %v1816_v27, %v1817_v61  ;;  %v7585_v7 = vsel %vm695_vm3, %v1815_v53, %v1816_v27  ;;  %v7595_v57 = vsel %vm695_vm3, %v1817_v61, %v1818_v24 }
 0x822   :  { %v1826_v58 = vmul.f32 %v7581_v6, %v7556_v39  ;;  %v1825_v56 = vmul.f32 %v7585_v7, %v7547_v46  ;;  %v1827_v44 = vmul.f32 %v7595_v57, %v7561_v51 }
 0x823   :  { %v1473_v52 = vsel %vm329_vm2, %v1470_v48, %v1472_v8  ;;  %v1471_v49 = vsel %vm329_vm2, %v1469_v42, %v1470_v48 }
 0x824   :  { %1476 = vrot.lane.b32.xlu1 %v1473_v52, %s6935_s21  ;;  %1474 = vrot.lane.b32.xlu0 %v1471_v49, %s6935_s21  ;;  %v1835_v1 = vsel %vm132_vm1, %v1826_v58, 0.0  ;;  %v1832_v4 = vsel %vm132_vm1, %v1825_v56, 0.0  ;;  %v1838_v0 = vsel %vm132_vm1, %v1827_v44, 0.0 }
 0x843   :  { %1830 = vadd.xlane.f32.xlu0 %v1829_v34 }
 0x847   :  { %1836 = vadd.xlane.f32.xlu0 %v1835_v1 }
 0x848   :  { %1833 = vadd.xlane.f32.xlu1 %v1832_v4 }
 0x84b   :  { %1839 = vadd.xlane.f32.xlu0 %v1838_v0 }
 0x84c   :  { %1842 = vadd.xlane.f32.xlu1 %v1841_v20 }
 0x896   :  { %v1477_v28 = vpop.permute.xlu1 %1476  ;;  %v1475_v13 = vpop.permute.xlu0 %1474 }
 0x897   :  { %v1483_v17 = vsel %vm132_vm1, %v1464_v33, %v1477_v28  ;;  %v1480_v37 = vsel %vm132_vm1, %v1463_v12, %v1475_v13 }
 0x898   :  { %6361 = vmatprep.mubr.msk.bf16.mxu1 %vm381_vm4, %v1480_v37  ;;  %v6687_v37 = vld [vmem:[#allocation2 + $0x30] sm:$0xff]  }
 0x899   :  { %6362 = vmatmul.mubr.msk.bf16.vlgmr.msra.gmra.mrb[16].mxu1 %vm381_vm4, %v1483_v17  ;;  %6369 = vmatprep.subr.bf16.mxu0 %v6687_v37 }
 0x89a   :  { %6370 = vmatpush3.bf16.msra.mxu0 %v6687_v37 }
 0x8d0   :  { %v1831_v16 = vpop.xlane.xlu0 %1830 }
 0x8d1   :  { %v1844_v23 = vmax.f32 %v1831_v16, 0.0 }
 0x8d3   :  { %v1849_v36 = vsel %vm7131_vm5, %v1844_v23, 0.0 }
 0x8d4   :  { %v1837_v35 = vpop.xlane.xlu0 %1836 }
 0x8d5   :  { %v1846_v43 = vmax.f32 %v1837_v35, 0.0  ;;  %v1834_v29 = vpop.xlane.xlu1 %1833 }
 0x8d6   :  { %v1845_v31 = vmax.f32 %v1834_v29, 0.0 }
 0x8d7   :  { %v1851_v2 = vsel %vm7139_vm7, %v1846_v43, 0.0 }
 0x8d8   :  { %v1850_v59 = vsel %vm7135_vm6, %v1845_v31, 0.0  ;;  %v1840_v30 = vpop.xlane.xlu0 %1839  ;;  %v6688_v31 = vld [vmem:[#allocation2 + $0x38] sm:$0xff]  }
 0x8d9   :  { %v1859_v5 = vadd.f32 %v1850_v59, %v1849_v36  ;;  %v1860_v19 = vadd.f32 %v1851_v2, %v1850_v59  ;;  %v1847_v60 = vmax.f32 %v1840_v30, 0.0  ;;  %v1843_v50 = vpop.xlane.xlu1 %1842  ;;  %6371 = vmatprep.subr.bf16.mxu0 %v6688_v31 }
 0x8da   :  { %v1848_v12 = vmax.f32 %v1843_v50, 0.0  ;;  %6372 = vmatpush3.bf16.msra.mxu0 %v6688_v31 }
 0x8db   :  { %v1869_v33 = vadd.f32 %v1859_v5, %v1851_v2  ;;  %v1852_v48 = vsel %vm7150_vm8, %v1847_v60, 0.0  ;;  %v6689_v5 = vld [vmem:[#allocation2 + $0x40] sm:$0xff]  }
 0x8dc   :  { %v1861_v8 = vadd.f32 %v1852_v48, %v1851_v2  ;;  %v1870_v42 = vadd.f32 %v1860_v19, %v1852_v48  ;;  %v1853_v52 = vsel %vm7161_vm9, %v1848_v12, 0.0  ;;  %v6690_v19 = vld [vmem:[#allocation2 + $0x48] sm:$0xff]   ;;  %6377 = vmatprep.subr.bf16.mxu1 %v6689_v5 }
 0x8dd   :  { %v1879_v49 = vadd.f32 %v1869_v33, %v1852_v48  ;;  %v1862_v38 = vadd.f32 %v1853_v52, %v1852_v48  ;;  %v1898_v58 = vsub.f32 0.0, %v1853_v52  ;;  %6378 = vmatpush3.bf16.msra.mxu1 %v6689_v5 }
 0x8de   :  { %v1871_v53 = vadd.f32 %v1861_v8, %v1853_v52  ;;  %v1880_v27 = vadd.f32 %v1870_v42, %v1853_v52  ;;  %6379 = vmatprep.subr.bf16.mxu1 %v6690_v19 }
 0x8df   :  { %v1889_v61 = vadd.f32 %v1879_v49, %v1853_v52  ;;  %v1897_v21 = vsub.f32 0.0, %v1862_v38  ;;  %v1907_v0 = vmul.f32 1.442695, %v1898_v58 }
 0x8e0   :  { %v1896_v24 = vsub.f32 0.0, %v1871_v53  ;;  %v1895_v34 = vsub.f32 0.0, %v1880_v27 }
 0x8e1   :  { %v1894_v56 = vsub.f32 0.0, %v1889_v61  ;;  %v1905_v1 = vmul.f32 1.442695, %v1897_v21  ;;  %6380 = vmatpush3.bf16.msra.mxu1 %v6690_v19 }
 0x8e2   :  { %v1903_v44 = vmul.f32 1.442695, %v1896_v24  ;;  %v1901_v4 = vmul.f32 1.442695, %v1895_v34  ;;  %v6691_v24 = vld [vmem:[#allocation2 + $0x50] sm:$0xff]   ;;  %v6692_v34 = vld [vmem:[#allocation2 + $0x58] sm:$0xff]  }
 0x8e3   :  { %v1899_v9 = vmul.f32 1.442695, %v1894_v56  ;;  %6801 = vpow2.f32 %v1905_v1  ;;  %6381 = vmatprep.subr.bf16.mxu1 %v6691_v24 }
 0x8e4   :  { %6803 = vpow2.f32 %v1903_v44 }
 0x8e5   :  { %6805 = vpow2.f32 %v1899_v9  ;;  %6382 = vmatpush3.bf16.msra.mxu1 %v6691_v24 }
 0x8e6   :  { %6807 = vpow2.f32 %v1901_v4  ;;  %6383 = vmatprep.subr.bf16.mxu1 %v6692_v34 }
 0x8e7   :  { %6809 = vpow2.f32 %v1907_v0 }
 0x8e9   :  { %6384 = vmatpush3.bf16.msra.mxu1 %v6692_v34 }
 0x8ed   :  { %v6802_v20 = vpop.eup %6801 }
 0x8ee   :  { %v6804_v3 = vpop.eup %6803  ;;  %v1912_v29 = vmul.f32 0.1, %v6802_v20 }
 0x8ef   :  { %v6806_v11 = vpop.eup %6805  ;;  %v1911_v28 = vmul.f32 0.1, %v6804_v3 }
 0x8f0   :  { %v6808_v13 = vpop.eup %6807  ;;  %v1909_v17 = vmul.f32 0.1, %v6806_v11  ;;  %v1917_v59 = vsub.f32 0.1, %v1912_v29 }
 0x8f1   :  { %v1916_v16 = vsub.f32 0.1, %v1911_v28  ;;  %v1910_v23 = vmul.f32 0.1, %v6808_v13  ;;  %v6810_v35 = vpop.eup %6809 }
 0x8f2   :  { %v1914_v43 = vsub.f32 0.1, %v1909_v17  ;;  %v1913_v36 = vmul.f32 0.1, %v6810_v35 }
 0x8f3   :  { %1931 = vperm.xlu1 %6650, %v1916_v16   ;;  %v1915_v2 = vsub.f32 0.1, %v1910_v23 }
 0x8f4   :  { %1921 = vperm.xlu0 %6649, %v1914_v43   ;;  %v1918_v30 = vsub.f32 0.1, %v1913_v36 }
 0x8f7   :  { %1926 = vperm.xlu1 %6650, %v1915_v2  }
 0x8f8   :  { %1936 = vperm.xlu0 %6649, %v1917_v59  }
 0x8fb   :  { %1941 = vperm.xlu1 %6650, %v1918_v30  }
 0x96c   :  { %v6363_v60 = vpop.f32.mrb[16].mxu1 }
 0x96d   :  { %v1563_v50 = vadd.f32 %v6363_v60, %v7185_v22  ;;  %v1554_v12 = vpop.f32.mrb[17].mxu1 }
 0x96e   :  { %v1555_v33 = vadd.f32 %v1554_v12, %v7185_v22  ;;  %v6364_v48 = vpop.f32.mrb[18].mxu1 }
 0x96f   :  { %v1566_v8 = vadd.f32 %v6364_v48, %v7185_v22  ;;  %v1557_v42 = vpop.f32.mrb[19].mxu1  ;;  %v1571_v49 = vmax.f32 %v1563_v50, 0.0 }
 0x970   :  { %v1558_v52 = vadd.f32 %v1557_v42, %v7185_v22  ;;  %v1569_v53 = vmax.f32 %v1555_v33, 0.0 }
 0x971   :  { %v1572_v38 = vmax.f32 %v1566_v8, 0.0 }
 0x972   :  { %v1570_v27 = vmax.f32 %v1558_v52, 0.0 }
 0x973   :  { %v1574_v61 = vpack.c.bf16 %v1572_v38, %v1571_v49 }
 0x974   :  { %v1573_v21 = vpack.c.bf16 %v1570_v27, %v1569_v53 }
 0x976   :  { %6373 = vmatprep.mubr.msk.bf16.mxu0 %vm381_vm4, %v1573_v21 }
 0x977   :  { %6374 = vmatmul.mubr.msk.bf16.vlgmr.msra.gmra.mrb[20].mxu0 %vm381_vm4, %v1574_v61 }
 0xa4a   :  { %v6375_v58 = vpop.f32.mrb[20].mxu0 }
 0xa4b   :  { %v1656_v56 = vadd.f32 %v6375_v58, %v7198_v62  ;;  %v1647_v1 = vpop.f32.mrb[21].mxu0 }
 0xa4c   :  { %v1648_v44 = vadd.f32 %v1647_v1, %v7198_v62  ;;  %v6376_v4 = vpop.f32.mrb[22].mxu0 }
 0xa4d   :  { %v1659_v9 = vadd.f32 %v6376_v4, %v7198_v62  ;;  %v1650_v0 = vpop.f32.mrb[23].mxu0  ;;  %v1664_v3 = vmax.f32 %v1656_v56, 0.0 }
 0xa4e   :  { %v1651_v20 = vadd.f32 %v1650_v0, %v7198_v62  ;;  %v1662_v28 = vmax.f32 %v1648_v44, 0.0 }
 0xa4f   :  { %v1665_v11 = vmax.f32 %v1659_v9, 0.0 }
 0xa50   :  { %v1663_v13 = vmax.f32 %v1651_v20, 0.0 }
 0xa51   :  { %v1667_v17 = vpack.c.bf16 %v1665_v11, %v1664_v3  ;;  %v7657_v11 = vpop.permute.xlu1 %1931 }
 0xa52   :  { %v1666_v37 = vpack.c.bf16 %v1663_v13, %v1662_v28 }
 0xa54   :  { %6385 = vmatprep.mubr.msk.bf16.mxu1 %vm381_vm4, %v1666_v37 }
 0xa55   :  { %6386 = vmatmul.mubr.msk.bf16.vlgmr.msra.gmra.mrb[20].mxu1 %vm381_vm4, %v1667_v17 }
 0xb28   :  { %v6387_v16 = vpop.f32.mrb[20].mxu1 }
 0xb29   :  { %v1740_v23 = vpop.f32.mrb[21].mxu1  ;;  %v7636_v35 = vadd.f32 %v6387_v16, %v7210_v14 }
 0xb2a   :  { %v1741_v43 = vadd.f32 %v1740_v23, %v7210_v14  ;;  %v6388_v29 = vpop.f32.mrb[22].mxu1  ;;  %v7659_v23 = vpop.permute.xlu1 %1926 }
 0xb2b   :  { %v1743_v31 = vpop.f32.mrb[23].mxu1  ;;  %v7640_v36 = vadd.f32 %v6388_v29, %v7210_v14  ;;  %v1771_v30 = vmul.f32 %v7636_v35, %v7636_v35  ;;  %v1758_v12 = vsel %vm381_vm4, %v7636_v35, 0.0 }
 0xb2c   :  { %v1769_v2 = vmul.f32 %v1741_v43, %v1741_v43  ;;  %v1744_v59 = vadd.f32 %v1743_v31, %v7210_v14  ;;  %v1755_v5 = vsel %vm381_vm4, %v1741_v43, 0.0  ;;  %v1922_v31 = vpop.permute.xlu0 %1921 }
 0xb2d   :  { %v1772_v48 = vmul.f32 %v7640_v36, %v7640_v36  ;;  %v1776_v49 = vsel %vm381_vm4, %v1771_v30, 0.0  ;;  %v1760_v38 = vsel %vm381_vm4, %v7640_v36, 0.0 }
 0xb2e   :  { %v1756_v19 = vsel %vm381_vm4, %v1744_v59, 0.0  ;;  %v1770_v60 = vmul.f32 %v1744_v59, %v1744_v59  ;;  %v1773_v33 = vsel %vm381_vm4, %v1769_v2, 0.0  ;;  %v1942_v30 = vpop.permute.xlu1 %1941 }
 0xb2f   :  { %v1757_v50 = vadd.f32 %v1756_v19, %v1755_v5  ;;  %v1778_v61 = vsel %vm381_vm4, %v1772_v48, 0.0  ;;  %v1953_v19 = vmul.f32 %v1942_v30, %v7537_v47 }
 0xb30   :  { %v1774_v8 = vsel %vm381_vm4, %v1770_v60, 0.0  ;;  %v1937_v5 = vpop.permute.xlu0 %1936 }
 0xb31   :  { %v1759_v42 = vadd.f32 %v1758_v12, %v1757_v50  ;;  %v1775_v52 = vadd.f32 %v1774_v8, %v1773_v33  ;;  %v1952_v60 = vmul.f32 %v1937_v5, %v7561_v51  ;;  %v1951_v50 = vmul.f32 %v7657_v11, %v7556_v39  ;;  %v7668_v8 = vld [vmem:[%s9133_s5] sm:$0x1f] }
 0xb32   :  { %v1958_v12 = vrot.slane %v1953_v19, 7  ;;  %v1944_v19 = vmul.f32 %v1922_v31, %v7573_v55 }
 0xb33   :  { %v1761_v53 = vadd.f32 %v1760_v38, %v1759_v42  ;;  %v1777_v27 = vadd.f32 %v1776_v49, %v1775_v52  ;;  %v1957_v48 = vrot.slane %v1952_v60, 7  ;;  %v1956_v52 = vrot.slane %v1951_v50, 7 }
 0xb34   :  { %v1945_v50 = vmul.f32 %v7659_v23, %v7585_v7  ;;  %v1971_v7 = vmul.f32 0.7, %v7556_v39 }
 0xb35   :  { %v1762_v21 = vrot.slane %v1761_v53, 4  ;;  %v1779_v24 = vadd.f32 %v1778_v61, %v1777_v27  ;;  %v1959_v49 = vsel %vm856_vm10, %v1957_v48, %v1958_v12  ;;  %v1960_v27 = vsel %vm856_vm10, %v1956_v52, %v1957_v48 }
 0xb36   :  { %v1948_v61 = vmul.f32 %v1942_v30, %v7599_v63  ;;  %v1972_v63 = vmul.f32 0.7, %v7561_v51  ;;  %v6694_v51 = vld [vmem:[#allocation2 + $0x8] sm:$0xff]  }
 0xb37   :  { %v1763_v34 = vadd.f32 %v1762_v21, %v1761_v53  ;;  %v1780_v58 = vrot.slane %v1779_v24, 4 }
 0xb39   :  { %v1764_v56 = vrot.slane %v1763_v34, 2  ;;  %v1781_v1 = vadd.f32 %v1780_v58, %v1779_v24 }
 0xb3b   :  { %v1765_v44 = vadd.f32 %v1764_v56, %v1763_v34  ;;  %v1782_v4 = vrot.slane %v1781_v1, 2  ;;  %v1947_v56 = vmul.f32 %v1937_v5, %v7595_v57 }
 0xb3d   :  { %v1766_v9 = vrot.slane %v1765_v44, 1  ;;  %v1783_v0 = vadd.f32 %v1782_v4, %v1781_v1  ;;  %v1968_v1 = vadd.f32 %v1959_v49, %v1948_v61 }
 0xb3f   :  { %v1767_v20 = vadd.f32 %v1766_v9, %v1765_v44  ;;  %v1784_v3 = vrot.slane %v1783_v0, 1  ;;  %v1967_v9 = vadd.f32 %v1960_v27, %v1947_v56 }
 0xb41   :  { %v1768_v28 = vmul.f32 0.03125, %v1767_v20  ;;  %v1785_v13 = vadd.f32 %v1784_v3, %v1783_v0  ;;  %v1973_v0 = vmul.f32 0.7, %v7537_v47  ;;  %v6693_v47 = vld [vmem:[#allocation2] sm:$0xff]  }
 0xb42   :  { %6389 = vmatprep.subr.bf16.mxu0 %v6693_v47 }
 0xb43   :  { %v1786_v17 = vmul.f32 0.03125, %v1785_v13  ;;  %v1787_v37 = vmul.f32 %v1768_v28, %v1768_v28  ;;  %v1978_v3 = vadd.f32 %v1973_v0, %v1968_v1  ;;  %6390 = vmatpush3.bf16.msra.mxu0 %v6693_v47 }
 0xb44   :  { %6391 = vmatprep.subr.bf16.mxu0 %v6694_v51 }
 0xb45   :  { %v1788_v16 = vsub.f32 %v1786_v17, %v1787_v37  ;;  %v6695_v17 = vld [vmem:[#allocation2 + $0x10] sm:$0xff]   ;;  %v6696_v37 = vld [vmem:[#allocation2 + $0x18] sm:$0xff]  }
 0xb47   :  { %v1789_v29 = vmax.f32 %v1788_v16, 0.0  ;;  %6392 = vmatpush3.bf16.msra.mxu0 %v6694_v51  ;;  %v1949_v16 = vmul.f32 %v1922_v31, %v7542_v45 }
 0xb48   :  { %6393 = vmatprep.subr.bf16.mxu0 %v6695_v17 }
 0xb49   :  { %v1790_v2 = vadd.f32 1e-05, %v1789_v29  ;;  %v1950_v29 = vmul.f32 %v7659_v23, %v7547_v46 }
 0xb4b   :  { %6811 = vrsqrt.f32 %v1790_v2  ;;  %6394 = vmatpush3.bf16.msra.mxu0 %v6695_v17  ;;  %v1954_v2 = vrot.slane %v1949_v16, 7  ;;  %v1955_v30 = vrot.slane %v1950_v29, 7 }
 0xb4c   :  { %6395 = vmatprep.subr.bf16.mxu0 %v6696_v37 }
 0xb4d   :  { %v1963_v5 = vsel %vm856_vm10, %v1958_v12, %v1954_v2  ;;  %v1962_v60 = vsel %vm856_vm10, %v1954_v2, %v1955_v30  ;;  %v1961_v49 = vsel %vm856_vm10, %v1955_v30, %v1956_v52  ;;  %v1970_v12 = vmul.f32 0.7, %v7547_v46 }
 0xb4e   :  { %v1965_v48 = vadd.f32 %v1962_v60, %v1945_v50 }
 0xb4f   :  { %6396 = vmatpush3.bf16.msra.mxu0 %v6696_v37 }
 0xb50   :  { %v1975_v55 = vadd.f32 %v1970_v12, %v1965_v48 }
 0xb55   :  { %v6812_v33 = vpop.eup %6811 }
 0xb56   :  { %v1792_v42 = vmul.f32 %v7668_v8, %v6812_v33  ;;  %v1964_v33 = vadd.f32 %v1963_v5, %v1944_v19 }
 0xb58   :  { %v1796_v38 = vrot.slane %v1792_v42, %v7267_v41  ;;  %v1801_v53 = vmul.f32 %v1792_v42, %v1768_v28  ;;  %v1969_v42 = vmul.f32 0.7, %v7542_v45 }
 0xb5a   :  { %v1798_v21 = vmul.f32 %v1796_v38, %v1744_v59  ;;  %v1797_v24 = vmul.f32 %v1796_v38, %v1741_v43  ;;  %v1803_v34 = vrot.slane %v1801_v53, 7  ;;  %v1799_v58 = vmul.f32 %v1796_v38, %v7636_v35 }
 0xb5b   :  { %v1800_v44 = vmul.f32 %v1796_v38, %v7640_v36  ;;  %v1977_v35 = vadd.f32 %v1972_v63, %v1967_v9  ;;  %v1946_v38 = vmul.f32 %v7657_v11, %v7581_v6  ;;  %v1974_v53 = vadd.f32 %v1969_v42, %v1964_v33 }
 0xb5c   :  { %v1805_v4 = vsub.f32 %v7668_v8, %v1803_v34 }
 0xb5d   :  { %v1966_v31 = vadd.f32 %v1961_v49, %v1946_v38  ;;  %v1979_v27 = vadd.f32 %v1974_v53, %v7319_v32  ;;  %v6697_v38 = vld [vmem:[#allocation2 + $0x20] sm:$0xff]   ;;  %v6698_v53 = vld [vmem:[#allocation2 + $0x28] sm:$0xff]  }
 0xb5e   :  { %v1809_v20 = vrot.slane %v1805_v4, %v7281_v54  ;;  %6401 = vmatprep.subr.bf16.mxu1 %v6697_v38 }
 0xb5f   :  { %v1976_v34 = vadd.f32 %v1971_v7, %v1966_v31  ;;  %6402 = vmatpush3.bf16.msra.mxu1 %v6697_v38 }
 0xb60   :  { %v1810_v59 = vadd.f32 %v1809_v20, %v1797_v24  ;;  %v1811_v43 = vadd.f32 %v1809_v20, %v1798_v21  ;;  %v1812_v28 = vadd.f32 %v1809_v20, %v1799_v58  ;;  %v1813_v13 = vadd.f32 %v1809_v20, %v1800_v44  ;;  %6403 = vmatprep.subr.bf16.mxu1 %v6698_v53 }
 0xb62   :  { %1981 = vrot.lane.b32.xlu0 %v1810_v59, %s6937_s1  ;;  %1992 = vrot.lane.b32.xlu1 %v1811_v43, %s6937_s1  ;;  %v2007_v57 = vadd.f32 %v1978_v3, %v1813_v13  ;;  %v1988_v36 = vadd.f32 %v1977_v35, %v1812_v28  ;;  %v1986_v61 = vadd.f32 %v1975_v55, %v1810_v59 }
 0xb63   :  { %v1987_v46 = vadd.f32 %v1976_v34, %v1811_v43  ;;  %6404 = vmatpush3.bf16.msra.mxu1 %v6698_v53 }
 0xb64   :  { %2008 = vst.msk [vmem:[%s9134_s6 + $0x20] sm:$0xff] %vm132_vm1, %v2007_v57 }
 0xb66   :  { %1994 = vrot.lane.b32.xlu0 %v1812_v28, %s6937_s1  ;;  %1996 = vrot.lane.b32.xlu1 %v1813_v13, %s6937_s1 }
 0xb6b   :  { %v7729_v58 = vld [vmem:[%s9134_s6 + $0x20] sm:$0xff] }
 0xb6c   :  { %v2016_v44 = vpack.c.bf16 %v7729_v58, %v7729_v58  ;;  %v2369_v16 = vrot.slane %v7729_v58, 1 }
 0xb6e   :  { %v2023_v63 = vrot.slane %v2016_v44, 4 }
 0xbd4   :  { %v1982_v23 = vpop.permute.xlu0 %1981  ;;  %v1993_v21 = vpop.permute.xlu1 %1992 }
 0xbd5   :  { %v1984_v24 = vadd.f32 %v1982_v23, %v1979_v27  ;;  %v2001_v45 = vadd.f32 %v1993_v21, %v1986_v61 }
 0xbd7   :  { %1985 = vst.msk [vmem:[%s9134_s6] sm:$0xff] %vm132_vm1, %v1984_v24  ;;  %2004 = vst.msk [vmem:[%s9134_s6 + $0x8] sm:$0xff] %vm132_vm1, %v2001_v45 }
 0xbd8   :  { %v1995_v6 = vpop.permute.xlu0 %1994  ;;  %v1997_v11 = vpop.permute.xlu1 %1996 }
 0xbd9   :  { %v2002_v52 = vadd.f32 %v1995_v6, %v1987_v46  ;;  %v2003_v39 = vadd.f32 %v1997_v11, %v1988_v36 }
 0xbdb   :  { %2005 = vst.msk [vmem:[%s9134_s6 + $0x10] sm:$0xff] %vm132_vm1, %v2002_v52  ;;  %2006 = vst.msk [vmem:[%s9134_s6 + $0x18] sm:$0xff] %vm132_vm1, %v2003_v39 }
 0xbde   :  { %v7734_v56 = vld [vmem:[%s9134_s6] sm:$0xff]  ;;  %v7739_v1 = vld [vmem:[%s9134_s6 + $0x8] sm:$0xff] }
 0xbdf   :  { %v2014_v4 = vpack.c.bf16 %v7739_v1, %v7734_v56  ;;  %v2365_v13 = vrot.slane %v7734_v56, 1  ;;  %v2366_v35 = vrot.slane %v7739_v1, 1 }
 0xbe1   :  { %v2020_v59 = vrot.slane %v2014_v4, 4  ;;  %v7765_v57 = vsel %vm695_vm3, %v2365_v13, %v2366_v35  ;;  %v7791_v19 = vsel %vm695_vm3, %v2369_v16, %v2365_v13 }
 0xbe2   :  { %v7748_v9 = vld [vmem:[%s9134_s6 + $0x10] sm:$0xff]  ;;  %v7753_v0 = vld [vmem:[%s9134_s6 + $0x18] sm:$0xff]  ;;  %v2375_v51 = vmul.f32 %v7765_v57, %v7734_v56  ;;  %v2379_v48 = vmul.f32 %v7791_v19, %v7729_v58 }
 0xbe3   :  { %v2015_v20 = vpack.c.bf16 %v7753_v0, %v7748_v9  ;;  %v2367_v36 = vrot.slane %v7748_v9, 1  ;;  %v2368_v47 = vrot.slane %v7753_v0, 1 }
 0xbe4   :  { %v2380_v29 = vsel %vm132_vm1, %v2375_v51, 0.0  ;;  %v2392_v49 = vsel %vm132_vm1, %v2379_v48, 0.0 }
 0xbe5   :  { %v2021_v3 = vrot.slane %v2015_v20, 4  ;;  %v7773_v17 = vsel %vm695_vm3, %v2367_v36, %v2368_v47  ;;  %v7777_v37 = vsel %vm695_vm3, %v2366_v35, %v2367_v36  ;;  %v7787_v5 = vsel %vm695_vm3, %v2368_v47, %v2369_v16 }
 0xbe6   :  { %v2377_v2 = vmul.f32 %v7773_v17, %v7748_v9  ;;  %v2376_v30 = vmul.f32 %v7777_v37, %v7739_v1  ;;  %v2378_v50 = vmul.f32 %v7787_v5, %v7753_v0 }
 0xbe7   :  { %v2024_v43 = vsel %vm329_vm2, %v2021_v3, %v2023_v63  ;;  %v2022_v28 = vsel %vm329_vm2, %v2020_v59, %v2021_v3 }
 0xbe8   :  { %2027 = vrot.lane.b32.xlu1 %v2024_v43, %s6935_s21  ;;  %2025 = vrot.lane.b32.xlu0 %v2022_v28, %s6935_s21  ;;  %v2386_v60 = vsel %vm132_vm1, %v2377_v2, 0.0  ;;  %v2383_v33 = vsel %vm132_vm1, %v2376_v30, 0.0  ;;  %v2389_v42 = vsel %vm132_vm1, %v2378_v50, 0.0 }
 0xc07   :  { %2381 = vadd.xlane.f32.xlu0 %v2380_v29 }
 0xc0b   :  { %2387 = vadd.xlane.f32.xlu0 %v2386_v60 }
 0xc0c   :  { %2384 = vadd.xlane.f32.xlu1 %v2383_v33 }
 0xc0f   :  { %2390 = vadd.xlane.f32.xlu0 %v2389_v42 }
 0xc10   :  { %2393 = vadd.xlane.f32.xlu1 %v2392_v49 }
 0xc5a   :  { %v2028_v12 = vpop.permute.xlu1 %2027  ;;  %v2026_v55 = vpop.permute.xlu0 %2025 }
 0xc5b   :  { %v2034_v31 = vsel %vm132_vm1, %v2015_v20, %v2028_v12  ;;  %v2031_v27 = vsel %vm132_vm1, %v2014_v4, %v2026_v55 }
 0xc5c   :  { %6397 = vmatprep.mubr.msk.bf16.mxu0 %vm381_vm4, %v2031_v27 }
 0xc5d   :  { %6398 = vmatmul.mubr.msk.bf16.vlgmr.msra.gmra.mrb[24].mxu0 %vm381_vm4, %v2034_v31 }
 0xc94   :  { %v2382_v61 = vpop.xlane.xlu0 %2381 }
 0xc95   :  { %v2395_v7 = vmax.f32 %v2382_v61, 0.0  ;;  %v6699_v61 = vld [vmem:[#allocation2 + $0x30] sm:$0xff]  }
 0xc96   :  { %6405 = vmatprep.subr.bf16.mxu1 %v6699_v61 }
 0xc97   :  { %v2400_v46 = vsel %vm7131_vm5, %v2395_v7, 0.0  ;;  %6406 = vmatpush3.bf16.msra.mxu1 %v6699_v61 }
 0xc98   :  { %v2388_v23 = vpop.xlane.xlu0 %2387 }
 0xc99   :  { %v2397_v21 = vmax.f32 %v2388_v23, 0.0  ;;  %v2385_v24 = vpop.xlane.xlu1 %2384 }
 0xc9a   :  { %v2396_v45 = vmax.f32 %v2385_v24, 0.0 }
 0xc9b   :  { %v2402_v34 = vsel %vm7139_vm7, %v2397_v21, 0.0 }
 0xc9c   :  { %v2401_v6 = vsel %vm7135_vm6, %v2396_v45, 0.0  ;;  %v2391_v11 = vpop.xlane.xlu0 %2390 }
 0xc9d   :  { %v2410_v52 = vadd.f32 %v2401_v6, %v2400_v46  ;;  %v2411_v39 = vadd.f32 %v2402_v34, %v2401_v6  ;;  %v2398_v44 = vmax.f32 %v2391_v11, 0.0  ;;  %v2394_v4 = vpop.xlane.xlu1 %2393 }
 0xc9e   :  { %v2399_v20 = vmax.f32 %v2394_v4, 0.0 }
 0xc9f   :  { %v2420_v3 = vadd.f32 %v2410_v52, %v2402_v34  ;;  %v2403_v63 = vsel %vm7150_vm8, %v2398_v44, 0.0  ;;  %v6702_v44 = vld [vmem:[#allocation2 + $0x48] sm:$0xff]  }
 0xca0   :  { %v2412_v59 = vadd.f32 %v2403_v63, %v2402_v34  ;;  %v2421_v43 = vadd.f32 %v2411_v39, %v2403_v63  ;;  %v2404_v28 = vsel %vm7161_vm9, %v2399_v20, 0.0  ;;  %v6700_v34 = vld [vmem:[#allocation2 + $0x38] sm:$0xff]   ;;  %v6701_v39 = vld [vmem:[#allocation2 + $0x40] sm:$0xff]  }
 0xca1   :  { %v2430_v13 = vadd.f32 %v2420_v3, %v2403_v63  ;;  %v2413_v35 = vadd.f32 %v2404_v28, %v2403_v63  ;;  %v2449_v30 = vsub.f32 0.0, %v2404_v28  ;;  %6407 = vmatprep.subr.bf16.mxu1 %v6700_v34  ;;  %6413 = vmatprep.subr.bf16.mxu0 %v6701_v39 }
 0xca2   :  { %v2422_v36 = vadd.f32 %v2412_v59, %v2404_v28  ;;  %v2431_v47 = vadd.f32 %v2421_v43, %v2404_v28  ;;  %6408 = vmatpush3.bf16.msra.mxu1 %v6700_v34  ;;  %6414 = vmatpush3.bf16.msra.mxu0 %v6701_v39 }
 0xca3   :  { %v2440_v51 = vadd.f32 %v2430_v13, %v2404_v28  ;;  %v2448_v16 = vsub.f32 0.0, %v2413_v35  ;;  %v2458_v49 = vmul.f32 1.442695, %v2449_v30  ;;  %6415 = vmatprep.subr.bf16.mxu0 %v6702_v44  ;;  %v6704_v30 = vld [vmem:[#allocation2 + $0x58] sm:$0xff]  }
 0xca4   :  { %v2447_v29 = vsub.f32 0.0, %v2422_v36  ;;  %v2446_v2 = vsub.f32 0.0, %v2431_v47 }
 0xca5   :  { %v2445_v60 = vsub.f32 0.0, %v2440_v51  ;;  %v2456_v50 = vmul.f32 1.442695, %v2448_v16 }
 0xca6   :  { %v2454_v33 = vmul.f32 1.442695, %v2447_v29  ;;  %v2452_v48 = vmul.f32 1.442695, %v2446_v2  ;;  %6416 = vmatpush3.bf16.msra.mxu0 %v6702_v44  ;;  %v6703_v2 = vld [vmem:[#allocation2 + $0x50] sm:$0xff]  }
 0xca7   :  { %v2450_v42 = vmul.f32 1.442695, %v2445_v60  ;;  %6813 = vpow2.f32 %v2456_v50  ;;  %6417 = vmatprep.subr.bf16.mxu0 %v6703_v2 }
 0xca8   :  { %6815 = vpow2.f32 %v2454_v33 }
 0xca9   :  { %6817 = vpow2.f32 %v2450_v42 }
 0xcaa   :  { %6819 = vpow2.f32 %v2452_v48  ;;  %6418 = vmatpush3.bf16.msra.mxu0 %v6703_v2 }
 0xcab   :  { %6821 = vpow2.f32 %v2458_v49  ;;  %6419 = vmatprep.subr.bf16.mxu0 %v6704_v30 }
 0xcae   :  { %6420 = vmatpush3.bf16.msra.mxu0 %v6704_v30 }
 0xcb1   :  { %v6814_v38 = vpop.eup %6813 }
 0xcb2   :  { %v6816_v53 = vpop.eup %6815  ;;  %v2463_v45 = vmul.f32 0.1, %v6814_v38 }
 0xcb3   :  { %v6818_v12 = vpop.eup %6817  ;;  %v2462_v55 = vmul.f32 0.1, %v6816_v53 }
 0xcb4   :  { %v6820_v31 = vpop.eup %6819  ;;  %v2460_v27 = vmul.f32 0.1, %v6818_v12  ;;  %v2468_v11 = vsub.f32 0.1, %v2463_v45 }
 0xcb5   :  { %v2467_v7 = vsub.f32 0.1, %v2462_v55  ;;  %v2461_v23 = vmul.f32 0.1, %v6820_v31  ;;  %v6822_v21 = vpop.eup %6821 }
 0xcb6   :  { %v2465_v24 = vsub.f32 0.1, %v2460_v27  ;;  %v2464_v6 = vmul.f32 0.1, %v6822_v21 }
 0xcb7   :  { %2482 = vperm.xlu1 %6650, %v2467_v7   ;;  %v2466_v46 = vsub.f32 0.1, %v2461_v23 }
 0xcb8   :  { %2472 = vperm.xlu0 %6649, %v2465_v24   ;;  %v2469_v52 = vsub.f32 0.1, %v2464_v6 }
 0xcbb   :  { %2477 = vperm.xlu1 %6650, %v2466_v46  }
 0xcbc   :  { %2487 = vperm.xlu0 %6649, %v2468_v11  }
 0xcbf   :  { %2492 = vperm.xlu1 %6650, %v2469_v52  }
 0xd30   :  { %v6399_v4 = vpop.f32.mrb[24].mxu0 }
 0xd31   :  { %v2114_v20 = vadd.f32 %v6399_v4, %v7185_v22  ;;  %v2105_v3 = vpop.f32.mrb[25].mxu0 }
 0xd32   :  { %v2106_v63 = vadd.f32 %v2105_v3, %v7185_v22  ;;  %v6400_v59 = vpop.f32.mrb[26].mxu0 }
 0xd33   :  { %v2117_v43 = vadd.f32 %v6400_v59, %v7185_v22  ;;  %v2108_v28 = vpop.f32.mrb[27].mxu0  ;;  %v2122_v35 = vmax.f32 %v2114_v20, 0.0 }
 0xd34   :  { %v2109_v13 = vadd.f32 %v2108_v28, %v7185_v22  ;;  %v2120_v47 = vmax.f32 %v2106_v63, 0.0 }
 0xd35   :  { %v2123_v36 = vmax.f32 %v2117_v43, 0.0 }
 0xd36   :  { %v2121_v51 = vmax.f32 %v2109_v13, 0.0 }
 0xd37   :  { %v2125_v16 = vpack.c.bf16 %v2123_v36, %v2122_v35 }
 0xd38   :  { %v2124_v29 = vpack.c.bf16 %v2121_v51, %v2120_v47 }
 0xd3a   :  { %6409 = vmatprep.mubr.msk.bf16.mxu1 %vm381_vm4, %v2124_v29 }
 0xd3b   :  { %6410 = vmatmul.mubr.msk.bf16.vlgmr.msra.gmra.mrb[24].mxu1 %vm381_vm4, %v2125_v16 }
 0xe0e   :  { %v6411_v60 = vpop.f32.mrb[24].mxu1 }
 0xe0f   :  { %v2207_v50 = vadd.f32 %v6411_v60, %v7198_v62  ;;  %v2198_v33 = vpop.f32.mrb[25].mxu1 }
 0xe10   :  { %v2199_v48 = vadd.f32 %v2198_v33, %v7198_v62  ;;  %v6412_v42 = vpop.f32.mrb[26].mxu1 }
 0xe11   :  { %v2210_v49 = vadd.f32 %v6412_v42, %v7198_v62  ;;  %v2201_v38 = vpop.f32.mrb[27].mxu1  ;;  %v2215_v12 = vmax.f32 %v2207_v50, 0.0 }
 0xe12   :  { %v2202_v53 = vadd.f32 %v2201_v38, %v7198_v62  ;;  %v2213_v31 = vmax.f32 %v2199_v48, 0.0 }
 0xe13   :  { %v2216_v55 = vmax.f32 %v2210_v49, 0.0 }
 0xe14   :  { %v2214_v27 = vmax.f32 %v2202_v53, 0.0 }
 0xe15   :  { %v2218_v61 = vpack.c.bf16 %v2216_v55, %v2215_v12 }
 0xe16   :  { %v2217_v7 = vpack.c.bf16 %v2214_v27, %v2213_v31  ;;  %v7844_v31 = vpop.permute.xlu1 %2482 }
 0xe18   :  { %6421 = vmatprep.mubr.msk.bf16.mxu0 %vm381_vm4, %v2217_v7 }
 0xe19   :  { %6422 = vmatmul.mubr.msk.bf16.vlgmr.msra.gmra.mrb[28].mxu0 %vm381_vm4, %v2218_v61 }
 0xeec   :  { %v6423_v23 = vpop.f32.mrb[28].mxu0 }
 0xeed   :  { %v2291_v21 = vpop.f32.mrb[29].mxu0  ;;  %v7828_v24 = vadd.f32 %v6423_v23, %v7210_v14 }
 0xeee   :  { %v2292_v45 = vadd.f32 %v2291_v21, %v7210_v14  ;;  %v6424_v34 = vpop.f32.mrb[30].mxu0 }
 0xeef   :  { %v2294_v46 = vpop.f32.mrb[31].mxu0  ;;  %v2303_v11 = vadd.f32 %v6424_v34, %v7210_v14  ;;  %v2322_v39 = vmul.f32 %v7828_v24, %v7828_v24  ;;  %v2309_v63 = vsel %vm381_vm4, %v7828_v24, 0.0  ;;  %v7846_v34 = vpop.permute.xlu1 %2477 }
 0xef0   :  { %v2320_v6 = vmul.f32 %v2292_v45, %v2292_v45  ;;  %v2295_v52 = vadd.f32 %v2294_v46, %v7210_v14  ;;  %v2306_v44 = vsel %vm381_vm4, %v2292_v45, 0.0 }
 0xef1   :  { %v2323_v43 = vmul.f32 %v2303_v11, %v2303_v11  ;;  %v2327_v36 = vsel %vm381_vm4, %v2322_v39, 0.0  ;;  %v2311_v47 = vsel %vm381_vm4, %v2303_v11, 0.0 }
 0xef2   :  { %v2307_v4 = vsel %vm381_vm4, %v2295_v52, 0.0  ;;  %v2321_v20 = vmul.f32 %v2295_v52, %v2295_v52  ;;  %v2324_v59 = vsel %vm381_vm4, %v2320_v6, 0.0  ;;  %v2473_v6 = vpop.permute.xlu0 %2472 }
 0xef3   :  { %v2308_v3 = vadd.f32 %v2307_v4, %v2306_v44  ;;  %v2329_v29 = vsel %vm381_vm4, %v2323_v43, 0.0  ;;  %v2493_v44 = vpop.permute.xlu1 %2492 }
 0xef4   :  { %v2325_v28 = vsel %vm381_vm4, %v2321_v20, 0.0  ;;  %v2504_v20 = vmul.f32 %v2493_v44, %v7729_v58 }
 0xef5   :  { %v2310_v13 = vadd.f32 %v2309_v63, %v2308_v3  ;;  %v2326_v35 = vadd.f32 %v2325_v28, %v2324_v59  ;;  %v2502_v63 = vmul.f32 %v7844_v31, %v7748_v9 }
 0xef6   :  { %v2488_v4 = vpop.permute.xlu0 %2487  ;;  %v2509_v59 = vrot.slane %v2504_v20, 7 }
 0xef7   :  { %v2312_v51 = vadd.f32 %v2311_v47, %v2310_v13  ;;  %v2328_v16 = vadd.f32 %v2327_v36, %v2326_v35  ;;  %v2503_v3 = vmul.f32 %v2488_v4, %v7753_v0  ;;  %v2507_v35 = vrot.slane %v2502_v63, 7 }
 0xef9   :  { %v2313_v2 = vrot.slane %v2312_v51, 4  ;;  %v2330_v30 = vadd.f32 %v2329_v29, %v2328_v16  ;;  %v2508_v28 = vrot.slane %v2503_v3, 7  ;;  %v2499_v29 = vmul.f32 %v2493_v44, %v7791_v19 }
 0xefa   :  { %v2496_v3 = vmul.f32 %v7846_v34, %v7777_v37  ;;  %v2522_v37 = vmul.f32 0.7, %v7748_v9 }
 0xefb   :  { %v2314_v60 = vadd.f32 %v2313_v2, %v2312_v51  ;;  %v2331_v50 = vrot.slane %v2330_v30, 4  ;;  %v2510_v36 = vsel %vm856_vm10, %v2508_v28, %v2509_v59  ;;  %v2511_v16 = vsel %vm856_vm10, %v2507_v35, %v2508_v28 }
 0xefc   :  { %v2520_v28 = vmul.f32 0.7, %v7734_v56 }
 0xefd   :  { %v2315_v33 = vrot.slane %v2314_v60, 2  ;;  %v2332_v48 = vadd.f32 %v2331_v50, %v2330_v30 }
 0xeff   :  { %v2316_v42 = vadd.f32 %v2315_v33, %v2314_v60  ;;  %v2333_v49 = vrot.slane %v2332_v48, 2  ;;  %v2498_v33 = vmul.f32 %v2488_v4, %v7787_v5  ;;  %v2495_v4 = vmul.f32 %v2473_v6, %v7765_v57 }
 0xf01   :  { %v2317_v38 = vrot.slane %v2316_v42, 1  ;;  %v2334_v53 = vadd.f32 %v2333_v49, %v2332_v48  ;;  %v2519_v48 = vadd.f32 %v2510_v36, %v2499_v29  ;;  %v2497_v36 = vmul.f32 %v7844_v31, %v7773_v17 }
 0xf03   :  { %v2318_v12 = vadd.f32 %v2317_v38, %v2316_v42  ;;  %v2335_v55 = vrot.slane %v2334_v53, 1  ;;  %v2518_v38 = vadd.f32 %v2511_v16, %v2498_v33 }
 0xf05   :  { %v2319_v27 = vmul.f32 0.03125, %v2318_v12  ;;  %v2336_v61 = vadd.f32 %v2335_v55, %v2334_v53  ;;  %v2524_v53 = vmul.f32 0.7, %v7729_v58  ;;  %v6706_v58 = vld [vmem:[#allocation2 + $0x8] sm:$0xff]  }
 0xf07   :  { %v2337_v7 = vmul.f32 0.03125, %v2336_v61  ;;  %v2338_v23 = vmul.f32 %v2319_v27, %v2319_v27  ;;  %v2529_v55 = vadd.f32 %v2524_v53, %v2519_v48 }
 0xf09   :  { %v2339_v21 = vsub.f32 %v2337_v7, %v2338_v23  ;;  %v2500_v23 = vmul.f32 %v2473_v6, %v7734_v56 }
 0xf0b   :  { %v2340_v46 = vmax.f32 %v2339_v21, 0.0  ;;  %v2501_v21 = vmul.f32 %v7846_v34, %v7739_v1 }
 0xf0d   :  { %v2341_v39 = vadd.f32 1e-05, %v2340_v46  ;;  %v2505_v46 = vrot.slane %v2500_v23, 7 }
 0xf0f   :  { %6823 = vrsqrt.f32 %v2341_v39  ;;  %v2506_v39 = vrot.slane %v2501_v21, 7  ;;  %v2514_v44 = vsel %vm856_vm10, %v2509_v59, %v2505_v46  ;;  %v2521_v59 = vmul.f32 0.7, %v7739_v1 }
 0xf10   :  { %v2515_v63 = vadd.f32 %v2514_v44, %v2495_v4 }
 0xf11   :  { %v2513_v20 = vsel %vm856_vm10, %v2505_v46, %v2506_v39 }
 0xf19   :  { %v6824_v43 = vpop.eup %6823 }
 0xf1a   :  { %v2343_v13 = vmul.f32 %v7668_v8, %v6824_v43  ;;  %v2516_v43 = vadd.f32 %v2513_v20, %v2496_v3 }
 0xf1c   :  { %v2347_v47 = vrot.slane %v2343_v13, %v7267_v41  ;;  %v2352_v51 = vmul.f32 %v2343_v13, %v2319_v27  ;;  %v2523_v27 = vmul.f32 0.7, %v7753_v0  ;;  %v6707_v0 = vld [vmem:[#allocation2 + $0x10] sm:$0xff]   ;;  %v2512_v13 = vsel %vm856_vm10, %v2506_v39, %v2507_v35 }
 0xf1d   :  { %v2526_v57 = vadd.f32 %v2521_v59, %v2516_v43  ;;  %v2517_v6 = vadd.f32 %v2512_v13, %v2497_v36  ;;  %v6709_v13 = vld [vmem:[#allocation2 + $0x20] sm:$0xff]   ;;  %v6710_v36 = vld [vmem:[#allocation2 + $0x28] sm:$0xff]  }
 0xf1e   :  { %v2349_v2 = vmul.f32 %v2347_v47, %v2295_v52  ;;  %v2348_v30 = vmul.f32 %v2347_v47, %v2292_v45  ;;  %v2354_v60 = vrot.slane %v2352_v51, 7  ;;  %v2350_v50 = vmul.f32 %v2347_v47, %v7828_v24  ;;  %6437 = vmatprep.subr.bf16.mxu0 %v6709_v13 }
 0xf1f   :  { %v2351_v42 = vmul.f32 %v2347_v47, %v2303_v11  ;;  %v2528_v7 = vadd.f32 %v2523_v27, %v2518_v38  ;;  %v6708_v11 = vld [vmem:[#allocation2 + $0x18] sm:$0xff]   ;;  %v2525_v47 = vadd.f32 %v2520_v28, %v2515_v63  ;;  %6438 = vmatpush3.bf16.msra.mxu0 %v6709_v13 }
 0xf20   :  { %v2356_v49 = vsub.f32 %v7668_v8, %v2354_v60  ;;  %v6705_v8 = vld [vmem:[#allocation2] sm:$0xff]   ;;  %6439 = vmatprep.subr.bf16.mxu0 %v6710_v36 }
 0xf21   :  { %6425 = vmatprep.subr.bf16.mxu1 %v6705_v8  ;;  %v2530_v51 = vadd.f32 %v2525_v47, %v7319_v32 }
 0xf22   :  { %v2360_v12 = vrot.slane %v2356_v49, %v7281_v54  ;;  %6426 = vmatpush3.bf16.msra.mxu1 %v6705_v8 }
 0xf23   :  { %6427 = vmatprep.subr.bf16.mxu1 %v6706_v58  ;;  %6440 = vmatpush3.bf16.msra.mxu0 %v6710_v36 }
 0xf24   :  { %v2361_v19 = vadd.f32 %v2360_v12, %v2348_v30  ;;  %v2362_v52 = vadd.f32 %v2360_v12, %v2349_v2  ;;  %v2363_v45 = vadd.f32 %v2360_v12, %v2350_v50  ;;  %v2364_v61 = vadd.f32 %v2360_v12, %v2351_v42 }
 0xf25   :  { %v2527_v30 = vadd.f32 %v2522_v37, %v2517_v6 }
 0xf26   :  { %2532 = vrot.lane.b32.xlu0 %v2361_v19, %s6937_s1  ;;  %2543 = vrot.lane.b32.xlu1 %v2362_v52, %s6937_s1  ;;  %v2558_v5 = vadd.f32 %v2529_v55, %v2364_v61  ;;  %v2539_v24 = vadd.f32 %v2528_v7, %v2363_v45  ;;  %v2537_v16 = vadd.f32 %v2526_v57, %v2361_v19 }
 0xf27   :  { %6428 = vmatpush3.bf16.msra.mxu1 %v6706_v58  ;;  %v2538_v1 = vadd.f32 %v2527_v30, %v2362_v52 }
 0xf28   :  { %2559 = vst.msk [vmem:[%s9134_s6 + $0x20] sm:$0xff] %vm132_vm1, %v2558_v5  ;;  %6429 = vmatprep.subr.bf16.mxu1 %v6707_v0 }
 0xf2a   :  { %2545 = vrot.lane.b32.xlu0 %v2363_v45, %s6937_s1  ;;  %2547 = vrot.lane.b32.xlu1 %v2364_v61, %s6937_s1 }
 0xf2b   :  { %6430 = vmatpush3.bf16.msra.mxu1 %v6707_v0 }
 0xf2c   :  { %6431 = vmatprep.subr.bf16.mxu1 %v6708_v11 }
 0xf2f   :  { %6432 = vmatpush3.bf16.msra.mxu1 %v6708_v11  ;;  %v7910_v60 = vld [vmem:[%s9134_s6 + $0x20] sm:$0xff] }
 0xf30   :  { %v2567_v48 = vpack.c.bf16 %v7910_v60, %v7910_v60  ;;  %v2920_v11 = vrot.slane %v7910_v60, 1 }
 0xf32   :  { %v2574_v55 = vrot.slane %v2567_v48, 4 }
 0xf98   :  { %v2533_v34 = vpop.permute.xlu0 %2532  ;;  %v2544_v29 = vpop.permute.xlu1 %2543 }
 0xf99   :  { %v2535_v2 = vadd.f32 %v2533_v34, %v2530_v51  ;;  %v2552_v56 = vadd.f32 %v2544_v29, %v2537_v16 }
 0xf9b   :  { %2536 = vst.msk [vmem:[%s9134_s6] sm:$0xff] %vm132_vm1, %v2535_v2  ;;  %2555 = vst.msk [vmem:[%s9134_s6 + $0x8] sm:$0xff] %vm132_vm1, %v2552_v56 }
 0xf9c   :  { %v2546_v17 = vpop.permute.xlu0 %2545  ;;  %v2548_v31 = vpop.permute.xlu1 %2547 }
 0xf9d   :  { %v2553_v35 = vadd.f32 %v2546_v17, %v2538_v1  ;;  %v2554_v9 = vadd.f32 %v2548_v31, %v2539_v24 }
 0xf9f   :  { %2556 = vst.msk [vmem:[%s9134_s6 + $0x10] sm:$0xff] %vm132_vm1, %v2553_v35  ;;  %2557 = vst.msk [vmem:[%s9134_s6 + $0x18] sm:$0xff] %vm132_vm1, %v2554_v9 }
 0xfa2   :  { %v7915_v50 = vld [vmem:[%s9134_s6] sm:$0xff]  ;;  %v7920_v33 = vld [vmem:[%s9134_s6 + $0x8] sm:$0xff] }
 0xfa3   :  { %v2565_v42 = vpack.c.bf16 %v7920_v33, %v7915_v50  ;;  %v2916_v45 = vrot.slane %v7915_v50, 1  ;;  %v2917_v61 = vrot.slane %v7920_v33, 1 }
 0xfa5   :  { %v2571_v27 = vrot.slane %v2565_v42, 4  ;;  %v7946_v7 = vsel %vm695_vm3, %v2916_v45, %v2917_v61  ;;  %v7972_v44 = vsel %vm695_vm3, %v2920_v11, %v2916_v45 }
 0xfa6   :  { %v7929_v49 = vld [vmem:[%s9134_s6 + $0x10] sm:$0xff]  ;;  %v7934_v38 = vld [vmem:[%s9134_s6 + $0x18] sm:$0xff]  ;;  %v2926_v8 = vmul.f32 %v7946_v7, %v7915_v50  ;;  %v2930_v63 = vmul.f32 %v7972_v44, %v7910_v60 }
 0xfa7   :  { %v2566_v53 = vpack.c.bf16 %v7934_v38, %v7929_v49  ;;  %v2918_v5 = vrot.slane %v7929_v49, 1  ;;  %v2919_v24 = vrot.slane %v7934_v38, 1 }
 0xfa8   :  { %v2931_v23 = vsel %vm132_vm1, %v2926_v8, 0.0  ;;  %v2943_v28 = vsel %vm132_vm1, %v2930_v63, 0.0 }
 0xfa9   :  { %v2572_v12 = vrot.slane %v2566_v53, 4  ;;  %v7954_v58 = vsel %vm695_vm3, %v2918_v5, %v2919_v24  ;;  %v7958_v0 = vsel %vm695_vm3, %v2917_v61, %v2918_v5  ;;  %v7968_v39 = vsel %vm695_vm3, %v2919_v24, %v2920_v11 }
 0xfaa   :  { %v2928_v21 = vmul.f32 %v7954_v58, %v7929_v49  ;;  %v2927_v46 = vmul.f32 %v7958_v0, %v7920_v33  ;;  %v2929_v20 = vmul.f32 %v7968_v39, %v7934_v38 }
 0xfab   :  { %v2575_v19 = vsel %vm329_vm2, %v2572_v12, %v2574_v55  ;;  %v2573_v52 = vsel %vm329_vm2, %v2571_v27, %v2572_v12 }
 0xfac   :  { %2578 = vrot.lane.b32.xlu1 %v2575_v19, %s6935_s21  ;;  %2576 = vrot.lane.b32.xlu0 %v2573_v52, %s6935_s21  ;;  %v2937_v4 = vsel %vm132_vm1, %v2928_v21, 0.0  ;;  %v2934_v3 = vsel %vm132_vm1, %v2927_v46, 0.0  ;;  %v2940_v43 = vsel %vm132_vm1, %v2929_v20, 0.0 }
 0xfcb   :  { %2932 = vadd.xlane.f32.xlu0 %v2931_v23 }
 0xfcf   :  { %2938 = vadd.xlane.f32.xlu0 %v2937_v4 }
 0xfd0   :  { %2935 = vadd.xlane.f32.xlu1 %v2934_v3 }
 0xfd3   :  { %2941 = vadd.xlane.f32.xlu0 %v2940_v43 }
 0xfd4   :  { %2944 = vadd.xlane.f32.xlu1 %v2943_v28 }
0x101e   :  { %v2579_v47 = vpop.permute.xlu1 %2578  ;;  %v2577_v59 = vpop.permute.xlu0 %2576 }
0x101f   :  { %v2585_v57 = vsel %vm132_vm1, %v2566_v53, %v2579_v47  ;;  %v2582_v6 = vsel %vm132_vm1, %v2565_v42, %v2577_v59 }
0x1020   :  { %6433 = vmatprep.mubr.msk.bf16.mxu1 %vm381_vm4, %v2582_v6  ;;  %v6711_v6 = vld [vmem:[#allocation2 + $0x30] sm:$0xff]  }
0x1021   :  { %6434 = vmatmul.mubr.msk.bf16.vlgmr.msra.gmra.mrb[28].mxu1 %vm381_vm4, %v2585_v57  ;;  %6441 = vmatprep.subr.bf16.mxu0 %v6711_v6 }
0x1022   :  { %6442 = vmatpush3.bf16.msra.mxu0 %v6711_v6 }
0x1058   :  { %v2933_v51 = vpop.xlane.xlu0 %2932 }
0x1059   :  { %v2946_v16 = vmax.f32 %v2933_v51, 0.0 }
0x105b   :  { %v2951_v30 = vsel %vm7131_vm5, %v2946_v16, 0.0 }
0x105c   :  { %v2939_v37 = vpop.xlane.xlu0 %2938 }
0x105d   :  { %v2948_v34 = vmax.f32 %v2939_v37, 0.0  ;;  %v2936_v29 = vpop.xlane.xlu1 %2935 }
0x105e   :  { %v2947_v2 = vmax.f32 %v2936_v29, 0.0 }
0x105f   :  { %v2953_v56 = vsel %vm7139_vm7, %v2948_v34, 0.0 }
0x1060   :  { %v2952_v1 = vsel %vm7135_vm6, %v2947_v2, 0.0  ;;  %v2942_v17 = vpop.xlane.xlu0 %2941  ;;  %v6712_v2 = vld [vmem:[#allocation2 + $0x38] sm:$0xff]  }
0x1061   :  { %v2961_v31 = vadd.f32 %v2952_v1, %v2951_v30  ;;  %v2962_v35 = vadd.f32 %v2953_v56, %v2952_v1  ;;  %v2949_v9 = vmax.f32 %v2942_v17, 0.0  ;;  %v2945_v48 = vpop.xlane.xlu1 %2944  ;;  %6443 = vmatprep.subr.bf16.mxu0 %v6712_v2 }
0x1062   :  { %v2950_v42 = vmax.f32 %v2945_v48, 0.0  ;;  %6444 = vmatpush3.bf16.msra.mxu0 %v6712_v2 }
0x1063   :  { %v2971_v53 = vadd.f32 %v2961_v31, %v2953_v56  ;;  %v2954_v12 = vsel %vm7150_vm8, %v2949_v9, 0.0  ;;  %v6713_v31 = vld [vmem:[#allocation2 + $0x40] sm:$0xff]  }
0x1064   :  { %v2963_v55 = vadd.f32 %v2954_v12, %v2953_v56  ;;  %v2972_v27 = vadd.f32 %v2962_v35, %v2954_v12  ;;  %v2955_v19 = vsel %vm7161_vm9, %v2950_v42, 0.0  ;;  %v6714_v35 = vld [vmem:[#allocation2 + $0x48] sm:$0xff]   ;;  %6449 = vmatprep.subr.bf16.mxu1 %v6713_v31 }
0x1065   :  { %v2981_v52 = vadd.f32 %v2971_v53, %v2954_v12  ;;  %v2964_v45 = vadd.f32 %v2955_v19, %v2954_v12  ;;  %v3000_v21 = vsub.f32 0.0, %v2955_v19  ;;  %6450 = vmatpush3.bf16.msra.mxu1 %v6713_v31 }
0x1066   :  { %v2973_v61 = vadd.f32 %v2963_v55, %v2955_v19  ;;  %v2982_v5 = vadd.f32 %v2972_v27, %v2955_v19  ;;  %6451 = vmatprep.subr.bf16.mxu1 %v6714_v35 }
0x1067   :  { %v2991_v24 = vadd.f32 %v2981_v52, %v2955_v19  ;;  %v2999_v8 = vsub.f32 0.0, %v2964_v45  ;;  %v3009_v43 = vmul.f32 1.442695, %v3000_v21 }
0x1068   :  { %v2998_v11 = vsub.f32 0.0, %v2973_v61  ;;  %v2997_v23 = vsub.f32 0.0, %v2982_v5 }
0x1069   :  { %v2996_v46 = vsub.f32 0.0, %v2991_v24  ;;  %v3007_v4 = vmul.f32 1.442695, %v2999_v8  ;;  %6452 = vmatpush3.bf16.msra.mxu1 %v6714_v35 }
0x106a   :  { %v3005_v20 = vmul.f32 1.442695, %v2998_v11  ;;  %v3003_v3 = vmul.f32 1.442695, %v2997_v23 }
0x106b   :  { %v3001_v63 = vmul.f32 1.442695, %v2996_v46  ;;  %6825 = vpow2.f32 %v3007_v4 }
0x106c   :  { %6827 = vpow2.f32 %v3005_v20 }
0x106d   :  { %6829 = vpow2.f32 %v3001_v63 }
0x106e   :  { %6831 = vpow2.f32 %v3003_v3 }
0x106f   :  { %6833 = vpow2.f32 %v3009_v43 }
0x1075   :  { %v6826_v28 = vpop.eup %6825 }
0x1076   :  { %v6828_v13 = vpop.eup %6827  ;;  %v3014_v29 = vmul.f32 0.1, %v6826_v28 }
0x1077   :  { %v6830_v36 = vpop.eup %6829  ;;  %v3013_v47 = vmul.f32 0.1, %v6828_v13 }
0x1078   :  { %v6832_v59 = vpop.eup %6831  ;;  %v3011_v57 = vmul.f32 0.1, %v6830_v36  ;;  %v3019_v1 = vsub.f32 0.1, %v3014_v29 }
0x1079   :  { %v3018_v51 = vsub.f32 0.1, %v3013_v47  ;;  %v3012_v16 = vmul.f32 0.1, %v6832_v59  ;;  %v6834_v37 = vpop.eup %6833 }
0x107a   :  { %v3016_v34 = vsub.f32 0.1, %v3011_v57  ;;  %v3015_v30 = vmul.f32 0.1, %v6834_v37 }
0x107b   :  { %3033 = vperm.xlu1 %6650, %v3018_v51   ;;  %v3017_v56 = vsub.f32 0.1, %v3012_v16 }
0x107c   :  { %3023 = vperm.xlu0 %6649, %v3016_v34   ;;  %v3020_v17 = vsub.f32 0.1, %v3015_v30  ;;  %v6715_v30 = vld [vmem:[#allocation2 + $0x50] sm:$0xff]  }
0x107d   :  { %6453 = vmatprep.subr.bf16.mxu1 %v6715_v30 }
0x107e   :  { %6454 = vmatpush3.bf16.msra.mxu1 %v6715_v30 }
0x107f   :  { %3028 = vperm.xlu1 %6650, %v3017_v56  }
0x1080   :  { %3038 = vperm.xlu0 %6649, %v3019_v1   ;;  %v6716_v1 = vld [vmem:[#allocation2 + $0x58] sm:$0xff]  }
0x1081   :  { %6455 = vmatprep.subr.bf16.mxu1 %v6716_v1 }
0x1082   :  { %6456 = vmatpush3.bf16.msra.mxu1 %v6716_v1 }
0x1083   :  { %3043 = vperm.xlu1 %6650, %v3020_v17  }
0x10f4   :  { %v6435_v9 = vpop.f32.mrb[28].mxu1 }
0x10f5   :  { %v2665_v48 = vadd.f32 %v6435_v9, %v7185_v22  ;;  %v2656_v42 = vpop.f32.mrb[29].mxu1 }
0x10f6   :  { %v2657_v53 = vadd.f32 %v2656_v42, %v7185_v22  ;;  %v6436_v12 = vpop.f32.mrb[30].mxu1 }
0x10f7   :  { %v2668_v55 = vadd.f32 %v6436_v12, %v7185_v22  ;;  %v2659_v27 = vpop.f32.mrb[31].mxu1  ;;  %v2673_v52 = vmax.f32 %v2665_v48, 0.0 }
0x10f8   :  { %v2660_v19 = vadd.f32 %v2659_v27, %v7185_v22  ;;  %v2671_v61 = vmax.f32 %v2657_v53, 0.0 }
0x10f9   :  { %v2674_v45 = vmax.f32 %v2668_v55, 0.0 }
0x10fa   :  { %v2672_v5 = vmax.f32 %v2660_v19, 0.0  ;;  %v3034_v24 = vpop.permute.xlu1 %3033 }
0x10fb   :  { %v2676_v8 = vpack.c.bf16 %v2674_v45, %v2673_v52  ;;  %v3024_v11 = vpop.permute.xlu0 %3023  ;;  %v3053_v21 = vmul.f32 %v3034_v24, %v7929_v49  ;;  %v3048_v36 = vmul.f32 %v3034_v24, %v7954_v58 }
0x10fc   :  { %v2675_v23 = vpack.c.bf16 %v2672_v5, %v2671_v61  ;;  %v3051_v46 = vmul.f32 %v3024_v11, %v7915_v50  ;;  %v3046_v29 = vmul.f32 %v3024_v11, %v7946_v7 }
0x10fd   :  { %v3058_v43 = vrot.slane %v3053_v21, 7 }
0x10fe   :  { %6445 = vmatprep.mubr.msk.bf16.mxu0 %vm381_vm4, %v2675_v23  ;;  %v3029_v4 = vpop.permute.xlu1 %3028  ;;  %v3056_v28 = vrot.slane %v3051_v46, 7 }
0x10ff   :  { %v3052_v20 = vmul.f32 %v3029_v4, %v7920_v33  ;;  %6446 = vmatmul.mubr.msk.bf16.vlgmr.msra.gmra.mrb[32].mxu0 %vm381_vm4, %v2676_v8  ;;  %v8005_v3 = vpop.permute.xlu0 %3038  ;;  %v3047_v47 = vmul.f32 %v3029_v4, %v7958_v0 }
0x1100   :  { %v8009_v63 = vmul.f32 %v8005_v3, %v7934_v38 }
0x1101   :  { %v3057_v13 = vrot.slane %v3052_v20, 7 }
0x1102   :  { %v3059_v59 = vrot.slane %v8009_v63, 7  ;;  %v8014_v57 = vpop.permute.xlu1 %3043 }
0x1103   :  { %v3063_v6 = vsel %vm856_vm10, %v3057_v13, %v3058_v43  ;;  %v3064_v51 = vsel %vm856_vm10, %v3056_v28, %v3057_v13  ;;  %v8022_v16 = vmul.f32 %v8014_v57, %v7910_v60 }
0x1104   :  { %v8024_v37 = vadd.f32 %v3064_v51, %v3047_v47  ;;  %v8030_v58 = vsel %vm856_vm10, %v3058_v43, %v3059_v59  ;;  %v8032_v0 = vadd.f32 %v3063_v6, %v3048_v36 }
0x1105   :  { %v3060_v34 = vrot.slane %v8022_v16, 7 }
0x1107   :  { %v3065_v2 = vsel %vm856_vm10, %v3060_v34, %v3056_v28 }
0x1108   :  { %v8040_v56 = vadd.f32 %v3065_v2, %v3046_v29 }
0x11d2   :  { %v6447_v17 = vpop.f32.mrb[32].mxu0 }
0x11d3   :  { %v2758_v31 = vadd.f32 %v6447_v17, %v7198_v62  ;;  %v2749_v35 = vpop.f32.mrb[33].mxu0 }
0x11d4   :  { %v2750_v9 = vadd.f32 %v2749_v35, %v7198_v62  ;;  %v6448_v7 = vpop.f32.mrb[34].mxu0 }
0x11d5   :  { %v2761_v48 = vadd.f32 %v6448_v7, %v7198_v62  ;;  %v2752_v42 = vpop.f32.mrb[35].mxu0  ;;  %v2766_v12 = vmax.f32 %v2758_v31, 0.0 }
0x11d6   :  { %v2753_v53 = vadd.f32 %v2752_v42, %v7198_v62  ;;  %v2764_v27 = vmax.f32 %v2750_v9, 0.0 }
0x11d7   :  { %v2767_v55 = vmax.f32 %v2761_v48, 0.0 }
0x11d8   :  { %v2765_v19 = vmax.f32 %v2753_v53, 0.0 }
0x11d9   :  { %v2769_v52 = vpack.c.bf16 %v2767_v55, %v2766_v12 }
0x11da   :  { %v2768_v45 = vpack.c.bf16 %v2765_v19, %v2764_v27 }
0x11dc   :  { %6457 = vmatprep.mubr.msk.bf16.mxu1 %vm381_vm4, %v2768_v45 }
0x11dd   :  { %6458 = vmatmul.mubr.msk.bf16.vlgmr.msra.gmra.mrb[32].mxu1 %vm381_vm4, %v2769_v52 }
0x12b0   :  { %v6459_v61 = vpop.f32.mrb[32].mxu1 }
0x12b1   :  { %v2842_v5 = vpop.f32.mrb[33].mxu1  ;;  %v2851_v24 = vadd.f32 %v6459_v61, %v7210_v14 }
0x12b2   :  { %v2843_v8 = vadd.f32 %v2842_v5, %v7210_v14  ;;  %v6460_v11 = vpop.f32.mrb[34].mxu1 }
0x12b3   :  { %v2845_v23 = vpop.f32.mrb[35].mxu1  ;;  %v2854_v46 = vadd.f32 %v6460_v11, %v7210_v14  ;;  %v2873_v20 = vmul.f32 %v2851_v24, %v2851_v24  ;;  %v2860_v47 = vsel %vm381_vm4, %v2851_v24, 0.0 }
0x12b4   :  { %v2871_v21 = vmul.f32 %v2843_v8, %v2843_v8  ;;  %v2846_v4 = vadd.f32 %v2845_v23, %v7210_v14  ;;  %v2857_v43 = vsel %vm381_vm4, %v2843_v8, 0.0 }
0x12b5   :  { %v2874_v51 = vmul.f32 %v2854_v46, %v2854_v46  ;;  %v2878_v1 = vsel %vm381_vm4, %v2873_v20, 0.0  ;;  %v2862_v17 = vsel %vm381_vm4, %v2854_v46, 0.0 }
0x12b6   :  { %v2858_v28 = vsel %vm381_vm4, %v2846_v4, 0.0  ;;  %v2872_v13 = vmul.f32 %v2846_v4, %v2846_v4  ;;  %v2875_v6 = vsel %vm381_vm4, %v2871_v21, 0.0 }
0x12b7   :  { %v2859_v36 = vadd.f32 %v2858_v28, %v2857_v43  ;;  %v2880_v9 = vsel %vm381_vm4, %v2874_v51, 0.0  ;;  %v3061_v51 = vsel %vm856_vm10, %v3059_v59, %v3060_v34  ;;  %v3075_v59 = vmul.f32 0.7, %v7910_v60 }
0x12b8   :  { %v2876_v29 = vsel %vm381_vm4, %v2872_v13, 0.0  ;;  %v3072_v34 = vmul.f32 0.7, %v7920_v33 }
0x12b9   :  { %v2861_v2 = vadd.f32 %v2860_v47, %v2859_v36  ;;  %v2877_v30 = vadd.f32 %v2876_v29, %v2875_v6  ;;  %v8063_v47 = vld [vmem:[%s9133_s5] sm:$0x1f] }
0x12bb   :  { %v2863_v31 = vadd.f32 %v2862_v17, %v2861_v2  ;;  %v2879_v35 = vadd.f32 %v2878_v1, %v2877_v30  ;;  %v3050_v30 = vmul.f32 %v8014_v57, %v7972_v44 }
0x12bd   :  { %v2864_v7 = vrot.slane %v2863_v31, 4  ;;  %v2881_v48 = vadd.f32 %v2880_v9, %v2879_v35  ;;  %v3049_v9 = vmul.f32 %v8005_v3, %v7968_v39  ;;  %v3074_v39 = vmul.f32 0.7, %v7934_v38  ;;  %v6717_v38 = vld [vmem:[#allocation2] sm:$0xff]  }
0x12be   :  { %6461 = vmatprep.subr.bf16.mxu0 %v6717_v38 }
0x12bf   :  { %v2865_v42 = vadd.f32 %v2864_v7, %v2863_v31  ;;  %v2882_v53 = vrot.slane %v2881_v48, 4  ;;  %v3070_v7 = vadd.f32 %v3061_v51, %v3050_v30  ;;  %6462 = vmatpush3.bf16.msra.mxu0 %v6717_v38 }
0x12c1   :  { %v2866_v12 = vrot.slane %v2865_v42, 2  ;;  %v2883_v55 = vadd.f32 %v2882_v53, %v2881_v48  ;;  %v3069_v48 = vadd.f32 %v8030_v58, %v3049_v9  ;;  %v3080_v57 = vadd.f32 %v3075_v59, %v3070_v7 }
0x12c3   :  { %v2867_v27 = vadd.f32 %v2866_v12, %v2865_v42  ;;  %v2884_v19 = vrot.slane %v2883_v55, 2  ;;  %v3073_v42 = vmul.f32 0.7, %v7929_v49  ;;  %v3079_v58 = vadd.f32 %v3074_v39, %v3069_v48 }
0x12c5   :  { %v2868_v52 = vrot.slane %v2867_v27, 1  ;;  %v2885_v45 = vadd.f32 %v2884_v19, %v2883_v55  ;;  %v6720_v55 = vld [vmem:[#allocation2 + $0x18] sm:$0xff]  }
0x12c7   :  { %v2869_v61 = vadd.f32 %v2868_v52, %v2867_v27  ;;  %v2886_v5 = vrot.slane %v2885_v45, 1  ;;  %v3071_v27 = vmul.f32 0.7, %v7915_v50 }
0x12c9   :  { %v2870_v11 = vmul.f32 0.03125, %v2869_v61  ;;  %v2887_v23 = vadd.f32 %v2886_v5, %v2885_v45  ;;  %v3076_v19 = vadd.f32 %v3071_v27, %v8040_v56 }
0x12cb   :  { %v2888_v21 = vmul.f32 0.03125, %v2887_v23  ;;  %v2889_v20 = vmul.f32 %v2870_v11, %v2870_v11  ;;  %v3081_v52 = vadd.f32 %v3076_v19, %v7319_v32 }
0x12cd   :  { %v2890_v43 = vsub.f32 %v2888_v21, %v2889_v20 }
0x12cf   :  { %v2891_v28 = vmax.f32 %v2890_v43, 0.0 }
0x12d1   :  { %v2892_v13 = vadd.f32 1e-05, %v2891_v28 }
0x12d3   :  { %6835 = vrsqrt.f32 %v2892_v13 }
0x12dd   :  { %v6836_v36 = vpop.eup %6835 }
0x12de   :  { %v2894_v6 = vmul.f32 %v8063_v47, %v6836_v36 }
0x12e0   :  { %v2898_v29 = vrot.slane %v2894_v6, %v7267_v41  ;;  %v2903_v2 = vmul.f32 %v2894_v6, %v2870_v11 }
0x12e2   :  { %v2900_v1 = vmul.f32 %v2898_v29, %v2846_v4  ;;  %v2899_v17 = vmul.f32 %v2898_v29, %v2843_v8  ;;  %v2905_v31 = vrot.slane %v2903_v2, 7  ;;  %v2901_v35 = vmul.f32 %v2898_v29, %v2851_v24 }
0x12e3   :  { %v2902_v16 = vmul.f32 %v2898_v29, %v2854_v46  ;;  %v3077_v24 = vadd.f32 %v3072_v34, %v8024_v37  ;;  %v3078_v8 = vadd.f32 %v3073_v42, %v8032_v0  ;;  %v6718_v37 = vld [vmem:[#allocation2 + $0x8] sm:$0xff]   ;;  %v6719_v0 = vld [vmem:[#allocation2 + $0x10] sm:$0xff]  }
0x12e4   :  { %v2907_v63 = vsub.f32 %v8063_v47, %v2905_v31  ;;  %6463 = vmatprep.subr.bf16.mxu0 %v6718_v37 }
0x12e5   :  { %6464 = vmatpush3.bf16.msra.mxu0 %v6718_v37 }
0x12e6   :  { %v2911_v44 = vrot.slane %v2907_v63, %v7281_v54  ;;  %6465 = vmatprep.subr.bf16.mxu0 %v6719_v0 }
0x12e8   :  { %v2912_v3 = vadd.f32 %v2911_v44, %v2899_v17  ;;  %v2913_v46 = vadd.f32 %v2911_v44, %v2900_v1  ;;  %v2914_v4 = vadd.f32 %v2911_v44, %v2901_v35  ;;  %v2915_v53 = vadd.f32 %v2911_v44, %v2902_v16 }
0x12e9   :  { %6466 = vmatpush3.bf16.msra.mxu0 %v6719_v0 }
0x12ea   :  { %3083 = vrot.lane.b32.xlu0 %v2912_v3, %s6937_s1  ;;  %3094 = vrot.lane.b32.xlu1 %v2913_v46, %s6937_s1  ;;  %v3109_v60 = vadd.f32 %v3080_v57, %v2915_v53  ;;  %v3088_v33 = vadd.f32 %v3077_v24, %v2912_v3  ;;  %v3089_v49 = vadd.f32 %v3078_v8, %v2913_v46 }
0x12eb   :  { %v3090_v12 = vadd.f32 %v3079_v58, %v2914_v4  ;;  %6467 = vmatprep.subr.bf16.mxu0 %v6720_v55 }
0x12ec   :  { %3110 = vst.msk [vmem:[%s9134_s6 + $0x20] sm:$0xff] %vm132_vm1, %v3109_v60 }
0x12ed   :  { %6468 = vmatpush3.bf16.msra.mxu0 %v6720_v55 }
0x12ee   :  { %3096 = vrot.lane.b32.xlu0 %v2914_v4, %s6937_s1  ;;  %3098 = vrot.lane.b32.xlu1 %v2915_v53, %s6937_s1 }
0x12f3   :  { %v8116_v20 = vld [vmem:[%s9134_s6 + $0x20] sm:$0xff] }
0x12f4   :  { %v3118_v13 = vpack.c.bf16 %v8116_v20, %v8116_v20  ;;  %v3471_v42 = vrot.slane %v8116_v20, 1 }
0x12f6   :  { %v3125_v30 = vrot.slane %v3118_v13, 4 }
0x135c   :  { %v3084_v45 = vpop.permute.xlu0 %3083  ;;  %v3095_v61 = vpop.permute.xlu1 %3094 }
0x135d   :  { %v3086_v5 = vadd.f32 %v3084_v45, %v3081_v52  ;;  %v3103_v11 = vadd.f32 %v3095_v61, %v3088_v33  ;;  %v6721_v33 = vld [vmem:[#allocation2 + $0x20] sm:$0xff]  }
0x135e   :  { %6473 = vmatprep.subr.bf16.mxu1 %v6721_v33 }
0x135f   :  { %3087 = vst.msk [vmem:[%s9134_s6] sm:$0xff] %vm132_vm1, %v3086_v5  ;;  %3106 = vst.msk [vmem:[%s9134_s6 + $0x8] sm:$0xff] %vm132_vm1, %v3103_v11  ;;  %6474 = vmatpush3.bf16.msra.mxu1 %v6721_v33 }
0x1360   :  { %v3097_v23 = vpop.permute.xlu0 %3096  ;;  %v3099_v50 = vpop.permute.xlu1 %3098 }
0x1361   :  { %v3104_v21 = vadd.f32 %v3097_v23, %v3089_v49  ;;  %v3105_v56 = vadd.f32 %v3099_v50, %v3090_v12  ;;  %v6722_v49 = vld [vmem:[#allocation2 + $0x28] sm:$0xff]  }
0x1362   :  { %6475 = vmatprep.subr.bf16.mxu1 %v6722_v49 }
0x1363   :  { %3107 = vst.msk [vmem:[%s9134_s6 + $0x10] sm:$0xff] %vm132_vm1, %v3104_v21  ;;  %3108 = vst.msk [vmem:[%s9134_s6 + $0x18] sm:$0xff] %vm132_vm1, %v3105_v56  ;;  %6476 = vmatpush3.bf16.msra.mxu1 %v6722_v49 }
0x1366   :  { %v8121_v43 = vld [vmem:[%s9134_s6] sm:$0xff]  ;;  %v8126_v28 = vld [vmem:[%s9134_s6 + $0x8] sm:$0xff] }
0x1367   :  { %v3116_v36 = vpack.c.bf16 %v8126_v28, %v8121_v43  ;;  %v3467_v35 = vrot.slane %v8121_v43, 1  ;;  %v3468_v9 = vrot.slane %v8126_v28, 1 }
0x1369   :  { %v3122_v1 = vrot.slane %v3116_v36, 4  ;;  %v8152_v7 = vsel %vm695_vm3, %v3467_v35, %v3468_v9  ;;  %v8178_v39 = vsel %vm695_vm3, %v3471_v42, %v3467_v35 }
0x136a   :  { %v8135_v6 = vld [vmem:[%s9134_s6 + $0x10] sm:$0xff]  ;;  %v8140_v51 = vld [vmem:[%s9134_s6 + $0x18] sm:$0xff]  ;;  %v3477_v48 = vmul.f32 %v8152_v7, %v8121_v43  ;;  %v3481_v53 = vmul.f32 %v8178_v39, %v8116_v20 }
0x136b   :  { %v3117_v29 = vpack.c.bf16 %v8140_v51, %v8135_v6  ;;  %v3469_v16 = vrot.slane %v8135_v6, 1  ;;  %v3470_v63 = vrot.slane %v8140_v51, 1 }
0x136c   :  { %v3482_v44 = vsel %vm132_vm1, %v3477_v48, 0.0  ;;  %v3494_v60 = vsel %vm132_vm1, %v3481_v53, 0.0 }
0x136d   :  { %v3123_v2 = vrot.slane %v3117_v29, 4  ;;  %v8160_v59 = vsel %vm695_vm3, %v3469_v16, %v3470_v63  ;;  %v8164_v34 = vsel %vm695_vm3, %v3468_v9, %v3469_v16  ;;  %v8174_v8 = vsel %vm695_vm3, %v3470_v63, %v3471_v42 }
0x136e   :  { %v3479_v57 = vmul.f32 %v8160_v59, %v8135_v6  ;;  %v3478_v24 = vmul.f32 %v8164_v34, %v8126_v28  ;;  %v3480_v46 = vmul.f32 %v8174_v8, %v8140_v51 }
0x136f   :  { %v3126_v17 = vsel %vm329_vm2, %v3123_v2, %v3125_v30  ;;  %v3124_v31 = vsel %vm329_vm2, %v3122_v1, %v3123_v2 }
0x1370   :  { %3129 = vrot.lane.b32.xlu1 %v3126_v17, %s6935_s21  ;;  %3127 = vrot.lane.b32.xlu0 %v3124_v31, %s6935_s21  ;;  %v3488_v3 = vsel %vm132_vm1, %v3479_v57, 0.0  ;;  %v3485_v4 = vsel %vm132_vm1, %v3478_v24, 0.0  ;;  %v3491_v58 = vsel %vm132_vm1, %v3480_v46, 0.0 }
0x138f   :  { %3483 = vadd.xlane.f32.xlu0 %v3482_v44 }
0x1393   :  { %3489 = vadd.xlane.f32.xlu0 %v3488_v3 }
0x1394   :  { %3486 = vadd.xlane.f32.xlu1 %v3485_v4 }
0x1397   :  { %3492 = vadd.xlane.f32.xlu0 %v3491_v58 }
0x1398   :  { %3495 = vadd.xlane.f32.xlu1 %v3494_v60 }
0x13e2   :  { %v3130_v12 = vpop.permute.xlu1 %3129  ;;  %v3128_v38 = vpop.permute.xlu0 %3127 }
0x13e3   :  { %v3136_v37 = vsel %vm132_vm1, %v3117_v29, %v3130_v12  ;;  %v3133_v0 = vsel %vm132_vm1, %v3116_v36, %v3128_v38 }
0x13e4   :  { %6469 = vmatprep.mubr.msk.bf16.mxu0 %vm381_vm4, %v3133_v0  ;;  %v6723_v0 = vld [vmem:[#allocation2 + $0x30] sm:$0xff]  }
0x13e5   :  { %6470 = vmatmul.mubr.msk.bf16.vlgmr.msra.gmra.mrb[36].mxu0 %vm381_vm4, %v3136_v37  ;;  %6477 = vmatprep.subr.bf16.mxu1 %v6723_v0 }
0x13e6   :  { %6478 = vmatpush3.bf16.msra.mxu1 %v6723_v0 }
0x141c   :  { %v3484_v55 = vpop.xlane.xlu0 %3483 }
0x141d   :  { %v3497_v27 = vmax.f32 %v3484_v55, 0.0 }
0x141f   :  { %v3502_v11 = vsel %vm7131_vm5, %v3497_v27, 0.0 }
0x1420   :  { %v3490_v19 = vpop.xlane.xlu0 %3489 }
0x1421   :  { %v3499_v52 = vmax.f32 %v3490_v19, 0.0  ;;  %v3487_v45 = vpop.xlane.xlu1 %3486 }
0x1422   :  { %v3498_v61 = vmax.f32 %v3487_v45, 0.0 }
0x1423   :  { %v3504_v5 = vsel %vm7139_vm7, %v3499_v52, 0.0 }
0x1424   :  { %v3503_v23 = vsel %vm7135_vm6, %v3498_v61, 0.0  ;;  %v3493_v50 = vpop.xlane.xlu0 %3492 }
0x1425   :  { %v3512_v21 = vadd.f32 %v3503_v23, %v3502_v11  ;;  %v3513_v56 = vadd.f32 %v3504_v5, %v3503_v23  ;;  %v3500_v13 = vmax.f32 %v3493_v50, 0.0  ;;  %v3496_v36 = vpop.xlane.xlu1 %3495 }
0x1426   :  { %v3501_v29 = vmax.f32 %v3496_v36, 0.0 }
0x1427   :  { %v3522_v2 = vadd.f32 %v3512_v21, %v3504_v5  ;;  %v3505_v30 = vsel %vm7150_vm8, %v3500_v13, 0.0  ;;  %v6726_v13 = vld [vmem:[#allocation2 + $0x48] sm:$0xff]  }
0x1428   :  { %v3514_v1 = vadd.f32 %v3505_v30, %v3504_v5  ;;  %v3523_v17 = vadd.f32 %v3513_v56, %v3505_v30  ;;  %v3506_v31 = vsel %vm7161_vm9, %v3501_v29, 0.0  ;;  %v6724_v5 = vld [vmem:[#allocation2 + $0x38] sm:$0xff]   ;;  %v6725_v56 = vld [vmem:[#allocation2 + $0x40] sm:$0xff]  }
0x1429   :  { %v3532_v35 = vadd.f32 %v3522_v2, %v3505_v30  ;;  %v3515_v9 = vadd.f32 %v3506_v31, %v3505_v30  ;;  %v3551_v24 = vsub.f32 0.0, %v3506_v31  ;;  %6479 = vmatprep.subr.bf16.mxu1 %v6724_v5  ;;  %6485 = vmatprep.subr.bf16.mxu0 %v6725_v56 }
0x142a   :  { %v3524_v16 = vadd.f32 %v3514_v1, %v3506_v31  ;;  %v3533_v63 = vadd.f32 %v3523_v17, %v3506_v31  ;;  %6480 = vmatpush3.bf16.msra.mxu1 %v6724_v5  ;;  %6486 = vmatpush3.bf16.msra.mxu0 %v6725_v56 }
0x142b   :  { %v3542_v48 = vadd.f32 %v3532_v35, %v3506_v31  ;;  %v3550_v42 = vsub.f32 0.0, %v3515_v9  ;;  %v3560_v60 = vmul.f32 1.442695, %v3551_v24  ;;  %6487 = vmatprep.subr.bf16.mxu0 %v6726_v13 }
0x142c   :  { %v3548_v44 = vsub.f32 0.0, %v3533_v63  ;;  %v3549_v57 = vsub.f32 0.0, %v3524_v16 }
0x142d   :  { %v3547_v3 = vsub.f32 0.0, %v3542_v48  ;;  %v3558_v46 = vmul.f32 1.442695, %v3550_v42 }
0x142e   :  { %v3554_v4 = vmul.f32 1.442695, %v3548_v44  ;;  %v3556_v53 = vmul.f32 1.442695, %v3549_v57  ;;  %6488 = vmatpush3.bf16.msra.mxu0 %v6726_v13 }
0x142f   :  { %v3552_v58 = vmul.f32 1.442695, %v3547_v3  ;;  %6837 = vpow2.f32 %v3558_v46 }
0x1430   :  { %6839 = vpow2.f32 %v3554_v4 }
0x1431   :  { %6841 = vpow2.f32 %v3556_v53 }
0x1432   :  { %6843 = vpow2.f32 %v3552_v58 }
0x1433   :  { %6845 = vpow2.f32 %v3560_v60 }
0x1439   :  { %v6838_v33 = vpop.eup %6837 }
0x143a   :  { %v6840_v49 = vpop.eup %6839  ;;  %v3565_v61 = vmul.f32 0.1, %v6838_v33 }
0x143b   :  { %v6842_v12 = vpop.eup %6841  ;;  %v3563_v19 = vmul.f32 0.1, %v6840_v49 }
0x143c   :  { %v6844_v38 = vpop.eup %6843  ;;  %v3564_v37 = vmul.f32 0.1, %v6842_v12  ;;  %v3570_v50 = vsub.f32 0.1, %v3565_v61 }
0x143d   :  { %v3562_v55 = vmul.f32 0.1, %v6844_v38  ;;  %v6846_v52 = vpop.eup %6845  ;;  %v3568_v11 = vsub.f32 0.1, %v3563_v19 }
0x143e   :  { %v3569_v27 = vsub.f32 0.1, %v3564_v37  ;;  %v3566_v23 = vmul.f32 0.1, %v6846_v52 }
0x143f   :  { %v3567_v45 = vsub.f32 0.1, %v3562_v55 }
0x1440   :  { %3584 = vperm.xlu1 %6650, %v3569_v27   ;;  %v3571_v21 = vsub.f32 0.1, %v3566_v23 }
0x1441   :  { %3574 = vperm.xlu0 %6649, %v3567_v45  }
0x1444   :  { %3579 = vperm.xlu1 %6650, %v3568_v11  }
0x1445   :  { %3589 = vperm.xlu0 %6649, %v3570_v50   ;;  %v6727_v50 = vld [vmem:[#allocation2 + $0x50] sm:$0xff]  }
0x1446   :  { %6489 = vmatprep.subr.bf16.mxu0 %v6727_v50 }
0x1447   :  { %6490 = vmatpush3.bf16.msra.mxu0 %v6727_v50 }
0x1448   :  { %3594 = vperm.xlu1 %6650, %v3571_v21   ;;  %v6728_v21 = vld [vmem:[#allocation2 + $0x58] sm:$0xff]  }
0x1449   :  { %6491 = vmatprep.subr.bf16.mxu0 %v6728_v21 }
0x144b   :  { %6492 = vmatpush3.bf16.msra.mxu0 %v6728_v21 }
0x14b8   :  { %v6471_v36 = vpop.f32.mrb[36].mxu0 }
0x14b9   :  { %v3216_v29 = vadd.f32 %v6471_v36, %v7185_v22  ;;  %v3207_v2 = vpop.f32.mrb[37].mxu0 }
0x14ba   :  { %v3208_v30 = vadd.f32 %v3207_v2, %v7185_v22  ;;  %v6472_v1 = vpop.f32.mrb[38].mxu0 }
0x14bb   :  { %v3219_v17 = vadd.f32 %v6472_v1, %v7185_v22  ;;  %v3210_v31 = vpop.f32.mrb[39].mxu0  ;;  %v3224_v9 = vmax.f32 %v3216_v29, 0.0 }
0x14bc   :  { %v3211_v35 = vadd.f32 %v3210_v31, %v7185_v22  ;;  %v3222_v63 = vmax.f32 %v3208_v30, 0.0 }
0x14bd   :  { %v3225_v16 = vmax.f32 %v3219_v17, 0.0 }
0x14be   :  { %v3223_v48 = vmax.f32 %v3211_v35, 0.0 }
0x14bf   :  { %v3227_v42 = vpack.c.bf16 %v3225_v16, %v3224_v9  ;;  %v3585_v44 = vpop.permute.xlu1 %3584 }
0x14c0   :  { %v3226_v57 = vpack.c.bf16 %v3223_v48, %v3222_v63  ;;  %v3575_v24 = vpop.permute.xlu0 %3574  ;;  %v3604_v3 = vmul.f32 %v3585_v44, %v8135_v6  ;;  %v3599_v38 = vmul.f32 %v3585_v44, %v8160_v59 }
0x14c1   :  { %v3602_v46 = vmul.f32 %v3575_v24, %v8121_v43  ;;  %v3597_v5 = vmul.f32 %v3575_v24, %v8152_v7 }
0x14c2   :  { %6481 = vmatprep.mubr.msk.bf16.mxu1 %vm381_vm4, %v3226_v57  ;;  %v3609_v33 = vrot.slane %v3604_v3, 7 }
0x14c3   :  { %v3580_v4 = vpop.permute.xlu1 %3579  ;;  %6482 = vmatmul.mubr.msk.bf16.vlgmr.msra.gmra.mrb[36].mxu1 %vm381_vm4, %v3227_v42  ;;  %v3607_v49 = vrot.slane %v3602_v46, 7 }
0x14c4   :  { %v3603_v53 = vmul.f32 %v3580_v4, %v8126_v28  ;;  %v8211_v58 = vpop.permute.xlu0 %3589  ;;  %v3598_v37 = vmul.f32 %v3580_v4, %v8164_v34 }
0x14c5   :  { %v8215_v60 = vmul.f32 %v8211_v58, %v8140_v51 }
0x14c6   :  { %v3608_v12 = vrot.slane %v3603_v53, 7 }
0x14c7   :  { %v3610_v0 = vrot.slane %v8215_v60, 7  ;;  %v8220_v55 = vpop.permute.xlu1 %3594 }
0x14c8   :  { %v3614_v27 = vsel %vm856_vm10, %v3608_v12, %v3609_v33  ;;  %v3615_v19 = vsel %vm856_vm10, %v3607_v49, %v3608_v12  ;;  %v8228_v52 = vmul.f32 %v8220_v55, %v8116_v20 }
0x14c9   :  { %v8230_v45 = vadd.f32 %v3615_v19, %v3598_v37  ;;  %v8236_v59 = vsel %vm856_vm10, %v3609_v33, %v3610_v0  ;;  %v8238_v34 = vadd.f32 %v3614_v27, %v3599_v38 }
0x14ca   :  { %v3611_v61 = vrot.slane %v8228_v52, 7 }
0x14cc   :  { %v3616_v11 = vsel %vm856_vm10, %v3611_v61, %v3607_v49 }
0x14cd   :  { %v8246_v23 = vadd.f32 %v3616_v11, %v3597_v5 }
0x1596   :  { %v6483_v56 = vpop.f32.mrb[36].mxu1 }
0x1597   :  { %v3309_v13 = vadd.f32 %v6483_v56, %v7198_v62  ;;  %v3300_v36 = vpop.f32.mrb[37].mxu1 }
0x1598   :  { %v3301_v29 = vadd.f32 %v3300_v36, %v7198_v62  ;;  %v6484_v7 = vpop.f32.mrb[38].mxu1 }
0x1599   :  { %v3312_v2 = vadd.f32 %v6484_v7, %v7198_v62  ;;  %v3303_v30 = vpop.f32.mrb[39].mxu1  ;;  %v3317_v17 = vmax.f32 %v3309_v13, 0.0 }
0x159a   :  { %v3304_v1 = vadd.f32 %v3303_v30, %v7198_v62  ;;  %v3315_v35 = vmax.f32 %v3301_v29, 0.0 }
0x159b   :  { %v3318_v31 = vmax.f32 %v3312_v2, 0.0 }
0x159c   :  { %v3316_v9 = vmax.f32 %v3304_v1, 0.0 }
0x159d   :  { %v3320_v16 = vpack.c.bf16 %v3318_v31, %v3317_v17 }
0x159e   :  { %v3319_v63 = vpack.c.bf16 %v3316_v9, %v3315_v35 }
0x15a0   :  { %6493 = vmatprep.mubr.msk.bf16.mxu0 %vm381_vm4, %v3319_v63 }
0x15a1   :  { %6494 = vmatmul.mubr.msk.bf16.vlgmr.msra.gmra.mrb[40].mxu0 %vm381_vm4, %v3320_v16 }
0x1674   :  { %v6495_v48 = vpop.f32.mrb[40].mxu0 }
0x1675   :  { %v3393_v42 = vpop.f32.mrb[41].mxu0  ;;  %v3402_v44 = vadd.f32 %v6495_v48, %v7210_v14 }
0x1676   :  { %v3394_v57 = vadd.f32 %v3393_v42, %v7210_v14  ;;  %v6496_v24 = vpop.f32.mrb[42].mxu0 }
0x1677   :  { %v3396_v3 = vpop.f32.mrb[43].mxu0  ;;  %v3405_v4 = vadd.f32 %v6496_v24, %v7210_v14  ;;  %v3424_v33 = vmul.f32 %v3402_v44, %v3402_v44  ;;  %v3411_v27 = vsel %vm381_vm4, %v3402_v44, 0.0 }
0x1678   :  { %v3422_v46 = vmul.f32 %v3394_v57, %v3394_v57  ;;  %v3397_v53 = vadd.f32 %v3396_v3, %v7210_v14  ;;  %v3408_v49 = vsel %vm381_vm4, %v3394_v57, 0.0 }
0x1679   :  { %v3425_v5 = vmul.f32 %v3405_v4, %v3405_v4  ;;  %v3429_v56 = vsel %vm381_vm4, %v3424_v33, 0.0  ;;  %v3413_v13 = vsel %vm381_vm4, %v3405_v4, 0.0 }
0x167a   :  { %v3409_v12 = vsel %vm381_vm4, %v3397_v53, 0.0  ;;  %v3423_v38 = vmul.f32 %v3397_v53, %v3397_v53  ;;  %v3426_v19 = vsel %vm381_vm4, %v3422_v46, 0.0 }
0x167b   :  { %v3410_v37 = vadd.f32 %v3409_v12, %v3408_v49  ;;  %v3431_v7 = vsel %vm381_vm4, %v3425_v5, 0.0  ;;  %v3612_v5 = vsel %vm856_vm10, %v3610_v0, %v3611_v61  ;;  %v3626_v0 = vmul.f32 0.7, %v8116_v20 }
0x167c   :  { %v3427_v11 = vsel %vm381_vm4, %v3423_v38, 0.0  ;;  %v3623_v61 = vmul.f32 0.7, %v8126_v28 }
0x167d   :  { %v3412_v50 = vadd.f32 %v3411_v27, %v3410_v37  ;;  %v3428_v21 = vadd.f32 %v3427_v11, %v3426_v19 }
0x167f   :  { %v3414_v36 = vadd.f32 %v3413_v13, %v3412_v50  ;;  %v3430_v29 = vadd.f32 %v3429_v56, %v3428_v21  ;;  %v3601_v21 = vmul.f32 %v8220_v55, %v8178_v39 }
0x1681   :  { %v3415_v2 = vrot.slane %v3414_v36, 4  ;;  %v3432_v30 = vadd.f32 %v3431_v7, %v3430_v29  ;;  %v3600_v7 = vmul.f32 %v8211_v58, %v8174_v8  ;;  %v3625_v8 = vmul.f32 0.7, %v8140_v51  ;;  %v6729_v51 = vld [vmem:[#allocation2] sm:$0xff]  }
0x1682   :  { %6497 = vmatprep.subr.bf16.mxu1 %v6729_v51 }
0x1683   :  { %v3416_v1 = vadd.f32 %v3415_v2, %v3414_v36  ;;  %v3433_v17 = vrot.slane %v3432_v30, 4  ;;  %v3621_v2 = vadd.f32 %v3612_v5, %v3601_v21  ;;  %6498 = vmatpush3.bf16.msra.mxu1 %v6729_v51 }
0x1685   :  { %v3417_v31 = vrot.slane %v3416_v1, 2  ;;  %v3434_v35 = vadd.f32 %v3433_v17, %v3432_v30  ;;  %v3620_v30 = vadd.f32 %v8236_v59, %v3600_v7  ;;  %v3631_v55 = vadd.f32 %v3626_v0, %v3621_v2 }
0x1687   :  { %v3418_v9 = vadd.f32 %v3417_v31, %v3416_v1  ;;  %v3435_v16 = vrot.slane %v3434_v35, 2  ;;  %v3624_v1 = vmul.f32 0.7, %v8135_v6  ;;  %v3630_v59 = vadd.f32 %v3625_v8, %v3620_v30  ;;  %v6732_v31 = vld [vmem:[#allocation2 + $0x18] sm:$0xff]  }
0x1689   :  { %v3419_v63 = vrot.slane %v3418_v9, 1  ;;  %v3436_v48 = vadd.f32 %v3435_v16, %v3434_v35  ;;  %v3622_v35 = vmul.f32 0.7, %v8121_v43 }
0x168b   :  { %v3420_v42 = vadd.f32 %v3419_v63, %v3418_v9  ;;  %v3437_v24 = vrot.slane %v3436_v48, 1  ;;  %v3627_v9 = vadd.f32 %v3622_v35, %v8246_v23 }
0x168d   :  { %v3421_v3 = vmul.f32 0.03125, %v3420_v42  ;;  %v3438_v46 = vadd.f32 %v3437_v24, %v3436_v48  ;;  %v3632_v16 = vadd.f32 %v3627_v9, %v7319_v32 }
0x168f   :  { %v3439_v33 = vmul.f32 0.03125, %v3438_v46  ;;  %v3440_v49 = vmul.f32 %v3421_v3, %v3421_v3 }
0x1691   :  { %v3441_v12 = vsub.f32 %v3439_v33, %v3440_v49 }
0x1693   :  { %v3442_v38 = vmax.f32 %v3441_v12, 0.0 }
0x1695   :  { %v3443_v37 = vadd.f32 1e-05, %v3442_v38 }
0x1697   :  { %6847 = vrsqrt.f32 %v3443_v37 }
0x16a1   :  { %v6848_v27 = vpop.eup %6847 }
0x16a2   :  { %v3445_v19 = vmul.f32 %v8063_v47, %v6848_v27 }
0x16a4   :  { %v3449_v11 = vrot.slane %v3445_v19, %v7267_v41  ;;  %v3454_v50 = vmul.f32 %v3445_v19, %v3421_v3 }
0x16a6   :  { %v3451_v56 = vmul.f32 %v3449_v11, %v3397_v53  ;;  %v3456_v13 = vrot.slane %v3454_v50, 7  ;;  %v3450_v36 = vmul.f32 %v3449_v11, %v3394_v57  ;;  %v3452_v29 = vmul.f32 %v3449_v11, %v3402_v44 }
0x16a7   :  { %v3453_v52 = vmul.f32 %v3449_v11, %v3405_v4  ;;  %v3628_v44 = vadd.f32 %v3623_v61, %v8230_v45  ;;  %v3629_v57 = vadd.f32 %v3624_v1, %v8238_v34  ;;  %v6730_v45 = vld [vmem:[#allocation2 + $0x8] sm:$0xff]   ;;  %v6731_v34 = vld [vmem:[#allocation2 + $0x10] sm:$0xff]  }
0x16a8   :  { %v3458_v60 = vsub.f32 %v8063_v47, %v3456_v13  ;;  %6499 = vmatprep.subr.bf16.mxu1 %v6730_v45 }
0x16a9   :  { %6500 = vmatpush3.bf16.msra.mxu1 %v6730_v45 }
0x16aa   :  { %v3462_v39 = vrot.slane %v3458_v60, %v7281_v54  ;;  %6501 = vmatprep.subr.bf16.mxu1 %v6731_v34 }
0x16ac   :  { %v3464_v58 = vadd.f32 %v3462_v39, %v3451_v56  ;;  %v3463_v4 = vadd.f32 %v3462_v39, %v3450_v36  ;;  %v3465_v47 = vadd.f32 %v3462_v39, %v3452_v29  ;;  %v3466_v53 = vadd.f32 %v3462_v39, %v3453_v52 }
0x16ad   :  { %6502 = vmatpush3.bf16.msra.mxu1 %v6731_v34 }
0x16ae   :  { %3634 = vrot.lane.b32.xlu0 %v3463_v4, %s6937_s1  ;;  %3645 = vrot.lane.b32.xlu1 %v3464_v58, %s6937_s1  ;;  %v3660_v20 = vadd.f32 %v3631_v55, %v3466_v53  ;;  %v3639_v28 = vadd.f32 %v3628_v44, %v3463_v4  ;;  %v3640_v6 = vadd.f32 %v3629_v57, %v3464_v58 }
0x16af   :  { %v3641_v17 = vadd.f32 %v3630_v59, %v3465_v47  ;;  %6503 = vmatprep.subr.bf16.mxu1 %v6732_v31 }
0x16b0   :  { %3661 = vst.msk [vmem:[%s9134_s6 + $0x20] sm:$0xff] %vm132_vm1, %v3660_v20  ;;  %v6733_v20 = vld [vmem:[#allocation2 + $0x20] sm:$0xff]  }
0x16b1   :  { %6504 = vmatpush3.bf16.msra.mxu1 %v6732_v31  ;;  %6509 = vmatprep.subr.bf16.mxu0 %v6733_v20 }
0x16b2   :  { %3647 = vrot.lane.b32.xlu0 %v3465_v47, %s6937_s1  ;;  %3649 = vrot.lane.b32.xlu1 %v3466_v53, %s6937_s1 }
0x16b3   :  { %6510 = vmatpush3.bf16.msra.mxu0 %v6733_v20 }
0x16b7   :  { %v8317_v33 = vld [vmem:[%s9134_s6 + $0x20] sm:$0xff] }
0x16b8   :  { %v3669_v38 = vpack.c.bf16 %v8317_v33, %v8317_v33  ;;  %v4022_v61 = vrot.slane %v8317_v33, 1 }
0x16ba   :  { %v3676_v50 = vrot.slane %v3669_v38, 4 }
0x1720   :  { %v3635_v63 = vpop.permute.xlu0 %3634  ;;  %v3646_v48 = vpop.permute.xlu1 %3645 }
0x1721   :  { %v3637_v42 = vadd.f32 %v3635_v63, %v3632_v16  ;;  %v3654_v24 = vadd.f32 %v3646_v48, %v3639_v28  ;;  %v6734_v28 = vld [vmem:[#allocation2 + $0x28] sm:$0xff]  }
0x1722   :  { %6511 = vmatprep.subr.bf16.mxu0 %v6734_v28 }
0x1723   :  { %3638 = vst.msk [vmem:[%s9134_s6] sm:$0xff] %vm132_vm1, %v3637_v42  ;;  %3657 = vst.msk [vmem:[%s9134_s6 + $0x8] sm:$0xff] %vm132_vm1, %v3654_v24  ;;  %6512 = vmatpush3.bf16.msra.mxu0 %v6734_v28 }
0x1724   :  { %v3648_v3 = vpop.permute.xlu0 %3647  ;;  %v3650_v43 = vpop.permute.xlu1 %3649 }
0x1725   :  { %v3655_v46 = vadd.f32 %v3648_v3, %v3640_v6  ;;  %v3656_v23 = vadd.f32 %v3650_v43, %v3641_v17 }
0x1727   :  { %3658 = vst.msk [vmem:[%s9134_s6 + $0x10] sm:$0xff] %vm132_vm1, %v3655_v46  ;;  %3659 = vst.msk [vmem:[%s9134_s6 + $0x18] sm:$0xff] %vm132_vm1, %v3656_v23 }
0x172a   :  { %v8322_v49 = vld [vmem:[%s9134_s6] sm:$0xff]  ;;  %v8327_v12 = vld [vmem:[%s9134_s6 + $0x8] sm:$0xff] }
0x172b   :  { %v3667_v37 = vpack.c.bf16 %v8327_v12, %v8322_v49  ;;  %v4018_v36 = vrot.slane %v8322_v49, 1  ;;  %v4019_v29 = vrot.slane %v8327_v12, 1 }
0x172d   :  { %v3673_v21 = vrot.slane %v3667_v37, 4  ;;  %v8353_v7 = vsel %vm695_vm3, %v4018_v36, %v4019_v29  ;;  %v8379_v57 = vsel %vm695_vm3, %v4022_v61, %v4018_v36 }
0x172e   :  { %v8336_v27 = vld [vmem:[%s9134_s6 + $0x10] sm:$0xff]  ;;  %v8341_v19 = vld [vmem:[%s9134_s6 + $0x18] sm:$0xff]  ;;  %v4028_v60 = vmul.f32 %v8353_v7, %v8322_v49  ;;  %v4032_v47 = vmul.f32 %v8379_v57, %v8317_v33 }
0x172f   :  { %v3668_v5 = vpack.c.bf16 %v8341_v19, %v8336_v27  ;;  %v4020_v2 = vrot.slane %v8336_v27, 1  ;;  %v4021_v52 = vrot.slane %v8341_v19, 1 }
0x1730   :  { %v4033_v1 = vsel %vm132_vm1, %v4028_v60, 0.0  ;;  %v4045_v59 = vsel %vm132_vm1, %v4032_v47, 0.0 }
0x1731   :  { %v3674_v11 = vrot.slane %v3668_v5, 4  ;;  %v8361_v30 = vsel %vm695_vm3, %v4020_v2, %v4021_v52  ;;  %v8365_v0 = vsel %vm695_vm3, %v4019_v29, %v4020_v2  ;;  %v8375_v44 = vsel %vm695_vm3, %v4021_v52, %v4022_v61 }
0x1732   :  { %v4030_v39 = vmul.f32 %v8361_v30, %v8336_v27  ;;  %v4029_v55 = vmul.f32 %v8365_v0, %v8327_v12  ;;  %v4031_v58 = vmul.f32 %v8375_v44, %v8341_v19 }
0x1733   :  { %v3677_v56 = vsel %vm329_vm2, %v3674_v11, %v3676_v50  ;;  %v3675_v13 = vsel %vm329_vm2, %v3673_v21, %v3674_v11 }
0x1734   :  { %3680 = vrot.lane.b32.xlu1 %v3677_v56, %s6935_s21  ;;  %3678 = vrot.lane.b32.xlu0 %v3675_v13, %s6935_s21  ;;  %v4039_v8 = vsel %vm132_vm1, %v4030_v39, 0.0  ;;  %v4036_v4 = vsel %vm132_vm1, %v4029_v55, 0.0  ;;  %v4042_v53 = vsel %vm132_vm1, %v4031_v58, 0.0 }
0x1753   :  { %4034 = vadd.xlane.f32.xlu0 %v4033_v1 }
0x1757   :  { %4040 = vadd.xlane.f32.xlu0 %v4039_v8 }
0x1758   :  { %4037 = vadd.xlane.f32.xlu1 %v4036_v4 }
0x175b   :  { %4043 = vadd.xlane.f32.xlu0 %v4042_v53 }
0x175c   :  { %4046 = vadd.xlane.f32.xlu1 %v4045_v59 }
0x17a6   :  { %v3681_v6 = vpop.permute.xlu1 %3680  ;;  %v3679_v17 = vpop.permute.xlu0 %3678 }
0x17a7   :  { %v3687_v51 = vsel %vm132_vm1, %v3668_v5, %v3681_v6  ;;  %v3684_v45 = vsel %vm132_vm1, %v3667_v37, %v3679_v17 }
0x17a8   :  { %6505 = vmatprep.mubr.msk.bf16.mxu1 %vm381_vm4, %v3684_v45 }
0x17a9   :  { %6506 = vmatmul.mubr.msk.bf16.vlgmr.msra.gmra.mrb[40].mxu1 %vm381_vm4, %v3687_v51  ;;  %v6735_v51 = vld [vmem:[#allocation2 + $0x30] sm:$0xff]  }
0x17aa   :  { %6513 = vmatprep.subr.bf16.mxu0 %v6735_v51 }
0x17ab   :  { %6514 = vmatpush3.bf16.msra.mxu0 %v6735_v51 }
0x17e0   :  { %v4035_v34 = vpop.xlane.xlu0 %4034 }
0x17e1   :  { %v4048_v31 = vmax.f32 %v4035_v34, 0.0 }
0x17e3   :  { %v4053_v42 = vsel %vm7131_vm5, %v4048_v31, 0.0 }
0x17e4   :  { %v4041_v35 = vpop.xlane.xlu0 %4040 }
0x17e5   :  { %v4050_v9 = vmax.f32 %v4041_v35, 0.0  ;;  %v4038_v16 = vpop.xlane.xlu1 %4037 }
0x17e6   :  { %v4049_v63 = vmax.f32 %v4038_v16, 0.0 }
0x17e7   :  { %v4055_v48 = vsel %vm7139_vm7, %v4050_v9, 0.0 }
0x17e8   :  { %v4054_v24 = vsel %vm7135_vm6, %v4049_v63, 0.0  ;;  %v4044_v3 = vpop.xlane.xlu0 %4043  ;;  %v6736_v63 = vld [vmem:[#allocation2 + $0x38] sm:$0xff]  }
0x17e9   :  { %v4063_v43 = vadd.f32 %v4054_v24, %v4053_v42  ;;  %v4064_v46 = vadd.f32 %v4055_v48, %v4054_v24  ;;  %v4051_v23 = vmax.f32 %v4044_v3, 0.0  ;;  %v4047_v38 = vpop.xlane.xlu1 %4046  ;;  %6515 = vmatprep.subr.bf16.mxu0 %v6736_v63 }
0x17ea   :  { %v4052_v37 = vmax.f32 %v4047_v38, 0.0  ;;  %6516 = vmatpush3.bf16.msra.mxu0 %v6736_v63 }
0x17eb   :  { %v4073_v5 = vadd.f32 %v4063_v43, %v4055_v48  ;;  %v4056_v11 = vsel %vm7150_vm8, %v4051_v23, 0.0  ;;  %v6737_v43 = vld [vmem:[#allocation2 + $0x40] sm:$0xff]  }
0x17ec   :  { %v4065_v50 = vadd.f32 %v4056_v11, %v4055_v48  ;;  %v4074_v21 = vadd.f32 %v4064_v46, %v4056_v11  ;;  %v4057_v56 = vsel %vm7161_vm9, %v4052_v37, 0.0  ;;  %v6738_v46 = vld [vmem:[#allocation2 + $0x48] sm:$0xff]   ;;  %6521 = vmatprep.subr.bf16.mxu1 %v6737_v43 }
0x17ed   :  { %v4083_v13 = vadd.f32 %v4073_v5, %v4056_v11  ;;  %v4066_v36 = vadd.f32 %v4057_v56, %v4056_v11  ;;  %v4102_v39 = vsub.f32 0.0, %v4057_v56  ;;  %6522 = vmatpush3.bf16.msra.mxu1 %v6737_v43 }
0x17ee   :  { %v4075_v29 = vadd.f32 %v4065_v50, %v4057_v56  ;;  %v4084_v2 = vadd.f32 %v4074_v21, %v4057_v56  ;;  %6523 = vmatprep.subr.bf16.mxu1 %v6738_v46 }
0x17ef   :  { %v4093_v52 = vadd.f32 %v4083_v13, %v4057_v56  ;;  %v4101_v60 = vsub.f32 0.0, %v4066_v36  ;;  %v4111_v53 = vmul.f32 1.442695, %v4102_v39 }
0x17f0   :  { %v4099_v61 = vsub.f32 0.0, %v4084_v2  ;;  %v4100_v1 = vsub.f32 0.0, %v4075_v29 }
0x17f1   :  { %v4098_v55 = vsub.f32 0.0, %v4093_v52  ;;  %v4109_v8 = vmul.f32 1.442695, %v4101_v60  ;;  %6524 = vmatpush3.bf16.msra.mxu1 %v6738_v46 }
0x17f2   :  { %v4105_v58 = vmul.f32 1.442695, %v4099_v61  ;;  %v4107_v4 = vmul.f32 1.442695, %v4100_v1 }
0x17f3   :  { %v4103_v47 = vmul.f32 1.442695, %v4098_v55  ;;  %6849 = vpow2.f32 %v4109_v8 }
0x17f4   :  { %6851 = vpow2.f32 %v4105_v58 }
0x17f5   :  { %6853 = vpow2.f32 %v4107_v4 }
0x17f6   :  { %6855 = vpow2.f32 %v4103_v47 }
0x17f7   :  { %6857 = vpow2.f32 %v4111_v53 }
0x17fd   :  { %v6850_v59 = vpop.eup %6849 }
0x17fe   :  { %v6852_v20 = vpop.eup %6851  ;;  %v4116_v16 = vmul.f32 0.1, %v6850_v59 }
0x17ff   :  { %v6854_v28 = vpop.eup %6853  ;;  %v4114_v31 = vmul.f32 0.1, %v6852_v20 }
0x1800   :  { %v6856_v6 = vpop.eup %6855  ;;  %v4115_v17 = vmul.f32 0.1, %v6854_v28  ;;  %v4121_v24 = vsub.f32 0.1, %v4116_v16 }
0x1801   :  { %v4113_v45 = vmul.f32 0.1, %v6856_v6  ;;  %v6858_v35 = vpop.eup %6857  ;;  %v4119_v48 = vsub.f32 0.1, %v4114_v31 }
0x1802   :  { %v4120_v34 = vsub.f32 0.1, %v4115_v17  ;;  %v4117_v42 = vmul.f32 0.1, %v6858_v35 }
0x1803   :  { %v4118_v9 = vsub.f32 0.1, %v4113_v45 }
0x1804   :  { %4135 = vperm.xlu1 %6650, %v4120_v34   ;;  %v4122_v3 = vsub.f32 0.1, %v4117_v42  ;;  %v6739_v42 = vld [vmem:[#allocation2 + $0x50] sm:$0xff]  }
0x1805   :  { %4125 = vperm.xlu0 %6649, %v4118_v9   ;;  %6525 = vmatprep.subr.bf16.mxu1 %v6739_v42 }
0x1806   :  { %6526 = vmatpush3.bf16.msra.mxu1 %v6739_v42 }
0x1808   :  { %4130 = vperm.xlu1 %6650, %v4119_v48  }
0x1809   :  { %4140 = vperm.xlu0 %6649, %v4121_v24   ;;  %v6740_v24 = vld [vmem:[#allocation2 + $0x58] sm:$0xff]  }
0x180a   :  { %6527 = vmatprep.subr.bf16.mxu1 %v6740_v24 }
0x180b   :  { %6528 = vmatpush3.bf16.msra.mxu1 %v6740_v24 }
0x180c   :  { %4145 = vperm.xlu1 %6650, %v4122_v3  }
0x187c   :  { %v6507_v23 = vpop.f32.mrb[40].mxu1 }
0x187d   :  { %v3767_v38 = vadd.f32 %v6507_v23, %v7185_v22  ;;  %v3758_v37 = vpop.f32.mrb[41].mxu1 }
0x187e   :  { %v3759_v5 = vadd.f32 %v3758_v37, %v7185_v22  ;;  %v6508_v11 = vpop.f32.mrb[42].mxu1 }
0x187f   :  { %v3770_v50 = vadd.f32 %v6508_v11, %v7185_v22  ;;  %v3761_v21 = vpop.f32.mrb[43].mxu1  ;;  %v3775_v13 = vmax.f32 %v3767_v38, 0.0 }
0x1880   :  { %v3762_v56 = vadd.f32 %v3761_v21, %v7185_v22  ;;  %v3773_v29 = vmax.f32 %v3759_v5, 0.0 }
0x1881   :  { %v3776_v36 = vmax.f32 %v3770_v50, 0.0 }
0x1882   :  { %v3774_v2 = vmax.f32 %v3762_v56, 0.0 }
0x1883   :  { %v3778_v52 = vpack.c.bf16 %v3776_v36, %v3775_v13  ;;  %v4136_v60 = vpop.permute.xlu1 %4135 }
0x1884   :  { %v3777_v61 = vpack.c.bf16 %v3774_v2, %v3773_v29  ;;  %v4126_v1 = vpop.permute.xlu0 %4125  ;;  %v4155_v39 = vmul.f32 %v4136_v60, %v8336_v27  ;;  %v4150_v28 = vmul.f32 %v4136_v60, %v8361_v30 }
0x1885   :  { %v4153_v55 = vmul.f32 %v4126_v1, %v8322_v49  ;;  %v4148_v16 = vmul.f32 %v4126_v1, %v8353_v7 }
0x1886   :  { %6517 = vmatprep.mubr.msk.bf16.mxu0 %vm381_vm4, %v3777_v61  ;;  %v4160_v53 = vrot.slane %v4155_v39, 7 }
0x1887   :  { %v4131_v8 = vpop.permute.xlu1 %4130  ;;  %6518 = vmatmul.mubr.msk.bf16.vlgmr.msra.gmra.mrb[44].mxu0 %vm381_vm4, %v3778_v52  ;;  %v4158_v59 = vrot.slane %v4153_v55, 7 }
0x1888   :  { %v4154_v58 = vmul.f32 %v4131_v8, %v8327_v12  ;;  %v8412_v4 = vpop.permute.xlu0 %4140  ;;  %v4149_v6 = vmul.f32 %v4131_v8, %v8365_v0 }
0x1889   :  { %v8416_v47 = vmul.f32 %v8412_v4, %v8341_v19 }
0x188a   :  { %v4159_v20 = vrot.slane %v4154_v58, 7 }
0x188b   :  { %v4161_v17 = vrot.slane %v8416_v47, 7  ;;  %v8421_v51 = vpop.permute.xlu1 %4145 }
0x188c   :  { %v4165_v45 = vsel %vm856_vm10, %v4159_v20, %v4160_v53  ;;  %v4166_v34 = vsel %vm856_vm10, %v4158_v59, %v4159_v20  ;;  %v8429_v31 = vmul.f32 %v8421_v51, %v8317_v33 }
0x188d   :  { %v8431_v35 = vadd.f32 %v4166_v34, %v4149_v6  ;;  %v8437_v30 = vsel %vm856_vm10, %v4160_v53, %v4161_v17  ;;  %v8439_v0 = vadd.f32 %v4165_v45, %v4150_v28 }
0x188e   :  { %v4162_v9 = vrot.slane %v8429_v31, 7 }
0x1890   :  { %v4167_v63 = vsel %vm856_vm10, %v4162_v9, %v4158_v59 }
0x1891   :  { %v8447_v48 = vadd.f32 %v4167_v63, %v4148_v16 }
0x195a   :  { %v6519_v3 = vpop.f32.mrb[44].mxu0 }
0x195b   :  { %v3860_v43 = vadd.f32 %v6519_v3, %v7198_v62  ;;  %v3851_v46 = vpop.f32.mrb[45].mxu0 }
0x195c   :  { %v3852_v23 = vadd.f32 %v3851_v46, %v7198_v62  ;;  %v6520_v7 = vpop.f32.mrb[46].mxu0 }
0x195d   :  { %v3863_v38 = vadd.f32 %v6520_v7, %v7198_v62  ;;  %v3854_v37 = vpop.f32.mrb[47].mxu0  ;;  %v3868_v11 = vmax.f32 %v3860_v43, 0.0 }
0x195e   :  { %v3855_v5 = vadd.f32 %v3854_v37, %v7198_v62  ;;  %v3866_v21 = vmax.f32 %v3852_v23, 0.0 }
0x195f   :  { %v3869_v50 = vmax.f32 %v3863_v38, 0.0 }
0x1960   :  { %v3867_v56 = vmax.f32 %v3855_v5, 0.0 }
0x1961   :  { %v3871_v13 = vpack.c.bf16 %v3869_v50, %v3868_v11 }
0x1962   :  { %v3870_v36 = vpack.c.bf16 %v3867_v56, %v3866_v21 }
0x1964   :  { %6529 = vmatprep.mubr.msk.bf16.mxu1 %vm381_vm4, %v3870_v36 }
0x1965   :  { %6530 = vmatmul.mubr.msk.bf16.vlgmr.msra.gmra.mrb[44].mxu1 %vm381_vm4, %v3871_v13 }
0x1a38   :  { %v6531_v29 = vpop.f32.mrb[44].mxu1 }
0x1a39   :  { %v3944_v2 = vpop.f32.mrb[45].mxu1  ;;  %v3953_v52 = vadd.f32 %v6531_v29, %v7210_v14 }
0x1a3a   :  { %v3945_v60 = vadd.f32 %v3944_v2, %v7210_v14  ;;  %v6532_v61 = vpop.f32.mrb[46].mxu1 }
0x1a3b   :  { %v3947_v1 = vpop.f32.mrb[47].mxu1  ;;  %v3956_v55 = vadd.f32 %v6532_v61, %v7210_v14  ;;  %v3975_v58 = vmul.f32 %v3953_v52, %v3953_v52  ;;  %v3962_v6 = vsel %vm381_vm4, %v3953_v52, 0.0 }
0x1a3c   :  { %v3973_v39 = vmul.f32 %v3945_v60, %v3945_v60  ;;  %v3948_v8 = vadd.f32 %v3947_v1, %v7210_v14  ;;  %v3959_v53 = vsel %vm381_vm4, %v3945_v60, 0.0 }
0x1a3d   :  { %v3976_v34 = vmul.f32 %v3956_v55, %v3956_v55  ;;  %v3980_v24 = vsel %vm381_vm4, %v3975_v58, 0.0  ;;  %v3964_v3 = vsel %vm381_vm4, %v3956_v55, 0.0 }
0x1a3e   :  { %v3960_v59 = vsel %vm381_vm4, %v3948_v8, 0.0  ;;  %v3974_v20 = vmul.f32 %v3948_v8, %v3948_v8  ;;  %v3977_v45 = vsel %vm381_vm4, %v3973_v39, 0.0 }
0x1a3f   :  { %v3961_v28 = vadd.f32 %v3960_v59, %v3959_v53  ;;  %v3982_v23 = vsel %vm381_vm4, %v3976_v34, 0.0  ;;  %v4163_v34 = vsel %vm856_vm10, %v4161_v17, %v4162_v9  ;;  %v4177_v17 = vmul.f32 0.7, %v8317_v33 }
0x1a40   :  { %v3978_v16 = vsel %vm381_vm4, %v3974_v20, 0.0  ;;  %v4174_v9 = vmul.f32 0.7, %v8327_v12 }
0x1a41   :  { %v3963_v63 = vadd.f32 %v3962_v6, %v3961_v28  ;;  %v3979_v42 = vadd.f32 %v3978_v16, %v3977_v45  ;;  %v8470_v6 = vld [vmem:[%s9133_s5] sm:$0x1f] }
0x1a43   :  { %v3965_v43 = vadd.f32 %v3964_v3, %v3963_v63  ;;  %v3981_v46 = vadd.f32 %v3980_v24, %v3979_v42  ;;  %v4152_v42 = vmul.f32 %v8421_v51, %v8379_v57 }
0x1a45   :  { %v3966_v7 = vrot.slane %v3965_v43, 4  ;;  %v3983_v38 = vadd.f32 %v3982_v23, %v3981_v46  ;;  %v4151_v23 = vmul.f32 %v8412_v4, %v8375_v44  ;;  %v4176_v44 = vmul.f32 0.7, %v8341_v19  ;;  %v6741_v19 = vld [vmem:[#allocation2] sm:$0xff]  }
0x1a46   :  { %6533 = vmatprep.subr.bf16.mxu0 %v6741_v19 }
0x1a47   :  { %v3967_v37 = vadd.f32 %v3966_v7, %v3965_v43  ;;  %v3984_v5 = vrot.slane %v3983_v38, 4  ;;  %v4172_v7 = vadd.f32 %v4163_v34, %v4152_v42  ;;  %6534 = vmatpush3.bf16.msra.mxu0 %v6741_v19 }
0x1a49   :  { %v3968_v11 = vrot.slane %v3967_v37, 2  ;;  %v3985_v50 = vadd.f32 %v3984_v5, %v3983_v38  ;;  %v4171_v38 = vadd.f32 %v8437_v30, %v4151_v23  ;;  %v4182_v51 = vadd.f32 %v4177_v17, %v4172_v7 }
0x1a4b   :  { %v3969_v21 = vadd.f32 %v3968_v11, %v3967_v37  ;;  %v3986_v56 = vrot.slane %v3985_v50, 2  ;;  %v4175_v37 = vmul.f32 0.7, %v8336_v27  ;;  %v4181_v30 = vadd.f32 %v4176_v44, %v4171_v38 }
0x1a4d   :  { %v3970_v13 = vrot.slane %v3969_v21, 1  ;;  %v3987_v36 = vadd.f32 %v3986_v56, %v3985_v50  ;;  %v6744_v50 = vld [vmem:[#allocation2 + $0x18] sm:$0xff]  }
0x1a4f   :  { %v3971_v29 = vadd.f32 %v3970_v13, %v3969_v21  ;;  %v3988_v2 = vrot.slane %v3987_v36, 1  ;;  %v4173_v21 = vmul.f32 0.7, %v8322_v49 }
0x1a51   :  { %v3972_v61 = vmul.f32 0.03125, %v3971_v29  ;;  %v3989_v1 = vadd.f32 %v3988_v2, %v3987_v36  ;;  %v4178_v56 = vadd.f32 %v4173_v21, %v8447_v48 }
0x1a53   :  { %v3990_v39 = vmul.f32 0.03125, %v3989_v1  ;;  %v3991_v58 = vmul.f32 %v3972_v61, %v3972_v61  ;;  %v4183_v13 = vadd.f32 %v4178_v56, %v7319_v32 }
0x1a55   :  { %v3992_v53 = vsub.f32 %v3990_v39, %v3991_v58 }
0x1a57   :  { %v3993_v59 = vmax.f32 %v3992_v53, 0.0 }
0x1a59   :  { %v3994_v20 = vadd.f32 1e-05, %v3993_v59 }
0x1a5b   :  { %6859 = vrsqrt.f32 %v3994_v20 }
0x1a65   :  { %v6860_v28 = vpop.eup %6859 }
0x1a66   :  { %v3996_v45 = vmul.f32 %v8470_v6, %v6860_v28 }
0x1a68   :  { %v4000_v16 = vrot.slane %v3996_v45, %v7267_v41  ;;  %v4005_v63 = vmul.f32 %v3996_v45, %v3972_v61 }
0x1a6a   :  { %v4002_v24 = vmul.f32 %v4000_v16, %v3948_v8  ;;  %v4007_v3 = vrot.slane %v4005_v63, 7  ;;  %v4001_v43 = vmul.f32 %v4000_v16, %v3945_v60  ;;  %v4003_v46 = vmul.f32 %v4000_v16, %v3953_v52 }
0x1a6b   :  { %v4004_v31 = vmul.f32 %v4000_v16, %v3956_v55  ;;  %v4179_v52 = vadd.f32 %v4174_v9, %v8431_v35  ;;  %v4180_v60 = vadd.f32 %v4175_v37, %v8439_v0  ;;  %v6742_v35 = vld [vmem:[#allocation2 + $0x8] sm:$0xff]   ;;  %v6743_v0 = vld [vmem:[#allocation2 + $0x10] sm:$0xff]  }
0x1a6c   :  { %v4009_v47 = vsub.f32 %v8470_v6, %v4007_v3  ;;  %6535 = vmatprep.subr.bf16.mxu0 %v6742_v35 }
0x1a6d   :  { %6536 = vmatpush3.bf16.msra.mxu0 %v6742_v35 }
0x1a6e   :  { %v4013_v57 = vrot.slane %v4009_v47, %v7281_v54  ;;  %6537 = vmatprep.subr.bf16.mxu0 %v6743_v0 }
0x1a70   :  { %v4015_v4 = vadd.f32 %v4013_v57, %v4002_v24  ;;  %v4014_v55 = vadd.f32 %v4013_v57, %v4001_v43  ;;  %v4016_v8 = vadd.f32 %v4013_v57, %v4003_v46  ;;  %v4017_v5 = vadd.f32 %v4013_v57, %v4004_v31 }
0x1a71   :  { %6538 = vmatpush3.bf16.msra.mxu0 %v6743_v0 }
0x1a72   :  { %4185 = vrot.lane.b32.xlu0 %v4014_v55, %s6937_s1  ;;  %4196 = vrot.lane.b32.xlu1 %v4015_v4, %s6937_s1  ;;  %v4211_v33 = vadd.f32 %v4182_v51, %v4017_v5  ;;  %v4190_v12 = vadd.f32 %v4179_v52, %v4014_v55  ;;  %v4191_v27 = vadd.f32 %v4180_v60, %v4015_v4 }
0x1a73   :  { %v4192_v11 = vadd.f32 %v4181_v30, %v4016_v8  ;;  %6539 = vmatprep.subr.bf16.mxu0 %v6744_v50 }
0x1a74   :  { %4212 = vst.msk [vmem:[%s9134_s6 + $0x20] sm:$0xff] %vm132_vm1, %v4211_v33 }
0x1a75   :  { %6540 = vmatpush3.bf16.msra.mxu0 %v6744_v50 }
0x1a76   :  { %4198 = vrot.lane.b32.xlu0 %v4016_v8, %s6937_s1  ;;  %4200 = vrot.lane.b32.xlu1 %v4017_v5, %s6937_s1 }
0x1a7b   :  { %v8523_v58 = vld [vmem:[%s9134_s6 + $0x20] sm:$0xff] }
0x1a7c   :  { %v4220_v20 = vpack.c.bf16 %v8523_v58, %v8523_v58  ;;  %v4573_v37 = vrot.slane %v8523_v58, 1 }
0x1a7e   :  { %v4227_v42 = vrot.slane %v4220_v20, 4 }
0x1ae4   :  { %v4186_v36 = vpop.permute.xlu0 %4185  ;;  %v4197_v29 = vpop.permute.xlu1 %4196 }
0x1ae5   :  { %v4188_v2 = vadd.f32 %v4186_v36, %v4183_v13  ;;  %v4205_v61 = vadd.f32 %v4197_v29, %v4190_v12  ;;  %v6745_v12 = vld [vmem:[#allocation2 + $0x20] sm:$0xff]  }
0x1ae6   :  { %6545 = vmatprep.subr.bf16.mxu1 %v6745_v12 }
0x1ae7   :  { %4189 = vst.msk [vmem:[%s9134_s6] sm:$0xff] %vm132_vm1, %v4188_v2  ;;  %4208 = vst.msk [vmem:[%s9134_s6 + $0x8] sm:$0xff] %vm132_vm1, %v4205_v61  ;;  %6546 = vmatpush3.bf16.msra.mxu1 %v6745_v12 }
0x1ae8   :  { %v4199_v1 = vpop.permute.xlu0 %4198  ;;  %v4201_v49 = vpop.permute.xlu1 %4200 }
0x1ae9   :  { %v4206_v39 = vadd.f32 %v4199_v1, %v4191_v27  ;;  %v4207_v48 = vadd.f32 %v4201_v49, %v4192_v11  ;;  %v6746_v27 = vld [vmem:[#allocation2 + $0x28] sm:$0xff]  }
0x1aea   :  { %6547 = vmatprep.subr.bf16.mxu1 %v6746_v27 }
0x1aeb   :  { %4209 = vst.msk [vmem:[%s9134_s6 + $0x10] sm:$0xff] %vm132_vm1, %v4206_v39  ;;  %4210 = vst.msk [vmem:[%s9134_s6 + $0x18] sm:$0xff] %vm132_vm1, %v4207_v48  ;;  %6548 = vmatpush3.bf16.msra.mxu1 %v6746_v27 }
0x1aee   :  { %v8528_v53 = vld [vmem:[%s9134_s6] sm:$0xff]  ;;  %v8533_v59 = vld [vmem:[%s9134_s6 + $0x8] sm:$0xff] }
0x1aef   :  { %v4218_v28 = vpack.c.bf16 %v8533_v59, %v8528_v53  ;;  %v4569_v46 = vrot.slane %v8528_v53, 1  ;;  %v4570_v23 = vrot.slane %v8533_v59, 1 }
0x1af1   :  { %v4224_v24 = vrot.slane %v4218_v28, 4  ;;  %v8559_v7 = vsel %vm695_vm3, %v4569_v46, %v4570_v23  ;;  %v8585_v44 = vsel %vm695_vm3, %v4573_v37, %v4569_v46 }
0x1af2   :  { %v8542_v45 = vld [vmem:[%s9134_s6 + $0x10] sm:$0xff]  ;;  %v8547_v34 = vld [vmem:[%s9134_s6 + $0x18] sm:$0xff]  ;;  %v4579_v38 = vmul.f32 %v8559_v7, %v8528_v53  ;;  %v4583_v5 = vmul.f32 %v8585_v44, %v8523_v58 }
0x1af3   :  { %v4219_v16 = vpack.c.bf16 %v8547_v34, %v8542_v45  ;;  %v4571_v31 = vrot.slane %v8542_v45, 1  ;;  %v4572_v47 = vrot.slane %v8547_v34, 1 }
0x1af4   :  { %v4584_v57 = vsel %vm132_vm1, %v4579_v38, 0.0  ;;  %v4596_v33 = vsel %vm132_vm1, %v4583_v5, 0.0 }
0x1af5   :  { %v4225_v63 = vrot.slane %v4219_v16, 4  ;;  %v8567_v17 = vsel %vm695_vm3, %v4571_v31, %v4572_v47  ;;  %v8571_v9 = vsel %vm695_vm3, %v4570_v23, %v4571_v31  ;;  %v8581_v60 = vsel %vm695_vm3, %v4572_v47, %v4573_v37 }
0x1af6   :  { %v4581_v51 = vmul.f32 %v8567_v17, %v8542_v45  ;;  %v4580_v52 = vmul.f32 %v8571_v9, %v8533_v59  ;;  %v4582_v55 = vmul.f32 %v8581_v60, %v8547_v34 }
0x1af7   :  { %v4228_v3 = vsel %vm329_vm2, %v4225_v63, %v4227_v42  ;;  %v4226_v43 = vsel %vm329_vm2, %v4224_v24, %v4225_v63 }
0x1af8   :  { %4231 = vrot.lane.b32.xlu1 %v4228_v3, %s6935_s21  ;;  %4229 = vrot.lane.b32.xlu0 %v4226_v43, %s6935_s21  ;;  %v4590_v4 = vsel %vm132_vm1, %v4581_v51, 0.0  ;;  %v4587_v8 = vsel %vm132_vm1, %v4580_v52, 0.0  ;;  %v4593_v30 = vsel %vm132_vm1, %v4582_v55, 0.0 }
0x1b17   :  { %4585 = vadd.xlane.f32.xlu0 %v4584_v57 }
0x1b1b   :  { %4591 = vadd.xlane.f32.xlu0 %v4590_v4 }
0x1b1c   :  { %4588 = vadd.xlane.f32.xlu1 %v4587_v8 }
0x1b1f   :  { %4594 = vadd.xlane.f32.xlu0 %v4593_v30 }
0x1b20   :  { %4597 = vadd.xlane.f32.xlu1 %v4596_v33 }
0x1b6a   :  { %v4232_v11 = vpop.permute.xlu1 %4231  ;;  %v4230_v19 = vpop.permute.xlu0 %4229 }
0x1b6b   :  { %v4238_v35 = vsel %vm132_vm1, %v4219_v16, %v4232_v11  ;;  %v4235_v0 = vsel %vm132_vm1, %v4218_v28, %v4230_v19 }
0x1b6c   :  { %6541 = vmatprep.mubr.msk.bf16.mxu0 %vm381_vm4, %v4235_v0  ;;  %v6747_v0 = vld [vmem:[#allocation2 + $0x30] sm:$0xff]  }
0x1b6d   :  { %6542 = vmatmul.mubr.msk.bf16.vlgmr.msra.gmra.mrb[48].mxu0 %vm381_vm4, %v4238_v35  ;;  %6549 = vmatprep.subr.bf16.mxu1 %v6747_v0 }
0x1b6e   :  { %6550 = vmatpush3.bf16.msra.mxu1 %v6747_v0 }
0x1ba4   :  { %v4586_v50 = vpop.xlane.xlu0 %4585 }
0x1ba5   :  { %v4599_v21 = vmax.f32 %v4586_v50, 0.0 }
0x1ba7   :  { %v4604_v61 = vsel %vm7131_vm5, %v4599_v21, 0.0 }
0x1ba8   :  { %v4592_v56 = vpop.xlane.xlu0 %4591 }
0x1ba9   :  { %v4601_v13 = vmax.f32 %v4592_v56, 0.0  ;;  %v4589_v36 = vpop.xlane.xlu1 %4588 }
0x1baa   :  { %v4600_v29 = vmax.f32 %v4589_v36, 0.0 }
0x1bab   :  { %v4606_v2 = vsel %vm7139_vm7, %v4601_v13, 0.0 }
0x1bac   :  { %v4605_v1 = vsel %vm7135_vm6, %v4600_v29, 0.0  ;;  %v4595_v49 = vpop.xlane.xlu0 %4594 }
0x1bad   :  { %v4614_v39 = vadd.f32 %v4605_v1, %v4604_v61  ;;  %v4615_v48 = vadd.f32 %v4606_v2, %v4605_v1  ;;  %v4602_v20 = vmax.f32 %v4595_v49, 0.0  ;;  %v4598_v28 = vpop.xlane.xlu1 %4597 }
0x1bae   :  { %v4603_v16 = vmax.f32 %v4598_v28, 0.0 }
0x1baf   :  { %v4624_v63 = vadd.f32 %v4614_v39, %v4606_v2  ;;  %v4607_v42 = vsel %vm7150_vm8, %v4602_v20, 0.0  ;;  %v6750_v20 = vld [vmem:[#allocation2 + $0x48] sm:$0xff]  }
0x1bb0   :  { %v4616_v24 = vadd.f32 %v4607_v42, %v4606_v2  ;;  %v4625_v3 = vadd.f32 %v4615_v48, %v4607_v42  ;;  %v4608_v43 = vsel %vm7161_vm9, %v4603_v16, 0.0  ;;  %v6748_v2 = vld [vmem:[#allocation2 + $0x38] sm:$0xff]   ;;  %v6749_v48 = vld [vmem:[#allocation2 + $0x40] sm:$0xff]  }
0x1bb1   :  { %v4634_v46 = vadd.f32 %v4624_v63, %v4607_v42  ;;  %v4617_v23 = vadd.f32 %v4608_v43, %v4607_v42  ;;  %v4653_v55 = vsub.f32 0.0, %v4608_v43  ;;  %6551 = vmatprep.subr.bf16.mxu1 %v6748_v2  ;;  %6557 = vmatprep.subr.bf16.mxu0 %v6749_v48 }
0x1bb2   :  { %v4626_v31 = vadd.f32 %v4616_v24, %v4608_v43  ;;  %v4635_v47 = vadd.f32 %v4625_v3, %v4608_v43  ;;  %6552 = vmatpush3.bf16.msra.mxu1 %v6748_v2  ;;  %6558 = vmatpush3.bf16.msra.mxu0 %v6749_v48 }
0x1bb3   :  { %v4644_v38 = vadd.f32 %v4634_v46, %v4608_v43  ;;  %v4652_v37 = vsub.f32 0.0, %v4617_v23  ;;  %v4662_v33 = vmul.f32 1.442695, %v4653_v55  ;;  %6559 = vmatprep.subr.bf16.mxu0 %v6750_v20 }
0x1bb4   :  { %v4650_v57 = vsub.f32 0.0, %v4635_v47  ;;  %v4651_v51 = vsub.f32 0.0, %v4626_v31 }
0x1bb5   :  { %v4649_v52 = vsub.f32 0.0, %v4644_v38  ;;  %v4660_v4 = vmul.f32 1.442695, %v4652_v37 }
0x1bb6   :  { %v4656_v8 = vmul.f32 1.442695, %v4650_v57  ;;  %v4658_v5 = vmul.f32 1.442695, %v4651_v51  ;;  %6560 = vmatpush3.bf16.msra.mxu0 %v6750_v20 }
0x1bb7   :  { %v4654_v30 = vmul.f32 1.442695, %v4649_v52  ;;  %6861 = vpow2.f32 %v4660_v4 }
0x1bb8   :  { %6863 = vpow2.f32 %v4656_v8 }
0x1bb9   :  { %6865 = vpow2.f32 %v4654_v30 }
0x1bba   :  { %6867 = vpow2.f32 %v4658_v5 }
0x1bbb   :  { %6869 = vpow2.f32 %v4662_v33 }
0x1bc1   :  { %v6862_v12 = vpop.eup %6861 }
0x1bc2   :  { %v6864_v27 = vpop.eup %6863  ;;  %v4667_v56 = vmul.f32 0.1, %v6862_v12 }
0x1bc3   :  { %v6866_v11 = vpop.eup %6865  ;;  %v4665_v36 = vmul.f32 0.1, %v6864_v27 }
0x1bc4   :  { %v6868_v19 = vpop.eup %6867  ;;  %v4664_v35 = vmul.f32 0.1, %v6866_v11  ;;  %v4672_v61 = vsub.f32 0.1, %v4667_v56 }
0x1bc5   :  { %v4666_v50 = vmul.f32 0.1, %v6868_v19  ;;  %v6870_v29 = vpop.eup %6869  ;;  %v4670_v1 = vsub.f32 0.1, %v4665_v36 }
0x1bc6   :  { %v4669_v21 = vsub.f32 0.1, %v4664_v35  ;;  %v4668_v49 = vmul.f32 0.1, %v6870_v29 }
0x1bc7   :  { %v4671_v13 = vsub.f32 0.1, %v4666_v50 }
0x1bc8   :  { %4676 = vperm.xlu0 %6649, %v4669_v21   ;;  %v4673_v39 = vsub.f32 0.1, %v4668_v49  ;;  %v6751_v49 = vld [vmem:[#allocation2 + $0x50] sm:$0xff]  }
0x1bc9   :  { %4686 = vperm.xlu1 %6650, %v4671_v13   ;;  %6561 = vmatprep.subr.bf16.mxu0 %v6751_v49 }
0x1bca   :  { %6562 = vmatpush3.bf16.msra.mxu0 %v6751_v49 }
0x1bcc   :  { %4691 = vperm.xlu0 %6649, %v4672_v61  }
0x1bcd   :  { %4681 = vperm.xlu1 %6650, %v4670_v1  }
0x1bd1   :  { %4696 = vperm.xlu1 %6650, %v4673_v39   ;;  %v6752_v39 = vld [vmem:[#allocation2 + $0x58] sm:$0xff]  }
0x1bd2   :  { %6563 = vmatprep.subr.bf16.mxu0 %v6752_v39 }
0x1bd3   :  { %6564 = vmatpush3.bf16.msra.mxu0 %v6752_v39 }
0x1c40   :  { %v6543_v28 = vpop.f32.mrb[48].mxu0 }
0x1c41   :  { %v4318_v16 = vadd.f32 %v6543_v28, %v7185_v22  ;;  %v4309_v63 = vpop.f32.mrb[49].mxu0 }
0x1c42   :  { %v4310_v42 = vadd.f32 %v4309_v63, %v7185_v22  ;;  %v6544_v24 = vpop.f32.mrb[50].mxu0 }
0x1c43   :  { %v4321_v3 = vadd.f32 %v6544_v24, %v7185_v22  ;;  %v4312_v43 = vpop.f32.mrb[51].mxu0  ;;  %v4326_v23 = vmax.f32 %v4318_v16, 0.0 }
0x1c44   :  { %v4313_v46 = vadd.f32 %v4312_v43, %v7185_v22  ;;  %v4324_v47 = vmax.f32 %v4310_v42, 0.0 }
0x1c45   :  { %v4327_v31 = vmax.f32 %v4321_v3, 0.0 }
0x1c46   :  { %v4325_v38 = vmax.f32 %v4313_v46, 0.0 }
0x1c47   :  { %v4329_v37 = vpack.c.bf16 %v4327_v31, %v4326_v23  ;;  %v4677_v57 = vpop.permute.xlu0 %4676 }
0x1c48   :  { %v4328_v51 = vpack.c.bf16 %v4325_v38, %v4324_v47  ;;  %v4687_v52 = vpop.permute.xlu1 %4686  ;;  %v4704_v55 = vmul.f32 %v4677_v57, %v8528_v53  ;;  %v4699_v2 = vmul.f32 %v4677_v57, %v8559_v7 }
0x1c49   :  { %v4706_v4 = vmul.f32 %v4687_v52, %v8542_v45  ;;  %v4701_v35 = vmul.f32 %v4687_v52, %v8567_v17 }
0x1c4a   :  { %6553 = vmatprep.mubr.msk.bf16.mxu1 %vm381_vm4, %v4328_v51  ;;  %v4709_v11 = vrot.slane %v4704_v55, 7 }
0x1c4b   :  { %6554 = vmatmul.mubr.msk.bf16.vlgmr.msra.gmra.mrb[48].mxu1 %vm381_vm4, %v4329_v37  ;;  %v8617_v8 = vpop.permute.xlu0 %4691  ;;  %v4711_v12 = vrot.slane %v4706_v4, 7 }
0x1c4c   :  { %v4682_v5 = vpop.permute.xlu1 %4681  ;;  %v8621_v30 = vmul.f32 %v8617_v8, %v8547_v34 }
0x1c4d   :  { %v4705_v33 = vmul.f32 %v4682_v5, %v8533_v59  ;;  %v4700_v0 = vmul.f32 %v4682_v5, %v8571_v9 }
0x1c4e   :  { %v4712_v27 = vrot.slane %v8621_v30, 7 }
0x1c4f   :  { %v4710_v19 = vrot.slane %v4705_v33, 7 }
0x1c50   :  { %v8631_v50 = vsel %vm856_vm10, %v4711_v12, %v4712_v27  ;;  %v8633_v21 = vpop.permute.xlu1 %4696 }
0x1c51   :  { %v4716_v56 = vsel %vm856_vm10, %v4710_v19, %v4711_v12  ;;  %v4717_v13 = vsel %vm856_vm10, %v4709_v11, %v4710_v19  ;;  %v8643_v17 = vmul.f32 %v8633_v21, %v8523_v58 }
0x1c52   :  { %v8639_v36 = vadd.f32 %v4717_v13, %v4700_v0  ;;  %v8645_v9 = vadd.f32 %v4716_v56, %v4701_v35 }
0x1c53   :  { %v4713_v29 = vrot.slane %v8643_v17, 7 }
0x1c55   :  { %v4718_v61 = vsel %vm856_vm10, %v4713_v29, %v4709_v11 }
0x1c56   :  { %v8653_v1 = vadd.f32 %v4718_v61, %v4699_v2 }
0x1d1e   :  { %v6555_v48 = vpop.f32.mrb[48].mxu1 }
0x1d1f   :  { %v4411_v20 = vadd.f32 %v6555_v48, %v7198_v62  ;;  %v4402_v28 = vpop.f32.mrb[49].mxu1 }
0x1d20   :  { %v4403_v16 = vadd.f32 %v4402_v28, %v7198_v62  ;;  %v6556_v7 = vpop.f32.mrb[50].mxu1 }
0x1d21   :  { %v4414_v63 = vadd.f32 %v6556_v7, %v7198_v62  ;;  %v4405_v42 = vpop.f32.mrb[51].mxu1  ;;  %v4419_v3 = vmax.f32 %v4411_v20, 0.0 }
0x1d22   :  { %v4406_v24 = vadd.f32 %v4405_v42, %v7198_v62  ;;  %v4417_v46 = vmax.f32 %v4403_v16, 0.0 }
0x1d23   :  { %v4420_v43 = vmax.f32 %v4414_v63, 0.0 }
0x1d24   :  { %v4418_v23 = vmax.f32 %v4406_v24, 0.0 }
0x1d25   :  { %v4422_v31 = vpack.c.bf16 %v4420_v43, %v4419_v3 }
0x1d26   :  { %v4421_v47 = vpack.c.bf16 %v4418_v23, %v4417_v46 }
0x1d28   :  { %6565 = vmatprep.mubr.msk.bf16.mxu0 %vm381_vm4, %v4421_v47 }
0x1d29   :  { %6566 = vmatmul.mubr.msk.bf16.vlgmr.msra.gmra.mrb[52].mxu0 %vm381_vm4, %v4422_v31 }
0x1dfc   :  { %v6567_v38 = vpop.f32.mrb[52].mxu0 }
0x1dfd   :  { %v4495_v37 = vpop.f32.mrb[53].mxu0  ;;  %v4504_v57 = vadd.f32 %v6567_v38, %v7210_v14 }
0x1dfe   :  { %v4496_v51 = vadd.f32 %v4495_v37, %v7210_v14  ;;  %v6568_v52 = vpop.f32.mrb[54].mxu0 }
0x1dff   :  { %v4498_v4 = vpop.f32.mrb[55].mxu0  ;;  %v4507_v5 = vadd.f32 %v6568_v52, %v7210_v14  ;;  %v4526_v12 = vmul.f32 %v4504_v57, %v4504_v57  ;;  %v4513_v56 = vsel %vm381_vm4, %v4504_v57, 0.0 }
0x1e00   :  { %v4524_v55 = vmul.f32 %v4496_v51, %v4496_v51  ;;  %v4499_v33 = vadd.f32 %v4498_v4, %v7210_v14  ;;  %v4510_v11 = vsel %vm381_vm4, %v4496_v51, 0.0 }
0x1e01   :  { %v4527_v2 = vmul.f32 %v4507_v5, %v4507_v5  ;;  %v4531_v48 = vsel %vm381_vm4, %v4526_v12, 0.0  ;;  %v4515_v20 = vsel %vm381_vm4, %v4507_v5, 0.0 }
0x1e02   :  { %v4511_v19 = vsel %vm381_vm4, %v4499_v33, 0.0  ;;  %v4525_v35 = vmul.f32 %v4499_v33, %v4499_v33  ;;  %v4528_v13 = vsel %vm381_vm4, %v4524_v55, 0.0 }
0x1e03   :  { %v4512_v0 = vadd.f32 %v4511_v19, %v4510_v11  ;;  %v4533_v7 = vsel %vm381_vm4, %v4527_v2, 0.0  ;;  %v4714_v2 = vsel %vm856_vm10, %v4712_v27, %v4713_v29  ;;  %v4728_v27 = vmul.f32 0.7, %v8523_v58 }
0x1e04   :  { %v4529_v61 = vsel %vm381_vm4, %v4525_v35, 0.0  ;;  %v4725_v29 = vmul.f32 0.7, %v8533_v59 }
0x1e05   :  { %v4514_v49 = vadd.f32 %v4513_v56, %v4512_v0  ;;  %v4530_v39 = vadd.f32 %v4529_v61, %v4528_v13 }
0x1e07   :  { %v4516_v28 = vadd.f32 %v4515_v20, %v4514_v49  ;;  %v4532_v16 = vadd.f32 %v4531_v48, %v4530_v39  ;;  %v4703_v39 = vmul.f32 %v8633_v21, %v8585_v44 }
0x1e09   :  { %v4517_v63 = vrot.slane %v4516_v28, 4  ;;  %v4534_v42 = vadd.f32 %v4533_v7, %v4532_v16  ;;  %v4702_v7 = vmul.f32 %v8617_v8, %v8581_v60  ;;  %v4727_v60 = vmul.f32 0.7, %v8547_v34  ;;  %v6753_v34 = vld [vmem:[#allocation2] sm:$0xff]  }
0x1e0a   :  { %6569 = vmatprep.subr.bf16.mxu1 %v6753_v34 }
0x1e0b   :  { %v4518_v24 = vadd.f32 %v4517_v63, %v4516_v28  ;;  %v4535_v3 = vrot.slane %v4534_v42, 4  ;;  %v4723_v63 = vadd.f32 %v4714_v2, %v4703_v39  ;;  %6570 = vmatpush3.bf16.msra.mxu1 %v6753_v34 }
0x1e0d   :  { %v4519_v43 = vrot.slane %v4518_v24, 2  ;;  %v4536_v46 = vadd.f32 %v4535_v3, %v4534_v42  ;;  %v4722_v42 = vadd.f32 %v8631_v50, %v4702_v7  ;;  %v4733_v21 = vadd.f32 %v4728_v27, %v4723_v63 }
0x1e0f   :  { %v4520_v23 = vadd.f32 %v4519_v43, %v4518_v24  ;;  %v4537_v31 = vrot.slane %v4536_v46, 2  ;;  %v4726_v24 = vmul.f32 0.7, %v8542_v45  ;;  %v4732_v50 = vadd.f32 %v4727_v60, %v4722_v42  ;;  %v6756_v43 = vld [vmem:[#allocation2 + $0x18] sm:$0xff]  }
0x1e11   :  { %v4521_v47 = vrot.slane %v4520_v23, 1  ;;  %v4538_v38 = vadd.f32 %v4537_v31, %v4536_v46  ;;  %v4724_v46 = vmul.f32 0.7, %v8528_v53 }
0x1e13   :  { %v4522_v37 = vadd.f32 %v4521_v47, %v4520_v23  ;;  %v4539_v52 = vrot.slane %v4538_v38, 1  ;;  %v4729_v23 = vadd.f32 %v4724_v46, %v8653_v1 }
0x1e15   :  { %v4523_v4 = vmul.f32 0.03125, %v4522_v37  ;;  %v4540_v55 = vadd.f32 %v4539_v52, %v4538_v38  ;;  %v4734_v31 = vadd.f32 %v4729_v23, %v7319_v32 }
0x1e17   :  { %v4541_v12 = vmul.f32 0.03125, %v4540_v55  ;;  %v4542_v11 = vmul.f32 %v4523_v4, %v4523_v4 }
0x1e19   :  { %v4543_v19 = vsub.f32 %v4541_v12, %v4542_v11 }
0x1e1b   :  { %v4544_v35 = vmax.f32 %v4543_v19, 0.0 }
0x1e1d   :  { %v4545_v0 = vadd.f32 1e-05, %v4544_v35 }
0x1e1f   :  { %6871 = vrsqrt.f32 %v4545_v0 }
0x1e29   :  { %v6872_v56 = vpop.eup %6871 }
0x1e2a   :  { %v4547_v13 = vmul.f32 %v8470_v6, %v6872_v56 }
0x1e2c   :  { %v4551_v61 = vrot.slane %v4547_v13, %v7267_v41  ;;  %v4556_v49 = vmul.f32 %v4547_v13, %v4523_v4 }
0x1e2e   :  { %v4553_v48 = vmul.f32 %v4551_v61, %v4499_v33  ;;  %v4558_v20 = vrot.slane %v4556_v49, 7  ;;  %v4552_v28 = vmul.f32 %v4551_v61, %v4496_v51  ;;  %v4554_v16 = vmul.f32 %v4551_v61, %v4504_v57 }
0x1e2f   :  { %v4555_v17 = vmul.f32 %v4551_v61, %v4507_v5  ;;  %v4730_v57 = vadd.f32 %v4725_v29, %v8639_v36  ;;  %v4731_v51 = vadd.f32 %v4726_v24, %v8645_v9  ;;  %v6754_v36 = vld [vmem:[#allocation2 + $0x8] sm:$0xff]   ;;  %v6755_v9 = vld [vmem:[#allocation2 + $0x10] sm:$0xff]  }
0x1e30   :  { %v4560_v30 = vsub.f32 %v8470_v6, %v4558_v20  ;;  %6571 = vmatprep.subr.bf16.mxu1 %v6754_v36 }
0x1e31   :  { %6572 = vmatpush3.bf16.msra.mxu1 %v6754_v36 }
0x1e32   :  { %v4564_v44 = vrot.slane %v4560_v30, %v7281_v54  ;;  %6573 = vmatprep.subr.bf16.mxu1 %v6755_v9 }
0x1e34   :  { %v4566_v8 = vadd.f32 %v4564_v44, %v4553_v48  ;;  %v4565_v5 = vadd.f32 %v4564_v44, %v4552_v28  ;;  %v4567_v6 = vadd.f32 %v4564_v44, %v4554_v16  ;;  %v4568_v33 = vadd.f32 %v4564_v44, %v4555_v17 }
0x1e35   :  { %6574 = vmatpush3.bf16.msra.mxu1 %v6755_v9 }
0x1e36   :  { %4736 = vrot.lane.b32.xlu0 %v4565_v5, %s6937_s1  ;;  %4747 = vrot.lane.b32.xlu1 %v4566_v8, %s6937_s1  ;;  %v4762_v58 = vadd.f32 %v4733_v21, %v4568_v33  ;;  %v4741_v59 = vadd.f32 %v4730_v57, %v4565_v5  ;;  %v4742_v45 = vadd.f32 %v4731_v51, %v4566_v8 }
0x1e37   :  { %v4743_v3 = vadd.f32 %v4732_v50, %v4567_v6  ;;  %6575 = vmatprep.subr.bf16.mxu1 %v6756_v43 }
0x1e38   :  { %4763 = vst.msk [vmem:[%s9134_s6 + $0x20] sm:$0xff] %vm132_vm1, %v4762_v58  ;;  %v6757_v58 = vld [vmem:[#allocation2 + $0x20] sm:$0xff]  }
0x1e39   :  { %6576 = vmatpush3.bf16.msra.mxu1 %v6756_v43  ;;  %6581 = vmatprep.subr.bf16.mxu0 %v6757_v58 }
0x1e3a   :  { %4749 = vrot.lane.b32.xlu0 %v4567_v6, %s6937_s1  ;;  %4751 = vrot.lane.b32.xlu1 %v4568_v33, %s6937_s1 }
0x1e3b   :  { %6582 = vmatpush3.bf16.msra.mxu0 %v6757_v58 }
0x1e3f   :  { %v8724_v12 = vld [vmem:[%s9134_s6 + $0x20] sm:$0xff] }
0x1e40   :  { %v4771_v35 = vpack.c.bf16 %v8724_v12, %v8724_v12  ;;  %v5124_v29 = vrot.slane %v8724_v12, 1 }
0x1e42   :  { %v4778_v49 = vrot.slane %v4771_v35, 4 }
0x1ea8   :  { %v4737_v47 = vpop.permute.xlu0 %4736  ;;  %v4748_v38 = vpop.permute.xlu1 %4747 }
0x1ea9   :  { %v4739_v37 = vadd.f32 %v4737_v47, %v4734_v31  ;;  %v4756_v52 = vadd.f32 %v4748_v38, %v4741_v59  ;;  %v6758_v59 = vld [vmem:[#allocation2 + $0x28] sm:$0xff]  }
0x1eaa   :  { %6583 = vmatprep.subr.bf16.mxu0 %v6758_v59 }
0x1eab   :  { %4740 = vst.msk [vmem:[%s9134_s6] sm:$0xff] %vm132_vm1, %v4739_v37  ;;  %4759 = vst.msk [vmem:[%s9134_s6 + $0x8] sm:$0xff] %vm132_vm1, %v4756_v52  ;;  %6584 = vmatpush3.bf16.msra.mxu0 %v6758_v59 }
0x1eac   :  { %v4750_v4 = vpop.permute.xlu0 %4749  ;;  %v4752_v53 = vpop.permute.xlu1 %4751 }
0x1ead   :  { %v4757_v55 = vadd.f32 %v4750_v4, %v4742_v45  ;;  %v4758_v1 = vadd.f32 %v4752_v53, %v4743_v3 }
0x1eaf   :  { %4760 = vst.msk [vmem:[%s9134_s6 + $0x10] sm:$0xff] %vm132_vm1, %v4757_v55  ;;  %4761 = vst.msk [vmem:[%s9134_s6 + $0x18] sm:$0xff] %vm132_vm1, %v4758_v1 }
0x1eb2   :  { %v8729_v11 = vld [vmem:[%s9134_s6] sm:$0xff]  ;;  %v8734_v19 = vld [vmem:[%s9134_s6 + $0x8] sm:$0xff] }
0x1eb3   :  { %v4769_v0 = vpack.c.bf16 %v8734_v19, %v8729_v11  ;;  %v5120_v28 = vrot.slane %v8729_v11, 1  ;;  %v5121_v16 = vrot.slane %v8734_v19, 1 }
0x1eb5   :  { %v4775_v39 = vrot.slane %v4769_v0, 4  ;;  %v8760_v7 = vsel %vm695_vm3, %v5120_v28, %v5121_v16  ;;  %v8786_v51 = vsel %vm695_vm3, %v5124_v29, %v5120_v28 }
0x1eb6   :  { %v8743_v56 = vld [vmem:[%s9134_s6 + $0x10] sm:$0xff]  ;;  %v8748_v13 = vld [vmem:[%s9134_s6 + $0x18] sm:$0xff]  ;;  %v5130_v30 = vmul.f32 %v8760_v7, %v8729_v11  ;;  %v5134_v6 = vmul.f32 %v8786_v51, %v8724_v12 }
0x1eb7   :  { %v4770_v2 = vpack.c.bf16 %v8748_v13, %v8743_v56  ;;  %v5122_v63 = vrot.slane %v8743_v56, 1  ;;  %v5123_v17 = vrot.slane %v8748_v13, 1 }
0x1eb8   :  { %v5135_v24 = vsel %vm132_vm1, %v5130_v30, 0.0  ;;  %v5147_v50 = vsel %vm132_vm1, %v5134_v6, 0.0 }
0x1eb9   :  { %v4776_v61 = vrot.slane %v4770_v2, 4  ;;  %v8768_v42 = vsel %vm695_vm3, %v5122_v63, %v5123_v17  ;;  %v8772_v27 = vsel %vm695_vm3, %v5121_v16, %v5122_v63  ;;  %v8782_v57 = vsel %vm695_vm3, %v5123_v17, %v5124_v29 }
0x1eba   :  { %v5132_v44 = vmul.f32 %v8768_v42, %v8743_v56  ;;  %v5131_v21 = vmul.f32 %v8772_v27, %v8734_v19  ;;  %v5133_v8 = vmul.f32 %v8782_v57, %v8748_v13 }
0x1ebb   :  { %v4779_v48 = vsel %vm329_vm2, %v4776_v61, %v4778_v49  ;;  %v4777_v20 = vsel %vm329_vm2, %v4775_v39, %v4776_v61 }
0x1ebc   :  { %4782 = vrot.lane.b32.xlu1 %v4779_v48, %s6935_s21  ;;  %4780 = vrot.lane.b32.xlu0 %v4777_v20, %s6935_s21  ;;  %v5141_v60 = vsel %vm132_vm1, %v5132_v44, 0.0  ;;  %v5138_v5 = vsel %vm132_vm1, %v5131_v21, 0.0  ;;  %v5144_v33 = vsel %vm132_vm1, %v5133_v8, 0.0 }
0x1edb   :  { %5136 = vadd.xlane.f32.xlu0 %v5135_v24 }
0x1edf   :  { %5142 = vadd.xlane.f32.xlu0 %v5141_v60 }
0x1ee0   :  { %5139 = vadd.xlane.f32.xlu1 %v5138_v5 }
0x1ee3   :  { %5145 = vadd.xlane.f32.xlu0 %v5144_v33 }
0x1ee4   :  { %5148 = vadd.xlane.f32.xlu1 %v5147_v50 }
0x1f2e   :  { %v4783_v45 = vpop.permute.xlu1 %4782  ;;  %v4781_v3 = vpop.permute.xlu0 %4780 }
0x1f2f   :  { %v4789_v34 = vsel %vm132_vm1, %v4770_v2, %v4783_v45  ;;  %v4786_v36 = vsel %vm132_vm1, %v4769_v0, %v4781_v3 }
0x1f30   :  { %6577 = vmatprep.mubr.msk.bf16.mxu1 %vm381_vm4, %v4786_v36 }
0x1f31   :  { %6578 = vmatmul.mubr.msk.bf16.vlgmr.msra.gmra.mrb[52].mxu1 %vm381_vm4, %v4789_v34  ;;  %v6759_v34 = vld [vmem:[#allocation2 + $0x30] sm:$0xff]  }
0x1f32   :  { %6585 = vmatprep.subr.bf16.mxu0 %v6759_v34 }
0x1f33   :  { %6586 = vmatpush3.bf16.msra.mxu0 %v6759_v34 }
0x1f68   :  { %v5137_v9 = vpop.xlane.xlu0 %5136 }
0x1f69   :  { %v5150_v43 = vmax.f32 %v5137_v9, 0.0 }
0x1f6b   :  { %v5155_v37 = vsel %vm7131_vm5, %v5150_v43, 0.0 }
0x1f6c   :  { %v5143_v46 = vpop.xlane.xlu0 %5142 }
0x1f6d   :  { %v5152_v23 = vmax.f32 %v5143_v46, 0.0  ;;  %v5140_v31 = vpop.xlane.xlu1 %5139 }
0x1f6e   :  { %v5151_v47 = vmax.f32 %v5140_v31, 0.0 }
0x1f6f   :  { %v5157_v38 = vsel %vm7139_vm7, %v5152_v23, 0.0 }
0x1f70   :  { %v5156_v52 = vsel %vm7135_vm6, %v5151_v47, 0.0  ;;  %v5146_v4 = vpop.xlane.xlu0 %5145  ;;  %v6760_v47 = vld [vmem:[#allocation2 + $0x38] sm:$0xff]  }
0x1f71   :  { %v5165_v53 = vadd.f32 %v5156_v52, %v5155_v37  ;;  %v5166_v55 = vadd.f32 %v5157_v38, %v5156_v52  ;;  %v5153_v1 = vmax.f32 %v5146_v4, 0.0  ;;  %v5149_v35 = vpop.xlane.xlu1 %5148  ;;  %6587 = vmatprep.subr.bf16.mxu0 %v6760_v47 }
0x1f72   :  { %v5154_v0 = vmax.f32 %v5149_v35, 0.0  ;;  %6588 = vmatpush3.bf16.msra.mxu0 %v6760_v47 }
0x1f73   :  { %v5175_v2 = vadd.f32 %v5165_v53, %v5157_v38  ;;  %v5158_v61 = vsel %vm7150_vm8, %v5153_v1, 0.0  ;;  %v6761_v53 = vld [vmem:[#allocation2 + $0x40] sm:$0xff]  }
0x1f74   :  { %v5167_v49 = vadd.f32 %v5158_v61, %v5157_v38  ;;  %v5176_v39 = vadd.f32 %v5166_v55, %v5158_v61  ;;  %v5159_v48 = vsel %vm7161_vm9, %v5154_v0, 0.0  ;;  %v6762_v55 = vld [vmem:[#allocation2 + $0x48] sm:$0xff]   ;;  %6593 = vmatprep.subr.bf16.mxu1 %v6761_v53 }
0x1f75   :  { %v5185_v20 = vadd.f32 %v5175_v2, %v5158_v61  ;;  %v5168_v28 = vadd.f32 %v5159_v48, %v5158_v61  ;;  %v5204_v60 = vsub.f32 0.0, %v5159_v48  ;;  %6594 = vmatpush3.bf16.msra.mxu1 %v6761_v53 }
0x1f76   :  { %v5177_v16 = vadd.f32 %v5167_v49, %v5159_v48  ;;  %v5186_v63 = vadd.f32 %v5176_v39, %v5159_v48  ;;  %6595 = vmatprep.subr.bf16.mxu1 %v6762_v55 }
0x1f77   :  { %v5195_v17 = vadd.f32 %v5185_v20, %v5159_v48  ;;  %v5203_v30 = vsub.f32 0.0, %v5168_v28  ;;  %v5213_v33 = vmul.f32 1.442695, %v5204_v60 }
0x1f78   :  { %v5201_v29 = vsub.f32 0.0, %v5186_v63  ;;  %v5202_v24 = vsub.f32 0.0, %v5177_v16 }
0x1f79   :  { %v5200_v44 = vsub.f32 0.0, %v5195_v17  ;;  %v5211_v21 = vmul.f32 1.442695, %v5203_v30  ;;  %6596 = vmatpush3.bf16.msra.mxu1 %v6762_v55 }
0x1f7a   :  { %v5207_v8 = vmul.f32 1.442695, %v5201_v29  ;;  %v5209_v5 = vmul.f32 1.442695, %v5202_v24 }
0x1f7b   :  { %v5205_v6 = vmul.f32 1.442695, %v5200_v44  ;;  %6873 = vpow2.f32 %v5211_v21 }
0x1f7c   :  { %6875 = vpow2.f32 %v5207_v8 }
0x1f7d   :  { %6877 = vpow2.f32 %v5205_v6 }
0x1f7e   :  { %6879 = vpow2.f32 %v5209_v5 }
0x1f7f   :  { %6881 = vpow2.f32 %v5213_v33 }
0x1f85   :  { %v6874_v50 = vpop.eup %6873 }
0x1f86   :  { %v6876_v58 = vpop.eup %6875  ;;  %v5218_v43 = vmul.f32 0.1, %v6874_v50 }
0x1f87   :  { %v6878_v59 = vpop.eup %6877  ;;  %v5216_v23 = vmul.f32 0.1, %v6876_v58 }
0x1f88   :  { %v6880_v45 = vpop.eup %6879  ;;  %v5215_v3 = vmul.f32 0.1, %v6878_v59  ;;  %v5223_v38 = vsub.f32 0.1, %v5218_v43 }
0x1f89   :  { %v5217_v36 = vmul.f32 0.1, %v6880_v45  ;;  %v6882_v31 = vpop.eup %6881  ;;  %v5221_v37 = vsub.f32 0.1, %v5216_v23 }
0x1f8a   :  { %v5220_v9 = vsub.f32 0.1, %v5215_v3  ;;  %v5219_v52 = vmul.f32 0.1, %v6882_v31 }
0x1f8b   :  { %v5222_v46 = vsub.f32 0.1, %v5217_v36 }
0x1f8c   :  { %5227 = vperm.xlu0 %6649, %v5220_v9   ;;  %v5224_v4 = vsub.f32 0.1, %v5219_v52  ;;  %v6764_v52 = vld [vmem:[#allocation2 + $0x58] sm:$0xff]  }
0x1f8d   :  { %5237 = vperm.xlu1 %6650, %v5222_v46  }
0x1f90   :  { %5242 = vperm.xlu0 %6649, %v5223_v38  }
0x1f91   :  { %5232 = vperm.xlu1 %6650, %v5221_v37   ;;  %v6763_v37 = vld [vmem:[#allocation2 + $0x50] sm:$0xff]  }
0x1f92   :  { %6597 = vmatprep.subr.bf16.mxu1 %v6763_v37 }
0x1f93   :  { %6598 = vmatpush3.bf16.msra.mxu1 %v6763_v37 }
0x1f94   :  { %6599 = vmatprep.subr.bf16.mxu1 %v6764_v52 }
0x1f95   :  { %5247 = vperm.xlu1 %6650, %v5224_v4  }
0x1f97   :  { %6600 = vmatpush3.bf16.msra.mxu1 %v6764_v52 }
0x2004   :  { %v6579_v1 = vpop.f32.mrb[52].mxu1 }
0x2005   :  { %v4869_v35 = vadd.f32 %v6579_v1, %v7185_v22  ;;  %v4860_v0 = vpop.f32.mrb[53].mxu1 }
0x2006   :  { %v4861_v2 = vadd.f32 %v4860_v0, %v7185_v22  ;;  %v6580_v61 = vpop.f32.mrb[54].mxu1 }
0x2007   :  { %v4872_v49 = vadd.f32 %v6580_v61, %v7185_v22  ;;  %v4863_v39 = vpop.f32.mrb[55].mxu1  ;;  %v4877_v20 = vmax.f32 %v4869_v35, 0.0 }
0x2008   :  { %v4864_v48 = vadd.f32 %v4863_v39, %v7185_v22  ;;  %v4875_v16 = vmax.f32 %v4861_v2, 0.0 }
0x2009   :  { %v4878_v28 = vmax.f32 %v4872_v49, 0.0 }
0x200a   :  { %v4876_v63 = vmax.f32 %v4864_v48, 0.0 }
0x200b   :  { %v4880_v17 = vpack.c.bf16 %v4878_v28, %v4877_v20  ;;  %v5228_v30 = vpop.permute.xlu0 %5227 }
0x200c   :  { %v4879_v29 = vpack.c.bf16 %v4876_v63, %v4875_v16  ;;  %v5238_v24 = vpop.permute.xlu1 %5237  ;;  %v5255_v21 = vmul.f32 %v5228_v30, %v8729_v11  ;;  %v5250_v31 = vmul.f32 %v5228_v30, %v8760_v7 }
0x200d   :  { %v5257_v44 = vmul.f32 %v5238_v24, %v8743_v56  ;;  %v5252_v45 = vmul.f32 %v5238_v24, %v8768_v42 }
0x200e   :  { %6589 = vmatprep.mubr.msk.bf16.mxu0 %vm381_vm4, %v4879_v29  ;;  %v5260_v58 = vrot.slane %v5255_v21, 7 }
0x200f   :  { %6590 = vmatmul.mubr.msk.bf16.vlgmr.msra.gmra.mrb[56].mxu0 %vm381_vm4, %v4880_v17  ;;  %v8818_v60 = vpop.permute.xlu0 %5242  ;;  %v5262_v33 = vrot.slane %v5257_v44, 7 }
0x2010   :  { %v5233_v8 = vpop.permute.xlu1 %5232  ;;  %v8822_v5 = vmul.f32 %v8818_v60, %v8748_v13 }
0x2011   :  { %v5256_v6 = vmul.f32 %v5233_v8, %v8734_v19  ;;  %v5251_v3 = vmul.f32 %v5233_v8, %v8772_v27 }
0x2012   :  { %v5263_v50 = vrot.slane %v8822_v5, 7 }
0x2013   :  { %v5261_v59 = vrot.slane %v5256_v6, 7 }
0x2014   :  { %v8832_v34 = vsel %vm856_vm10, %v5262_v33, %v5263_v50  ;;  %v8834_v36 = vpop.permute.xlu1 %5247 }
0x2015   :  { %v5267_v9 = vsel %vm856_vm10, %v5261_v59, %v5262_v33  ;;  %v5268_v43 = vsel %vm856_vm10, %v5260_v58, %v5261_v59  ;;  %v8844_v42 = vmul.f32 %v8834_v36, %v8724_v12 }
0x2016   :  { %v8840_v46 = vadd.f32 %v5268_v43, %v5251_v3  ;;  %v8846_v27 = vadd.f32 %v5267_v9, %v5252_v45 }
0x2017   :  { %v5264_v23 = vrot.slane %v8844_v42, 7 }
0x2019   :  { %v5269_v47 = vsel %vm856_vm10, %v5264_v23, %v5260_v58 }
0x201a   :  { %v8854_v38 = vadd.f32 %v5269_v47, %v5250_v31 }
0x20e2   :  { %v6591_v4 = vpop.f32.mrb[56].mxu0 }
0x20e3   :  { %v4962_v53 = vadd.f32 %v6591_v4, %v7198_v62  ;;  %v4953_v55 = vpop.f32.mrb[57].mxu0 }
0x20e4   :  { %v4954_v1 = vadd.f32 %v4953_v55, %v7198_v62  ;;  %v6592_v7 = vpop.f32.mrb[58].mxu0 }
0x20e5   :  { %v4965_v35 = vadd.f32 %v6592_v7, %v7198_v62  ;;  %v4956_v0 = vpop.f32.mrb[59].mxu0  ;;  %v4970_v61 = vmax.f32 %v4962_v53, 0.0 }
0x20e6   :  { %v4957_v2 = vadd.f32 %v4956_v0, %v7198_v62  ;;  %v4968_v39 = vmax.f32 %v4954_v1, 0.0 }
0x20e7   :  { %v4971_v49 = vmax.f32 %v4965_v35, 0.0 }
0x20e8   :  { %v4969_v48 = vmax.f32 %v4957_v2, 0.0 }
0x20e9   :  { %v4973_v20 = vpack.c.bf16 %v4971_v49, %v4970_v61 }
0x20ea   :  { %v4972_v28 = vpack.c.bf16 %v4969_v48, %v4968_v39 }
0x20ec   :  { %6601 = vmatprep.mubr.msk.bf16.mxu1 %vm381_vm4, %v4972_v28 }
0x20ed   :  { %6602 = vmatmul.mubr.msk.bf16.vlgmr.msra.gmra.mrb[56].mxu1 %vm381_vm4, %v4973_v20 }
0x21c0   :  { %v6603_v16 = vpop.f32.mrb[56].mxu1 }
0x21c1   :  { %v5046_v63 = vpop.f32.mrb[57].mxu1  ;;  %v5055_v17 = vadd.f32 %v6603_v16, %v7210_v14 }
0x21c2   :  { %v5047_v30 = vadd.f32 %v5046_v63, %v7210_v14  ;;  %v6604_v29 = vpop.f32.mrb[58].mxu1 }
0x21c3   :  { %v5049_v24 = vpop.f32.mrb[59].mxu1  ;;  %v5058_v21 = vadd.f32 %v6604_v29, %v7210_v14  ;;  %v5077_v6 = vmul.f32 %v5055_v17, %v5055_v17  ;;  %v5064_v3 = vsel %vm381_vm4, %v5055_v17, 0.0 }
0x21c4   :  { %v5075_v44 = vmul.f32 %v5047_v30, %v5047_v30  ;;  %v5050_v8 = vadd.f32 %v5049_v24, %v7210_v14  ;;  %v5061_v33 = vsel %vm381_vm4, %v5047_v30, 0.0 }
0x21c5   :  { %v5078_v43 = vmul.f32 %v5058_v21, %v5058_v21  ;;  %v5082_v52 = vsel %vm381_vm4, %v5077_v6, 0.0  ;;  %v5066_v4 = vsel %vm381_vm4, %v5058_v21, 0.0 }
0x21c6   :  { %v5062_v58 = vsel %vm381_vm4, %v5050_v8, 0.0  ;;  %v5076_v59 = vmul.f32 %v5050_v8, %v5050_v8  ;;  %v5079_v9 = vsel %vm381_vm4, %v5075_v44, 0.0 }
0x21c7   :  { %v5063_v45 = vadd.f32 %v5062_v58, %v5061_v33  ;;  %v5084_v1 = vsel %vm381_vm4, %v5078_v43, 0.0  ;;  %v5265_v43 = vsel %vm856_vm10, %v5263_v50, %v5264_v23  ;;  %v5279_v50 = vmul.f32 0.7, %v8724_v12 }
0x21c8   :  { %v5080_v31 = vsel %vm381_vm4, %v5076_v59, 0.0  ;;  %v5276_v23 = vmul.f32 0.7, %v8734_v19 }
0x21c9   :  { %v5065_v47 = vadd.f32 %v5064_v3, %v5063_v45  ;;  %v5081_v37 = vadd.f32 %v5080_v31, %v5079_v9  ;;  %v8877_v3 = vld [vmem:[%s9133_s5] sm:$0x1f] }
0x21cb   :  { %v5067_v53 = vadd.f32 %v5066_v4, %v5065_v47  ;;  %v5083_v55 = vadd.f32 %v5082_v52, %v5081_v37  ;;  %v5254_v37 = vmul.f32 %v8834_v36, %v8786_v51 }
0x21cd   :  { %v5068_v7 = vrot.slane %v5067_v53, 4  ;;  %v5085_v35 = vadd.f32 %v5084_v1, %v5083_v55  ;;  %v5253_v1 = vmul.f32 %v8818_v60, %v8782_v57  ;;  %v5278_v57 = vmul.f32 0.7, %v8748_v13  ;;  %v6765_v13 = vld [vmem:[#allocation2] sm:$0xff]  }
0x21ce   :  { %6605 = vmatprep.subr.bf16.mxu0 %v6765_v13 }
0x21cf   :  { %v5069_v0 = vadd.f32 %v5068_v7, %v5067_v53  ;;  %v5086_v2 = vrot.slane %v5085_v35, 4  ;;  %v5274_v7 = vadd.f32 %v5265_v43, %v5254_v37  ;;  %6606 = vmatpush3.bf16.msra.mxu0 %v6765_v13 }
0x21d1   :  { %v5070_v61 = vrot.slane %v5069_v0, 2  ;;  %v5087_v49 = vadd.f32 %v5086_v2, %v5085_v35  ;;  %v5273_v35 = vadd.f32 %v8832_v34, %v5253_v1  ;;  %v5284_v36 = vadd.f32 %v5279_v50, %v5274_v7 }
0x21d3   :  { %v5071_v39 = vadd.f32 %v5070_v61, %v5069_v0  ;;  %v5088_v48 = vrot.slane %v5087_v49, 2  ;;  %v5277_v0 = vmul.f32 0.7, %v8743_v56  ;;  %v5283_v34 = vadd.f32 %v5278_v57, %v5273_v35 }
0x21d5   :  { %v5072_v20 = vrot.slane %v5071_v39, 1  ;;  %v5089_v28 = vadd.f32 %v5088_v48, %v5087_v49  ;;  %v6768_v49 = vld [vmem:[#allocation2 + $0x18] sm:$0xff]  }
0x21d7   :  { %v5073_v16 = vadd.f32 %v5072_v20, %v5071_v39  ;;  %v5090_v63 = vrot.slane %v5089_v28, 1  ;;  %v5275_v39 = vmul.f32 0.7, %v8729_v11 }
0x21d9   :  { %v5074_v29 = vmul.f32 0.03125, %v5073_v16  ;;  %v5091_v24 = vadd.f32 %v5090_v63, %v5089_v28  ;;  %v5280_v48 = vadd.f32 %v5275_v39, %v8854_v38 }
0x21db   :  { %v5092_v44 = vmul.f32 0.03125, %v5091_v24  ;;  %v5093_v6 = vmul.f32 %v5074_v29, %v5074_v29  ;;  %v5285_v20 = vadd.f32 %v5280_v48, %v7319_v32 }
0x21dd   :  { %v5094_v33 = vsub.f32 %v5092_v44, %v5093_v6 }
0x21df   :  { %v5095_v58 = vmax.f32 %v5094_v33, 0.0 }
0x21e1   :  { %v5096_v59 = vadd.f32 1e-05, %v5095_v58 }
0x21e3   :  { %6883 = vrsqrt.f32 %v5096_v59 }
0x21ed   :  { %v6884_v45 = vpop.eup %6883 }
0x21ee   :  { %v5098_v9 = vmul.f32 %v8877_v3, %v6884_v45 }
0x21f0   :  { %v5102_v31 = vrot.slane %v5098_v9, %v7267_v41  ;;  %v5107_v47 = vmul.f32 %v5098_v9, %v5074_v29 }
0x21f2   :  { %v5104_v52 = vmul.f32 %v5102_v31, %v5050_v8  ;;  %v5109_v4 = vrot.slane %v5107_v47, 7  ;;  %v5103_v53 = vmul.f32 %v5102_v31, %v5047_v30  ;;  %v5105_v55 = vmul.f32 %v5102_v31, %v5055_v17 }
0x21f3   :  { %v5106_v42 = vmul.f32 %v5102_v31, %v5058_v21  ;;  %v5281_v17 = vadd.f32 %v5276_v23, %v8840_v46  ;;  %v5282_v30 = vadd.f32 %v5277_v0, %v8846_v27  ;;  %v6766_v46 = vld [vmem:[#allocation2 + $0x8] sm:$0xff]   ;;  %v6767_v27 = vld [vmem:[#allocation2 + $0x10] sm:$0xff]  }
0x21f4   :  { %v5111_v5 = vsub.f32 %v8877_v3, %v5109_v4  ;;  %6607 = vmatprep.subr.bf16.mxu0 %v6766_v46 }
0x21f5   :  { %6608 = vmatpush3.bf16.msra.mxu0 %v6766_v46 }
0x21f6   :  { %v5115_v51 = vrot.slane %v5111_v5, %v7281_v54  ;;  %6609 = vmatprep.subr.bf16.mxu0 %v6767_v27 }
0x21f8   :  { %v5117_v60 = vadd.f32 %v5115_v51, %v5104_v52  ;;  %v5116_v21 = vadd.f32 %v5115_v51, %v5103_v53  ;;  %v5118_v8 = vadd.f32 %v5115_v51, %v5105_v55  ;;  %v5119_v2 = vadd.f32 %v5115_v51, %v5106_v42 }
0x21f9   :  { %6610 = vmatpush3.bf16.msra.mxu0 %v6767_v27 }
0x21fa   :  { %5287 = vrot.lane.b32.xlu0 %v5116_v21, %s6937_s1  ;;  %5298 = vrot.lane.b32.xlu1 %v5117_v60, %s6937_s1  ;;  %v5313_v12 = vadd.f32 %v5284_v36, %v5119_v2  ;;  %v5292_v19 = vadd.f32 %v5281_v17, %v5116_v21  ;;  %v5293_v56 = vadd.f32 %v5282_v30, %v5117_v60 }
0x21fb   :  { %v5294_v61 = vadd.f32 %v5283_v34, %v5118_v8  ;;  %6611 = vmatprep.subr.bf16.mxu0 %v6768_v49 }
0x21fc   :  { %5314 = vst.msk [vmem:[%s9134_s6 + $0x20] sm:$0xff] %vm132_vm1, %v5313_v12 }
0x21fd   :  { %6612 = vmatpush3.bf16.msra.mxu0 %v6768_v49 }
0x21fe   :  { %5300 = vrot.lane.b32.xlu0 %v5118_v8, %s6937_s1  ;;  %5302 = vrot.lane.b32.xlu1 %v5119_v2, %s6937_s1 }
0x2203   :  { %v8930_v6 = vld [vmem:[%s9134_s6 + $0x20] sm:$0xff] }
0x2204   :  { %v5322_v59 = vpack.c.bf16 %v8930_v6, %v8930_v6  ;;  %v5675_v0 = vrot.slane %v8930_v6, 1 }
0x2206   :  { %v5329_v37 = vrot.slane %v5322_v59, 4 }
0x226c   :  { %v5288_v28 = vpop.permute.xlu0 %5287  ;;  %v5299_v16 = vpop.permute.xlu1 %5298 }
0x226d   :  { %v5290_v63 = vadd.f32 %v5288_v28, %v5285_v20  ;;  %v5307_v29 = vadd.f32 %v5299_v16, %v5292_v19  ;;  %v6769_v19 = vld [vmem:[#allocation2 + $0x20] sm:$0xff]  }
0x226e   :  { %6617 = vmatprep.subr.bf16.mxu1 %v6769_v19 }
0x226f   :  { %5291 = vst.msk [vmem:[%s9134_s6] sm:$0xff] %vm132_vm1, %v5290_v63  ;;  %5310 = vst.msk [vmem:[%s9134_s6 + $0x8] sm:$0xff] %vm132_vm1, %v5307_v29  ;;  %6618 = vmatpush3.bf16.msra.mxu1 %v6769_v19  ;;  %v6771_v19 = vld [vmem:[#allocation2 + $0x30] sm:$0xff]  }
0x2270   :  { %v5301_v24 = vpop.permute.xlu0 %5300  ;;  %v5303_v11 = vpop.permute.xlu1 %5302 }
0x2271   :  { %v5308_v44 = vadd.f32 %v5301_v24, %v5293_v56  ;;  %v5309_v38 = vadd.f32 %v5303_v11, %v5294_v61  ;;  %v6770_v56 = vld [vmem:[#allocation2 + $0x28] sm:$0xff]  }
0x2272   :  { %6619 = vmatprep.subr.bf16.mxu1 %v6770_v56 }
0x2273   :  { %5311 = vst.msk [vmem:[%s9134_s6 + $0x10] sm:$0xff] %vm132_vm1, %v5308_v44  ;;  %5312 = vst.msk [vmem:[%s9134_s6 + $0x18] sm:$0xff] %vm132_vm1, %v5309_v38  ;;  %6620 = vmatpush3.bf16.msra.mxu1 %v6770_v56 }
0x2274   :  { %6621 = vmatprep.subr.bf16.mxu1 %v6771_v19 }
0x2276   :  { %v8935_v33 = vld [vmem:[%s9134_s6] sm:$0xff]  ;;  %v8940_v58 = vld [vmem:[%s9134_s6 + $0x8] sm:$0xff] }
0x2277   :  { %v5320_v45 = vpack.c.bf16 %v8940_v58, %v8935_v33  ;;  %v5671_v55 = vrot.slane %v8935_v33, 1  ;;  %v5672_v1 = vrot.slane %v8940_v58, 1  ;;  %6622 = vmatpush3.bf16.msra.mxu1 %v6771_v19 }
0x2279   :  { %v5326_v52 = vrot.slane %v5320_v45, 4  ;;  %v8966_v7 = vsel %vm695_vm3, %v5671_v55, %v5672_v1  ;;  %v8992_v57 = vsel %vm695_vm3, %v5675_v0, %v5671_v55 }
0x227a   :  { %v8949_v9 = vld [vmem:[%s9134_s6 + $0x10] sm:$0xff]  ;;  %v8954_v43 = vld [vmem:[%s9134_s6 + $0x18] sm:$0xff]  ;;  %v5681_v35 = vmul.f32 %v8966_v7, %v8935_v33  ;;  %v5685_v2 = vmul.f32 %v8992_v57, %v8930_v6 }
0x227b   :  { %v5321_v31 = vpack.c.bf16 %v8954_v43, %v8949_v9  ;;  %v5673_v42 = vrot.slane %v8949_v9, 1  ;;  %v5674_v5 = vrot.slane %v8954_v43, 1 }
0x227c   :  { %v5686_v51 = vsel %vm132_vm1, %v5681_v35, 0.0  ;;  %v5698_v12 = vsel %vm132_vm1, %v5685_v2, 0.0 }
0x227d   :  { %v5327_v47 = vrot.slane %v5321_v31, 4  ;;  %v8974_v50 = vsel %vm695_vm3, %v5673_v42, %v5674_v5  ;;  %v8978_v23 = vsel %vm695_vm3, %v5672_v1, %v5673_v42  ;;  %v8988_v30 = vsel %vm695_vm3, %v5674_v5, %v5675_v0 }
0x227e   :  { %v5683_v36 = vmul.f32 %v8974_v50, %v8949_v9  ;;  %v5682_v17 = vmul.f32 %v8978_v23, %v8940_v58  ;;  %v5684_v21 = vmul.f32 %v8988_v30, %v8954_v43 }
0x227f   :  { %v5330_v4 = vsel %vm329_vm2, %v5327_v47, %v5329_v37  ;;  %v5328_v53 = vsel %vm329_vm2, %v5326_v52, %v5327_v47 }
0x2280   :  { %5333 = vrot.lane.b32.xlu1 %v5330_v4, %s6935_s21  ;;  %5331 = vrot.lane.b32.xlu0 %v5328_v53, %s6935_s21  ;;  %v5692_v60 = vsel %vm132_vm1, %v5683_v36, 0.0  ;;  %v5689_v8 = vsel %vm132_vm1, %v5682_v17, 0.0  ;;  %v5695_v34 = vsel %vm132_vm1, %v5684_v21, 0.0 }
0x229f   :  { %5687 = vadd.xlane.f32.xlu0 %v5686_v51 }
0x22a3   :  { %5693 = vadd.xlane.f32.xlu0 %v5692_v60 }
0x22a4   :  { %5690 = vadd.xlane.f32.xlu1 %v5689_v8 }
0x22a7   :  { %5696 = vadd.xlane.f32.xlu0 %v5695_v34 }
0x22a8   :  { %5699 = vadd.xlane.f32.xlu1 %v5698_v12 }
0x22f2   :  { %v5334_v61 = vpop.permute.xlu1 %5333  ;;  %v5332_v13 = vpop.permute.xlu0 %5331 }
0x22f3   :  { %v5340_v46 = vsel %vm132_vm1, %v5321_v31, %v5334_v61  ;;  %v5337_v27 = vsel %vm132_vm1, %v5320_v45, %v5332_v13 }
0x22f4   :  { %6613 = vmatprep.mubr.msk.bf16.mxu0 %vm381_vm4, %v5337_v27 }
0x22f5   :  { %6614 = vmatmul.mubr.msk.bf16.vlgmr.msra.gmra.mrb[60].mxu0 %vm381_vm4, %v5340_v46 }
0x232c   :  { %v5688_v49 = vpop.xlane.xlu0 %5687 }
0x232d   :  { %v5701_v39 = vmax.f32 %v5688_v49, 0.0 }
0x232f   :  { %v5706_v29 = vsel %vm7131_vm5, %v5701_v39, 0.0  ;;  %v6772_v39 = vld [vmem:[#allocation2 + $0x38] sm:$0xff]  }
0x2330   :  { %v5694_v48 = vpop.xlane.xlu0 %5693  ;;  %6623 = vmatprep.subr.bf16.mxu1 %v6772_v39 }
0x2331   :  { %v5703_v20 = vmax.f32 %v5694_v48, 0.0  ;;  %v5691_v28 = vpop.xlane.xlu1 %5690  ;;  %6624 = vmatpush3.bf16.msra.mxu1 %v6772_v39 }
0x2332   :  { %v5702_v16 = vmax.f32 %v5691_v28, 0.0 }
0x2333   :  { %v5708_v63 = vsel %vm7139_vm7, %v5703_v20, 0.0 }
0x2334   :  { %v5707_v24 = vsel %vm7135_vm6, %v5702_v16, 0.0  ;;  %v5697_v11 = vpop.xlane.xlu0 %5696 }
0x2335   :  { %v5716_v44 = vadd.f32 %v5707_v24, %v5706_v29  ;;  %v5717_v38 = vadd.f32 %v5708_v63, %v5707_v24  ;;  %v5704_v59 = vmax.f32 %v5697_v11, 0.0  ;;  %v5700_v45 = vpop.xlane.xlu1 %5699  ;;  %v6774_v29 = vld [vmem:[#allocation2 + $0x48] sm:$0xff]  }
0x2336   :  { %v5705_v31 = vmax.f32 %v5700_v45, 0.0 }
0x2337   :  { %v5726_v47 = vadd.f32 %v5716_v44, %v5708_v63  ;;  %v5709_v37 = vsel %vm7150_vm8, %v5704_v59, 0.0 }
0x2338   :  { %v5718_v52 = vadd.f32 %v5709_v37, %v5708_v63  ;;  %v5727_v4 = vadd.f32 %v5717_v38, %v5709_v37  ;;  %v5710_v18 = vsel %vm7161_vm9, %v5705_v31, 0.0  ;;  %v6773_v63 = vld [vmem:[#allocation2 + $0x40] sm:$0xff]  }
0x2339   :  { %v5736_v10 = vadd.f32 %v5726_v47, %v5709_v37  ;;  %v5719_v53 = vadd.f32 %v5710_v18, %v5709_v37  ;;  %v5755_v36 = vsub.f32 0.0, %v5710_v18  ;;  %6629 = vmatprep.subr.bf16.mxu0 %v6773_v63 }
0x233a   :  { %v5728_v55 = vadd.f32 %v5718_v52, %v5710_v18  ;;  %v5737_v15 = vadd.f32 %v5727_v4, %v5710_v18  ;;  %6630 = vmatpush3.bf16.msra.mxu0 %v6773_v63 }
0x233b   :  { %v5746_v1 = vadd.f32 %v5736_v10, %v5710_v18  ;;  %v5754_v42 = vsub.f32 0.0, %v5719_v53  ;;  %v5764_v40 = vmul.f32 1.442695, %v5755_v36  ;;  %6631 = vmatprep.subr.bf16.mxu0 %v6774_v29 }
0x233c   :  { %v5752_v5 = vsub.f32 0.0, %v5737_v15  ;;  %v5753_v35 = vsub.f32 0.0, %v5728_v55 }
0x233d   :  { %v5751_v0 = vsub.f32 0.0, %v5746_v1  ;;  %v5762_v51 = vmul.f32 1.442695, %v5754_v42 }
0x233e   :  { %v5758_v17 = vmul.f32 1.442695, %v5752_v5  ;;  %v5760_v60 = vmul.f32 1.442695, %v5753_v35  ;;  %6632 = vmatpush3.bf16.msra.mxu0 %v6774_v29 }
0x233f   :  { %v5756_v25 = vmul.f32 1.442695, %v5751_v0  ;;  %6885 = vpow2.f32 %v5762_v51 }
0x2340   :  { %6887 = vpow2.f32 %v5758_v17 }
0x2341   :  { %6889 = vpow2.f32 %v5756_v25 }
0x2342   :  { %6891 = vpow2.f32 %v5760_v60 }
0x2343   :  { %6893 = vpow2.f32 %v5764_v40 }
0x2349   :  { %v6886_v21 = vpop.eup %6885 }
0x234a   :  { %v6888_v8 = vpop.eup %6887  ;;  %v5769_v13 = vmul.f32 0.1, %v6886_v21 }
0x234b   :  { %v6890_v2 = vpop.eup %6889  ;;  %v5767_v27 = vmul.f32 0.1, %v6888_v8 }
0x234c   :  { %v6892_v34 = vpop.eup %6891  ;;  %v5766_v12 = vmul.f32 0.1, %v6890_v2  ;;  %v5774_v48 = vsub.f32 0.1, %v5769_v13 }
0x234d   :  { %v5768_v56 = vmul.f32 0.1, %v6892_v34  ;;  %v6894_v49 = vpop.eup %6893  ;;  %v5772_v20 = vsub.f32 0.1, %v5767_v27  ;;  %v6776_v27 = vld [vmem:[#allocation2 + $0x58] sm:$0xff]  }
0x234e   :  { %v5771_v61 = vsub.f32 0.1, %v5766_v12  ;;  %v5770_v28 = vmul.f32 0.1, %v6894_v49 }
0x234f   :  { %v5773_v46 = vsub.f32 0.1, %v5768_v56 }
0x2350   :  { %5778 = vperm.xlu0 %6649, %v5771_v61   ;;  %v5775_v16 = vsub.f32 0.1, %v5770_v28 }
0x2351   :  { %5788 = vperm.xlu1 %6650, %v5773_v46   ;;  %v6775_v46 = vld [vmem:[#allocation2 + $0x50] sm:$0xff]  }
0x2352   :  { %6633 = vmatprep.subr.bf16.mxu0 %v6775_v46 }
0x2353   :  { %6634 = vmatpush3.bf16.msra.mxu0 %v6775_v46 }
0x2354   :  { %5793 = vperm.xlu0 %6649, %v5774_v48   ;;  %6635 = vmatprep.subr.bf16.mxu0 %v6776_v27 }
0x2355   :  { %5783 = vperm.xlu1 %6650, %v5772_v20  }
0x2357   :  { %6636 = vmatpush3.bf16.msra.mxu0 %v6776_v27 }
0x2359   :  { %5798 = vperm.xlu1 %6650, %v5775_v16  }
0x23c8   :  { %v6615_v24 = vpop.f32.mrb[60].mxu0 }
0x23c9   :  { %v5420_v11 = vadd.f32 %v6615_v24, %v7185_v22  ;;  %v5411_v44 = vpop.f32.mrb[61].mxu0 }
0x23ca   :  { %v5412_v38 = vadd.f32 %v5411_v44, %v7185_v22  ;;  %v6616_v59 = vpop.f32.mrb[62].mxu0 }
0x23cb   :  { %v5423_v45 = vadd.f32 %v6616_v59, %v7185_v22  ;;  %v5414_v31 = vpop.f32.mrb[63].mxu0  ;;  %v5428_v37 = vmax.f32 %v5420_v11, 0.0 }
0x23cc   :  { %v5415_v47 = vadd.f32 %v5414_v31, %v7185_v22  ;;  %v5426_v4 = vmax.f32 %v5412_v38, 0.0 }
0x23cd   :  { %v5429_v52 = vmax.f32 %v5423_v45, 0.0 }
0x23ce   :  { %v5427_v18 = vmax.f32 %v5415_v47, 0.0 }
0x23cf   :  { %v5431_v10 = vpack.c.bf16 %v5429_v52, %v5428_v37  ;;  %v5779_v53 = vpop.permute.xlu0 %5778 }
0x23d0   :  { %v5430_v55 = vpack.c.bf16 %v5427_v18, %v5426_v4  ;;  %v5789_v15 = vpop.permute.xlu1 %5788  ;;  %v5806_v42 = vmul.f32 %v5779_v53, %v8935_v33  ;;  %v5801_v56 = vmul.f32 %v5779_v53, %v8966_v7 }
0x23d1   :  { %v5808_v1 = vmul.f32 %v5789_v15, %v8949_v9  ;;  %v5803_v25 = vmul.f32 %v5789_v15, %v8974_v50 }
0x23d2   :  { %6625 = vmatprep.mubr.msk.bf16.mxu1 %vm381_vm4, %v5430_v55  ;;  %v5811_v17 = vrot.slane %v5806_v42, 7 }
0x23d3   :  { %6626 = vmatmul.mubr.msk.bf16.vlgmr.msra.gmra.mrb[60].mxu1 %vm381_vm4, %v5431_v10  ;;  %v9024_v5 = vpop.permute.xlu0 %5793  ;;  %v5813_v51 = vrot.slane %v5808_v1, 7 }
0x23d4   :  { %v5784_v35 = vpop.permute.xlu1 %5783  ;;  %v9028_v22 = vmul.f32 %v9024_v5, %v8954_v43 }
0x23d5   :  { %v5807_v0 = vmul.f32 %v5784_v35, %v8940_v58  ;;  %v5802_v40 = vmul.f32 %v5784_v35, %v8978_v23 }
0x23d6   :  { %v5814_v36 = vrot.slane %v9028_v22, 7 }
0x23d7   :  { %v5812_v60 = vrot.slane %v5807_v0, 7 }
0x23d8   :  { %v9038_v21 = vsel %vm856_vm10, %v5813_v51, %v5814_v36  ;;  %v9040_v8 = vpop.permute.xlu1 %5798 }
0x23d9   :  { %v5818_v2 = vsel %vm856_vm10, %v5812_v60, %v5813_v51  ;;  %v5819_v34 = vsel %vm856_vm10, %v5811_v17, %v5812_v60  ;;  %v9050_v50 = vmul.f32 %v9040_v8, %v8930_v6 }
0x23da   :  { %v9046_v12 = vadd.f32 %v5819_v34, %v5802_v40  ;;  %v9052_v23 = vadd.f32 %v5818_v2, %v5803_v25 }
0x23db   :  { %v5815_v19 = vrot.slane %v9050_v50, 7 }
0x23dd   :  { %v5820_v61 = vsel %vm856_vm10, %v5815_v19, %v5811_v17 }
0x23de   :  { %v9060_v13 = vadd.f32 %v5820_v61, %v5801_v56 }
0x24a6   :  { %v6627_v49 = vpop.f32.mrb[60].mxu1 }
0x24a7   :  { %v5513_v39 = vadd.f32 %v6627_v49, %v7198_v62  ;;  %v5504_v48 = vpop.f32.mrb[61].mxu1 }
0x24a8   :  { %v5505_v20 = vadd.f32 %v5504_v48, %v7198_v62  ;;  %v6628_v7 = vpop.f32.mrb[62].mxu1 }
0x24a9   :  { %v5516_v28 = vadd.f32 %v6628_v7, %v7198_v62  ;;  %v5507_v16 = vpop.f32.mrb[63].mxu1  ;;  %v5521_v29 = vmax.f32 %v5513_v39, 0.0 }
0x24aa   :  { %v5508_v63 = vadd.f32 %v5507_v16, %v7198_v62  ;;  %v5519_v11 = vmax.f32 %v5505_v20, 0.0 }
0x24ab   :  { %v5522_v24 = vmax.f32 %v5516_v28, 0.0 }
0x24ac   :  { %v5520_v44 = vmax.f32 %v5508_v63, 0.0 }
0x24ad   :  { %v5524_v38 = vpack.c.bf16 %v5522_v24, %v5521_v29 }
0x24ae   :  { %v5523_v59 = vpack.c.bf16 %v5520_v44, %v5519_v11 }
0x24b0   :  { %6637 = vmatprep.mubr.msk.bf16.mxu0 %vm381_vm4, %v5523_v59 }
0x24b1   :  { %6638 = vmatmul.mubr.msk.bf16.vlgmr.msra.gmra.mrb[64].mxu0 %vm381_vm4, %v5524_v38 }
0x2584   :  { %v6639_v45 = vpop.f32.mrb[64].mxu0 }
0x2585   :  { %v5597_v31 = vpop.f32.mrb[65].mxu0  ;;  %v5606_v47 = vadd.f32 %v6639_v45, %v7210_v14 }
0x2586   :  { %v5598_v37 = vadd.f32 %v5597_v31, %v7210_v14  ;;  %v6640_v52 = vpop.f32.mrb[66].mxu0 }
0x2587   :  { %v5600_v4 = vpop.f32.mrb[67].mxu0  ;;  %v5609_v62 = vadd.f32 %v6640_v52, %v7210_v14  ;;  %v5628_v53 = vmul.f32 %v5606_v47, %v5606_v47  ;;  %v5615_v35 = vsel %vm381_vm4, %v5606_v47, 0.0 }
0x2588   :  { %v5626_v18 = vmul.f32 %v5598_v37, %v5598_v37  ;;  %v5601_v10 = vadd.f32 %v5600_v4, %v7210_v14  ;;  %v5612_v55 = vsel %vm381_vm4, %v5598_v37, 0.0 }
0x2589   :  { %v5629_v51 = vmul.f32 %v5609_v62, %v5609_v62  ;;  %v5633_v40 = vsel %vm381_vm4, %v5628_v53, 0.0  ;;  %v5617_v14 = vsel %vm381_vm4, %v5609_v62, 0.0 }
0x258a   :  { %v5613_v15 = vsel %vm381_vm4, %v5601_v10, 0.0  ;;  %v5627_v1 = vmul.f32 %v5601_v10, %v5601_v10  ;;  %v5630_v0 = vsel %vm381_vm4, %v5626_v18, 0.0  ;;  %v5816_v18 = vsel %vm856_vm10, %v5814_v36, %v5815_v19 }
0x258b   :  { %v5614_v42 = vadd.f32 %v5613_v15, %v5612_v55  ;;  %v5635_v56 = vsel %vm381_vm4, %v5629_v51, 0.0  ;;  %v5805_v15 = vmul.f32 %v9040_v8, %v8992_v57  ;;  %v5804_v51 = vmul.f32 %v9024_v5, %v8988_v30 }
0x258c   :  { %v5631_v17 = vsel %vm381_vm4, %v5627_v1, 0.0  ;;  %v5830_v36 = vmul.f32 0.7, %v8930_v6  ;;  %v5828_v19 = vmul.f32 0.7, %v8949_v9 }
0x258d   :  { %v5616_v60 = vadd.f32 %v5615_v35, %v5614_v42  ;;  %v5632_v25 = vadd.f32 %v5631_v17, %v5630_v0  ;;  %v5825_v17 = vadd.f32 %v5816_v18, %v5805_v15  ;;  %v5824_v26 = vadd.f32 %v9038_v21, %v5804_v51 }
0x258e   :  { %v5829_v30 = vmul.f32 0.7, %v8954_v43  ;;  %v5826_v43 = vmul.f32 0.7, %v8935_v33 }
0x258f   :  { %v5618_v2 = vadd.f32 %v5617_v14, %v5616_v60  ;;  %v5634_v34 = vadd.f32 %v5633_v40, %v5632_v25  ;;  %v5835_v8 = vadd.f32 %v5830_v36, %v5825_v17 }
0x2590   :  { %v5834_v21 = vadd.f32 %v5829_v30, %v5824_v26 }
0x2591   :  { %v5619_v61 = vrot.slane %v5618_v2, 4  ;;  %v5636_v46 = vadd.f32 %v5635_v56, %v5634_v34 }
0x2593   :  { %v5620_v27 = vadd.f32 %v5619_v61, %v5618_v2  ;;  %v5637_v49 = vrot.slane %v5636_v46, 4 }
0x2595   :  { %v5621_v39 = vrot.slane %v5620_v27, 2  ;;  %v5638_v48 = vadd.f32 %v5637_v49, %v5636_v46 }
0x2597   :  { %v5622_v20 = vadd.f32 %v5621_v39, %v5620_v27  ;;  %v5639_v7 = vrot.slane %v5638_v48, 2 }
0x2599   :  { %v5623_v28 = vrot.slane %v5622_v20, 1  ;;  %v5640_v16 = vadd.f32 %v5639_v7, %v5638_v48 }
0x259b   :  { %v5624_v63 = vadd.f32 %v5623_v28, %v5622_v20  ;;  %v5641_v29 = vrot.slane %v5640_v16, 1 }
0x259d   :  { %v5625_v24 = vmul.f32 0.03125, %v5624_v63  ;;  %v5642_v11 = vadd.f32 %v5641_v29, %v5640_v16 }
0x259f   :  { %v5643_v44 = vmul.f32 0.03125, %v5642_v11  ;;  %v5644_v38 = vmul.f32 %v5625_v24, %v5625_v24 }
0x25a1   :  { %v5645_v59 = vsub.f32 %v5643_v44, %v5644_v38 }
0x25a3   :  { %v5646_v45 = vmax.f32 %v5645_v59, 0.0 }
0x25a5   :  { %v5647_v31 = vadd.f32 1e-05, %v5646_v45 }
0x25a7   :  { %6895 = vrsqrt.f32 %v5647_v31 }
0x25b1   :  { %v6896_v52 = vpop.eup %6895 }
0x25b2   :  { %v5649_v4 = vmul.f32 %v8877_v3, %v6896_v52 }
0x25b4   :  { %v5653_v53 = vrot.slane %v5649_v4, %v7267_v41  ;;  %v5658_v55 = vmul.f32 %v5649_v4, %v5625_v24  ;;  %v5827_v41 = vmul.f32 0.7, %v8940_v58 }
0x25b6   :  { %v5655_v1 = vmul.f32 %v5653_v53, %v5601_v10  ;;  %v5660_v42 = vrot.slane %v5658_v55, 7  ;;  %v5654_v35 = vmul.f32 %v5653_v53, %v5598_v37  ;;  %v5656_v0 = vmul.f32 %v5653_v53, %v5606_v47 }
0x25b7   :  { %v5657_v50 = vmul.f32 %v5653_v53, %v5609_v62  ;;  %v5832_v47 = vadd.f32 %v5827_v41, %v9046_v12  ;;  %v5833_v37 = vadd.f32 %v5828_v19, %v9052_v23  ;;  %v5831_v12 = vadd.f32 %v5826_v43, %v9060_v13 }
0x25b8   :  { %v5662_v22 = vsub.f32 %v8877_v3, %v5660_v42 }
0x25b9   :  { %v5836_v23 = vadd.f32 %v5831_v12, %v7319_v32 }
0x25ba   :  { %v5666_v57 = vrot.slane %v5662_v22, %v7281_v54 }
0x25bc   :  { %v5668_v5 = vadd.f32 %v5666_v57, %v5655_v1  ;;  %v5667_v62 = vadd.f32 %v5666_v57, %v5654_v35  ;;  %v5669_v3 = vadd.f32 %v5666_v57, %v5656_v0  ;;  %v5670_v10 = vadd.f32 %v5666_v57, %v5657_v50 }
0x25be   :  { %5838 = vrot.lane.b32.xlu0 %v5667_v62, %s6937_s1  ;;  %5849 = vrot.lane.b32.xlu1 %v5668_v5, %s6937_s1  ;;  %v5864_v6 = vadd.f32 %v5835_v8, %v5670_v10  ;;  %v5843_v58 = vadd.f32 %v5832_v47, %v5667_v62  ;;  %v5844_v9 = vadd.f32 %v5833_v37, %v5668_v5 }
0x25bf   :  { %v5845_v54 = vadd.f32 %v5834_v21, %v5669_v3 }
0x25c0   :  { %5865 = vst.msk [vmem:[%s9134_s6 + $0x20] sm:$0xff] %vm132_vm1, %v5864_v6 }
0x25c2   :  { %5851 = vrot.lane.b32.xlu0 %v5669_v3, %s6937_s1  ;;  %5853 = vrot.lane.b32.xlu1 %v5670_v10, %s6937_s1 }
0x2630   :  { %v5839_v60 = vpop.permute.xlu0 %5838  ;;  %v5850_v25 = vpop.permute.xlu1 %5849 }
0x2631   :  { %v5841_v40 = vadd.f32 %v5839_v60, %v5836_v23  ;;  %v5858_v14 = vadd.f32 %v5850_v25, %v5843_v58 }
0x2633   :  { %5842 = vst.msk [vmem:[%s9134_s6] sm:$0xff] %vm132_vm1, %v5841_v40  ;;  %5861 = vst.msk [vmem:[%s9134_s6 + $0x8] sm:$0xff] %vm132_vm1, %v5858_v14 }
0x2634   :  { %v5852_v2 = vpop.permute.xlu0 %5851  ;;  %v5854_v33 = vpop.permute.xlu1 %5853 }
0x2635   :  { %v5859_v34 = vadd.f32 %v5852_v2, %v5844_v9  ;;  %v5860_v13 = vadd.f32 %v5854_v33, %v5845_v54 }
0x2637   :  { %5862 = vst.msk [vmem:[%s9134_s6 + $0x10] sm:$0xff] %vm132_vm1, %v5859_v34  ;;  %5863 = vst.msk [vmem:[%s9134_s6 + $0x18] sm:$0xff] %vm132_vm1, %v5860_v13 }
0x2638   :  { %5870 = vsyncpa [#allocation3], 1 }

</bundles_post_ra>
